<compile_context>
chip_gen: v7x
topology: tpu7x:2x2x1
jax: 0.10.0
libtpu: 0.0.40
codegen_flags: <defaults>
</compile_context>

<pallas_src>
import functools
import math

import jax
import jax.numpy as jnp
from jax import lax
from jax.experimental import pallas as pl
from jax.experimental.pallas import tpu as pltpu


_VMEM_LIMIT = 32 * 1024 * 1024


def _fs1(shape):
    """Full-array BlockSpec for a grid=(1,) kernel."""
    nd = len(shape)
    return pl.BlockSpec(tuple(shape), lambda i, _nd=nd: (0,) * _nd)


# ---------------------------------------------------------------------------
# In-kernel building blocks (operate on VMEM-resident values, f32 LN/softmax)
# ---------------------------------------------------------------------------

def _layer_norm(z, g, b, eps):
    mu = jnp.mean(z, axis=-1, keepdims=True)
    zc = z - mu
    var = jnp.mean(zc * zc, axis=-1, keepdims=True)
    return zc * lax.rsqrt(var + eps) * g + b


def _heads_attention(q, k, v, num_heads):
    """q: (Sq, E), k/v: (Sk, E) f32.  Per-head softmax attention -> (Sq, E) f32.

    The 1/sqrt(head_dim) scale is folded into the Q projection weights.
    """
    E = q.shape[-1]
    hd = E // num_heads
    outs = []
    for h in range(num_heads):
        sl = slice(h * hd, (h + 1) * hd)
        qh = q[:, sl].astype(jnp.bfloat16)
        kh = k[:, sl].astype(jnp.bfloat16)
        vh = v[:, sl].astype(jnp.bfloat16)
        s = lax.dot_general(qh, kh, (((1,), (1,)), ((), ())),
                            preferred_element_type=jnp.float32)      # (Sq, Sk)
        s = s - jnp.max(s, axis=-1, keepdims=True)
        p = jnp.exp(s)
        p = p * pl.reciprocal(jnp.sum(p, axis=-1, keepdims=True), approx=True)
        outs.append(jnp.dot(p.astype(jnp.bfloat16), vh,
                            preferred_element_type=jnp.float32))      # (Sq, hd)
    return jnp.concatenate(outs, axis=-1)                             # (Sq, E)


def _self_attn_block(x, wqkv, bqkv, wo, bo, g, b, *, num_heads, eps):
    """LayerNorm(x + out_proj(MHA(x, x, x))), all in VMEM.  x: (S, E) f32."""
    E = x.shape[-1]
    qkv = jnp.dot(x.astype(jnp.bfloat16), wqkv,
                  preferred_element_type=jnp.float32) + bqkv          # (S, 3E)
    attn = _heads_attention(qkv[:, :E], qkv[:, E:2 * E], qkv[:, 2 * E:], num_heads)
    proj = jnp.dot(attn.astype(jnp.bfloat16), wo,
                   preferred_element_type=jnp.float32) + bo
    return _layer_norm(x + proj, g, b, eps)


def _cross_attn_block(x, mem, wq, bq, wkv, bkv, wo, bo, g, b, *, num_heads, eps):
    """LayerNorm(x + out_proj(MHA(x, mem, mem))).  x: (St, E), mem: (Sm, E)."""
    E = x.shape[-1]
    q = jnp.dot(x.astype(jnp.bfloat16), wq,
                preferred_element_type=jnp.float32) + bq              # (St, E)
    kv = jnp.dot(mem.astype(jnp.bfloat16), wkv,
                 preferred_element_type=jnp.float32) + bkv            # (Sm, 2E)
    attn = _heads_attention(q, kv[:, :E], kv[:, E:], num_heads)
    proj = jnp.dot(attn.astype(jnp.bfloat16), wo,
                   preferred_element_type=jnp.float32) + bo
    return _layer_norm(x + proj, g, b, eps)


def _ffn_block(x, w1, b1, w2, b2, g, b, *, eps):
    """LayerNorm(x + Linear2(ReLU(Linear1(x)))); the 2048-wide h stays in VMEM."""
    h = jnp.dot(x.astype(jnp.bfloat16), w1,
                preferred_element_type=jnp.float32) + b1
    h = jnp.maximum(h, 0.0)
    y = jnp.dot(h.astype(jnp.bfloat16), w2,
                preferred_element_type=jnp.float32) + b2
    return _layer_norm(x + y, g, b, eps)


# ---------------------------------------------------------------------------
# Pallas kernels
# ---------------------------------------------------------------------------

def _linear_kernel(x_ref, w_ref, b_ref, o_ref):
    o_ref[...] = (jnp.dot(x_ref[...].astype(jnp.bfloat16), w_ref[...],
                          preferred_element_type=jnp.float32)
                  + b_ref[...]).astype(o_ref.dtype)


def _encoder_stack_kernel(x_ref, wqkv_ref, bqkv_ref, wo_ref, bo_ref,
                          ln1g_ref, ln1b_ref, w1_ref, b1_ref, w2_ref, b2_ref,
                          ln2g_ref, ln2b_ref, o_ref, carry_ref, *, num_heads, eps):
    """grid=(B, L): one batch element through encoder layer l per step."""
    l = pl.program_id(1)

    @pl.when(l == 0)
    def _():
        carry_ref[...] = x_ref[0]

    x = carry_ref[...]                                                # (S, E) f32
    z = _self_attn_block(x, wqkv_ref[0], bqkv_ref[0], wo_ref[0], bo_ref[0],
                         ln1g_ref[0], ln1b_ref[0], num_heads=num_heads, eps=eps)
    z = _ffn_block(z, w1_ref[0], b1_ref[0], w2_ref[0], b2_ref[0],
                   ln2g_ref[0], ln2b_ref[0], eps=eps)
    carry_ref[...] = z
    o_ref[0] = z.astype(o_ref.dtype)


def _decoder_stack_kernel(x_ref, mem_ref,
                          wqkv_ref, bqkv_ref, wo_ref, bo_ref, ln1g_ref, ln1b_ref,
                          wqc_ref, bqc_ref, wkvc_ref, bkvc_ref, woc_ref, boc_ref,
                          ln2g_ref, ln2b_ref,
                          w1_ref, b1_ref, w2_ref, b2_ref, ln3g_ref, ln3b_ref,
                          wfc_ref, bfc_ref, o_ref, carry_ref, *, num_heads, eps):
    """grid=(B, L): one batch element through decoder layer l; dec_fc fused at the end."""
    l = pl.program_id(1)
    nl = pl.num_programs(1)

    @pl.when(l == 0)
    def _():
        carry_ref[...] = x_ref[0]

    x = carry_ref[...]                                                # (St, E) f32
    mem = mem_ref[0]                                                  # (Sm, E) f32
    z = _self_attn_block(x, wqkv_ref[0], bqkv_ref[0], wo_ref[0], bo_ref[0],
                         ln1g_ref[0], ln1b_ref[0], num_heads=num_heads, eps=eps)
    z = _cross_attn_block(z, mem, wqc_ref[0], bqc_ref[0], wkvc_ref[0], bkvc_ref[0],
                          woc_ref[0], boc_ref[0], ln2g_ref[0], ln2b_ref[0],
                          num_heads=num_heads, eps=eps)
    z = _ffn_block(z, w1_ref[0], b1_ref[0], w2_ref[0], b2_ref[0],
                   ln3g_ref[0], ln3b_ref[0], eps=eps)
    carry_ref[...] = z

    @pl.when(l == nl - 1)
    def _():
        out = jnp.dot(z.astype(jnp.bfloat16), wfc_ref[...],
                      preferred_element_type=jnp.float32) + bfc_ref[...]
        o_ref[0] = out.astype(o_ref.dtype)


def _emb_proj_kernel(x_ref, g_ref, b_ref, w1_ref, b1_ref, w2_ref, b2_ref,
                     wd_ref, bd_ref, emb_ref, dec_ref, *, eps):
    """emb = Linear2(ReLU(Linear1(LN(x)))); dec = dec_embedding(emb).  Dropout = id."""
    z = _layer_norm(x_ref[...], g_ref[...], b_ref[...], eps)
    h = jnp.dot(z.astype(jnp.bfloat16), w1_ref[...],
                preferred_element_type=jnp.float32) + b1_ref[...]
    h = jnp.maximum(h, 0.0)
    emb = jnp.dot(h.astype(jnp.bfloat16), w2_ref[...],
                  preferred_element_type=jnp.float32) + b2_ref[...]
    emb_ref[...] = emb.astype(emb_ref.dtype)
    dec_ref[...] = (jnp.dot(emb.astype(jnp.bfloat16), wd_ref[...],
                            preferred_element_type=jnp.float32)
                    + bd_ref[...]).astype(dec_ref.dtype)


# ---------------------------------------------------------------------------
# pallas_call wrappers
# ---------------------------------------------------------------------------

def linear(x2d, wt, b):
    M, K = x2d.shape
    N = wt.shape[1]
    return pl.pallas_call(
        _linear_kernel,
        out_shape=jax.ShapeDtypeStruct((M, N), jnp.float32),
        grid=(1,),
        in_specs=[_fs1((M, K)), _fs1((K, N)), _fs1((1, N))],
        out_specs=_fs1((M, N)),
        compiler_params=pltpu.CompilerParams(
            dimension_semantics=("arbitrary",), vmem_limit_bytes=_VMEM_LIMIT),
    )(x2d, wt, b)


def _layer_spec(arr):
    nd = arr.ndim
    return pl.BlockSpec((1,) + tuple(arr.shape[1:]),
                        lambda b, l, _nd=nd: (l,) + (0,) * (_nd - 1))


def encoder_stack(x, layers, num_heads, eps=1e-5):
    """x: (B, S, E) f32; layers: dict of (L, ...)-stacked per-layer params."""
    B, S, E = x.shape
    L = layers["wqkv"].shape[0]
    names = ["wqkv", "bqkv", "wo", "bo", "ln1_g", "ln1_b",
             "w1", "b1", "w2", "b2", "ln2_g", "ln2_b"]
    ins = [layers[n] for n in names]
    act_spec = pl.BlockSpec((1, S, E), lambda b, l: (b, 0, 0))
    return pl.pallas_call(
        functools.partial(_encoder_stack_kernel, num_heads=num_heads, eps=eps),
        out_shape=jax.ShapeDtypeStruct((B, S, E), jnp.float32),
        grid=(B, L),
        in_specs=[act_spec] + [_layer_spec(a) for a in ins],
        out_specs=act_spec,
        scratch_shapes=[pltpu.VMEM((S, E), jnp.float32)],
        compiler_params=pltpu.CompilerParams(
            dimension_semantics=("parallel", "arbitrary"),
            vmem_limit_bytes=_VMEM_LIMIT),
    )(x, *ins)


def decoder_stack(tgt, memory, layers, wfc, bfc, num_heads, eps=1e-5):
    """tgt: (B, St, E); memory: (B, Sm, E).  Returns dec_fc output (B, St, Npad)."""
    B, St, E = tgt.shape
    Sm = memory.shape[1]
    L = layers["wqkv"].shape[0]
    N = wfc.shape[1]
    names = ["wqkv", "bqkv", "wo", "bo", "ln1_g", "ln1_b",
             "wq_c", "bq_c", "wkv_c", "bkv_c", "wo_c", "bo_c", "ln2_g", "ln2_b",
             "w1", "b1", "w2", "b2", "ln3_g", "ln3_b"]
    lw = [layers[n] for n in names]
    in_specs = ([pl.BlockSpec((1, St, E), lambda b, l: (b, 0, 0)),
                 pl.BlockSpec((1, Sm, E), lambda b, l: (b, 0, 0))]
                + [_layer_spec(a) for a in lw]
                + [pl.BlockSpec(tuple(wfc.shape), lambda b, l: (0, 0)),
                   pl.BlockSpec(tuple(bfc.shape), lambda b, l: (0, 0))])
    return pl.pallas_call(
        functools.partial(_decoder_stack_kernel, num_heads=num_heads, eps=eps),
        out_shape=jax.ShapeDtypeStruct((B, St, N), jnp.float32),
        grid=(B, L),
        in_specs=in_specs,
        out_specs=pl.BlockSpec((1, St, N), lambda b, l: (b, 0, 0)),
        scratch_shapes=[pltpu.VMEM((St, E), jnp.float32)],
        compiler_params=pltpu.CompilerParams(
            dimension_semantics=("parallel", "arbitrary"),
            vmem_limit_bytes=_VMEM_LIMIT),
    )(tgt, memory, *lw, wfc, bfc)


def emb_proj_and_dec_embed(cls_out, p, eps=1e-5):
    """cls_out: (B, E) -> (emb (B, E), dec_embedding(emb) (B, E)) in one kernel."""
    B, E = cls_out.shape
    args = (cls_out, p["emb_proj_ln_g"], p["emb_proj_ln_b"],
            p["emb_proj_w1"], p["emb_proj_b1"],
            p["emb_proj_w2"], p["emb_proj_b2"],
            p["dec_embedding_w"], p["dec_embedding_b"])
    return pl.pallas_call(
        functools.partial(_emb_proj_kernel, eps=eps),
        out_shape=(jax.ShapeDtypeStruct((B, E), jnp.float32),
                   jax.ShapeDtypeStruct((B, E), jnp.float32)),
        grid=(1,),
        in_specs=[_fs1(a.shape) for a in args],
        out_specs=(_fs1((B, E)), _fs1((B, E))),
        compiler_params=pltpu.CompilerParams(
            dimension_semantics=("arbitrary",), vmem_limit_bytes=_VMEM_LIMIT),
    )(*args)


# ---------------------------------------------------------------------------
# Forward pass (glue in plain JAX, all compute in Pallas)
# ---------------------------------------------------------------------------

def make_positional_encoding(max_len, d_model):
    position = jnp.arange(max_len, dtype=jnp.float32)[:, None]
    div_term = jnp.exp(jnp.arange(0, d_model, 2, dtype=jnp.float32)
                       * (-math.log(10000.0) / d_model))
    pe = jnp.zeros((max_len, d_model), jnp.float32)
    pe = pe.at[:, 0::2].set(jnp.sin(position * div_term))
    pe = pe.at[:, 1::2].set(jnp.cos(position * div_term))
    return pe[:, None, :]  # (max_len, 1, d_model)


def transformer_autoencoder_forward(params, x, num_heads):
    """x: (B, T, input_dim) f32 -> (out (B, T, input_dim), emb (B, E))."""
    B, T, input_dim = x.shape
    E = params["cls_token"].shape[-1]
    k_pad = params["enc_embedding_w"].shape[0]

    # enc_embedding (input zero-padded 120 -> 128; weight rows zero-padded too)
    x2d = x.reshape(B * T, input_dim)
    if k_pad > input_dim:
        x2d = jnp.pad(x2d, ((0, 0), (0, k_pad - input_dim)))
    xe = linear(x2d, params["enc_embedding_w"], params["enc_embedding_b"])
    xe = xe.reshape(B, T, E)

    # prepend CLS token, add positional encoding (batch-major layout throughout)
    cls = jnp.broadcast_to(params["cls_token"], (B, 1, E))
    xs = jnp.concatenate([cls, xe], axis=1)                       # (B, T+1, E)
    xs = xs + params["pe"][: T + 1, 0, :][None, :, :]

    # encoder: one pallas_call, grid=(B, num_layers), activation carried in VMEM
    enc = encoder_stack(xs, params["enc_layers"], num_heads)      # (B, T+1, E)

    # emb_proj on the CLS output + dec_embedding, fused in one kernel
    emb, dec_row = emb_proj_and_dec_embed(enc[:, 0, :], params)   # (B, E), (B, E)

    # decoder input: dec_embedding(emb) repeated T times
    dec_in = jnp.broadcast_to(dec_row[:, None, :], (B, T, E))

    # decoder + dec_fc: one pallas_call, grid=(B, num_layers)
    out_pad = decoder_stack(dec_in, enc, params["dec_layers"],
                            params["dec_fc_w"], params["dec_fc_b"], num_heads)
    out = out_pad[:, :, :input_dim]                               # (B, T, input_dim)
    return out, emb


# ---------------------------------------------------------------------------
# Deterministic parameter init (pre-transposed bf16 weights, layer-stacked,
# fused QKV / KV, softmax scale folded into Q, padding for lane-dense tiles)
# ---------------------------------------------------------------------------

def init_params(key, input_dim, emb_dim, num_heads, num_layers,
                ffn_dim=2048, max_len=1024):
    keys = iter(jax.random.split(key, 1024))

    def nk():
        return next(keys)

    hd = emb_dim // num_heads
    q_scale = 1.0 / math.sqrt(hd)

    def dense_t(in_d, out_d, pad_in=None, pad_out=None, out_scale=1.0):
        """nn.Linear(in_d, out_d) init, pre-transposed to (K, N), bf16 weight."""
        bound = 1.0 / math.sqrt(in_d)
        w = jax.random.uniform(nk(), (out_d, in_d), jnp.float32, -bound, bound)
        b = jax.random.uniform(nk(), (out_d,), jnp.float32, -bound, bound)
        wt = w.T * out_scale
        b = b * out_scale
        if pad_in is not None and pad_in > in_d:
            wt = jnp.pad(wt, ((0, pad_in - in_d), (0, 0)))
        if pad_out is not None and pad_out > out_d:
            wt = jnp.pad(wt, ((0, 0), (0, pad_out - out_d)))
            b = jnp.pad(b, (0, pad_out - out_d))
        return wt.astype(jnp.bfloat16), b.reshape(1, -1).astype(jnp.float32)

    ones = jnp.ones((1, emb_dim), jnp.float32)
    zeros = jnp.zeros((1, emb_dim), jnp.float32)

    def self_attn_params():
        wq, bq = dense_t(emb_dim, emb_dim, out_scale=q_scale)   # softmax scale folded in
        wk, bk = dense_t(emb_dim, emb_dim)
        wv, bv = dense_t(emb_dim, emb_dim)
        wo, bo = dense_t(emb_dim, emb_dim)
        return {"wqkv": jnp.concatenate([wq, wk, wv], axis=1),
                "bqkv": jnp.concatenate([bq, bk, bv], axis=1),
                "wo": wo, "bo": bo}

    def enc_layer_params():
        p = self_attn_params()
        w1, b1 = dense_t(emb_dim, ffn_dim)
        w2, b2 = dense_t(ffn_dim, emb_dim)
        p.update({"w1": w1, "b1": b1, "w2": w2, "b2": b2,
                  "ln1_g": ones, "ln1_b": zeros,
                  "ln2_g": ones, "ln2_b": zeros})
        return p

    def dec_layer_params():
        p = self_attn_params()
        wqc, bqc = dense_t(emb_dim, emb_dim, out_scale=q_scale)
        wkc, bkc = dense_t(emb_dim, emb_dim)
        wvc, bvc = dense_t(emb_dim, emb_dim)
        woc, boc = dense_t(emb_dim, emb_dim)
        w1, b1 = dense_t(emb_dim, ffn_dim)
        w2, b2 = dense_t(ffn_dim, emb_dim)
        p.update({"wq_c": wqc, "bq_c": bqc,
                  "wkv_c": jnp.concatenate([wkc, wvc], axis=1),
                  "bkv_c": jnp.concatenate([bkc, bvc], axis=1),
                  "wo_c": woc, "bo_c": boc,
                  "w1": w1, "b1": b1, "w2": w2, "b2": b2,
                  "ln1_g": ones, "ln1_b": zeros,
                  "ln2_g": ones, "ln2_b": zeros,
                  "ln3_g": ones, "ln3_b": zeros})
        return p

    def stack_layers(layer_dicts):
        return jax.tree_util.tree_map(lambda *xs: jnp.stack(xs, axis=0), *layer_dicts)

    k_pad = ((input_dim + 127) // 128) * 128
    enc_w, enc_b = dense_t(input_dim, emb_dim, pad_in=k_pad)
    p1w, p1b = dense_t(emb_dim, emb_dim)
    p2w, p2b = dense_t(emb_dim, emb_dim)
    dec_emb_w, dec_emb_b = dense_t(emb_dim, emb_dim)
    n_pad = ((input_dim + 127) // 128) * 128
    fc_w, fc_b = dense_t(emb_dim, input_dim, pad_out=n_pad)

    return {
        "cls_token": jax.random.normal(nk(), (1, 1, emb_dim), jnp.float32),
        "enc_embedding_w": enc_w, "enc_embedding_b": enc_b,
        "pe": make_positional_encoding(max_len, emb_dim),
        "enc_layers": stack_layers([enc_layer_params() for _ in range(num_layers)]),
        "emb_proj_ln_g": ones, "emb_proj_ln_b": zeros,
        "emb_proj_w1": p1w, "emb_proj_b1": p1b,
        "emb_proj_w2": p2w, "emb_proj_b2": p2b,
        "dec_embedding_w": dec_emb_w, "dec_embedding_b": dec_emb_b,
        "dec_layers": stack_layers([dec_layer_params() for _ in range(num_layers)]),
        "dec_fc_w": fc_w, "dec_fc_b": fc_b,
    }


# ---------------------------------------------------------------------------
# Main
# ---------------------------------------------------------------------------

if __name__ == "__main__":
    INPUT_DIM = 120
    EMB_DIM = 128
    NUM_HEADS = 4
    NUM_LAYERS = 4
    FFN_DIM = 2048
    B, T = 2, 8

    root = jax.random.PRNGKey(0)
    pkey, xkey = jax.random.split(root)
    params = init_params(pkey, INPUT_DIM, EMB_DIM, NUM_HEADS, NUM_LAYERS,
                         ffn_dim=FFN_DIM)
    x = jax.random.normal(xkey, (B, T, INPUT_DIM), jnp.float32)

    fwd = jax.jit(lambda inp: transformer_autoencoder_forward(params, inp, NUM_HEADS))
    out, emb = fwd(x)
    jax.block_until_ready(out)
    jax.block_until_ready(emb)

    assert out.shape == (B, T, INPUT_DIM), out.shape
    assert emb.shape == (B, EMB_DIM), emb.shape
    assert jnp.all(jnp.isfinite(out)) and jnp.all(jnp.isfinite(emb))
    print("KERNEL_OK")
</pallas_src>

<mosaic_0001>
module attributes {stable_mosaic.version = 11 : i64} {
  func.func @_linear_kernel(%arg0: i32, %arg1: memref<16x128xf32, #tpu.memory_space<vmem>>, %arg2: memref<128x128xbf16, #tpu.memory_space<vmem>>, %arg3: memref<1x128xf32, #tpu.memory_space<vmem>>, %arg4: memref<16x128xf32, #tpu.memory_space<vmem>>) attributes {dimension_semantics = [#tpu.dimension_semantics<arbitrary>], iteration_bounds = array<i64: 1>, scalar_prefetch = 0 : i64, scratch_operands = 0 : i64, tpu.core_type = #tpu.core_type<tc>, window_params = [{pipeline_mode = #tpu.pipeline_mode<synchronous>, transform_indices = @transform_0, window_bounds = array<i64: 16, 128>}, {pipeline_mode = #tpu.pipeline_mode<synchronous>, transform_indices = @transform_1, window_bounds = array<i64: 128, 128>}, {pipeline_mode = #tpu.pipeline_mode<synchronous>, transform_indices = @transform_2, window_bounds = array<i64: 1, 128>}, {pipeline_mode = #tpu.pipeline_mode<synchronous>, transform_indices = @transform_3, window_bounds = array<i64: 16, 128>}]} {
    %c0 = arith.constant 0 : index
    %c0_0 = arith.constant 0 : index
    %0 = vector.load %arg1[%c0, %c0_0] : memref<16x128xf32, #tpu.memory_space<vmem>>, vector<16x128xf32>
    %1 = arith.truncf %0 : vector<16x128xf32> to vector<16x128xbf16>
    %c0_1 = arith.constant 0 : index
    %c0_2 = arith.constant 0 : index
    %2 = vector.load %arg2[%c0_1, %c0_2] : memref<128x128xbf16, #tpu.memory_space<vmem>>, vector<128x128xbf16>
    %cst = arith.constant dense<0.000000e+00> : vector<16x128xf32>
    %3 = tpu.matmul %1, %2, %cst {dimension_numbers = #tpu.dot_dimension_numbers<[1], [0], [0], [1], [0, 0, 1, 1], [], []>} : vector<16x128xbf16>, vector<128x128xbf16>, vector<16x128xf32> -> vector<16x128xf32>
    %c0_3 = arith.constant 0 : index
    %c0_4 = arith.constant 0 : index
    %4 = vector.load %arg3[%c0_3, %c0_4] : memref<1x128xf32, #tpu.memory_space<vmem>>, vector<1x128xf32>
    %5 = vector.broadcast %4 : vector<1x128xf32> to vector<16x128xf32>
    %6 = arith.addf %3, %5 : vector<16x128xf32>
    %c0_5 = arith.constant 0 : index
    %c0_6 = arith.constant 0 : index
    %7 = vector.load %arg4[%c0_5, %c0_6] : memref<16x128xf32, #tpu.memory_space<vmem>>, vector<16x128xf32>
    tpu.vector_store %arg4[%c0_5, %c0_6], %6 {strides = array<i32>} : memref<16x128xf32, #tpu.memory_space<vmem>>, vector<16x128xf32>,
    return
  }
  func.func @transform_0(%arg0: i32) -> (i32, i32) {
    %c0_i32 = arith.constant 0 : i32
    %c0_i32_0 = arith.constant 0 : i32
    %c0_i32_1 = arith.constant 0 : i32
    return %c0_i32, %c0_i32_0 : i32, i32
  }
  func.func @transform_1(%arg0: i32) -> (i32, i32) {
    %c0_i32 = arith.constant 0 : i32
    %c0_i32_0 = arith.constant 0 : i32
    %c0_i32_1 = arith.constant 0 : i32
    return %c0_i32, %c0_i32_0 : i32, i32
  }
  func.func @transform_2(%arg0: i32) -> (i32, i32) {
    %c0_i32 = arith.constant 0 : i32
    %c0_i32_0 = arith.constant 0 : i32
    %c0_i32_1 = arith.constant 0 : i32
    return %c0_i32, %c0_i32_0 : i32, i32
  }
  func.func @transform_3(%arg0: i32) -> (i32, i32) {
    %c0_i32 = arith.constant 0 : i32
    %c0_i32_0 = arith.constant 0 : i32
    %c0_i32_1 = arith.constant 0 : i32
    return %c0_i32, %c0_i32_0 : i32, i32
  }
}

module attributes {stable_mosaic.version = 11 : i64} {
  func.func @_encoder_stack_kernel(%arg0: i32, %arg1: i32, %arg2: memref<1x9x128xf32, #tpu.memory_space<vmem>>, %arg3: memref<1x128x384xbf16, #tpu.memory_space<vmem>>, %arg4: memref<1x1x384xf32, #tpu.memory_space<vmem>>, %arg5: memref<1x128x128xbf16, #tpu.memory_space<vmem>>, %arg6: memref<1x1x128xf32, #tpu.memory_space<vmem>>, %arg7: memref<1x1x128xf32, #tpu.memory_space<vmem>>, %arg8: memref<1x1x128xf32, #tpu.memory_space<vmem>>, %arg9: memref<1x128x2048xbf16, #tpu.memory_space<vmem>>, %arg10: memref<1x1x2048xf32, #tpu.memory_space<vmem>>, %arg11: memref<1x2048x128xbf16, #tpu.memory_space<vmem>>, %arg12: memref<1x1x128xf32, #tpu.memory_space<vmem>>, %arg13: memref<1x1x128xf32, #tpu.memory_space<vmem>>, %arg14: memref<1x1x128xf32, #tpu.memory_space<vmem>>, %arg15: memref<1x9x128xf32, #tpu.memory_space<vmem>>, %arg16: memref<9x128xf32, #tpu.memory_space<vmem>>) attributes {dimension_semantics = [#tpu.dimension_semantics<parallel>, #tpu.dimension_semantics<arbitrary>], iteration_bounds = array<i64: 2, 4>, scalar_prefetch = 0 : i64, scratch_operands = 1 : i64, tpu.core_type = #tpu.core_type<tc>, window_params = [{transform_indices = @transform_0, window_bounds = array<i64: 1, 9, 128>}, {transform_indices = @transform_1, window_bounds = array<i64: 1, 128, 384>}, {transform_indices = @transform_2, window_bounds = array<i64: 1, 1, 384>}, {transform_indices = @transform_3, window_bounds = array<i64: 1, 128, 128>}, {transform_indices = @transform_4, window_bounds = array<i64: 1, 1, 128>}, {transform_indices = @transform_5, window_bounds = array<i64: 1, 1, 128>}, {transform_indices = @transform_6, window_bounds = array<i64: 1, 1, 128>}, {transform_indices = @transform_7, window_bounds = array<i64: 1, 128, 2048>}, {transform_indices = @transform_8, window_bounds = array<i64: 1, 1, 2048>}, {transform_indices = @transform_9, window_bounds = array<i64: 1, 2048, 128>}, {transform_indices = @transform_10, window_bounds = array<i64: 1, 1, 128>}, {transform_indices = @transform_11, window_bounds = array<i64: 1, 1, 128>}, {transform_indices = @transform_12, window_bounds = array<i64: 1, 1, 128>}, {transform_indices = @transform_13, window_bounds = array<i64: 1, 9, 128>}]} {
    %c0_i32 = arith.constant 0 : i32
    %0 = arith.cmpi eq, %arg1, %c0_i32 : i32
    %1 = arith.extui %0 : i1 to i32
    %c0_i32_0 = arith.constant 0 : i32
    %2 = arith.cmpi ne, %1, %c0_i32_0 : i32
    scf.if %2 {
      %c0_73 = arith.constant 0 : index
      %c0_74 = arith.constant 0 : index
      %c0_75 = arith.constant 0 : index
      %172 = vector.load %arg2[%c0_73, %c0_74, %c0_75] : memref<1x9x128xf32, #tpu.memory_space<vmem>>, vector<1x9x128xf32>
      %173 = vector.shape_cast %172 : vector<1x9x128xf32> to vector<9x128xf32>
      %c0_76 = arith.constant 0 : index
      %c0_77 = arith.constant 0 : index
      %174 = vector.load %arg16[%c0_76, %c0_77] : memref<9x128xf32, #tpu.memory_space<vmem>>, vector<9x128xf32>
      tpu.vector_store %arg16[%c0_76, %c0_77], %173 {strides = array<i32>} : memref<9x128xf32, #tpu.memory_space<vmem>>, vector<9x128xf32>,
    } else {
    }
    %c0 = arith.constant 0 : index
    %c0_1 = arith.constant 0 : index
    %3 = vector.load %arg16[%c0, %c0_1] : memref<9x128xf32, #tpu.memory_space<vmem>>, vector<9x128xf32>
    %c0_2 = arith.constant 0 : index
    %c0_3 = arith.constant 0 : index
    %c0_4 = arith.constant 0 : index
    %4 = vector.load %arg3[%c0_2, %c0_3, %c0_4] : memref<1x128x384xbf16, #tpu.memory_space<vmem>>, vector<1x128x384xbf16>
    %5 = vector.shape_cast %4 : vector<1x128x384xbf16> to vector<128x384xbf16>
    %c0_5 = arith.constant 0 : index
    %c0_6 = arith.constant 0 : index
    %c0_7 = arith.constant 0 : index
    %6 = vector.load %arg4[%c0_5, %c0_6, %c0_7] : memref<1x1x384xf32, #tpu.memory_space<vmem>>, vector<1x1x384xf32>
    %7 = vector.shape_cast %6 : vector<1x1x384xf32> to vector<1x384xf32>
    %c0_8 = arith.constant 0 : index
    %c0_9 = arith.constant 0 : index
    %c0_10 = arith.constant 0 : index
    %8 = vector.load %arg5[%c0_8, %c0_9, %c0_10] : memref<1x128x128xbf16, #tpu.memory_space<vmem>>, vector<1x128x128xbf16>
    %9 = vector.shape_cast %8 : vector<1x128x128xbf16> to vector<128x128xbf16>
    %c0_11 = arith.constant 0 : index
    %c0_12 = arith.constant 0 : index
    %c0_13 = arith.constant 0 : index
    %10 = vector.load %arg6[%c0_11, %c0_12, %c0_13] : memref<1x1x128xf32, #tpu.memory_space<vmem>>, vector<1x1x128xf32>
    %11 = vector.shape_cast %10 : vector<1x1x128xf32> to vector<1x128xf32>
    %c0_14 = arith.constant 0 : index
    %c0_15 = arith.constant 0 : index
    %c0_16 = arith.constant 0 : index
    %12 = vector.load %arg7[%c0_14, %c0_15, %c0_16] : memref<1x1x128xf32, #tpu.memory_space<vmem>>, vector<1x1x128xf32>
    %13 = vector.shape_cast %12 : vector<1x1x128xf32> to vector<1x128xf32>
    %c0_17 = arith.constant 0 : index
    %c0_18 = arith.constant 0 : index
    %c0_19 = arith.constant 0 : index
    %14 = vector.load %arg8[%c0_17, %c0_18, %c0_19] : memref<1x1x128xf32, #tpu.memory_space<vmem>>, vector<1x1x128xf32>
    %15 = vector.shape_cast %14 : vector<1x1x128xf32> to vector<1x128xf32>
    %16 = arith.truncf %3 : vector<9x128xf32> to vector<9x128xbf16>
    %cst = arith.constant dense<0.000000e+00> : vector<9x384xf32>
    %17 = tpu.matmul %16, %5, %cst {dimension_numbers = #tpu.dot_dimension_numbers<[1], [0], [0], [1], [0, 0, 1, 1], [], []>} : vector<9x128xbf16>, vector<128x384xbf16>, vector<9x384xf32> -> vector<9x384xf32>
    %18 = vector.broadcast %7 : vector<1x384xf32> to vector<9x384xf32>
    %19 = arith.addf %17, %18 : vector<9x384xf32>
    %20 = vector.extract_strided_slice %19 {offsets = [0, 0], sizes = [9, 128], strides = [1, 1]} : vector<9x384xf32> to vector<9x128xf32>
    %21 = vector.extract_strided_slice %19 {offsets = [0, 128], sizes = [9, 128], strides = [1, 1]} : vector<9x384xf32> to vector<9x128xf32>
    %22 = vector.extract_strided_slice %19 {offsets = [0, 256], sizes = [9, 128], strides = [1, 1]} : vector<9x384xf32> to vector<9x128xf32>
    %23 = vector.extract_strided_slice %20 {offsets = [0, 0], sizes = [9, 32], strides = [1, 1]} : vector<9x128xf32> to vector<9x32xf32>
    %24 = arith.truncf %23 : vector<9x32xf32> to vector<9x32xbf16>
    %25 = vector.extract_strided_slice %21 {offsets = [0, 0], sizes = [9, 32], strides = [1, 1]} : vector<9x128xf32> to vector<9x32xf32>
    %26 = arith.truncf %25 : vector<9x32xf32> to vector<9x32xbf16>
    %27 = vector.extract_strided_slice %22 {offsets = [0, 0], sizes = [9, 32], strides = [1, 1]} : vector<9x128xf32> to vector<9x32xf32>
    %28 = arith.truncf %27 : vector<9x32xf32> to vector<9x32xbf16>
    %cst_20 = arith.constant dense<0.000000e+00> : vector<9x9xf32>
    %29 = tpu.matmul %24, %26, %cst_20 {dimension_numbers = #tpu.dot_dimension_numbers<[1], [1], [0], [0], [0, 0, 1, 0], [], []>} : vector<9x32xbf16>, vector<9x32xbf16>, vector<9x9xf32> -> vector<9x9xf32>
    %cst_21 = arith.constant dense<0xFF800000> : vector<9xf32>
    %30 = vector.multi_reduction <maximumf>, %29, %cst_21 [1] : vector<9x9xf32> to vector<9xf32>
    %31 = vector.shape_cast %30 : vector<9xf32> to vector<9x1xf32>
    %32 = vector.broadcast %31 : vector<9x1xf32> to vector<9x9xf32>
    %33 = arith.subf %29, %32 : vector<9x9xf32>
    %34 = math.exp %33 : vector<9x9xf32>
    %cst_22 = arith.constant dense<0.000000e+00> : vector<9xf32>
    %35 = vector.multi_reduction <add>, %34, %cst_22 [1] : vector<9x9xf32> to vector<9xf32>
    %36 = vector.shape_cast %35 : vector<9xf32> to vector<9x1xf32>
    %37 = tpu.reciprocal %36 {approx = true} : vector<9x1xf32> -> vector<9x1xf32>
    %38 = vector.broadcast %37 : vector<9x1xf32> to vector<9x9xf32>
    %39 = arith.mulf %34, %38 : vector<9x9xf32>
    %40 = arith.truncf %39 : vector<9x9xf32> to vector<9x9xbf16>
    %cst_23 = arith.constant dense<0.000000e+00> : vector<9x32xf32>
    %41 = tpu.matmul %40, %28, %cst_23 {dimension_numbers = #tpu.dot_dimension_numbers<[1], [0], [0], [1], [0, 0, 1, 1], [], []>} : vector<9x9xbf16>, vector<9x32xbf16>, vector<9x32xf32> -> vector<9x32xf32>
    %42 = vector.extract_strided_slice %20 {offsets = [0, 32], sizes = [9, 32], strides = [1, 1]} : vector<9x128xf32> to vector<9x32xf32>
    %43 = arith.truncf %42 : vector<9x32xf32> to vector<9x32xbf16>
    %44 = vector.extract_strided_slice %21 {offsets = [0, 32], sizes = [9, 32], strides = [1, 1]} : vector<9x128xf32> to vector<9x32xf32>
    %45 = arith.truncf %44 : vector<9x32xf32> to vector<9x32xbf16>
    %46 = vector.extract_strided_slice %22 {offsets = [0, 32], sizes = [9, 32], strides = [1, 1]} : vector<9x128xf32> to vector<9x32xf32>
    %47 = arith.truncf %46 : vector<9x32xf32> to vector<9x32xbf16>
    %cst_24 = arith.constant dense<0.000000e+00> : vector<9x9xf32>
    %48 = tpu.matmul %43, %45, %cst_24 {dimension_numbers = #tpu.dot_dimension_numbers<[1], [1], [0], [0], [0, 0, 1, 0], [], []>} : vector<9x32xbf16>, vector<9x32xbf16>, vector<9x9xf32> -> vector<9x9xf32>
    %cst_25 = arith.constant dense<0xFF800000> : vector<9xf32>
    %49 = vector.multi_reduction <maximumf>, %48, %cst_25 [1] : vector<9x9xf32> to vector<9xf32>
    %50 = vector.shape_cast %49 : vector<9xf32> to vector<9x1xf32>
    %51 = vector.broadcast %50 : vector<9x1xf32> to vector<9x9xf32>
    %52 = arith.subf %48, %51 : vector<9x9xf32>
    %53 = math.exp %52 : vector<9x9xf32>
    %cst_26 = arith.constant dense<0.000000e+00> : vector<9xf32>
    %54 = vector.multi_reduction <add>, %53, %cst_26 [1] : vector<9x9xf32> to vector<9xf32>
    %55 = vector.shape_cast %54 : vector<9xf32> to vector<9x1xf32>
    %56 = tpu.reciprocal %55 {approx = true} : vector<9x1xf32> -> vector<9x1xf32>
    %57 = vector.broadcast %56 : vector<9x1xf32> to vector<9x9xf32>
    %58 = arith.mulf %53, %57 : vector<9x9xf32>
    %59 = arith.truncf %58 : vector<9x9xf32> to vector<9x9xbf16>
    %cst_27 = arith.constant dense<0.000000e+00> : vector<9x32xf32>
    %60 = tpu.matmul %59, %47, %cst_27 {dimension_numbers = #tpu.dot_dimension_numbers<[1], [0], [0], [1], [0, 0, 1, 1], [], []>} : vector<9x9xbf16>, vector<9x32xbf16>, vector<9x32xf32> -> vector<9x32xf32>
    %61 = vector.extract_strided_slice %20 {offsets = [0, 64], sizes = [9, 32], strides = [1, 1]} : vector<9x128xf32> to vector<9x32xf32>
    %62 = arith.truncf %61 : vector<9x32xf32> to vector<9x32xbf16>
    %63 = vector.extract_strided_slice %21 {offsets = [0, 64], sizes = [9, 32], strides = [1, 1]} : vector<9x128xf32> to vector<9x32xf32>
    %64 = arith.truncf %63 : vector<9x32xf32> to vector<9x32xbf16>
    %65 = vector.extract_strided_slice %22 {offsets = [0, 64], sizes = [9, 32], strides = [1, 1]} : vector<9x128xf32> to vector<9x32xf32>
    %66 = arith.truncf %65 : vector<9x32xf32> to vector<9x32xbf16>
    %cst_28 = arith.constant dense<0.000000e+00> : vector<9x9xf32>
    %67 = tpu.matmul %62, %64, %cst_28 {dimension_numbers = #tpu.dot_dimension_numbers<[1], [1], [0], [0], [0, 0, 1, 0], [], []>} : vector<9x32xbf16>, vector<9x32xbf16>, vector<9x9xf32> -> vector<9x9xf32>
    %cst_29 = arith.constant dense<0xFF800000> : vector<9xf32>
    %68 = vector.multi_reduction <maximumf>, %67, %cst_29 [1] : vector<9x9xf32> to vector<9xf32>
    %69 = vector.shape_cast %68 : vector<9xf32> to vector<9x1xf32>
    %70 = vector.broadcast %69 : vector<9x1xf32> to vector<9x9xf32>
    %71 = arith.subf %67, %70 : vector<9x9xf32>
    %72 = math.exp %71 : vector<9x9xf32>
    %cst_30 = arith.constant dense<0.000000e+00> : vector<9xf32>
    %73 = vector.multi_reduction <add>, %72, %cst_30 [1] : vector<9x9xf32> to vector<9xf32>
    %74 = vector.shape_cast %73 : vector<9xf32> to vector<9x1xf32>
    %75 = tpu.reciprocal %74 {approx = true} : vector<9x1xf32> -> vector<9x1xf32>
    %76 = vector.broadcast %75 : vector<9x1xf32> to vector<9x9xf32>
    %77 = arith.mulf %72, %76 : vector<9x9xf32>
    %78 = arith.truncf %77 : vector<9x9xf32> to vector<9x9xbf16>
    %cst_31 = arith.constant dense<0.000000e+00> : vector<9x32xf32>
    %79 = tpu.matmul %78, %66, %cst_31 {dimension_numbers = #tpu.dot_dimension_numbers<[1], [0], [0], [1], [0, 0, 1, 1], [], []>} : vector<9x9xbf16>, vector<9x32xbf16>, vector<9x32xf32> -> vector<9x32xf32>
    %80 = vector.extract_strided_slice %20 {offsets = [0, 96], sizes = [9, 32], strides = [1, 1]} : vector<9x128xf32> to vector<9x32xf32>
    %81 = arith.truncf %80 : vector<9x32xf32> to vector<9x32xbf16>
    %82 = vector.extract_strided_slice %21 {offsets = [0, 96], sizes = [9, 32], strides = [1, 1]} : vector<9x128xf32> to vector<9x32xf32>
    %83 = arith.truncf %82 : vector<9x32xf32> to vector<9x32xbf16>
    %84 = vector.extract_strided_slice %22 {offsets = [0, 96], sizes = [9, 32], strides = [1, 1]} : vector<9x128xf32> to vector<9x32xf32>
    %85 = arith.truncf %84 : vector<9x32xf32> to vector<9x32xbf16>
    %cst_32 = arith.constant dense<0.000000e+00> : vector<9x9xf32>
    %86 = tpu.matmul %81, %83, %cst_32 {dimension_numbers = #tpu.dot_dimension_numbers<[1], [1], [0], [0], [0, 0, 1, 0], [], []>} : vector<9x32xbf16>, vector<9x32xbf16>, vector<9x9xf32> -> vector<9x9xf32>
    %cst_33 = arith.constant dense<0xFF800000> : vector<9xf32>
    %87 = vector.multi_reduction <maximumf>, %86, %cst_33 [1] : vector<9x9xf32> to vector<9xf32>
    %88 = vector.shape_cast %87 : vector<9xf32> to vector<9x1xf32>
    %89 = vector.broadcast %88 : vector<9x1xf32> to vector<9x9xf32>
    %90 = arith.subf %86, %89 : vector<9x9xf32>
    %91 = math.exp %90 : vector<9x9xf32>
    %cst_34 = arith.constant dense<0.000000e+00> : vector<9xf32>
    %92 = vector.multi_reduction <add>, %91, %cst_34 [1] : vector<9x9xf32> to vector<9xf32>
    %93 = vector.shape_cast %92 : vector<9xf32> to vector<9x1xf32>
    %94 = tpu.reciprocal %93 {approx = true} : vector<9x1xf32> -> vector<9x1xf32>
    %95 = vector.broadcast %94 : vector<9x1xf32> to vector<9x9xf32>
    %96 = arith.mulf %91, %95 : vector<9x9xf32>
    %97 = arith.truncf %96 : vector<9x9xf32> to vector<9x9xbf16>
    %cst_35 = arith.constant dense<0.000000e+00> : vector<9x32xf32>
    %98 = tpu.matmul %97, %85, %cst_35 {dimension_numbers = #tpu.dot_dimension_numbers<[1], [0], [0], [1], [0, 0, 1, 1], [], []>} : vector<9x9xbf16>, vector<9x32xbf16>, vector<9x32xf32> -> vector<9x32xf32>
    %99 = tpu.concatenate %41, %60, %79, %98 in 1 : vector<9x32xf32>, vector<9x32xf32>, vector<9x32xf32>, vector<9x32xf32> -> vector<9x128xf32>
    %100 = arith.truncf %99 : vector<9x128xf32> to vector<9x128xbf16>
    %cst_36 = arith.constant dense<0.000000e+00> : vector<9x128xf32>
    %101 = tpu.matmul %100, %9, %cst_36 {dimension_numbers = #tpu.dot_dimension_numbers<[1], [0], [0], [1], [0, 0, 1, 1], [], []>} : vector<9x128xbf16>, vector<128x128xbf16>, vector<9x128xf32> -> vector<9x128xf32>
    %102 = vector.broadcast %11 : vector<1x128xf32> to vector<9x128xf32>
    %103 = arith.addf %101, %102 : vector<9x128xf32>
    %104 = arith.addf %3, %103 : vector<9x128xf32>
    %cst_37 = arith.constant dense<0.000000e+00> : vector<9xf32>
    %105 = vector.multi_reduction <add>, %104, %cst_37 [1] : vector<9x128xf32> to vector<9xf32>
    %106 = vector.shape_cast %105 : vector<9xf32> to vector<9x1xf32>
    %cst_38 = arith.constant 1.280000e+02 : f32
    %107 = vector.broadcast %cst_38 : f32 to vector<9x1xf32>
    %108 = arith.divf %106, %107 : vector<9x1xf32>
    %109 = vector.broadcast %108 : vector<9x1xf32> to vector<9x128xf32>
    %110 = arith.subf %104, %109 : vector<9x128xf32>
    %111 = arith.mulf %110, %110 : vector<9x128xf32>
    %cst_39 = arith.constant dense<0.000000e+00> : vector<9xf32>
    %112 = vector.multi_reduction <add>, %111, %cst_39 [1] : vector<9x128xf32> to vector<9xf32>
    %113 = vector.shape_cast %112 : vector<9xf32> to vector<9x1xf32>
    %cst_40 = arith.constant 1.280000e+02 : f32
    %114 = vector.broadcast %cst_40 : f32 to vector<9x1xf32>
    %115 = arith.divf %113, %114 : vector<9x1xf32>
    %cst_41 = arith.constant 9.99999974E-6 : f32
    %116 = vector.broadcast %cst_41 : f32 to vector<9x1xf32>
    %117 = arith.addf %115, %116 : vector<9x1xf32>
    %118 = math.rsqrt %117 : vector<9x1xf32>
    %119 = vector.broadcast %118 : vector<9x1xf32> to vector<9x128xf32>
    %120 = arith.mulf %110, %119 : vector<9x128xf32>
    %121 = vector.broadcast %13 : vector<1x128xf32> to vector<9x128xf32>
    %122 = arith.mulf %120, %121 : vector<9x128xf32>
    %123 = vector.broadcast %15 : vector<1x128xf32> to vector<9x128xf32>
    %124 = arith.addf %122, %123 : vector<9x128xf32>
    %c0_42 = arith.constant 0 : index
    %c0_43 = arith.constant 0 : index
    %c0_44 = arith.constant 0 : index
    %125 = vector.load %arg9[%c0_42, %c0_43, %c0_44] : memref<1x128x2048xbf16, #tpu.memory_space<vmem>>, vector<1x128x2048xbf16>
    %126 = vector.shape_cast %125 : vector<1x128x2048xbf16> to vector<128x2048xbf16>
    %c0_45 = arith.constant 0 : index
    %c0_46 = arith.constant 0 : index
    %c0_47 = arith.constant 0 : index
    %127 = vector.load %arg10[%c0_45, %c0_46, %c0_47] : memref<1x1x2048xf32, #tpu.memory_space<vmem>>, vector<1x1x2048xf32>
    %128 = vector.shape_cast %127 : vector<1x1x2048xf32> to vector<1x2048xf32>
    %c0_48 = arith.constant 0 : index
    %c0_49 = arith.constant 0 : index
    %c0_50 = arith.constant 0 : index
    %129 = vector.load %arg11[%c0_48, %c0_49, %c0_50] : memref<1x2048x128xbf16, #tpu.memory_space<vmem>>, vector<1x2048x128xbf16>
    %130 = vector.shape_cast %129 : vector<1x2048x128xbf16> to vector<2048x128xbf16>
    %c0_51 = arith.constant 0 : index
    %c0_52 = arith.constant 0 : index
    %c0_53 = arith.constant 0 : index
    %131 = vector.load %arg12[%c0_51, %c0_52, %c0_53] : memref<1x1x128xf32, #tpu.memory_space<vmem>>, vector<1x1x128xf32>
    %132 = vector.shape_cast %131 : vector<1x1x128xf32> to vector<1x128xf32>
    %c0_54 = arith.constant 0 : index
    %c0_55 = arith.constant 0 : index
    %c0_56 = arith.constant 0 : index
    %133 = vector.load %arg13[%c0_54, %c0_55, %c0_56] : memref<1x1x128xf32, #tpu.memory_space<vmem>>, vector<1x1x128xf32>
    %134 = vector.shape_cast %133 : vector<1x1x128xf32> to vector<1x128xf32>
    %c0_57 = arith.constant 0 : index
    %c0_58 = arith.constant 0 : index
    %c0_59 = arith.constant 0 : index
    %135 = vector.load %arg14[%c0_57, %c0_58, %c0_59] : memref<1x1x128xf32, #tpu.memory_space<vmem>>, vector<1x1x128xf32>
    %136 = vector.shape_cast %135 : vector<1x1x128xf32> to vector<1x128xf32>
    %137 = arith.truncf %124 : vector<9x128xf32> to vector<9x128xbf16>
    %cst_60 = arith.constant dense<0.000000e+00> : vector<9x2048xf32>
    %138 = tpu.matmul %137, %126, %cst_60 {dimension_numbers = #tpu.dot_dimension_numbers<[1], [0], [0], [1], [0, 0, 1, 1], [], []>} : vector<9x128xbf16>, vector<128x2048xbf16>, vector<9x2048xf32> -> vector<9x2048xf32>
    %139 = vector.broadcast %128 : vector<1x2048xf32> to vector<9x2048xf32>
    %140 = arith.addf %138, %139 : vector<9x2048xf32>
    %cst_61 = arith.constant 0.000000e+00 : f32
    %141 = vector.broadcast %cst_61 : f32 to vector<9x2048xf32>
    %142 = arith.maximumf %140, %141 : vector<9x2048xf32>
    %143 = arith.truncf %142 : vector<9x2048xf32> to vector<9x2048xbf16>
    %cst_62 = arith.constant dense<0.000000e+00> : vector<9x128xf32>
    %144 = tpu.matmul %143, %130, %cst_62 {dimension_numbers = #tpu.dot_dimension_numbers<[1], [0], [0], [1], [0, 0, 1, 1], [], []>} : vector<9x2048xbf16>, vector<2048x128xbf16>, vector<9x128xf32> -> vector<9x128xf32>
    %145 = vector.broadcast %132 : vector<1x128xf32> to vector<9x128xf32>
    %146 = arith.addf %144, %145 : vector<9x128xf32>
    %147 = arith.addf %124, %146 : vector<9x128xf32>
    %cst_63 = arith.constant dense<0.000000e+00> : vector<9xf32>
    %148 = vector.multi_reduction <add>, %147, %cst_63 [1] : vector<9x128xf32> to vector<9xf32>
    %149 = vector.shape_cast %148 : vector<9xf32> to vector<9x1xf32>
    %cst_64 = arith.constant 1.280000e+02 : f32
    %150 = vector.broadcast %cst_64 : f32 to vector<9x1xf32>
    %151 = arith.divf %149, %150 : vector<9x1xf32>
    %152 = vector.broadcast %151 : vector<9x1xf32> to vector<9x128xf32>
    %153 = arith.subf %147, %152 : vector<9x128xf32>
    %154 = arith.mulf %153, %153 : vector<9x128xf32>
    %cst_65 = arith.constant dense<0.000000e+00> : vector<9xf32>
    %155 = vector.multi_reduction <add>, %154, %cst_65 [1] : vector<9x128xf32> to vector<9xf32>
    %156 = vector.shape_cast %155 : vector<9xf32> to vector<9x1xf32>
    %cst_66 = arith.constant 1.280000e+02 : f32
    %157 = vector.broadcast %cst_66 : f32 to vector<9x1xf32>
    %158 = arith.divf %156, %157 : vector<9x1xf32>
    %cst_67 = arith.constant 9.99999974E-6 : f32
    %159 = vector.broadcast %cst_67 : f32 to vector<9x1xf32>
    %160 = arith.addf %158, %159 : vector<9x1xf32>
    %161 = math.rsqrt %160 : vector<9x1xf32>
    %162 = vector.broadcast %161 : vector<9x1xf32> to vector<9x128xf32>
    %163 = arith.mulf %153, %162 : vector<9x128xf32>
    %164 = vector.broadcast %134 : vector<1x128xf32> to vector<9x128xf32>
    %165 = arith.mulf %163, %164 : vector<9x128xf32>
    %166 = vector.broadcast %136 : vector<1x128xf32> to vector<9x128xf32>
    %167 = arith.addf %165, %166 : vector<9x128xf32>
    %c0_68 = arith.constant 0 : index
    %c0_69 = arith.constant 0 : index
    %168 = vector.load %arg16[%c0_68, %c0_69] : memref<9x128xf32, #tpu.memory_space<vmem>>, vector<9x128xf32>
    tpu.vector_store %arg16[%c0_68, %c0_69], %167 {strides = array<i32>} : memref<9x128xf32, #tpu.memory_space<vmem>>, vector<9x128xf32>,
    %c0_70 = arith.constant 0 : index
    %c0_71 = arith.constant 0 : index
    %c0_72 = arith.constant 0 : index
    %169 = vector.load %arg15[%c0_70, %c0_71, %c0_72] : memref<1x9x128xf32, #tpu.memory_space<vmem>>, vector<1x9x128xf32>
    %170 = vector.shape_cast %169 : vector<1x9x128xf32> to vector<9x128xf32>
    %171 = vector.shape_cast %167 : vector<9x128xf32> to vector<1x9x128xf32>
    tpu.vector_store %arg15[%c0_70, %c0_71, %c0_72], %171 {strides = array<i32>} : memref<1x9x128xf32, #tpu.memory_space<vmem>>, vector<1x9x128xf32>,
    return
  }
  func.func @transform_0(%arg0: i32, %arg1: i32) -> (i32, i32, i32) {
    %c0_i32 = arith.constant 0 : i32
    %c0_i32_0 = arith.constant 0 : i32
    %c0_i32_1 = arith.constant 0 : i32
    return %arg0, %c0_i32, %c0_i32_0 : i32, i32, i32
  }
  func.func @transform_1(%arg0: i32, %arg1: i32) -> (i32, i32, i32) {
    %c0_i32 = arith.constant 0 : i32
    %c0_i32_0 = arith.constant 0 : i32
    %c0_i32_1 = arith.constant 0 : i32
    return %arg1, %c0_i32, %c0_i32_0 : i32, i32, i32
  }
  func.func @transform_2(%arg0: i32, %arg1: i32) -> (i32, i32, i32) {
    %c0_i32 = arith.constant 0 : i32
    %c0_i32_0 = arith.constant 0 : i32
    %c0_i32_1 = arith.constant 0 : i32
    return %arg1, %c0_i32, %c0_i32_0 : i32, i32, i32
  }
  func.func @transform_3(%arg0: i32, %arg1: i32) -> (i32, i32, i32) {
    %c0_i32 = arith.constant 0 : i32
    %c0_i32_0 = arith.constant 0 : i32
    %c0_i32_1 = arith.constant 0 : i32
    return %arg1, %c0_i32, %c0_i32_0 : i32, i32, i32
  }
  func.func @transform_4(%arg0: i32, %arg1: i32) -> (i32, i32, i32) {
    %c0_i32 = arith.constant 0 : i32
    %c0_i32_0 = arith.constant 0 : i32
    %c0_i32_1 = arith.constant 0 : i32
    return %arg1, %c0_i32, %c0_i32_0 : i32, i32, i32
  }
  func.func @transform_5(%arg0: i32, %arg1: i32) -> (i32, i32, i32) {
    %c0_i32 = arith.constant 0 : i32
    %c0_i32_0 = arith.constant 0 : i32
    %c0_i32_1 = arith.constant 0 : i32
    return %arg1, %c0_i32, %c0_i32_0 : i32, i32, i32
  }
  func.func @transform_6(%arg0: i32, %arg1: i32) -> (i32, i32, i32) {
    %c0_i32 = arith.constant 0 : i32
    %c0_i32_0 = arith.constant 0 : i32
    %c0_i32_1 = arith.constant 0 : i32
    return %arg1, %c0_i32, %c0_i32_0 : i32, i32, i32
  }
  func.func @transform_7(%arg0: i32, %arg1: i32) -> (i32, i32, i32) {
    %c0_i32 = arith.constant 0 : i32
    %c0_i32_0 = arith.constant 0 : i32
    %c0_i32_1 = arith.constant 0 : i32
    return %arg1, %c0_i32, %c0_i32_0 : i32, i32, i32
  }
  func.func @transform_8(%arg0: i32, %arg1: i32) -> (i32, i32, i32) {
    %c0_i32 = arith.constant 0 : i32
    %c0_i32_0 = arith.constant 0 : i32
    %c0_i32_1 = arith.constant 0 : i32
    return %arg1, %c0_i32, %c0_i32_0 : i32, i32, i32
  }
  func.func @transform_9(%arg0: i32, %arg1: i32) -> (i32, i32, i32) {
    %c0_i32 = arith.constant 0 : i32
    %c0_i32_0 = arith.constant 0 : i32
    %c0_i32_1 = arith.constant 0 : i32
    return %arg1, %c0_i32, %c0_i32_0 : i32, i32, i32
  }
  func.func @transform_10(%arg0: i32, %arg1: i32) -> (i32, i32, i32) {
    %c0_i32 = arith.constant 0 : i32
    %c0_i32_0 = arith.constant 0 : i32
    %c0_i32_1 = arith.constant 0 : i32
    return %arg1, %c0_i32, %c0_i32_0 : i32, i32, i32
  }
  func.func @transform_11(%arg0: i32, %arg1: i32) -> (i32, i32, i32) {
    %c0_i32 = arith.constant 0 : i32
    %c0_i32_0 = arith.constant 0 : i32
    %c0_i32_1 = arith.constant 0 : i32
    return %arg1, %c0_i32, %c0_i32_0 : i32, i32, i32
  }
  func.func @transform_12(%arg0: i32, %arg1: i32) -> (i32, i32, i32) {
    %c0_i32 = arith.constant 0 : i32
    %c0_i32_0 = arith.constant 0 : i32
    %c0_i32_1 = arith.constant 0 : i32
    return %arg1, %c0_i32, %c0_i32_0 : i32, i32, i32
  }
  func.func @transform_13(%arg0: i32, %arg1: i32) -> (i32, i32, i32) {
    %c0_i32 = arith.constant 0 : i32
    %c0_i32_0 = arith.constant 0 : i32
    %c0_i32_1 = arith.constant 0 : i32
    return %arg0, %c0_i32, %c0_i32_0 : i32, i32, i32
  }
}

module attributes {stable_mosaic.version = 11 : i64} {
  func.func @_emb_proj_kernel(%arg0: i32, %arg1: memref<2x128xf32, #tpu.memory_space<vmem>>, %arg2: memref<1x128xf32, #tpu.memory_space<vmem>>, %arg3: memref<1x128xf32, #tpu.memory_space<vmem>>, %arg4: memref<128x128xbf16, #tpu.memory_space<vmem>>, %arg5: memref<1x128xf32, #tpu.memory_space<vmem>>, %arg6: memref<128x128xbf16, #tpu.memory_space<vmem>>, %arg7: memref<1x128xf32, #tpu.memory_space<vmem>>, %arg8: memref<128x128xbf16, #tpu.memory_space<vmem>>, %arg9: memref<1x128xf32, #tpu.memory_space<vmem>>, %arg10: memref<2x128xf32, #tpu.memory_space<vmem>>, %arg11: memref<2x128xf32, #tpu.memory_space<vmem>>) attributes {dimension_semantics = [#tpu.dimension_semantics<arbitrary>], iteration_bounds = array<i64: 1>, scalar_prefetch = 0 : i64, scratch_operands = 0 : i64, tpu.core_type = #tpu.core_type<tc>, window_params = [{pipeline_mode = #tpu.pipeline_mode<synchronous>, transform_indices = @transform_0, window_bounds = array<i64: 2, 128>}, {pipeline_mode = #tpu.pipeline_mode<synchronous>, transform_indices = @transform_1, window_bounds = array<i64: 1, 128>}, {pipeline_mode = #tpu.pipeline_mode<synchronous>, transform_indices = @transform_2, window_bounds = array<i64: 1, 128>}, {pipeline_mode = #tpu.pipeline_mode<synchronous>, transform_indices = @transform_3, window_bounds = array<i64: 128, 128>}, {pipeline_mode = #tpu.pipeline_mode<synchronous>, transform_indices = @transform_4, window_bounds = array<i64: 1, 128>}, {pipeline_mode = #tpu.pipeline_mode<synchronous>, transform_indices = @transform_5, window_bounds = array<i64: 128, 128>}, {pipeline_mode = #tpu.pipeline_mode<synchronous>, transform_indices = @transform_6, window_bounds = array<i64: 1, 128>}, {pipeline_mode = #tpu.pipeline_mode<synchronous>, transform_indices = @transform_7, window_bounds = array<i64: 128, 128>}, {pipeline_mode = #tpu.pipeline_mode<synchronous>, transform_indices = @transform_8, window_bounds = array<i64: 1, 128>}, {pipeline_mode = #tpu.pipeline_mode<synchronous>, transform_indices = @transform_9, window_bounds = array<i64: 2, 128>}, {pipeline_mode = #tpu.pipeline_mode<synchronous>, transform_indices = @transform_10, window_bounds = array<i64: 2, 128>}]} {
    %c0 = arith.constant 0 : index
    %c0_0 = arith.constant 0 : index
    %0 = vector.load %arg1[%c0, %c0_0] : memref<2x128xf32, #tpu.memory_space<vmem>>, vector<2x128xf32>
    %c0_1 = arith.constant 0 : index
    %c0_2 = arith.constant 0 : index
    %1 = vector.load %arg2[%c0_1, %c0_2] : memref<1x128xf32, #tpu.memory_space<vmem>>, vector<1x128xf32>
    %c0_3 = arith.constant 0 : index
    %c0_4 = arith.constant 0 : index
    %2 = vector.load %arg3[%c0_3, %c0_4] : memref<1x128xf32, #tpu.memory_space<vmem>>, vector<1x128xf32>
    %cst = arith.constant dense<0.000000e+00> : vector<2xf32>
    %3 = vector.multi_reduction <add>, %0, %cst [1] : vector<2x128xf32> to vector<2xf32>
    %4 = vector.shape_cast %3 : vector<2xf32> to vector<2x1xf32>
    %cst_5 = arith.constant 1.280000e+02 : f32
    %5 = vector.broadcast %cst_5 : f32 to vector<2x1xf32>
    %6 = arith.divf %4, %5 : vector<2x1xf32>
    %7 = vector.broadcast %6 : vector<2x1xf32> to vector<2x128xf32>
    %8 = arith.subf %0, %7 : vector<2x128xf32>
    %9 = arith.mulf %8, %8 : vector<2x128xf32>
    %cst_6 = arith.constant dense<0.000000e+00> : vector<2xf32>
    %10 = vector.multi_reduction <add>, %9, %cst_6 [1] : vector<2x128xf32> to vector<2xf32>
    %11 = vector.shape_cast %10 : vector<2xf32> to vector<2x1xf32>
    %cst_7 = arith.constant 1.280000e+02 : f32
    %12 = vector.broadcast %cst_7 : f32 to vector<2x1xf32>
    %13 = arith.divf %11, %12 : vector<2x1xf32>
    %cst_8 = arith.constant 9.99999974E-6 : f32
    %14 = vector.broadcast %cst_8 : f32 to vector<2x1xf32>
    %15 = arith.addf %13, %14 : vector<2x1xf32>
    %16 = math.rsqrt %15 : vector<2x1xf32>
    %17 = vector.broadcast %16 : vector<2x1xf32> to vector<2x128xf32>
    %18 = arith.mulf %8, %17 : vector<2x128xf32>
    %19 = vector.broadcast %1 : vector<1x128xf32> to vector<2x128xf32>
    %20 = arith.mulf %18, %19 : vector<2x128xf32>
    %21 = vector.broadcast %2 : vector<1x128xf32> to vector<2x128xf32>
    %22 = arith.addf %20, %21 : vector<2x128xf32>
    %23 = arith.truncf %22 : vector<2x128xf32> to vector<2x128xbf16>
    %c0_9 = arith.constant 0 : index
    %c0_10 = arith.constant 0 : index
    %24 = vector.load %arg4[%c0_9, %c0_10] : memref<128x128xbf16, #tpu.memory_space<vmem>>, vector<128x128xbf16>
    %cst_11 = arith.constant dense<0.000000e+00> : vector<2x128xf32>
    %25 = tpu.matmul %23, %24, %cst_11 {dimension_numbers = #tpu.dot_dimension_numbers<[1], [0], [0], [1], [0, 0, 1, 1], [], []>} : vector<2x128xbf16>, vector<128x128xbf16>, vector<2x128xf32> -> vector<2x128xf32>
    %c0_12 = arith.constant 0 : index
    %c0_13 = arith.constant 0 : index
    %26 = vector.load %arg5[%c0_12, %c0_13] : memref<1x128xf32, #tpu.memory_space<vmem>>, vector<1x128xf32>
    %27 = vector.broadcast %26 : vector<1x128xf32> to vector<2x128xf32>
    %28 = arith.addf %25, %27 : vector<2x128xf32>
    %cst_14 = arith.constant 0.000000e+00 : f32
    %29 = vector.broadcast %cst_14 : f32 to vector<2x128xf32>
    %30 = arith.maximumf %28, %29 : vector<2x128xf32>
    %31 = arith.truncf %30 : vector<2x128xf32> to vector<2x128xbf16>
    %c0_15 = arith.constant 0 : index
    %c0_16 = arith.constant 0 : index
    %32 = vector.load %arg6[%c0_15, %c0_16] : memref<128x128xbf16, #tpu.memory_space<vmem>>, vector<128x128xbf16>
    %cst_17 = arith.constant dense<0.000000e+00> : vector<2x128xf32>
    %33 = tpu.matmul %31, %32, %cst_17 {dimension_numbers = #tpu.dot_dimension_numbers<[1], [0], [0], [1], [0, 0, 1, 1], [], []>} : vector<2x128xbf16>, vector<128x128xbf16>, vector<2x128xf32> -> vector<2x128xf32>
    %c0_18 = arith.constant 0 : index
    %c0_19 = arith.constant 0 : index
    %34 = vector.load %arg7[%c0_18, %c0_19] : memref<1x128xf32, #tpu.memory_space<vmem>>, vector<1x128xf32>
    %35 = vector.broadcast %34 : vector<1x128xf32> to vector<2x128xf32>
    %36 = arith.addf %33, %35 : vector<2x128xf32>
    %c0_20 = arith.constant 0 : index
    %c0_21 = arith.constant 0 : index
    %37 = vector.load %arg10[%c0_20, %c0_21] : memref<2x128xf32, #tpu.memory_space<vmem>>, vector<2x128xf32>
    tpu.vector_store %arg10[%c0_20, %c0_21], %36 {strides = array<i32>} : memref<2x128xf32, #tpu.memory_space<vmem>>, vector<2x128xf32>,
    %38 = arith.truncf %36 : vector<2x128xf32> to vector<2x128xbf16>
    %c0_22 = arith.constant 0 : index
    %c0_23 = arith.constant 0 : index
    %39 = vector.load %arg8[%c0_22, %c0_23] : memref<128x128xbf16, #tpu.memory_space<vmem>>, vector<128x128xbf16>
    %cst_24 = arith.constant dense<0.000000e+00> : vector<2x128xf32>
    %40 = tpu.matmul %38, %39, %cst_24 {dimension_numbers = #tpu.dot_dimension_numbers<[1], [0], [0], [1], [0, 0, 1, 1], [], []>} : vector<2x128xbf16>, vector<128x128xbf16>, vector<2x128xf32> -> vector<2x128xf32>
    %c0_25 = arith.constant 0 : index
    %c0_26 = arith.constant 0 : index
    %41 = vector.load %arg9[%c0_25, %c0_26] : memref<1x128xf32, #tpu.memory_space<vmem>>, vector<1x128xf32>
    %42 = vector.broadcast %41 : vector<1x128xf32> to vector<2x128xf32>
    %43 = arith.addf %40, %42 : vector<2x128xf32>
    %c0_27 = arith.constant 0 : index
    %c0_28 = arith.constant 0 : index
    %44 = vector.load %arg11[%c0_27, %c0_28] : memref<2x128xf32, #tpu.memory_space<vmem>>, vector<2x128xf32>
    tpu.vector_store %arg11[%c0_27, %c0_28], %43 {strides = array<i32>} : memref<2x128xf32, #tpu.memory_space<vmem>>, vector<2x128xf32>,
    return
  }
  func.func @transform_0(%arg0: i32) -> (i32, i32) {
    %c0_i32 = arith.constant 0 : i32
    %c0_i32_0 = arith.constant 0 : i32
    %c0_i32_1 = arith.constant 0 : i32
    return %c0_i32, %c0_i32_0 : i32, i32
  }
  func.func @transform_1(%arg0: i32) -> (i32, i32) {
    %c0_i32 = arith.constant 0 : i32
    %c0_i32_0 = arith.constant 0 : i32
    %c0_i32_1 = arith.constant 0 : i32
    return %c0_i32, %c0_i32_0 : i32, i32
  }
  func.func @transform_2(%arg0: i32) -> (i32, i32) {
    %c0_i32 = arith.constant 0 : i32
    %c0_i32_0 = arith.constant 0 : i32
    %c0_i32_1 = arith.constant 0 : i32
    return %c0_i32, %c0_i32_0 : i32, i32
  }
  func.func @transform_3(%arg0: i32) -> (i32, i32) {
    %c0_i32 = arith.constant 0 : i32
    %c0_i32_0 = arith.constant 0 : i32
    %c0_i32_1 = arith.constant 0 : i32
    return %c0_i32, %c0_i32_0 : i32, i32
  }
  func.func @transform_4(%arg0: i32) -> (i32, i32) {
    %c0_i32 = arith.constant 0 : i32
    %c0_i32_0 = arith.constant 0 : i32
    %c0_i32_1 = arith.constant 0 : i32
    return %c0_i32, %c0_i32_0 : i32, i32
  }
  func.func @transform_5(%arg0: i32) -> (i32, i32) {
    %c0_i32 = arith.constant 0 : i32
    %c0_i32_0 = arith.constant 0 : i32
    %c0_i32_1 = arith.constant 0 : i32
    return %c0_i32, %c0_i32_0 : i32, i32
  }
  func.func @transform_6(%arg0: i32) -> (i32, i32) {
    %c0_i32 = arith.constant 0 : i32
    %c0_i32_0 = arith.constant 0 : i32
    %c0_i32_1 = arith.constant 0 : i32
    return %c0_i32, %c0_i32_0 : i32, i32
  }
  func.func @transform_7(%arg0: i32) -> (i32, i32) {
    %c0_i32 = arith.constant 0 : i32
    %c0_i32_0 = arith.constant 0 : i32
    %c0_i32_1 = arith.constant 0 : i32
    return %c0_i32, %c0_i32_0 : i32, i32
  }
  func.func @transform_8(%arg0: i32) -> (i32, i32) {
    %c0_i32 = arith.constant 0 : i32
    %c0_i32_0 = arith.constant 0 : i32
    %c0_i32_1 = arith.constant 0 : i32
    return %c0_i32, %c0_i32_0 : i32, i32
  }
  func.func @transform_9(%arg0: i32) -> (i32, i32) {
    %c0_i32 = arith.constant 0 : i32
    %c0_i32_0 = arith.constant 0 : i32
    %c0_i32_1 = arith.constant 0 : i32
    return %c0_i32, %c0_i32_0 : i32, i32
  }
  func.func @transform_10(%arg0: i32) -> (i32, i32) {
    %c0_i32 = arith.constant 0 : i32
    %c0_i32_0 = arith.constant 0 : i32
    %c0_i32_1 = arith.constant 0 : i32
    return %c0_i32, %c0_i32_0 : i32, i32
  }
}

module attributes {stable_mosaic.version = 11 : i64} {
  func.func @_decoder_stack_kernel(%arg0: i32, %arg1: i32, %arg2: memref<1x8x128xf32, #tpu.memory_space<vmem>>, %arg3: memref<1x9x128xf32, #tpu.memory_space<vmem>>, %arg4: memref<1x128x384xbf16, #tpu.memory_space<vmem>>, %arg5: memref<1x1x384xf32, #tpu.memory_space<vmem>>, %arg6: memref<1x128x128xbf16, #tpu.memory_space<vmem>>, %arg7: memref<1x1x128xf32, #tpu.memory_space<vmem>>, %arg8: memref<1x1x128xf32, #tpu.memory_space<vmem>>, %arg9: memref<1x1x128xf32, #tpu.memory_space<vmem>>, %arg10: memref<1x128x128xbf16, #tpu.memory_space<vmem>>, %arg11: memref<1x1x128xf32, #tpu.memory_space<vmem>>, %arg12: memref<1x128x256xbf16, #tpu.memory_space<vmem>>, %arg13: memref<1x1x256xf32, #tpu.memory_space<vmem>>, %arg14: memref<1x128x128xbf16, #tpu.memory_space<vmem>>, %arg15: memref<1x1x128xf32, #tpu.memory_space<vmem>>, %arg16: memref<1x1x128xf32, #tpu.memory_space<vmem>>, %arg17: memref<1x1x128xf32, #tpu.memory_space<vmem>>, %arg18: memref<1x128x2048xbf16, #tpu.memory_space<vmem>>, %arg19: memref<1x1x2048xf32, #tpu.memory_space<vmem>>, %arg20: memref<1x2048x128xbf16, #tpu.memory_space<vmem>>, %arg21: memref<1x1x128xf32, #tpu.memory_space<vmem>>, %arg22: memref<1x1x128xf32, #tpu.memory_space<vmem>>, %arg23: memref<1x1x128xf32, #tpu.memory_space<vmem>>, %arg24: memref<128x128xbf16, #tpu.memory_space<vmem>>, %arg25: memref<1x128xf32, #tpu.memory_space<vmem>>, %arg26: memref<1x8x128xf32, #tpu.memory_space<vmem>>, %arg27: memref<8x128xf32, #tpu.memory_space<vmem>>) attributes {dimension_semantics = [#tpu.dimension_semantics<parallel>, #tpu.dimension_semantics<arbitrary>], iteration_bounds = array<i64: 2, 4>, scalar_prefetch = 0 : i64, scratch_operands = 1 : i64, tpu.core_type = #tpu.core_type<tc>, window_params = [{transform_indices = @transform_0, window_bounds = array<i64: 1, 8, 128>}, {transform_indices = @transform_1, window_bounds = array<i64: 1, 9, 128>}, {transform_indices = @transform_2, window_bounds = array<i64: 1, 128, 384>}, {transform_indices = @transform_3, window_bounds = array<i64: 1, 1, 384>}, {transform_indices = @transform_4, window_bounds = array<i64: 1, 128, 128>}, {transform_indices = @transform_5, window_bounds = array<i64: 1, 1, 128>}, {transform_indices = @transform_6, window_bounds = array<i64: 1, 1, 128>}, {transform_indices = @transform_7, window_bounds = array<i64: 1, 1, 128>}, {transform_indices = @transform_8, window_bounds = array<i64: 1, 128, 128>}, {transform_indices = @transform_9, window_bounds = array<i64: 1, 1, 128>}, {transform_indices = @transform_10, window_bounds = array<i64: 1, 128, 256>}, {transform_indices = @transform_11, window_bounds = array<i64: 1, 1, 256>}, {transform_indices = @transform_12, window_bounds = array<i64: 1, 128, 128>}, {transform_indices = @transform_13, window_bounds = array<i64: 1, 1, 128>}, {transform_indices = @transform_14, window_bounds = array<i64: 1, 1, 128>}, {transform_indices = @transform_15, window_bounds = array<i64: 1, 1, 128>}, {transform_indices = @transform_16, window_bounds = array<i64: 1, 128, 2048>}, {transform_indices = @transform_17, window_bounds = array<i64: 1, 1, 2048>}, {transform_indices = @transform_18, window_bounds = array<i64: 1, 2048, 128>}, {transform_indices = @transform_19, window_bounds = array<i64: 1, 1, 128>}, {transform_indices = @transform_20, window_bounds = array<i64: 1, 1, 128>}, {transform_indices = @transform_21, window_bounds = array<i64: 1, 1, 128>}, {pipeline_mode = #tpu.pipeline_mode<synchronous>, transform_indices = @transform_22, window_bounds = array<i64: 128, 128>}, {pipeline_mode = #tpu.pipeline_mode<synchronous>, transform_indices = @transform_23, window_bounds = array<i64: 1, 128>}, {transform_indices = @transform_24, window_bounds = array<i64: 1, 8, 128>}]} {
    %c0_i32 = arith.constant 0 : i32
    %0 = arith.cmpi eq, %arg1, %c0_i32 : i32
    %1 = arith.extui %0 : i1 to i32
    %c0_i32_0 = arith.constant 0 : i32
    %2 = arith.cmpi ne, %1, %c0_i32_0 : i32
    scf.if %2 {
      %c0_122 = arith.constant 0 : index
      %c0_123 = arith.constant 0 : index
      %c0_124 = arith.constant 0 : index
      %302 = vector.load %arg2[%c0_122, %c0_123, %c0_124] : memref<1x8x128xf32, #tpu.memory_space<vmem>>, vector<1x8x128xf32>
      %303 = vector.shape_cast %302 : vector<1x8x128xf32> to vector<8x128xf32>
      %c0_125 = arith.constant 0 : index
      %c0_126 = arith.constant 0 : index
      %304 = vector.load %arg27[%c0_125, %c0_126] : memref<8x128xf32, #tpu.memory_space<vmem>>, vector<8x128xf32>
      tpu.vector_store %arg27[%c0_125, %c0_126], %303 {strides = array<i32>} : memref<8x128xf32, #tpu.memory_space<vmem>>, vector<8x128xf32>,
    } else {
    }
    %c0 = arith.constant 0 : index
    %c0_1 = arith.constant 0 : index
    %3 = vector.load %arg27[%c0, %c0_1] : memref<8x128xf32, #tpu.memory_space<vmem>>, vector<8x128xf32>
    %c0_2 = arith.constant 0 : index
    %c0_3 = arith.constant 0 : index
    %c0_4 = arith.constant 0 : index
    %4 = vector.load %arg3[%c0_2, %c0_3, %c0_4] : memref<1x9x128xf32, #tpu.memory_space<vmem>>, vector<1x9x128xf32>
    %5 = vector.shape_cast %4 : vector<1x9x128xf32> to vector<9x128xf32>
    %c0_5 = arith.constant 0 : index
    %c0_6 = arith.constant 0 : index
    %c0_7 = arith.constant 0 : index
    %6 = vector.load %arg4[%c0_5, %c0_6, %c0_7] : memref<1x128x384xbf16, #tpu.memory_space<vmem>>, vector<1x128x384xbf16>
    %7 = vector.shape_cast %6 : vector<1x128x384xbf16> to vector<128x384xbf16>
    %c0_8 = arith.constant 0 : index
    %c0_9 = arith.constant 0 : index
    %c0_10 = arith.constant 0 : index
    %8 = vector.load %arg5[%c0_8, %c0_9, %c0_10] : memref<1x1x384xf32, #tpu.memory_space<vmem>>, vector<1x1x384xf32>
    %9 = vector.shape_cast %8 : vector<1x1x384xf32> to vector<1x384xf32>
    %c0_11 = arith.constant 0 : index
    %c0_12 = arith.constant 0 : index
    %c0_13 = arith.constant 0 : index
    %10 = vector.load %arg6[%c0_11, %c0_12, %c0_13] : memref<1x128x128xbf16, #tpu.memory_space<vmem>>, vector<1x128x128xbf16>
    %11 = vector.shape_cast %10 : vector<1x128x128xbf16> to vector<128x128xbf16>
    %c0_14 = arith.constant 0 : index
    %c0_15 = arith.constant 0 : index
    %c0_16 = arith.constant 0 : index
    %12 = vector.load %arg7[%c0_14, %c0_15, %c0_16] : memref<1x1x128xf32, #tpu.memory_space<vmem>>, vector<1x1x128xf32>
    %13 = vector.shape_cast %12 : vector<1x1x128xf32> to vector<1x128xf32>
    %c0_17 = arith.constant 0 : index
    %c0_18 = arith.constant 0 : index
    %c0_19 = arith.constant 0 : index
    %14 = vector.load %arg8[%c0_17, %c0_18, %c0_19] : memref<1x1x128xf32, #tpu.memory_space<vmem>>, vector<1x1x128xf32>
    %15 = vector.shape_cast %14 : vector<1x1x128xf32> to vector<1x128xf32>
    %c0_20 = arith.constant 0 : index
    %c0_21 = arith.constant 0 : index
    %c0_22 = arith.constant 0 : index
    %16 = vector.load %arg9[%c0_20, %c0_21, %c0_22] : memref<1x1x128xf32, #tpu.memory_space<vmem>>, vector<1x1x128xf32>
    %17 = vector.shape_cast %16 : vector<1x1x128xf32> to vector<1x128xf32>
    %18 = arith.truncf %3 : vector<8x128xf32> to vector<8x128xbf16>
    %cst = arith.constant dense<0.000000e+00> : vector<8x384xf32>
    %19 = tpu.matmul %18, %7, %cst {dimension_numbers = #tpu.dot_dimension_numbers<[1], [0], [0], [1], [0, 0, 1, 1], [], []>} : vector<8x128xbf16>, vector<128x384xbf16>, vector<8x384xf32> -> vector<8x384xf32>
    %20 = vector.broadcast %9 : vector<1x384xf32> to vector<8x384xf32>
    %21 = arith.addf %19, %20 : vector<8x384xf32>
    %22 = vector.extract_strided_slice %21 {offsets = [0, 0], sizes = [8, 128], strides = [1, 1]} : vector<8x384xf32> to vector<8x128xf32>
    %23 = vector.extract_strided_slice %21 {offsets = [0, 128], sizes = [8, 128], strides = [1, 1]} : vector<8x384xf32> to vector<8x128xf32>
    %24 = vector.extract_strided_slice %21 {offsets = [0, 256], sizes = [8, 128], strides = [1, 1]} : vector<8x384xf32> to vector<8x128xf32>
    %25 = vector.extract_strided_slice %22 {offsets = [0, 0], sizes = [8, 32], strides = [1, 1]} : vector<8x128xf32> to vector<8x32xf32>
    %26 = arith.truncf %25 : vector<8x32xf32> to vector<8x32xbf16>
    %27 = vector.extract_strided_slice %23 {offsets = [0, 0], sizes = [8, 32], strides = [1, 1]} : vector<8x128xf32> to vector<8x32xf32>
    %28 = arith.truncf %27 : vector<8x32xf32> to vector<8x32xbf16>
    %29 = vector.extract_strided_slice %24 {offsets = [0, 0], sizes = [8, 32], strides = [1, 1]} : vector<8x128xf32> to vector<8x32xf32>
    %30 = arith.truncf %29 : vector<8x32xf32> to vector<8x32xbf16>
    %cst_23 = arith.constant dense<0.000000e+00> : vector<8x8xf32>
    %31 = tpu.matmul %26, %28, %cst_23 {dimension_numbers = #tpu.dot_dimension_numbers<[1], [1], [0], [0], [0, 0, 1, 0], [], []>} : vector<8x32xbf16>, vector<8x32xbf16>, vector<8x8xf32> -> vector<8x8xf32>
    %cst_24 = arith.constant dense<0xFF800000> : vector<8xf32>
    %32 = vector.multi_reduction <maximumf>, %31, %cst_24 [1] : vector<8x8xf32> to vector<8xf32>
    %33 = vector.shape_cast %32 : vector<8xf32> to vector<8x1xf32>
    %34 = vector.broadcast %33 : vector<8x1xf32> to vector<8x8xf32>
    %35 = arith.subf %31, %34 : vector<8x8xf32>
    %36 = math.exp %35 : vector<8x8xf32>
    %cst_25 = arith.constant dense<0.000000e+00> : vector<8xf32>
    %37 = vector.multi_reduction <add>, %36, %cst_25 [1] : vector<8x8xf32> to vector<8xf32>
    %38 = vector.shape_cast %37 : vector<8xf32> to vector<8x1xf32>
    %39 = tpu.reciprocal %38 {approx = true} : vector<8x1xf32> -> vector<8x1xf32>
    %40 = vector.broadcast %39 : vector<8x1xf32> to vector<8x8xf32>
    %41 = arith.mulf %36, %40 : vector<8x8xf32>
    %42 = arith.truncf %41 : vector<8x8xf32> to vector<8x8xbf16>
    %cst_26 = arith.constant dense<0.000000e+00> : vector<8x32xf32>
    %43 = tpu.matmul %42, %30, %cst_26 {dimension_numbers = #tpu.dot_dimension_numbers<[1], [0], [0], [1], [0, 0, 1, 1], [], []>} : vector<8x8xbf16>, vector<8x32xbf16>, vector<8x32xf32> -> vector<8x32xf32>
    %44 = vector.extract_strided_slice %22 {offsets = [0, 32], sizes = [8, 32], strides = [1, 1]} : vector<8x128xf32> to vector<8x32xf32>
    %45 = arith.truncf %44 : vector<8x32xf32> to vector<8x32xbf16>
    %46 = vector.extract_strided_slice %23 {offsets = [0, 32], sizes = [8, 32], strides = [1, 1]} : vector<8x128xf32> to vector<8x32xf32>
    %47 = arith.truncf %46 : vector<8x32xf32> to vector<8x32xbf16>
    %48 = vector.extract_strided_slice %24 {offsets = [0, 32], sizes = [8, 32], strides = [1, 1]} : vector<8x128xf32> to vector<8x32xf32>
    %49 = arith.truncf %48 : vector<8x32xf32> to vector<8x32xbf16>
    %cst_27 = arith.constant dense<0.000000e+00> : vector<8x8xf32>
    %50 = tpu.matmul %45, %47, %cst_27 {dimension_numbers = #tpu.dot_dimension_numbers<[1], [1], [0], [0], [0, 0, 1, 0], [], []>} : vector<8x32xbf16>, vector<8x32xbf16>, vector<8x8xf32> -> vector<8x8xf32>
    %cst_28 = arith.constant dense<0xFF800000> : vector<8xf32>
    %51 = vector.multi_reduction <maximumf>, %50, %cst_28 [1] : vector<8x8xf32> to vector<8xf32>
    %52 = vector.shape_cast %51 : vector<8xf32> to vector<8x1xf32>
    %53 = vector.broadcast %52 : vector<8x1xf32> to vector<8x8xf32>
    %54 = arith.subf %50, %53 : vector<8x8xf32>
    %55 = math.exp %54 : vector<8x8xf32>
    %cst_29 = arith.constant dense<0.000000e+00> : vector<8xf32>
    %56 = vector.multi_reduction <add>, %55, %cst_29 [1] : vector<8x8xf32> to vector<8xf32>
    %57 = vector.shape_cast %56 : vector<8xf32> to vector<8x1xf32>
    %58 = tpu.reciprocal %57 {approx = true} : vector<8x1xf32> -> vector<8x1xf32>
    %59 = vector.broadcast %58 : vector<8x1xf32> to vector<8x8xf32>
    %60 = arith.mulf %55, %59 : vector<8x8xf32>
    %61 = arith.truncf %60 : vector<8x8xf32> to vector<8x8xbf16>
    %cst_30 = arith.constant dense<0.000000e+00> : vector<8x32xf32>
    %62 = tpu.matmul %61, %49, %cst_30 {dimension_numbers = #tpu.dot_dimension_numbers<[1], [0], [0], [1], [0, 0, 1, 1], [], []>} : vector<8x8xbf16>, vector<8x32xbf16>, vector<8x32xf32> -> vector<8x32xf32>
    %63 = vector.extract_strided_slice %22 {offsets = [0, 64], sizes = [8, 32], strides = [1, 1]} : vector<8x128xf32> to vector<8x32xf32>
    %64 = arith.truncf %63 : vector<8x32xf32> to vector<8x32xbf16>
    %65 = vector.extract_strided_slice %23 {offsets = [0, 64], sizes = [8, 32], strides = [1, 1]} : vector<8x128xf32> to vector<8x32xf32>
    %66 = arith.truncf %65 : vector<8x32xf32> to vector<8x32xbf16>
    %67 = vector.extract_strided_slice %24 {offsets = [0, 64], sizes = [8, 32], strides = [1, 1]} : vector<8x128xf32> to vector<8x32xf32>
    %68 = arith.truncf %67 : vector<8x32xf32> to vector<8x32xbf16>
    %cst_31 = arith.constant dense<0.000000e+00> : vector<8x8xf32>
    %69 = tpu.matmul %64, %66, %cst_31 {dimension_numbers = #tpu.dot_dimension_numbers<[1], [1], [0], [0], [0, 0, 1, 0], [], []>} : vector<8x32xbf16>, vector<8x32xbf16>, vector<8x8xf32> -> vector<8x8xf32>
    %cst_32 = arith.constant dense<0xFF800000> : vector<8xf32>
    %70 = vector.multi_reduction <maximumf>, %69, %cst_32 [1] : vector<8x8xf32> to vector<8xf32>
    %71 = vector.shape_cast %70 : vector<8xf32> to vector<8x1xf32>
    %72 = vector.broadcast %71 : vector<8x1xf32> to vector<8x8xf32>
    %73 = arith.subf %69, %72 : vector<8x8xf32>
    %74 = math.exp %73 : vector<8x8xf32>
    %cst_33 = arith.constant dense<0.000000e+00> : vector<8xf32>
    %75 = vector.multi_reduction <add>, %74, %cst_33 [1] : vector<8x8xf32> to vector<8xf32>
    %76 = vector.shape_cast %75 : vector<8xf32> to vector<8x1xf32>
    %77 = tpu.reciprocal %76 {approx = true} : vector<8x1xf32> -> vector<8x1xf32>
    %78 = vector.broadcast %77 : vector<8x1xf32> to vector<8x8xf32>
    %79 = arith.mulf %74, %78 : vector<8x8xf32>
    %80 = arith.truncf %79 : vector<8x8xf32> to vector<8x8xbf16>
    %cst_34 = arith.constant dense<0.000000e+00> : vector<8x32xf32>
    %81 = tpu.matmul %80, %68, %cst_34 {dimension_numbers = #tpu.dot_dimension_numbers<[1], [0], [0], [1], [0, 0, 1, 1], [], []>} : vector<8x8xbf16>, vector<8x32xbf16>, vector<8x32xf32> -> vector<8x32xf32>
    %82 = vector.extract_strided_slice %22 {offsets = [0, 96], sizes = [8, 32], strides = [1, 1]} : vector<8x128xf32> to vector<8x32xf32>
    %83 = arith.truncf %82 : vector<8x32xf32> to vector<8x32xbf16>
    %84 = vector.extract_strided_slice %23 {offsets = [0, 96], sizes = [8, 32], strides = [1, 1]} : vector<8x128xf32> to vector<8x32xf32>
    %85 = arith.truncf %84 : vector<8x32xf32> to vector<8x32xbf16>
    %86 = vector.extract_strided_slice %24 {offsets = [0, 96], sizes = [8, 32], strides = [1, 1]} : vector<8x128xf32> to vector<8x32xf32>
    %87 = arith.truncf %86 : vector<8x32xf32> to vector<8x32xbf16>
    %cst_35 = arith.constant dense<0.000000e+00> : vector<8x8xf32>
    %88 = tpu.matmul %83, %85, %cst_35 {dimension_numbers = #tpu.dot_dimension_numbers<[1], [1], [0], [0], [0, 0, 1, 0], [], []>} : vector<8x32xbf16>, vector<8x32xbf16>, vector<8x8xf32> -> vector<8x8xf32>
    %cst_36 = arith.constant dense<0xFF800000> : vector<8xf32>
    %89 = vector.multi_reduction <maximumf>, %88, %cst_36 [1] : vector<8x8xf32> to vector<8xf32>
    %90 = vector.shape_cast %89 : vector<8xf32> to vector<8x1xf32>
    %91 = vector.broadcast %90 : vector<8x1xf32> to vector<8x8xf32>
    %92 = arith.subf %88, %91 : vector<8x8xf32>
    %93 = math.exp %92 : vector<8x8xf32>
    %cst_37 = arith.constant dense<0.000000e+00> : vector<8xf32>
    %94 = vector.multi_reduction <add>, %93, %cst_37 [1] : vector<8x8xf32> to vector<8xf32>
    %95 = vector.shape_cast %94 : vector<8xf32> to vector<8x1xf32>
    %96 = tpu.reciprocal %95 {approx = true} : vector<8x1xf32> -> vector<8x1xf32>
    %97 = vector.broadcast %96 : vector<8x1xf32> to vector<8x8xf32>
    %98 = arith.mulf %93, %97 : vector<8x8xf32>
    %99 = arith.truncf %98 : vector<8x8xf32> to vector<8x8xbf16>
    %cst_38 = arith.constant dense<0.000000e+00> : vector<8x32xf32>
    %100 = tpu.matmul %99, %87, %cst_38 {dimension_numbers = #tpu.dot_dimension_numbers<[1], [0], [0], [1], [0, 0, 1, 1], [], []>} : vector<8x8xbf16>, vector<8x32xbf16>, vector<8x32xf32> -> vector<8x32xf32>
    %101 = tpu.concatenate %43, %62, %81, %100 in 1 : vector<8x32xf32>, vector<8x32xf32>, vector<8x32xf32>, vector<8x32xf32> -> vector<8x128xf32>
    %102 = arith.truncf %101 : vector<8x128xf32> to vector<8x128xbf16>
    %cst_39 = arith.constant dense<0.000000e+00> : vector<8x128xf32>
    %103 = tpu.matmul %102, %11, %cst_39 {dimension_numbers = #tpu.dot_dimension_numbers<[1], [0], [0], [1], [0, 0, 1, 1], [], []>} : vector<8x128xbf16>, vector<128x128xbf16>, vector<8x128xf32> -> vector<8x128xf32>
    %104 = vector.broadcast %13 : vector<1x128xf32> to vector<8x128xf32>
    %105 = arith.addf %103, %104 : vector<8x128xf32>
    %106 = arith.addf %3, %105 : vector<8x128xf32>
    %cst_40 = arith.constant dense<0.000000e+00> : vector<8xf32>
    %107 = vector.multi_reduction <add>, %106, %cst_40 [1] : vector<8x128xf32> to vector<8xf32>
    %108 = vector.shape_cast %107 : vector<8xf32> to vector<8x1xf32>
    %cst_41 = arith.constant 1.280000e+02 : f32
    %109 = vector.broadcast %cst_41 : f32 to vector<8x1xf32>
    %110 = arith.divf %108, %109 : vector<8x1xf32>
    %111 = vector.broadcast %110 : vector<8x1xf32> to vector<8x128xf32>
    %112 = arith.subf %106, %111 : vector<8x128xf32>
    %113 = arith.mulf %112, %112 : vector<8x128xf32>
    %cst_42 = arith.constant dense<0.000000e+00> : vector<8xf32>
    %114 = vector.multi_reduction <add>, %113, %cst_42 [1] : vector<8x128xf32> to vector<8xf32>
    %115 = vector.shape_cast %114 : vector<8xf32> to vector<8x1xf32>
    %cst_43 = arith.constant 1.280000e+02 : f32
    %116 = vector.broadcast %cst_43 : f32 to vector<8x1xf32>
    %117 = arith.divf %115, %116 : vector<8x1xf32>
    %cst_44 = arith.constant 9.99999974E-6 : f32
    %118 = vector.broadcast %cst_44 : f32 to vector<8x1xf32>
    %119 = arith.addf %117, %118 : vector<8x1xf32>
    %120 = math.rsqrt %119 : vector<8x1xf32>
    %121 = vector.broadcast %120 : vector<8x1xf32> to vector<8x128xf32>
    %122 = arith.mulf %112, %121 : vector<8x128xf32>
    %123 = vector.broadcast %15 : vector<1x128xf32> to vector<8x128xf32>
    %124 = arith.mulf %122, %123 : vector<8x128xf32>
    %125 = vector.broadcast %17 : vector<1x128xf32> to vector<8x128xf32>
    %126 = arith.addf %124, %125 : vector<8x128xf32>
    %c0_45 = arith.constant 0 : index
    %c0_46 = arith.constant 0 : index
    %c0_47 = arith.constant 0 : index
    %127 = vector.load %arg10[%c0_45, %c0_46, %c0_47] : memref<1x128x128xbf16, #tpu.memory_space<vmem>>, vector<1x128x128xbf16>
    %128 = vector.shape_cast %127 : vector<1x128x128xbf16> to vector<128x128xbf16>
    %c0_48 = arith.constant 0 : index
    %c0_49 = arith.constant 0 : index
    %c0_50 = arith.constant 0 : index
    %129 = vector.load %arg11[%c0_48, %c0_49, %c0_50] : memref<1x1x128xf32, #tpu.memory_space<vmem>>, vector<1x1x128xf32>
    %130 = vector.shape_cast %129 : vector<1x1x128xf32> to vector<1x128xf32>
    %c0_51 = arith.constant 0 : index
    %c0_52 = arith.constant 0 : index
    %c0_53 = arith.constant 0 : index
    %131 = vector.load %arg12[%c0_51, %c0_52, %c0_53] : memref<1x128x256xbf16, #tpu.memory_space<vmem>>, vector<1x128x256xbf16>
    %132 = vector.shape_cast %131 : vector<1x128x256xbf16> to vector<128x256xbf16>
    %c0_54 = arith.constant 0 : index
    %c0_55 = arith.constant 0 : index
    %c0_56 = arith.constant 0 : index
    %133 = vector.load %arg13[%c0_54, %c0_55, %c0_56] : memref<1x1x256xf32, #tpu.memory_space<vmem>>, vector<1x1x256xf32>
    %134 = vector.shape_cast %133 : vector<1x1x256xf32> to vector<1x256xf32>
    %c0_57 = arith.constant 0 : index
    %c0_58 = arith.constant 0 : index
    %c0_59 = arith.constant 0 : index
    %135 = vector.load %arg14[%c0_57, %c0_58, %c0_59] : memref<1x128x128xbf16, #tpu.memory_space<vmem>>, vector<1x128x128xbf16>
    %136 = vector.shape_cast %135 : vector<1x128x128xbf16> to vector<128x128xbf16>
    %c0_60 = arith.constant 0 : index
    %c0_61 = arith.constant 0 : index
    %c0_62 = arith.constant 0 : index
    %137 = vector.load %arg15[%c0_60, %c0_61, %c0_62] : memref<1x1x128xf32, #tpu.memory_space<vmem>>, vector<1x1x128xf32>
    %138 = vector.shape_cast %137 : vector<1x1x128xf32> to vector<1x128xf32>
    %c0_63 = arith.constant 0 : index
    %c0_64 = arith.constant 0 : index
    %c0_65 = arith.constant 0 : index
    %139 = vector.load %arg16[%c0_63, %c0_64, %c0_65] : memref<1x1x128xf32, #tpu.memory_space<vmem>>, vector<1x1x128xf32>
    %140 = vector.shape_cast %139 : vector<1x1x128xf32> to vector<1x128xf32>
    %c0_66 = arith.constant 0 : index
    %c0_67 = arith.constant 0 : index
    %c0_68 = arith.constant 0 : index
    %141 = vector.load %arg17[%c0_66, %c0_67, %c0_68] : memref<1x1x128xf32, #tpu.memory_space<vmem>>, vector<1x1x128xf32>
    %142 = vector.shape_cast %141 : vector<1x1x128xf32> to vector<1x128xf32>
    %143 = arith.truncf %126 : vector<8x128xf32> to vector<8x128xbf16>
    %cst_69 = arith.constant dense<0.000000e+00> : vector<8x128xf32>
    %144 = tpu.matmul %143, %128, %cst_69 {dimension_numbers = #tpu.dot_dimension_numbers<[1], [0], [0], [1], [0, 0, 1, 1], [], []>} : vector<8x128xbf16>, vector<128x128xbf16>, vector<8x128xf32> -> vector<8x128xf32>
    %145 = vector.broadcast %130 : vector<1x128xf32> to vector<8x128xf32>
    %146 = arith.addf %144, %145 : vector<8x128xf32>
    %147 = arith.truncf %5 : vector<9x128xf32> to vector<9x128xbf16>
    %cst_70 = arith.constant dense<0.000000e+00> : vector<9x256xf32>
    %148 = tpu.matmul %147, %132, %cst_70 {dimension_numbers = #tpu.dot_dimension_numbers<[1], [0], [0], [1], [0, 0, 1, 1], [], []>} : vector<9x128xbf16>, vector<128x256xbf16>, vector<9x256xf32> -> vector<9x256xf32>
    %149 = vector.broadcast %134 : vector<1x256xf32> to vector<9x256xf32>
    %150 = arith.addf %148, %149 : vector<9x256xf32>
    %151 = vector.extract_strided_slice %150 {offsets = [0, 0], sizes = [9, 128], strides = [1, 1]} : vector<9x256xf32> to vector<9x128xf32>
    %152 = vector.extract_strided_slice %150 {offsets = [0, 128], sizes = [9, 128], strides = [1, 1]} : vector<9x256xf32> to vector<9x128xf32>
    %153 = vector.extract_strided_slice %146 {offsets = [0, 0], sizes = [8, 32], strides = [1, 1]} : vector<8x128xf32> to vector<8x32xf32>
    %154 = arith.truncf %153 : vector<8x32xf32> to vector<8x32xbf16>
    %155 = vector.extract_strided_slice %151 {offsets = [0, 0], sizes = [9, 32], strides = [1, 1]} : vector<9x128xf32> to vector<9x32xf32>
    %156 = arith.truncf %155 : vector<9x32xf32> to vector<9x32xbf16>
    %157 = vector.extract_strided_slice %152 {offsets = [0, 0], sizes = [9, 32], strides = [1, 1]} : vector<9x128xf32> to vector<9x32xf32>
    %158 = arith.truncf %157 : vector<9x32xf32> to vector<9x32xbf16>
    %cst_71 = arith.constant dense<0.000000e+00> : vector<8x9xf32>
    %159 = tpu.matmul %154, %156, %cst_71 {dimension_numbers = #tpu.dot_dimension_numbers<[1], [1], [0], [0], [0, 0, 1, 0], [], []>} : vector<8x32xbf16>, vector<9x32xbf16>, vector<8x9xf32> -> vector<8x9xf32>
    %cst_72 = arith.constant dense<0xFF800000> : vector<8xf32>
    %160 = vector.multi_reduction <maximumf>, %159, %cst_72 [1] : vector<8x9xf32> to vector<8xf32>
    %161 = vector.shape_cast %160 : vector<8xf32> to vector<8x1xf32>
    %162 = vector.broadcast %161 : vector<8x1xf32> to vector<8x9xf32>
    %163 = arith.subf %159, %162 : vector<8x9xf32>
    %164 = math.exp %163 : vector<8x9xf32>
    %cst_73 = arith.constant dense<0.000000e+00> : vector<8xf32>
    %165 = vector.multi_reduction <add>, %164, %cst_73 [1] : vector<8x9xf32> to vector<8xf32>
    %166 = vector.shape_cast %165 : vector<8xf32> to vector<8x1xf32>
    %167 = tpu.reciprocal %166 {approx = true} : vector<8x1xf32> -> vector<8x1xf32>
    %168 = vector.broadcast %167 : vector<8x1xf32> to vector<8x9xf32>
    %169 = arith.mulf %164, %168 : vector<8x9xf32>
    %170 = arith.truncf %169 : vector<8x9xf32> to vector<8x9xbf16>
    %cst_74 = arith.constant dense<0.000000e+00> : vector<8x32xf32>
    %171 = tpu.matmul %170, %158, %cst_74 {dimension_numbers = #tpu.dot_dimension_numbers<[1], [0], [0], [1], [0, 0, 1, 1], [], []>} : vector<8x9xbf16>, vector<9x32xbf16>, vector<8x32xf32> -> vector<8x32xf32>
    %172 = vector.extract_strided_slice %146 {offsets = [0, 32], sizes = [8, 32], strides = [1, 1]} : vector<8x128xf32> to vector<8x32xf32>
    %173 = arith.truncf %172 : vector<8x32xf32> to vector<8x32xbf16>
    %174 = vector.extract_strided_slice %151 {offsets = [0, 32], sizes = [9, 32], strides = [1, 1]} : vector<9x128xf32> to vector<9x32xf32>
    %175 = arith.truncf %174 : vector<9x32xf32> to vector<9x32xbf16>
    %176 = vector.extract_strided_slice %152 {offsets = [0, 32], sizes = [9, 32], strides = [1, 1]} : vector<9x128xf32> to vector<9x32xf32>
    %177 = arith.truncf %176 : vector<9x32xf32> to vector<9x32xbf16>
    %cst_75 = arith.constant dense<0.000000e+00> : vector<8x9xf32>
    %178 = tpu.matmul %173, %175, %cst_75 {dimension_numbers = #tpu.dot_dimension_numbers<[1], [1], [0], [0], [0, 0, 1, 0], [], []>} : vector<8x32xbf16>, vector<9x32xbf16>, vector<8x9xf32> -> vector<8x9xf32>
    %cst_76 = arith.constant dense<0xFF800000> : vector<8xf32>
    %179 = vector.multi_reduction <maximumf>, %178, %cst_76 [1] : vector<8x9xf32> to vector<8xf32>
    %180 = vector.shape_cast %179 : vector<8xf32> to vector<8x1xf32>
    %181 = vector.broadcast %180 : vector<8x1xf32> to vector<8x9xf32>
    %182 = arith.subf %178, %181 : vector<8x9xf32>
    %183 = math.exp %182 : vector<8x9xf32>
    %cst_77 = arith.constant dense<0.000000e+00> : vector<8xf32>
    %184 = vector.multi_reduction <add>, %183, %cst_77 [1] : vector<8x9xf32> to vector<8xf32>
    %185 = vector.shape_cast %184 : vector<8xf32> to vector<8x1xf32>
    %186 = tpu.reciprocal %185 {approx = true} : vector<8x1xf32> -> vector<8x1xf32>
    %187 = vector.broadcast %186 : vector<8x1xf32> to vector<8x9xf32>
    %188 = arith.mulf %183, %187 : vector<8x9xf32>
    %189 = arith.truncf %188 : vector<8x9xf32> to vector<8x9xbf16>
    %cst_78 = arith.constant dense<0.000000e+00> : vector<8x32xf32>
    %190 = tpu.matmul %189, %177, %cst_78 {dimension_numbers = #tpu.dot_dimension_numbers<[1], [0], [0], [1], [0, 0, 1, 1], [], []>} : vector<8x9xbf16>, vector<9x32xbf16>, vector<8x32xf32> -> vector<8x32xf32>
    %191 = vector.extract_strided_slice %146 {offsets = [0, 64], sizes = [8, 32], strides = [1, 1]} : vector<8x128xf32> to vector<8x32xf32>
    %192 = arith.truncf %191 : vector<8x32xf32> to vector<8x32xbf16>
    %193 = vector.extract_strided_slice %151 {offsets = [0, 64], sizes = [9, 32], strides = [1, 1]} : vector<9x128xf32> to vector<9x32xf32>
    %194 = arith.truncf %193 : vector<9x32xf32> to vector<9x32xbf16>
    %195 = vector.extract_strided_slice %152 {offsets = [0, 64], sizes = [9, 32], strides = [1, 1]} : vector<9x128xf32> to vector<9x32xf32>
    %196 = arith.truncf %195 : vector<9x32xf32> to vector<9x32xbf16>
    %cst_79 = arith.constant dense<0.000000e+00> : vector<8x9xf32>
    %197 = tpu.matmul %192, %194, %cst_79 {dimension_numbers = #tpu.dot_dimension_numbers<[1], [1], [0], [0], [0, 0, 1, 0], [], []>} : vector<8x32xbf16>, vector<9x32xbf16>, vector<8x9xf32> -> vector<8x9xf32>
    %cst_80 = arith.constant dense<0xFF800000> : vector<8xf32>
    %198 = vector.multi_reduction <maximumf>, %197, %cst_80 [1] : vector<8x9xf32> to vector<8xf32>
    %199 = vector.shape_cast %198 : vector<8xf32> to vector<8x1xf32>
    %200 = vector.broadcast %199 : vector<8x1xf32> to vector<8x9xf32>
    %201 = arith.subf %197, %200 : vector<8x9xf32>
    %202 = math.exp %201 : vector<8x9xf32>
    %cst_81 = arith.constant dense<0.000000e+00> : vector<8xf32>
    %203 = vector.multi_reduction <add>, %202, %cst_81 [1] : vector<8x9xf32> to vector<8xf32>
    %204 = vector.shape_cast %203 : vector<8xf32> to vector<8x1xf32>
    %205 = tpu.reciprocal %204 {approx = true} : vector<8x1xf32> -> vector<8x1xf32>
    %206 = vector.broadcast %205 : vector<8x1xf32> to vector<8x9xf32>
    %207 = arith.mulf %202, %206 : vector<8x9xf32>
    %208 = arith.truncf %207 : vector<8x9xf32> to vector<8x9xbf16>
    %cst_82 = arith.constant dense<0.000000e+00> : vector<8x32xf32>
    %209 = tpu.matmul %208, %196, %cst_82 {dimension_numbers = #tpu.dot_dimension_numbers<[1], [0], [0], [1], [0, 0, 1, 1], [], []>} : vector<8x9xbf16>, vector<9x32xbf16>, vector<8x32xf32> -> vector<8x32xf32>
    %210 = vector.extract_strided_slice %146 {offsets = [0, 96], sizes = [8, 32], strides = [1, 1]} : vector<8x128xf32> to vector<8x32xf32>
    %211 = arith.truncf %210 : vector<8x32xf32> to vector<8x32xbf16>
    %212 = vector.extract_strided_slice %151 {offsets = [0, 96], sizes = [9, 32], strides = [1, 1]} : vector<9x128xf32> to vector<9x32xf32>
    %213 = arith.truncf %212 : vector<9x32xf32> to vector<9x32xbf16>
    %214 = vector.extract_strided_slice %152 {offsets = [0, 96], sizes = [9, 32], strides = [1, 1]} : vector<9x128xf32> to vector<9x32xf32>
    %215 = arith.truncf %214 : vector<9x32xf32> to vector<9x32xbf16>
    %cst_83 = arith.constant dense<0.000000e+00> : vector<8x9xf32>
    %216 = tpu.matmul %211, %213, %cst_83 {dimension_numbers = #tpu.dot_dimension_numbers<[1], [1], [0], [0], [0, 0, 1, 0], [], []>} : vector<8x32xbf16>, vector<9x32xbf16>, vector<8x9xf32> -> vector<8x9xf32>
    %cst_84 = arith.constant dense<0xFF800000> : vector<8xf32>
    %217 = vector.multi_reduction <maximumf>, %216, %cst_84 [1] : vector<8x9xf32> to vector<8xf32>
    %218 = vector.shape_cast %217 : vector<8xf32> to vector<8x1xf32>
    %219 = vector.broadcast %218 : vector<8x1xf32> to vector<8x9xf32>
    %220 = arith.subf %216, %219 : vector<8x9xf32>
    %221 = math.exp %220 : vector<8x9xf32>
    %cst_85 = arith.constant dense<0.000000e+00> : vector<8xf32>
    %222 = vector.multi_reduction <add>, %221, %cst_85 [1] : vector<8x9xf32> to vector<8xf32>
    %223 = vector.shape_cast %222 : vector<8xf32> to vector<8x1xf32>
    %224 = tpu.reciprocal %223 {approx = true} : vector<8x1xf32> -> vector<8x1xf32>
    %225 = vector.broadcast %224 : vector<8x1xf32> to vector<8x9xf32>
    %226 = arith.mulf %221, %225 : vector<8x9xf32>
    %227 = arith.truncf %226 : vector<8x9xf32> to vector<8x9xbf16>
    %cst_86 = arith.constant dense<0.000000e+00> : vector<8x32xf32>
    %228 = tpu.matmul %227, %215, %cst_86 {dimension_numbers = #tpu.dot_dimension_numbers<[1], [0], [0], [1], [0, 0, 1, 1], [], []>} : vector<8x9xbf16>, vector<9x32xbf16>, vector<8x32xf32> -> vector<8x32xf32>
    %229 = tpu.concatenate %171, %190, %209, %228 in 1 : vector<8x32xf32>, vector<8x32xf32>, vector<8x32xf32>, vector<8x32xf32> -> vector<8x128xf32>
    %230 = arith.truncf %229 : vector<8x128xf32> to vector<8x128xbf16>
    %cst_87 = arith.constant dense<0.000000e+00> : vector<8x128xf32>
    %231 = tpu.matmul %230, %136, %cst_87 {dimension_numbers = #tpu.dot_dimension_numbers<[1], [0], [0], [1], [0, 0, 1, 1], [], []>} : vector<8x128xbf16>, vector<128x128xbf16>, vector<8x128xf32> -> vector<8x128xf32>
    %232 = vector.broadcast %138 : vector<1x128xf32> to vector<8x128xf32>
    %233 = arith.addf %231, %232 : vector<8x128xf32>
    %234 = arith.addf %126, %233 : vector<8x128xf32>
    %cst_88 = arith.constant dense<0.000000e+00> : vector<8xf32>
    %235 = vector.multi_reduction <add>, %234, %cst_88 [1] : vector<8x128xf32> to vector<8xf32>
    %236 = vector.shape_cast %235 : vector<8xf32> to vector<8x1xf32>
    %cst_89 = arith.constant 1.280000e+02 : f32
    %237 = vector.broadcast %cst_89 : f32 to vector<8x1xf32>
    %238 = arith.divf %236, %237 : vector<8x1xf32>
    %239 = vector.broadcast %238 : vector<8x1xf32> to vector<8x128xf32>
    %240 = arith.subf %234, %239 : vector<8x128xf32>
    %241 = arith.mulf %240, %240 : vector<8x128xf32>
    %cst_90 = arith.constant dense<0.000000e+00> : vector<8xf32>
    %242 = vector.multi_reduction <add>, %241, %cst_90 [1] : vector<8x128xf32> to vector<8xf32>
    %243 = vector.shape_cast %242 : vector<8xf32> to vector<8x1xf32>
    %cst_91 = arith.constant 1.280000e+02 : f32
    %244 = vector.broadcast %cst_91 : f32 to vector<8x1xf32>
    %245 = arith.divf %243, %244 : vector<8x1xf32>
    %cst_92 = arith.constant 9.99999974E-6 : f32
    %246 = vector.broadcast %cst_92 : f32 to vector<8x1xf32>
    %247 = arith.addf %245, %246 : vector<8x1xf32>
    %248 = math.rsqrt %247 : vector<8x1xf32>
    %249 = vector.broadcast %248 : vector<8x1xf32> to vector<8x128xf32>
    %250 = arith.mulf %240, %249 : vector<8x128xf32>
    %251 = vector.broadcast %140 : vector<1x128xf32> to vector<8x128xf32>
    %252 = arith.mulf %250, %251 : vector<8x128xf32>
    %253 = vector.broadcast %142 : vector<1x128xf32> to vector<8x128xf32>
    %254 = arith.addf %252, %253 : vector<8x128xf32>
    %c0_93 = arith.constant 0 : index
    %c0_94 = arith.constant 0 : index
    %c0_95 = arith.constant 0 : index
    %255 = vector.load %arg18[%c0_93, %c0_94, %c0_95] : memref<1x128x2048xbf16, #tpu.memory_space<vmem>>, vector<1x128x2048xbf16>
    %256 = vector.shape_cast %255 : vector<1x128x2048xbf16> to vector<128x2048xbf16>
    %c0_96 = arith.constant 0 : index
    %c0_97 = arith.constant 0 : index
    %c0_98 = arith.constant 0 : index
    %257 = vector.load %arg19[%c0_96, %c0_97, %c0_98] : memref<1x1x2048xf32, #tpu.memory_space<vmem>>, vector<1x1x2048xf32>
    %258 = vector.shape_cast %257 : vector<1x1x2048xf32> to vector<1x2048xf32>
    %c0_99 = arith.constant 0 : index
    %c0_100 = arith.constant 0 : index
    %c0_101 = arith.constant 0 : index
    %259 = vector.load %arg20[%c0_99, %c0_100, %c0_101] : memref<1x2048x128xbf16, #tpu.memory_space<vmem>>, vector<1x2048x128xbf16>
    %260 = vector.shape_cast %259 : vector<1x2048x128xbf16> to vector<2048x128xbf16>
    %c0_102 = arith.constant 0 : index
    %c0_103 = arith.constant 0 : index
    %c0_104 = arith.constant 0 : index
    %261 = vector.load %arg21[%c0_102, %c0_103, %c0_104] : memref<1x1x128xf32, #tpu.memory_space<vmem>>, vector<1x1x128xf32>
    %262 = vector.shape_cast %261 : vector<1x1x128xf32> to vector<1x128xf32>
    %c0_105 = arith.constant 0 : index
    %c0_106 = arith.constant 0 : index
    %c0_107 = arith.constant 0 : index
    %263 = vector.load %arg22[%c0_105, %c0_106, %c0_107] : memref<1x1x128xf32, #tpu.memory_space<vmem>>, vector<1x1x128xf32>
    %264 = vector.shape_cast %263 : vector<1x1x128xf32> to vector<1x128xf32>
    %c0_108 = arith.constant 0 : index
    %c0_109 = arith.constant 0 : index
    %c0_110 = arith.constant 0 : index
    %265 = vector.load %arg23[%c0_108, %c0_109, %c0_110] : memref<1x1x128xf32, #tpu.memory_space<vmem>>, vector<1x1x128xf32>
    %266 = vector.shape_cast %265 : vector<1x1x128xf32> to vector<1x128xf32>
    %267 = arith.truncf %254 : vector<8x128xf32> to vector<8x128xbf16>
    %cst_111 = arith.constant dense<0.000000e+00> : vector<8x2048xf32>
    %268 = tpu.matmul %267, %256, %cst_111 {dimension_numbers = #tpu.dot_dimension_numbers<[1], [0], [0], [1], [0, 0, 1, 1], [], []>} : vector<8x128xbf16>, vector<128x2048xbf16>, vector<8x2048xf32> -> vector<8x2048xf32>
    %269 = vector.broadcast %258 : vector<1x2048xf32> to vector<8x2048xf32>
    %270 = arith.addf %268, %269 : vector<8x2048xf32>
    %cst_112 = arith.constant 0.000000e+00 : f32
    %271 = vector.broadcast %cst_112 : f32 to vector<8x2048xf32>
    %272 = arith.maximumf %270, %271 : vector<8x2048xf32>
    %273 = arith.truncf %272 : vector<8x2048xf32> to vector<8x2048xbf16>
    %cst_113 = arith.constant dense<0.000000e+00> : vector<8x128xf32>
    %274 = tpu.matmul %273, %260, %cst_113 {dimension_numbers = #tpu.dot_dimension_numbers<[1], [0], [0], [1], [0, 0, 1, 1], [], []>} : vector<8x2048xbf16>, vector<2048x128xbf16>, vector<8x128xf32> -> vector<8x128xf32>
    %275 = vector.broadcast %262 : vector<1x128xf32> to vector<8x128xf32>
    %276 = arith.addf %274, %275 : vector<8x128xf32>
    %277 = arith.addf %254, %276 : vector<8x128xf32>
    %cst_114 = arith.constant dense<0.000000e+00> : vector<8xf32>
    %278 = vector.multi_reduction <add>, %277, %cst_114 [1] : vector<8x128xf32> to vector<8xf32>
    %279 = vector.shape_cast %278 : vector<8xf32> to vector<8x1xf32>
    %cst_115 = arith.constant 1.280000e+02 : f32
    %280 = vector.broadcast %cst_115 : f32 to vector<8x1xf32>
    %281 = arith.divf %279, %280 : vector<8x1xf32>
    %282 = vector.broadcast %281 : vector<8x1xf32> to vector<8x128xf32>
    %283 = arith.subf %277, %282 : vector<8x128xf32>
    %284 = arith.mulf %283, %283 : vector<8x128xf32>
    %cst_116 = arith.constant dense<0.000000e+00> : vector<8xf32>
    %285 = vector.multi_reduction <add>, %284, %cst_116 [1] : vector<8x128xf32> to vector<8xf32>
    %286 = vector.shape_cast %285 : vector<8xf32> to vector<8x1xf32>
    %cst_117 = arith.constant 1.280000e+02 : f32
    %287 = vector.broadcast %cst_117 : f32 to vector<8x1xf32>
    %288 = arith.divf %286, %287 : vector<8x1xf32>
    %cst_118 = arith.constant 9.99999974E-6 : f32
    %289 = vector.broadcast %cst_118 : f32 to vector<8x1xf32>
    %290 = arith.addf %288, %289 : vector<8x1xf32>
    %291 = math.rsqrt %290 : vector<8x1xf32>
    %292 = vector.broadcast %291 : vector<8x1xf32> to vector<8x128xf32>
    %293 = arith.mulf %283, %292 : vector<8x128xf32>
    %294 = vector.broadcast %264 : vector<1x128xf32> to vector<8x128xf32>
    %295 = arith.mulf %293, %294 : vector<8x128xf32>
    %296 = vector.broadcast %266 : vector<1x128xf32> to vector<8x128xf32>
    %297 = arith.addf %295, %296 : vector<8x128xf32>
    %c0_119 = arith.constant 0 : index
    %c0_120 = arith.constant 0 : index
    %298 = vector.load %arg27[%c0_119, %c0_120] : memref<8x128xf32, #tpu.memory_space<vmem>>, vector<8x128xf32>
    tpu.vector_store %arg27[%c0_119, %c0_120], %297 {strides = array<i32>} : memref<8x128xf32, #tpu.memory_space<vmem>>, vector<8x128xf32>,
    %c3_i32 = arith.constant 3 : i32
    %299 = arith.cmpi eq, %arg1, %c3_i32 : i32
    %300 = arith.extui %299 : i1 to i32
    %c0_i32_121 = arith.constant 0 : i32
    %301 = arith.cmpi ne, %300, %c0_i32_121 : i32
    scf.if %301 {
      %302 = arith.truncf %297 : vector<8x128xf32> to vector<8x128xbf16>
      %c0_122 = arith.constant 0 : index
      %c0_123 = arith.constant 0 : index
      %303 = vector.load %arg24[%c0_122, %c0_123] : memref<128x128xbf16, #tpu.memory_space<vmem>>, vector<128x128xbf16>
      %cst_124 = arith.constant dense<0.000000e+00> : vector<8x128xf32>
      %304 = tpu.matmul %302, %303, %cst_124 {dimension_numbers = #tpu.dot_dimension_numbers<[1], [0], [0], [1], [0, 0, 1, 1], [], []>} : vector<8x128xbf16>, vector<128x128xbf16>, vector<8x128xf32> -> vector<8x128xf32>
      %c0_125 = arith.constant 0 : index
      %c0_126 = arith.constant 0 : index
      %305 = vector.load %arg25[%c0_125, %c0_126] : memref<1x128xf32, #tpu.memory_space<vmem>>, vector<1x128xf32>
      %306 = vector.broadcast %305 : vector<1x128xf32> to vector<8x128xf32>
      %307 = arith.addf %304, %306 : vector<8x128xf32>
      %c0_127 = arith.constant 0 : index
      %c0_128 = arith.constant 0 : index
      %c0_129 = arith.constant 0 : index
      %308 = vector.load %arg26[%c0_127, %c0_128, %c0_129] : memref<1x8x128xf32, #tpu.memory_space<vmem>>, vector<1x8x128xf32>
      %309 = vector.shape_cast %308 : vector<1x8x128xf32> to vector<8x128xf32>
      %310 = vector.shape_cast %307 : vector<8x128xf32> to vector<1x8x128xf32>
      tpu.vector_store %arg26[%c0_127, %c0_128, %c0_129], %310 {strides = array<i32>} : memref<1x8x128xf32, #tpu.memory_space<vmem>>, vector<1x8x128xf32>,
    } else {
    }
    return
  }
  func.func @transform_0(%arg0: i32, %arg1: i32) -> (i32, i32, i32) {
    %c0_i32 = arith.constant 0 : i32
    %c0_i32_0 = arith.constant 0 : i32
    %c0_i32_1 = arith.constant 0 : i32
    return %arg0, %c0_i32, %c0_i32_0 : i32, i32, i32
  }
  func.func @transform_1(%arg0: i32, %arg1: i32) -> (i32, i32, i32) {
    %c0_i32 = arith.constant 0 : i32
    %c0_i32_0 = arith.constant 0 : i32
    %c0_i32_1 = arith.constant 0 : i32
    return %arg0, %c0_i32, %c0_i32_0 : i32, i32, i32
  }
  func.func @transform_2(%arg0: i32, %arg1: i32) -> (i32, i32, i32) {
    %c0_i32 = arith.constant 0 : i32
    %c0_i32_0 = arith.constant 0 : i32
    %c0_i32_1 = arith.constant 0 : i32
    return %arg1, %c0_i32, %c0_i32_0 : i32, i32, i32
  }
  func.func @transform_3(%arg0: i32, %arg1: i32) -> (i32, i32, i32) {
    %c0_i32 = arith.constant 0 : i32
    %c0_i32_0 = arith.constant 0 : i32
    %c0_i32_1 = arith.constant 0 : i32
    return %arg1, %c0_i32, %c0_i32_0 : i32, i32, i32
  }
  func.func @transform_4(%arg0: i32, %arg1: i32) -> (i32, i32, i32) {
    %c0_i32 = arith.constant 0 : i32
    %c0_i32_0 = arith.constant 0 : i32
    %c0_i32_1 = arith.constant 0 : i32
    return %arg1, %c0_i32, %c0_i32_0 : i32, i32, i32
  }
  func.func @transform_5(%arg0: i32, %arg1: i32) -> (i32, i32, i32) {
    %c0_i32 = arith.constant 0 : i32
    %c0_i32_0 = arith.constant 0 : i32
    %c0_i32_1 = arith.constant 0 : i32
    return %arg1, %c0_i32, %c0_i32_0 : i32, i32, i32
  }
  func.func @transform_6(%arg0: i32, %arg1: i32) -> (i32, i32, i32) {
    %c0_i32 = arith.constant 0 : i32
    %c0_i32_0 = arith.constant 0 : i32
    %c0_i32_1 = arith.constant 0 : i32
    return %arg1, %c0_i32, %c0_i32_0 : i32, i32, i32
  }
  func.func @transform_7(%arg0: i32, %arg1: i32) -> (i32, i32, i32) {
    %c0_i32 = arith.constant 0 : i32
    %c0_i32_0 = arith.constant 0 : i32
    %c0_i32_1 = arith.constant 0 : i32
    return %arg1, %c0_i32, %c0_i32_0 : i32, i32, i32
  }
  func.func @transform_8(%arg0: i32, %arg1: i32) -> (i32, i32, i32) {
    %c0_i32 = arith.constant 0 : i32
    %c0_i32_0 = arith.constant 0 : i32
    %c0_i32_1 = arith.constant 0 : i32
    return %arg1, %c0_i32, %c0_i32_0 : i32, i32, i32
  }
  func.func @transform_9(%arg0: i32, %arg1: i32) -> (i32, i32, i32) {
    %c0_i32 = arith.constant 0 : i32
    %c0_i32_0 = arith.constant 0 : i32
    %c0_i32_1 = arith.constant 0 : i32
    return %arg1, %c0_i32, %c0_i32_0 : i32, i32, i32
  }
  func.func @transform_10(%arg0: i32, %arg1: i32) -> (i32, i32, i32) {
    %c0_i32 = arith.constant 0 : i32
    %c0_i32_0 = arith.constant 0 : i32
    %c0_i32_1 = arith.constant 0 : i32
    return %arg1, %c0_i32, %c0_i32_0 : i32, i32, i32
  }
  func.func @transform_11(%arg0: i32, %arg1: i32) -> (i32, i32, i32) {
    %c0_i32 = arith.constant 0 : i32
    %c0_i32_0 = arith.constant 0 : i32
    %c0_i32_1 = arith.constant 0 : i32
    return %arg1, %c0_i32, %c0_i32_0 : i32, i32, i32
  }
  func.func @transform_12(%arg0: i32, %arg1: i32) -> (i32, i32, i32) {
    %c0_i32 = arith.constant 0 : i32
    %c0_i32_0 = arith.constant 0 : i32
    %c0_i32_1 = arith.constant 0 : i32
    return %arg1, %c0_i32, %c0_i32_0 : i32, i32, i32
  }
  func.func @transform_13(%arg0: i32, %arg1: i32) -> (i32, i32, i32) {
    %c0_i32 = arith.constant 0 : i32
    %c0_i32_0 = arith.constant 0 : i32
    %c0_i32_1 = arith.constant 0 : i32
    return %arg1, %c0_i32, %c0_i32_0 : i32, i32, i32
  }
  func.func @transform_14(%arg0: i32, %arg1: i32) -> (i32, i32, i32) {
    %c0_i32 = arith.constant 0 : i32
    %c0_i32_0 = arith.constant 0 : i32
    %c0_i32_1 = arith.constant 0 : i32
    return %arg1, %c0_i32, %c0_i32_0 : i32, i32, i32
  }
  func.func @transform_15(%arg0: i32, %arg1: i32) -> (i32, i32, i32) {
    %c0_i32 = arith.constant 0 : i32
    %c0_i32_0 = arith.constant 0 : i32
    %c0_i32_1 = arith.constant 0 : i32
    return %arg1, %c0_i32, %c0_i32_0 : i32, i32, i32
  }
  func.func @transform_16(%arg0: i32, %arg1: i32) -> (i32, i32, i32) {
    %c0_i32 = arith.constant 0 : i32
    %c0_i32_0 = arith.constant 0 : i32
    %c0_i32_1 = arith.constant 0 : i32
    return %arg1, %c0_i32, %c0_i32_0 : i32, i32, i32
  }
  func.func @transform_17(%arg0: i32, %arg1: i32) -> (i32, i32, i32) {
    %c0_i32 = arith.constant 0 : i32
    %c0_i32_0 = arith.constant 0 : i32
    %c0_i32_1 = arith.constant 0 : i32
    return %arg1, %c0_i32, %c0_i32_0 : i32, i32, i32
  }
  func.func @transform_18(%arg0: i32, %arg1: i32) -> (i32, i32, i32) {
    %c0_i32 = arith.constant 0 : i32
    %c0_i32_0 = arith.constant 0 : i32
    %c0_i32_1 = arith.constant 0 : i32
    return %arg1, %c0_i32, %c0_i32_0 : i32, i32, i32
  }
  func.func @transform_19(%arg0: i32, %arg1: i32) -> (i32, i32, i32) {
    %c0_i32 = arith.constant 0 : i32
    %c0_i32_0 = arith.constant 0 : i32
    %c0_i32_1 = arith.constant 0 : i32
    return %arg1, %c0_i32, %c0_i32_0 : i32, i32, i32
  }
  func.func @transform_20(%arg0: i32, %arg1: i32) -> (i32, i32, i32) {
    %c0_i32 = arith.constant 0 : i32
    %c0_i32_0 = arith.constant 0 : i32
    %c0_i32_1 = arith.constant 0 : i32
    return %arg1, %c0_i32, %c0_i32_0 : i32, i32, i32
  }
  func.func @transform_21(%arg0: i32, %arg1: i32) -> (i32, i32, i32) {
    %c0_i32 = arith.constant 0 : i32
    %c0_i32_0 = arith.constant 0 : i32
    %c0_i32_1 = arith.constant 0 : i32
    return %arg1, %c0_i32, %c0_i32_0 : i32, i32, i32
  }
  func.func @transform_22(%arg0: i32, %arg1: i32) -> (i32, i32) {
    %c0_i32 = arith.constant 0 : i32
    %c0_i32_0 = arith.constant 0 : i32
    %c0_i32_1 = arith.constant 0 : i32
    return %c0_i32, %c0_i32_0 : i32, i32
  }
  func.func @transform_23(%arg0: i32, %arg1: i32) -> (i32, i32) {
    %c0_i32 = arith.constant 0 : i32
    %c0_i32_0 = arith.constant 0 : i32
    %c0_i32_1 = arith.constant 0 : i32
    return %c0_i32, %c0_i32_0 : i32, i32
  }
  func.func @transform_24(%arg0: i32, %arg1: i32) -> (i32, i32, i32) {
    %c0_i32 = arith.constant 0 : i32
    %c0_i32_0 = arith.constant 0 : i32
    %c0_i32_1 = arith.constant 0 : i32
    return %arg0, %c0_i32, %c0_i32_0 : i32, i32, i32
  }
}

</mosaic_0001>

<bundles_post_ra>
// kernel: _lambda_.4
= control target key start
LH: loop header
LB: loop body
LE: loop exit
PB: predicated region body
PF: predicated region fallthrough
CT: control target
= control target key end

     0   :  { %v184_v0 = vmov 0.0   ;;  %vm185_vm0 = vmmov 0   ;;  %s245_s1 = inlined_call_operand.vmem [shape: bf16[128,128], index: 1, kind: input, shape index: {}]   ;;  %s246_s0 = inlined_call_operand.vmem [shape: f32[16,128], index: 0, kind: input, shape index: {}]   ;;  %s247_s2 = inlined_call_operand.vmem [shape: f32[1,128], index: 2, kind: input, shape index: {}]   ;;  %s248_s3 = inlined_call_operand.vmem [shape: f32[16,128], index: 3, kind: output, shape index: {}]  }
   0x1   :  { %154 = vmatprep.subr.bf16.mxu0 %v184_v0  ;;  %v176_v1 = vld [vmem:[%s245_s1] sm:$0xff]   ;;  %170 = vmatprep.mubr.msk.bf16.mxu0 %vm185_vm0, %v184_v0  ;;  %v177_v2 = vld [vmem:[%s245_s1 + $0x8] sm:$0xff]   ;;  %v178_v3 = vld [vmem:[%s245_s1 + $0x10] sm:$0xff]  }
   0x2   :  { %155 = vmatpush3.bf16.msra.mxu0 %v176_v1  ;;  %v179_v4 = vld [vmem:[%s245_s1 + $0x18] sm:$0xff]   ;;  %v180_v5 = vld [vmem:[%s245_s1 + $0x20] sm:$0xff]   ;;  %v181_v6 = vld [vmem:[%s245_s1 + $0x28] sm:$0xff]  }
   0x3   :  { %156 = vmatprep.subr.bf16.mxu0 %v184_v0  ;;  %v182_v7 = vld [vmem:[%s245_s1 + $0x30] sm:$0xff]   ;;  %v183_v8 = vld [vmem:[%s245_s1 + $0x38] sm:$0xff]   ;;  %v15_v9 = vld [vmem:[%s246_s0] sm:$0xff] }
   0x4   :  { %v16_v10 = vld [vmem:[%s246_s0 + $0x8] sm:$0xff]  ;;  %v136_v12 = vld [vmem:[%s247_s2] ss:$0 sm:$0xff] }
   0x5   :  { %v17_v11 = vpack.c.bf16 %v16_v10, %v15_v9 }
   0x6   :  { %157 = vmatpush3.bf16.msra.mxu0 %v177_v2 }
   0x7   :  { %158 = vmatprep.subr.bf16.mxu0 %v184_v0 }
   0xa   :  { %159 = vmatpush3.bf16.msra.mxu0 %v178_v3 }
   0xb   :  { %160 = vmatprep.subr.bf16.mxu0 %v184_v0 }
   0xe   :  { %161 = vmatpush3.bf16.msra.mxu0 %v179_v4 }
   0xf   :  { %162 = vmatprep.subr.bf16.mxu0 %v184_v0 }
  0x12   :  { %163 = vmatpush3.bf16.msra.mxu0 %v180_v5 }
  0x13   :  { %164 = vmatprep.subr.bf16.mxu0 %v184_v0 }
  0x16   :  { %165 = vmatpush3.bf16.msra.mxu0 %v181_v6 }
  0x17   :  { %166 = vmatprep.subr.bf16.mxu0 %v184_v0 }
  0x1a   :  { %167 = vmatpush3.bf16.msra.mxu0 %v182_v7 }
  0x1b   :  { %168 = vmatprep.subr.bf16.mxu0 %v184_v0 }
  0x1e   :  { %169 = vmatpush3.bf16.msra.mxu0 %v183_v8 }
  0x21   :  { %171 = vmatmul.mubr.bf16.vlgmr.msra.gmra.mrb[0].mxu0 %v17_v11 }
  0xf4   :  { %v123_v13 = vpop.f32.mrb[0].mxu0 }
  0xf5   :  { %v124_v14 = vadd.f32 %v136_v12, %v123_v13  ;;  %v172_v15 = vpop.f32.mrb[1].mxu0 }
  0xf6   :  { %v126_v16 = vpop.f32.mrb[2].mxu0 }
  0xf7   :  { %130 = vst [vmem:[%s248_s3] sm:$0xff] %v124_v14  ;;  %v127_v17 = vadd.f32 %v136_v12, %v126_v16  ;;  %v173_v18 = vpop.f32.mrb[3].mxu0 }
  0xf9   :  { %131 = vst [vmem:[%s248_s3 + $0x8] sm:$0xff] %v127_v17 }

// kernel: _lambda_.5
= control target key start
LH: loop header
LB: loop body
LE: loop exit
PB: predicated region body
PF: predicated region fallthrough
CT: control target
= control target key end

     0   :  { %s5474_s25 = smov 0   ;;  %s5476_s26 = smov 0   ;;  %s6126_s0 = inlined_call_operand.vmem [shape: f32[2,9,128], index: 0, kind: input, shape index: {}]   ;;  %s6127_s1 = inlined_call_operand.vmem [shape: bf16[4,128,384], index: 1, kind: input, shape index: {}]   ;;  %s6128_s2 = inlined_call_operand.vmem [shape: f32[4,1,384], index: 2, kind: input, shape index: {}]   ;;  %s6129_s3 = inlined_call_operand.vmem [shape: bf16[4,128,128], index: 3, kind: input, shape index: {}]   ;;  %s6130_s4 = inlined_call_operand.vmem [shape: f32[4,1,128], index: 4, kind: input, shape index: {}]   ;;  %s6131_s5 = inlined_call_operand.vmem [shape: f32[4,1,128], index: 5, kind: input, shape index: {}, may-alias: {5,11}]   ;;  %s6132_s6 = inlined_call_operand.vmem [shape: f32[4,1,128], index: 6, kind: input, shape index: {}, may-alias: {6,12}]   ;;  %s6133_s7 = inlined_call_operand.vmem [shape: bf16[4,128,2048], index: 7, kind: input, shape index: {}]   ;;  %s6134_s8 = inlined_call_operand.vmem [shape: f32[4,1,2048], index: 8, kind: input, shape index: {}]   ;;  %s6135_s9 = inlined_call_operand.vmem [shape: bf16[4,2048,128], index: 9, kind: input, shape index: {}]   ;;  %s6136_s10 = inlined_call_operand.vmem [shape: f32[4,1,128], index: 10, kind: input, shape index: {}]   ;;  %s6137_s11 = inlined_call_operand.vmem [shape: f32[4,1,128], index: 11, kind: input, shape index: {}, may-alias: {5,11}]   ;;  %s6138_s12 = inlined_call_operand.vmem [shape: f32[4,1,128], index: 12, kind: input, shape index: {}, may-alias: {6,12}]   ;;  %s6139_s13 = inlined_call_operand.vmem [shape: f32[2,9,128], index: 13, kind: output, shape index: {}]  }
   0x1   :  { %6144 = sst [smem:[#allocation9_spill]] %s6126_s0  ;;  %s5478_s27 = smov 0  }
   0x2   :  { %6145 = sst [smem:[#allocation10_spill]] %s6127_s1  ;;  %s5480_s28 = smov 0  }
   0x3   :  { %6146 = sst [smem:[#allocation11_spill]] %s6128_s2  ;;  %s5482_s29 = smov 0  }
   0x4   :  { %6147 = sst [smem:[#allocation12_spill]] %s6129_s3 }
   0x5   :  { %6148 = sst [smem:[#allocation13_spill]] %s6132_s6 }
   0x6   :  { %6149 = sst [smem:[#allocation14_spill]] %s6133_s7 }
   0x7   :  { %6150 = sst [smem:[#allocation15_spill]] %s6134_s8 }
   0x8   :  { %6151 = sst [smem:[#allocation16_spill]] %s6138_s12 }
   0x9   :  { %6152 = sst [smem:[#allocation17_spill]] %s6139_s13 }
   0xa LB: > { %6153 = sst [smem:[#allocation3_spill]] %s5379_s25  ;;  %s32_s30 = sadd.s32 1, %s5387_s27  ;;  %s5395_s29 = sphi %s5482_s29, %s23_s29   ;;  %s5391_s28 = sphi %s5480_s28, %s6178_s28   ;;  %s5387_s27 = sphi %s5478_s27, %s6177_s27   ;;  %s5383_s26 = sphi %s5476_s26, %s6176_s26   ;;  %s5379_s25 = sphi %s5474_s25, %s6175_s25  }
   0xb   : > { %6154 = sst [smem:[#allocation4_spill]] %s5387_s27  ;;  %s35_s14 = sadd.s32 1, %s5391_s28 }
   0xc   : > { %6155 = sst [smem:[#allocation5_spill]] %s5391_s28  ;;  %p33_p0 = scmp.ge.s32.totalorder %s32_s30, 4 }
   0xd   : > { %6156 = sst [smem:[#allocation6_spill]] %s5395_s29  ;;  %p4462_p1 = scmp.ge.s32.totalorder %s5395_s29, 1 }
   0xe   : > { %p505_p2 = scmp.lt.s32.totalorder %s5395_s29, 9  ;;  %s6180_s30 = smov (%p33_p0, %s32_s30), 0 }
   0xf   : > { %6157 = sst [smem:[#allocation7_spill]] %s6180_s30  ;;  %s6182_s14 = smov (!%p33_p0, %s35_s14), %s5391_s28 }
  0x10   : > { %p506_p3 = pnand %p4462_p1, %p505_p2  ;;  %p37_p4 = scmp.ge.s32.totalorder %s6182_s14, 2 }
  0x11   : > { %p595_p5 = scmp.lt.s32.totalorder (!%p506_p3), %s5383_s26, 1  ;;  %p600_p6 = scmp.lt.s32.totalorder (!%p506_p3), %s5379_s25, 3 }
  0x12   : > { %s6184_s14 = smov (%p37_p4, %s6182_s14), 0  ;;  %509 = sbr.rel (%p506_p3) target bundleno = 3137 (0xc41), region = 72 }
  0x13   : > { %6158 = sst [smem:[#allocation8_spill]] %s6184_s14  ;;  %s6159_s0 = sld [smem:[#allocation9_spill]] (!%p506_p3) }
  0x14   : > { %s6160_s1 = sld [smem:[#allocation10_spill]] (!%p506_p3)  ;;  %s6161_s3 = sld [smem:[#allocation12_spill]] (!%p506_p3) }
  0x15   : > { %s6162_s2 = sld [smem:[#allocation11_spill]] (!%p506_p3)  ;;  %s6164_s7 = sld [smem:[#allocation14_spill]] (!%p506_p3) }
  0x16   : > { %s6165_s8 = sld [smem:[#allocation15_spill]] (!%p506_p3) }
  0x19   : > { %s6186_s26 = smov (!%p595_p5, %s5383_s26), 1 }
  0x1a   : > { %s5508_s15 = scalar_select %p600_p6, %s5379_s25, 3 }
  0x1b   : > { %s4780_s16 = sshll.u32 %s6186_s26, 4  ;;  %s6167_s26 = sld [smem:[#allocation17_spill]] }
  0x1c   : > { %s599_s19 = scalar_lea.vmem %s6159_s0, %s4780_s16  ;;  %s5083_s20 = smul.u32 192, %s5508_s15 }
  0x1d   : > { %s5084_s21 = smul.u32 3, %s5508_s15  ;;  %s4781_s22 = sshll.u32 %s5508_s15, 6 }
  0x1e   : > { %s5519_s14 = scalar_lea.vmem %s6160_s1, %s5083_s20  ;;  %s5524_s27 = scalar_lea.vmem %s6161_s3, %s4781_s22 }
  0x1f   : > { %s5529_s17 = scalar_lea.vmem %s6162_s2, %s5084_s21  ;;  %s4782_s28 = sshll.u32 %s5508_s15, 10 }
  0x20   : > { %s4470_s30 = sshll.u32 %s5508_s15, 4  ;;  %s5548_s29 = scalar_lea.vmem %s6164_s7, %s4782_s28 }
  0x21   : > { %s5553_s0 = scalar_lea.vmem %s6165_s8, %s4470_s30  ;;  %s5558_s12 = scalar_lea.vmem %s6135_s9, %s4782_s28 }
  0x22   : > { %s639_s24 = scalar_lea.vmem %s6136_s10, %s5508_s15  ;;  %s642_s3 = scalar_lea.vmem %s6137_s11, %s5508_s15 }
  0x23   : > { %s6166_s7 = sld [smem:[#allocation16_spill]]  ;;  %s5575_s8 = scalar_lea.vmem %s6167_s26, %s4780_s16 }
  0x24   : > { %s6168_s25 = sld [smem:[#allocation3_spill]] }
  0x29   : > { %s645_s6 = scalar_lea.vmem %s6166_s7, %s5508_s15 }
  0x2a   : > { %p4475_p7 = scmp.ne.s32.totalorder %s6168_s25, 0 }
  0x2b   : > { %v656_v0 = vld [vmem:[%s599_s19] sm:$0xff] (!%p4475_p7)  ;;  %v657_v1 = vld [vmem:[%s599_s19 + $0x8] sm:$0x1] (!%p4475_p7) }
  0x2c   : > { %655 = sbr.rel (%p4475_p7) target bundleno = 51 (0x33), region = 76  ;;  %658 = vst [vmem:[#allocation2] sm:$0xff] (!%p4475_p7), %v656_v0  ;;  %659 = vst [vmem:[#allocation2 + $0x8] sm:$0x1] (!%p4475_p7), %v657_v1 }
  0x33 PF: > { %v5147_v2 = vld [vmem:[%s5519_s14 + $0x4] ss:$12 sps:$4 sm:$0xff]   ;;  %v5149_v3 = vld [vmem:[%s5519_s14] ss:$12 sps:$4 sm:$0xff]   ;;  %v5397_v4 = vmov 0   ;;  %v5398_v5 = vmov 0.0   ;;  %v716_v31 = vlaneseq  ;;  %s6169_s16 = scalar_lea.vmem %s6130_s4, %s5508_s15  ;;  %s6170_s23 = scalar_lea.vmem %s6131_s5, %s5508_s15 }
  0x34   : > { %891 = vmatprep.mubr.bf16.mxu0 %v5397_v4  ;;  %4995 = vmatprep.subr.bf16.mxu1 %v5398_v5  ;;  %v5150_v6 = vld [vmem:[%s5519_s14 + $0x1c] ss:$12 sps:$4 sm:$0xff]   ;;  %v5152_v7 = vld [vmem:[%s5519_s14 + $0x18] ss:$12 sps:$4 sm:$0xff]   ;;  %v5153_v8 = vld [vmem:[%s5519_s14 + $0x34] ss:$12 sps:$4 sm:$0xff]  }
  0x35   : > { %859 = vmatprep.subr.bf16.mxu0 %v5147_v2  ;;  %v5155_v9 = vld [vmem:[%s5519_s14 + $0x30] ss:$12 sps:$4 sm:$0xff]   ;;  %v5156_v10 = vld [vmem:[%s5519_s14 + $0x4c] ss:$12 sps:$4 sm:$0xff]   ;;  %v5158_v11 = vld [vmem:[%s5519_s14 + $0x48] ss:$12 sps:$4 sm:$0xff]  }
  0x36   : > { %860 = vmatpush1.bf16.msra.mxu0 %v5149_v3  ;;  %v5159_v12 = vld [vmem:[%s5519_s14 + $0x64] ss:$12 sps:$4 sm:$0xff]   ;;  %v5171_v13 = vld [vmem:[%s5519_s14 + $0x8] ss:$12 sps:$4 sm:$0xff]   ;;  %v5172_v14 = vld [vmem:[%s5519_s14 + $0x20] ss:$12 sps:$4 sm:$0xff]  }
  0x37   : > { %861 = vmatprep.subr.bf16.mxu0 %v5150_v6  ;;  %4996 = vmatpush3.bf16.msra.mxu1 %v5171_v13  ;;  %v5161_v15 = vld [vmem:[%s5519_s14 + $0x60] ss:$12 sps:$4 sm:$0xff]   ;;  %v5162_v16 = vld [vmem:[%s5519_s14 + $0x7c] ss:$12 sps:$4 sm:$0xff]   ;;  %v5164_v17 = vld [vmem:[%s5519_s14 + $0x78] ss:$12 sps:$4 sm:$0xff]  }
  0x38   : > { %4997 = vmatprep.subr.bf16.mxu1 %v5398_v5  ;;  %v5165_v18 = vld [vmem:[%s5519_s14 + $0x94] ss:$12 sps:$4 sm:$0xff]   ;;  %v5173_v19 = vld [vmem:[%s5519_s14 + $0x38] ss:$12 sps:$4 sm:$0xff]   ;;  %v5174_v20 = vld [vmem:[%s5519_s14 + $0x50] ss:$12 sps:$4 sm:$0xff]  }
  0x39   : > { %v5167_v21 = vld [vmem:[%s5519_s14 + $0x90] ss:$12 sps:$4 sm:$0xff]   ;;  %v5168_v22 = vld [vmem:[%s5519_s14 + $0xac] ss:$12 sps:$4 sm:$0xff]   ;;  %v5175_v23 = vld [vmem:[%s5519_s14 + $0x68] ss:$12 sps:$4 sm:$0xff]  }
  0x3a   : > { %862 = vmatpush1.bf16.msra.mxu0 %v5152_v7  ;;  %v5170_v24 = vld [vmem:[%s5519_s14 + $0xa8] ss:$12 sps:$4 sm:$0xff]   ;;  %v660_v25 = vld [vmem:[#allocation2] sm:$0xff]  ;;  %v5178_v30 = vld [vmem:[%s5519_s14 + $0xb0] ss:$12 sps:$4 sm:$0xff]   ;;  %vm5399_vm0 = vmmov 0  }
  0x3b   : > { %863 = vmatprep.subr.bf16.mxu0 %v5153_v8  ;;  %4998 = vmatpush3.bf16.msra.mxu1 %v5172_v14  ;;  %v661_v26 = vld [vmem:[#allocation2 + $0x8] sm:$0x1]  ;;  %v5176_v27 = vld [vmem:[%s5519_s14 + $0x80] ss:$12 sps:$4 sm:$0xff]   ;;  %v5177_v29 = vld [vmem:[%s5519_s14 + $0x98] ss:$12 sps:$4 sm:$0xff]  }
  0x3c   : > { %4999 = vmatprep.subr.bf16.mxu1 %v5398_v5  ;;  %v714_v28 = vpack.c.bf16 %v661_v26, %v660_v25  ;;  %5011 = vmatprep.mubr.msk.bf16.mxu1 %vm5399_vm0, %v5398_v5  ;;  %v5619_v32 = vshrl.u32 %v716_v31, 7  ;;  %v694_v34 = vld [vmem:[%s5529_s17] sm:$0x7]  ;;  %vm946_vm1 = vcmask 261120   ;;  %vm1022_vm2 = vcmask 1043456   ;;  %s5401_s1 = smov 96  }
  0x3d   : > { %vm1023_vm3 = vcmask 1044480   ;;  %v5400_v58 = vmov 65535   ;;  %vm994_vm4 = vcmask 72704   ;;  %vm998_vm5 = vcmask 65536   ;;  %s5402_s2 = smov 32   ;;  %s5403_s7 = smov 64  }
  0x3e   : > { %864 = vmatpush1.bf16.msra.mxu0 %v5155_v9  ;;  %v5622_v33 = vsub.s32 0, %v5619_v32  ;;  %v5626_v35 = vsub.s32 1, %v5619_v32  ;;  %v5636_v49 = vsub.s32 2, %v5619_v32  ;;  %v1024_v59 = vsel %vm1022_vm2, 4294967295, %v5400_v58  ;;  %s6171_s13 = sld [smem:[#allocation13_spill]] }
  0x3f   : > { %865 = vmatprep.subr.bf16.mxu0 %v5156_v10  ;;  %5000 = vmatpush3.bf16.msra.mxu1 %v5173_v19  ;;  %v5641_v60 = vsel %vm1023_vm3, %v1024_v59, 0  ;;  %vm1468_vm6 = vcmask 523264   ;;  %vm1471_vm7 = vcmask 785408   ;;  %vm1574_vm8 = vcmask 1040384  }
  0x40   : > { %5001 = vmatprep.subr.bf16.mxu1 %v5398_v5  ;;  %v719_v36 = vrot.slane %v694_v34, %v5622_v33  ;;  %v723_v38 = vrot.slane %v694_v34, %v5626_v35  ;;  %v727_v50 = vrot.slane %v694_v34, %v5636_v49 }
  0x42   : > { %866 = vmatpush1.bf16.msra.mxu0 %v5158_v11 }
  0x43   : > { %867 = vmatprep.subr.bf16.mxu0 %v5159_v12  ;;  %5002 = vmatpush3.bf16.msra.mxu1 %v5174_v20 }
  0x44   : > { %5003 = vmatprep.subr.bf16.mxu1 %v5398_v5  ;;  %s6172_s20 = scalar_lea.vmem %s6171_s13, %s5508_s15 }
  0x46   : > { %868 = vmatpush1.bf16.msra.mxu0 %v5161_v15 }
  0x47   : > { %869 = vmatprep.subr.bf16.mxu0 %v5162_v16  ;;  %5004 = vmatpush3.bf16.msra.mxu1 %v5175_v23 }
  0x48   : > { %5005 = vmatprep.subr.bf16.mxu1 %v5398_v5 }
  0x4a   : > { %870 = vmatpush1.bf16.msra.mxu0 %v5164_v17 }
  0x4b   : > { %871 = vmatprep.subr.bf16.mxu0 %v5165_v18  ;;  %5006 = vmatpush3.bf16.msra.mxu1 %v5176_v27 }
  0x4c   : > { %5007 = vmatprep.subr.bf16.mxu1 %v5398_v5 }
  0x4e   : > { %872 = vmatpush1.bf16.msra.mxu0 %v5167_v21 }
  0x4f   : > { %873 = vmatprep.subr.bf16.mxu0 %v5168_v22  ;;  %5008 = vmatpush3.bf16.msra.mxu1 %v5177_v29 }
  0x50   : > { %5009 = vmatprep.subr.bf16.mxu1 %v5398_v5 }
  0x52   : > { %874 = vmatpush1.bf16.msra.mxu0 %v5170_v24 }
  0x53   : > { %5039 = vmatprep.subr.bf16.mxu0 %v5398_v5  ;;  %5010 = vmatpush3.bf16.msra.mxu1 %v5178_v30 }
  0x54   : > { %5015 = vmatprep.subr.bf16.mxu1 %v5398_v5 }
  0x55   : > { %892 = vmatmul.mubr.bf16.vlgmr.msra.gmra.mrb[0].mxu0 %v714_v28 }
  0x56   : > { %5041 = vmatprep.mubr.msk.bf16.mxu0 %vm5399_vm0, %v5398_v5  ;;  %5012 = vmatmul.mubr.bf16.vlgmr.msra.gmra.mrb[0].mxu1 %v714_v28 }
  0x57   : > { %5017 = vmatprep.mubr.msk.bf16.mxu1 %vm5399_vm0, %v5398_v5 }
 0x128   : > { %v893_v37 = vpop.f32.mrb[0].mxu0 }
 0x129   : > { %v895_v39 = vpop.f32.mrb[1].mxu0  ;;  %v894_v41 = vadd.f32 %v893_v37, %v719_v36  ;;  %v936_v51 = vpop.f32.mrb[0].mxu1 }
 0x12a   : > { %v897_v40 = vpop.f32.mrb[2].mxu0  ;;  %v896_v44 = vadd.f32 %v895_v39, %v723_v38  ;;  %v937_v52 = vadd.f32 %v936_v51, %v727_v50  ;;  %v5013_v53 = vpop.f32.mrb[1].mxu1 }
 0x12b   : > { %v898_v42 = vadd.f32 %v897_v40, %v719_v36  ;;  %v899_v43 = vpop.f32.mrb[3].mxu0  ;;  %v939_v54 = vpop.f32.mrb[2].mxu1 }
 0x12c   : > { %v900_v45 = vadd.f32 %v899_v43, %v723_v38  ;;  %v940_v55 = vadd.f32 %v939_v54, %v727_v50  ;;  %v5014_v56 = vpop.f32.mrb[3].mxu1 }
 0x12d   : > { %v943_v46 = vpack.c.bf16 %v898_v42, %v894_v41 }
 0x12e   : > { %v944_v47 = vpack.c.bf16 %v900_v45, %v896_v44  ;;  %v5639_v57 = vpack.c.bf16 %v940_v55, %v937_v52 }
 0x130   : > { %v951_v48 = vsel %vm946_vm1, %v944_v47, 0  ;;  %v1027_v61 = vand.u32 %v5641_v60, %v5639_v57 }
 0x131   : > { %5016 = vmatpush3.bf16.xpose.msra.mxu1 %v951_v48 }
 0x132   : > { %5021 = vmatprep.subr.bf16.mxu1 %v5398_v5 }
 0x138   : > { %5018 = vmatmul.mubr.msk.bf16.vlgmr.msra.gmra.mrb[4].mxu1 %vm946_vm1, %v943_v46 }
 0x139   : > { %5023 = vmatprep.mubr.msk.bf16.mxu1 %vm5399_vm0, %v5398_v5  ;;  %5022 = vmatpush3.bf16.msra.mxu1 %v1027_v61 }
 0x13a   : > { %5027 = vmatprep.subr.bf16.mxu1 %v5398_v5 }
 0x20b   : > { %v987_v62 = vpop.f32.mrb[4].mxu1 }
 0x20c   : > { %v5019_v63 = vpop.f32.mrb[5].mxu1  ;;  %v995_v0 = vsel %vm994_vm4, %v987_v62, -inf }
 0x20d   : > { %996 = vmax.xlane.f32.xlu0 %v995_v0  ;;  %v990_v1 = vpop.f32.mrb[6].mxu1 }
 0x20e   : > { %v5020_v2 = vpop.f32.mrb[7].mxu1  ;;  %v999_v3 = vsel %vm998_vm5, %v990_v1, -inf }
 0x211   : > { %1000 = vmax.xlane.f32.xlu0 %v999_v3 }
 0x227   : > { %1074 = vrot.lane.b32.xlu0 %v944_v47, %s5401_s1 }
 0x22b   : > { %1321 = vrot.lane.b32.xlu0 %v944_v47, %s5402_s2 }
 0x29a   : > { %v997_v6 = vpop.xlane.xlu0 %996 }
 0x29b   : > { %v1002_v7 = vsub.f32 %v987_v62, %v997_v6 }
 0x29d   : > { %v1004_v8 = vmul.f32 1.442695, %v1002_v7 }
 0x29e   : > { %v1001_v9 = vpop.xlane.xlu0 %1000 }
 0x29f   : > { %5315 = vpow2.f32 %v1004_v8  ;;  %v1003_v10 = vsub.f32 %v990_v1, %v1001_v9 }
 0x2a1   : > { %v1006_v11 = vmul.f32 1.442695, %v1003_v10 }
 0x2a2   : > { %v1075_v19 = vpop.permute.xlu0 %1074 }
 0x2a3   : > { %5317 = vpow2.f32 %v1006_v11  ;;  %v1080_v28 = vsel %vm946_vm1, %v1075_v19, 0 }
 0x2a6   : > { %v1322_v26 = vpop.permute.xlu0 %1321 }
 0x2a7   : > { %v1327_v30 = vsel %vm946_vm1, %v1322_v26, 0 }
 0x2a9   : > { %v5316_v12 = vpop.eup %5315 }
 0x2aa   : > { %v1008_v13 = vsel %vm994_vm4, %v5316_v12, 0.0 }
 0x2ab   : > { %1009 = vadd.xlane.f32.xlu1 %v1008_v13 }
 0x2ad   : > { %v5318_v14 = vpop.eup %5317 }
 0x2ae   : > { %v1011_v15 = vsel %vm998_vm5, %v5318_v14, 0.0 }
 0x2af   : > { %1012 = vadd.xlane.f32.xlu1 %v1011_v15 }
 0x2c0   : > { %1071 = vrot.lane.b32.xlu1 %v943_v46, %s5401_s1 }
 0x2c4   : > { %1198 = vrot.lane.b32.xlu1 %v944_v47, %s5403_s7 }
 0x2c8   : > { %1196 = vrot.lane.b32.xlu1 %v943_v46, %s5403_s7 }
 0x2cc   : > { %1319 = vrot.lane.b32.xlu1 %v943_v46, %s5402_s2 }
 0x338   : > { %v1010_v16 = vpop.xlane.xlu1 %1009 }
 0x339   : > { %5319 = vrcp.f32 %v1010_v16 }
 0x33c   : > { %v1013_v17 = vpop.xlane.xlu1 %1012 }
 0x33d   : > { %5321 = vrcp.f32 %v1013_v17 }
 0x340   : > { %v1072_v18 = vpop.permute.xlu1 %1071 }
 0x343   : > { %v5320_v21 = vpop.eup %5319 }
 0x344   : > { %v1199_v20 = vpop.permute.xlu1 %1198  ;;  %v1016_v24 = vmul.f32 %v5320_v21, %v5316_v12 }
 0x345   : > { %v1204_v22 = vsel %vm946_vm1, %v1199_v20, 0 }
 0x346   : > { %5040 = vmatpush3.bf16.xpose.msra.mxu0 %v1204_v22 }
 0x347   : > { %v5322_v23 = vpop.eup %5321  ;;  %5051 = vmatprep.subr.bf16.mxu0 %v5398_v5 }
 0x348   : > { %v1017_v25 = vmul.f32 %v5322_v23, %v5318_v14  ;;  %v1197_v29 = vpop.permute.xlu1 %1196 }
 0x34a   : > { %v1018_v27 = vpack.c.bf16 %v1017_v25, %v1016_v24 }
 0x34c   : > { %5024 = vmatmul.mubr.msk.bf16.vlgmr.msra.gmra.mrb[8].mxu1 %vm994_vm4, %v1018_v27  ;;  %v1320_v31 = vpop.permute.xlu1 %1319 }
 0x34d   : > { %5028 = vmatpush3.bf16.xpose.msra.mxu1 %v1080_v28  ;;  %5042 = vmatmul.mubr.msk.bf16.vlgmr.msra.gmra.mrb[4].mxu0 %vm946_vm1, %v1197_v29 }
 0x34e   : > { %5052 = vmatpush3.bf16.xpose.msra.mxu0 %v1327_v30  ;;  %5029 = vmatprep.mubr.msk.bf16.mxu1 %vm5399_vm0, %v5398_v5 }
 0x34f   : > { %5053 = vmatprep.mubr.msk.bf16.mxu0 %vm5399_vm0, %v5398_v5  ;;  %5033 = vmatprep.subr.bf16.mxu1 %v5398_v5 }
 0x350   : > { %5063 = vmatprep.subr.bf16.mxu0 %v5398_v5 }
 0x354   : > { %5030 = vmatmul.mubr.msk.bf16.vlgmr.msra.gmra.mrb[12].mxu1 %vm946_vm1, %v1072_v18 }
 0x355   : > { %5054 = vmatmul.mubr.msk.bf16.vlgmr.msra.gmra.mrb[8].mxu0 %vm946_vm1, %v1320_v31  ;;  %5035 = vmatprep.mubr.msk.bf16.mxu1 %vm5399_vm0, %v5398_v5 }
 0x356   : > { %5079 = vmatprep.mubr.msk.bf16.mxu0 %vm5399_vm0, %v5398_v5 }
 0x41f   : > { %v5674_v34 = vpop.f32.mrb[8].mxu1 }
 0x420   : > { %v5025_v36 = vpop.f32.mrb[9].mxu1  ;;  %v1240_v37 = vpop.f32.mrb[4].mxu0 }
 0x421   : > { %v5676_v38 = vpop.f32.mrb[10].mxu1  ;;  %v5043_v39 = vpop.f32.mrb[5].mxu0  ;;  %v1247_v54 = vsel %vm994_vm4, %v1240_v37, -inf }
 0x422   : > { %v5026_v40 = vpop.f32.mrb[11].mxu1  ;;  %v1243_v41 = vpop.f32.mrb[6].mxu0 }
 0x423   : > { %v5044_v42 = vpop.f32.mrb[7].mxu0  ;;  %v1250_v56 = vsel %vm998_vm5, %v1243_v41, -inf }
 0x427   : > { %v1116_v43 = vpop.f32.mrb[12].mxu1 }
 0x428   : > { %v5031_v44 = vpop.f32.mrb[13].mxu1  ;;  %v1363_v45 = vpop.f32.mrb[8].mxu0  ;;  %v1123_v46 = vsel %vm994_vm4, %v1116_v43, -inf }
 0x429   : > { %v5055_v47 = vpop.f32.mrb[9].mxu0  ;;  %1124 = vmax.xlane.f32.xlu0 %v1123_v46  ;;  %v1119_v48 = vpop.f32.mrb[14].mxu1  ;;  %v1370_v58 = vsel %vm994_vm4, %v1363_v45, -inf }
 0x42a   : > { %v5032_v50 = vpop.f32.mrb[15].mxu1  ;;  %v1366_v51 = vpop.f32.mrb[10].mxu0  ;;  %v1126_v52 = vsel %vm998_vm5, %v1119_v48, -inf }
 0x42b   : > { %v5056_v53 = vpop.f32.mrb[11].mxu0  ;;  %1127 = vmax.xlane.f32.xlu1 %v1126_v52  ;;  %v1373_v55 = vsel %vm998_vm5, %v1366_v51, -inf }
 0x42d   : > { %1248 = vmax.xlane.f32.xlu0 %v1247_v54 }
 0x42f   : > { %1374 = vmax.xlane.f32.xlu1 %v1373_v55 }
 0x431   : > { %1251 = vmax.xlane.f32.xlu0 %v1250_v56 }
 0x435   : > { %1371 = vmax.xlane.f32.xlu0 %v1370_v58 }
 0x4b6   : > { %v1125_v59 = vpop.xlane.xlu0 %1124 }
 0x4b7   : > { %v1129_v7 = vsub.f32 %v1116_v43, %v1125_v59 }
 0x4b8   : > { %v1128_v61 = vpop.xlane.xlu1 %1127 }
 0x4b9   : > { %v1130_v8 = vsub.f32 %v1119_v48, %v1128_v61  ;;  %v1131_v13 = vmul.f32 1.442695, %v1129_v7 }
 0x4ba   : > { %v1249_v62 = vpop.xlane.xlu0 %1248 }
 0x4bb   : > { %v1253_v63 = vsub.f32 %v1240_v37, %v1249_v62  ;;  %v1133_v14 = vmul.f32 1.442695, %v1130_v8  ;;  %v5179_v62 = vld [vmem:[%s5524_s27] sm:$0xff]  }
 0x4bc   : > { %v1375_v0 = vpop.xlane.xlu1 %1374  ;;  %5064 = vmatpush3.bf16.msra.mxu0 %v5179_v62 }
 0x4bd   : > { %v1255_v1 = vmul.f32 1.442695, %v1253_v63  ;;  %v1377_v2 = vsub.f32 %v1366_v51, %v1375_v0  ;;  %v5180_v63 = vld [vmem:[%s5524_s27 + $0x8] sm:$0xff]   ;;  %5065 = vmatprep.subr.bf16.mxu0 %v5398_v5  ;;  %v5182_v0 = vld [vmem:[%s5524_s27 + $0x18] sm:$0xff]  }
 0x4be   : > { %v1252_v3 = vpop.xlane.xlu0 %1251 }
 0x4bf   : > { %5323 = vpow2.f32 %v1255_v1  ;;  %v1254_v6 = vsub.f32 %v1243_v41, %v1252_v3  ;;  %v1380_v9 = vmul.f32 1.442695, %v1377_v2  ;;  %v5183_v1 = vld [vmem:[%s5524_s27 + $0x20] sm:$0xff]  }
 0x4c0   : > { %5066 = vmatpush3.bf16.msra.mxu0 %v5180_v63 }
 0x4c1   : > { %v1257_v10 = vmul.f32 1.442695, %v1254_v6  ;;  %5067 = vmatprep.subr.bf16.mxu0 %v5398_v5  ;;  %v5184_v6 = vld [vmem:[%s5524_s27 + $0x28] sm:$0xff]  }
 0x4c2   : > { %v1372_v11 = vpop.xlane.xlu0 %1371 }
 0x4c3   : > { %5325 = vpow2.f32 %v1257_v10  ;;  %v1376_v12 = vsub.f32 %v1363_v45, %v1372_v11  ;;  %v5185_v10 = vld [vmem:[%s5524_s27 + $0x30] sm:$0xff]  }
 0x4c4   : > { %5327 = vpow2.f32 %v1380_v9 }
 0x4c5   : > { %v1378_v15 = vmul.f32 1.442695, %v1376_v12 }
 0x4c7   : > { %5329 = vpow2.f32 %v1378_v15 }
 0x4c8   : > { %5331 = vpow2.f32 %v1131_v13  ;;  %v5186_v13 = vld [vmem:[%s5524_s27 + $0x38] sm:$0xff]  }
 0x4c9   : > { %v5324_v16 = vpop.eup %5323  ;;  %5333 = vpow2.f32 %v1133_v14 }
 0x4ca   : > { %v1259_v17 = vsel %vm994_vm4, %v5324_v16, 0.0 }
 0x4cb   : > { %1260 = vadd.xlane.f32.xlu0 %v1259_v17 }
 0x4cd   : > { %v5326_v18 = vpop.eup %5325 }
 0x4ce   : > { %v1262_v19 = vsel %vm998_vm5, %v5326_v18, 0.0  ;;  %v5328_v20 = vpop.eup %5327 }
 0x4cf   : > { %1263 = vadd.xlane.f32.xlu1 %v1262_v19  ;;  %v1385_v24 = vsel %vm998_vm5, %v5328_v20, 0.0 }
 0x4d1   : > { %v5330_v21 = vpop.eup %5329 }
 0x4d2   : > { %v5332_v22 = vpop.eup %5331  ;;  %v1382_v23 = vsel %vm994_vm4, %v5330_v21, 0.0 }
 0x4d3   : > { %v5334_v25 = vpop.eup %5333  ;;  %1383 = vadd.xlane.f32.xlu0 %v1382_v23  ;;  %1386 = vadd.xlane.f32.xlu1 %v1385_v24  ;;  %v1135_v26 = vsel %vm994_vm4, %v5332_v22, 0.0 }
 0x4d4   : > { %v1138_v27 = vsel %vm998_vm5, %v5334_v25, 0.0 }
 0x4d7   : > { %1136 = vadd.xlane.f32.xlu0 %v1135_v26  ;;  %1139 = vadd.xlane.f32.xlu1 %v1138_v27 }
 0x4e8   : > { %1270 = vrot.lane.b32.xlu1 %v5639_v57, %s5403_s7 }
 0x4ec   : > { %1393 = vrot.lane.b32.xlu1 %v5639_v57, %s5402_s2 }
 0x4ed   : > { %1147 = vrot.lane.b32.xlu0 %v5639_v57, %s5401_s1 }
 0x558   : > { %v1261_v28 = vpop.xlane.xlu0 %1260 }
 0x55c   : > { %v1264_v29 = vpop.xlane.xlu1 %1263 }
 0x560   : > { %v1384_v30 = vpop.xlane.xlu0 %1383  ;;  %v1387_v31 = vpop.xlane.xlu1 %1386 }
 0x564   : > { %v1137_v36 = vpop.xlane.xlu0 %1136  ;;  %v1140_v37 = vpop.xlane.xlu1 %1139 }
 0x565   : > { %5335 = vrcp.f32 %v1137_v36 }
 0x566   : > { %5337 = vrcp.f32 %v1140_v37 }
 0x567   : > { %5339 = vrcp.f32 %v1264_v29 }
 0x568   : > { %v1148_v39 = vpop.permute.xlu0 %1147  ;;  %5341 = vrcp.f32 %v1261_v28  ;;  %v1271_v44 = vpop.permute.xlu1 %1270 }
 0x569   : > { %v1153_v40 = vand.u32 %v1148_v39, %v5641_v60  ;;  %5343 = vrcp.f32 %v1384_v30  ;;  %v1276_v47 = vand.u32 %v1271_v44, %v5641_v60 }
 0x56a   : > { %5345 = vrcp.f32 %v1387_v31 }
 0x56b   : > { %5034 = vmatpush3.bf16.msra.mxu1 %v1153_v40 }
 0x56c   : > { %5045 = vmatprep.subr.bf16.mxu1 %v5398_v5  ;;  %v1394_v52 = vpop.permute.xlu1 %1393 }
 0x56d   : > { %v1399_v56 = vand.u32 %v1394_v52, %v5641_v60  ;;  %v5181_v60 = vld [vmem:[%s5524_s27 + $0x10] sm:$0xff]   ;;  %v1614_v52 = vld [vmem:[%s5548_s29] sm:$0xff] }
 0x56e   : > { %5068 = vmatpush3.bf16.msra.mxu0 %v5181_v60 }
 0x56f   : > { %v5336_v41 = vpop.eup %5335  ;;  %5069 = vmatprep.subr.bf16.mxu0 %v5398_v5 }
 0x570   : > { %v5338_v42 = vpop.eup %5337  ;;  %v1143_v43 = vmul.f32 %v5336_v41, %v5332_v22 }
 0x571   : > { %v1144_v57 = vmul.f32 %v5338_v42, %v5334_v25  ;;  %v5340_v46 = vpop.eup %5339  ;;  %v4508_v42 = vld [vmem:[%s6169_s16] ss:$0 sm:$0xff] }
 0x572   : > { %v5342_v48 = vpop.eup %5341  ;;  %v1268_v50 = vmul.f32 %v5340_v46, %v5326_v18  ;;  %5070 = vmatpush3.bf16.msra.mxu0 %v5182_v0  ;;  %v5355_v46 = vld [vmem:[#allocation2] sm:$0xff]  ;;  %v1631_v0 = vld [vmem:[%s5548_s29 + $0x88] sm:$0xff] }
 0x573   : > { %v1145_v45 = vpack.c.bf16 %v1144_v57, %v1143_v43  ;;  %v1267_v51 = vmul.f32 %v5342_v48, %v5324_v16  ;;  %v5344_v53 = vpop.eup %5343  ;;  %5071 = vmatprep.subr.bf16.mxu0 %v5398_v5  ;;  %v5356_v48 = vld [vmem:[#allocation2 + $0x8] sm:$0x1] }
 0x574   : > { %v5346_v55 = vpop.eup %5345  ;;  %v1390_v58 = vmul.f32 %v5344_v53, %v5330_v21  ;;  %v1622_v53 = vld [vmem:[%s5548_s29 + $0x40] sm:$0xff] }
 0x575   : > { %5036 = vmatmul.mubr.msk.bf16.vlgmr.msra.gmra.mrb[16].mxu1 %vm994_vm4, %v1145_v45  ;;  %v1269_v54 = vpack.c.bf16 %v1268_v50, %v1267_v51  ;;  %v1391_v59 = vmul.f32 %v5346_v55, %v5328_v20  ;;  %v4519_v55 = vcombine.low %v1614_v52, %v1622_v53 }
 0x576   : > { %5046 = vmatpush3.bf16.msra.mxu1 %v1276_v47  ;;  %5047 = vmatprep.mubr.msk.bf16.mxu1 %vm5399_vm0, %v5398_v5 }
 0x577   : > { %5057 = vmatprep.subr.bf16.mxu1 %v5398_v5  ;;  %v1392_v61 = vpack.c.bf16 %v1391_v59, %v1390_v58  ;;  %5072 = vmatpush3.bf16.msra.mxu0 %v5183_v1  ;;  %v1623_v58 = vld [vmem:[%s5548_s29 + $0x48] sm:$0xff]  ;;  %v1630_v59 = vld [vmem:[%s5548_s29 + $0x80] sm:$0xff] }
 0x578   : > { %5073 = vmatprep.subr.bf16.mxu0 %v5398_v5  ;;  %v1639_v1 = vld [vmem:[%s5548_s29 + $0xc8] sm:$0xff] }
 0x57b   : > { %5074 = vmatpush3.bf16.msra.mxu0 %v5184_v6  ;;  %v4537_v6 = vcombine.low %v1631_v0, %v1639_v1 }
 0x57c   : > { %5075 = vmatprep.subr.bf16.mxu0 %v5398_v5 }
 0x57d   : > { %5048 = vmatmul.mubr.msk.bf16.vlgmr.msra.gmra.mrb[20].mxu1 %vm994_vm4, %v1269_v54  ;;  %v1615_v54 = vld [vmem:[%s5548_s29 + $0x8] sm:$0xff] }
 0x57e   : > { %5058 = vmatpush3.bf16.msra.mxu1 %v1399_v56  ;;  %5059 = vmatprep.mubr.msk.bf16.mxu1 %vm5399_vm0, %v5398_v5  ;;  %v4520_v56 = vcombine.high %v1614_v52, %v1622_v53  ;;  %v4521_v62 = vcombine.low %v1615_v54, %v1623_v58  ;;  %v4522_v63 = vcombine.high %v1615_v54, %v1623_v58  ;;  %v1711_v52 = vld [vmem:[%s5548_s29 + $0x308] sm:$0xff] }
 0x57f   : > { %5076 = vmatpush3.bf16.msra.mxu0 %v5185_v10  ;;  %v1719_v54 = vld [vmem:[%s5548_s29 + $0x348] sm:$0xff] }
 0x580   : > { %5077 = vmatprep.subr.bf16.mxu0 %v5398_v5  ;;  %2726 = vmatprep.subr.bf16.mxu1 %v4520_v56  ;;  %v4617_v56 = vcombine.low %v1711_v52, %v1719_v54  ;;  %v4618_v58 = vcombine.high %v1711_v52, %v1719_v54  ;;  %v1680_v54 = vld [vmem:[%s5548_s29 + $0x210] sm:$0xff] }
 0x583   : > { %5078 = vmatpush3.bf16.msra.mxu0 %v5186_v13 }
 0x584   : > { %2769 = vmatprep.subr.bf16.mxu0 %v4522_v63 }
 0x585   : > { %5060 = vmatmul.mubr.msk.bf16.vlgmr.msra.gmra.mrb[24].mxu1 %vm994_vm4, %v1392_v61  ;;  %v1638_v61 = vld [vmem:[%s5548_s29 + $0xc0] sm:$0xff] }
 0x586   : > { %2758 = vmatprep.mubr.bf16.mxu1 %v5397_v4  ;;  %v4536_v60 = vcombine.high %v1630_v59, %v1638_v61  ;;  %2727 = vmatpush1.bf16.msra.mxu1 %v4519_v55 }
 0x588   : > { %2728 = vmatprep.subr.bf16.mxu1 %v4536_v60  ;;  %v1735_v60 = vld [vmem:[%s5548_s29 + $0x3c8] sm:$0xff] }
 0x648   : > { %v1189_v2 = vpop.f32.mrb[16].mxu1 }
 0x649   : > { %v5037_v3 = vpop.f32.mrb[17].mxu1 }
 0x64a   : > { %v1192_v7 = vpop.f32.mrb[18].mxu1  ;;  %v4535_v3 = vcombine.low %v1630_v59, %v1638_v61  ;;  %v1726_v59 = vld [vmem:[%s5548_s29 + $0x380] sm:$0xff] }
 0x64b   : > { %v5132_v8 = vpack.i.bf16 %v1192_v7, %v1189_v2  ;;  %v5038_v9 = vpop.f32.mrb[19].mxu1  ;;  %v4538_v2 = vcombine.high %v1631_v0, %v1639_v1  ;;  %v1734_v61 = vld [vmem:[%s5548_s29 + $0x3c0] sm:$0xff] }
 0x64c   : > { %2729 = vmatpush1.bf16.msra.mxu1 %v4535_v3  ;;  %v4632_v63 = vcombine.high %v1726_v59, %v1734_v61  ;;  %v4631_v0 = vcombine.low %v1726_v59, %v1734_v61  ;;  %v1616_v3 = vld [vmem:[%s5548_s29 + $0x10] sm:$0xff] }
 0x64d   : > { %5133 = vrot.lane.b32.xlu1 %v5132_v8, %s5402_s2 }
 0x650   : > { %v1312_v11 = vpop.f32.mrb[20].mxu1 }
 0x651   : > { %v5049_v12 = vpop.f32.mrb[21].mxu1 }
 0x652   : > { %v1315_v14 = vpop.f32.mrb[22].mxu1 }
 0x653   : > { %v5137_v15 = vpack.i.bf16 %v1315_v14, %v1312_v11  ;;  %v5050_v16 = vpop.f32.mrb[23].mxu1 }
 0x654   : > { %v1646_v16 = vld [vmem:[%s5548_s29 + $0x100] sm:$0xff] }
 0x655   : > { %5138 = vrot.lane.b32.xlu0 %v5137_v15, %s5403_s7 }
 0x658   : > { %v1435_v17 = vpop.f32.mrb[24].mxu1 }
 0x659   : > { %v5061_v18 = vpop.f32.mrb[25].mxu1 }
 0x65a   : > { %v1438_v19 = vpop.f32.mrb[26].mxu1  ;;  %v1647_v18 = vld [vmem:[%s5548_s29 + $0x108] sm:$0xff] }
 0x65b   : > { %v5142_v20 = vpack.i.bf16 %v1438_v19, %v1435_v17  ;;  %v5062_v21 = vpop.f32.mrb[27].mxu1  ;;  %v1654_v17 = vld [vmem:[%s5548_s29 + $0x140] sm:$0xff] }
 0x65c   : > { %v4552_v19 = vcombine.high %v1646_v16, %v1654_v17  ;;  %v4551_v21 = vcombine.low %v1646_v16, %v1654_v17 }
 0x65d   : > { %5143 = vrot.lane.b32.xlu1 %v5142_v20, %s5401_s1  ;;  %v1655_v20 = vld [vmem:[%s5548_s29 + $0x148] sm:$0xff] }
 0x65e   : > { %2730 = vmatprep.subr.bf16.mxu1 %v4552_v19 }
 0x65f   : > { %2731 = vmatpush1.bf16.msra.mxu1 %v4551_v21 }
 0x6bf   : > { %v5134_v22 = vpop.permute.xlu1 %5133 }
 0x6c0   : > { %v5136_v24 = vunpack.i.h.bf16 %v5134_v22  ;;  %v5135_v25 = vunpack.i.l.bf16 %v5134_v22  ;;  %v4553_v22 = vcombine.low %v1647_v18, %v1655_v20 }
 0x6c2   : > { %v1467_v28 = vsel %vm946_vm1, %v5676_v38, %v5136_v24  ;;  %v1466_v29 = vsel %vm946_vm1, %v5674_v34, %v5135_v25  ;;  %v1662_v24 = vld [vmem:[%s5548_s29 + $0x180] sm:$0xff] }
 0x6c3   : > { %v1670_v25 = vld [vmem:[%s5548_s29 + $0x1c0] sm:$0xff] }
 0x6c7   : > { %v5139_v23 = vpop.permute.xlu0 %5138 }
 0x6c8   : > { %v5141_v5 = vunpack.i.h.bf16 %v5139_v23  ;;  %v5140_v26 = vunpack.i.l.bf16 %v5139_v23  ;;  %v4554_v23 = vcombine.high %v1647_v18, %v1655_v20 }
 0x6ca   : > { %v1470_v36 = vsel %vm1468_vm6, %v1467_v28, %v5141_v5  ;;  %v1469_v37 = vsel %vm1468_vm6, %v1466_v29, %v5140_v26  ;;  %v1663_v5 = vld [vmem:[%s5548_s29 + $0x188] sm:$0xff]  ;;  %v4568_v26 = vcombine.high %v1662_v24, %v1670_v25  ;;  %v4567_v28 = vcombine.low %v1662_v24, %v1670_v25 }
 0x6cc   : > { %2732 = vmatprep.subr.bf16.mxu1 %v4568_v26  ;;  %v4518_v26 = vld [vmem:[%s6172_s20] ss:$0 sm:$0xff] }
 0x6cd   : > { %2733 = vmatpush1.bf16.msra.mxu1 %v4567_v28  ;;  %v1640_v28 = vld [vmem:[%s5548_s29 + $0xd0] sm:$0xff] }
 0x6cf   : > { %v5144_v27 = vpop.permute.xlu1 %5143 }
 0x6d0   : > { %v5146_v30 = vunpack.i.h.bf16 %v5144_v27  ;;  %v5145_v31 = vunpack.i.l.bf16 %v5144_v27  ;;  %v1671_v27 = vld [vmem:[%s5548_s29 + $0x1c8] sm:$0xff] }
 0x6d1   : > { %v4569_v29 = vcombine.low %v1663_v5, %v1671_v27 }
 0x6d2   : > { %v1473_v39 = vsel %vm1471_vm7, %v1470_v36, %v5146_v30  ;;  %v1472_v40 = vsel %vm1471_vm7, %v1469_v37, %v5145_v31  ;;  %v4570_v30 = vcombine.high %v1663_v5, %v1671_v27  ;;  %v1678_v31 = vld [vmem:[%s5548_s29 + $0x200] sm:$0xff]  ;;  %v1679_v37 = vld [vmem:[%s5548_s29 + $0x208] sm:$0xff] }
 0x6d3   : > { %v1474_v41 = vpack.c.bf16 %v1473_v39, %v1472_v40  ;;  %v1686_v36 = vld [vmem:[%s5548_s29 + $0x240] sm:$0xff]  ;;  %v1687_v40 = vld [vmem:[%s5548_s29 + $0x248] sm:$0xff] }
 0x6d4   : > { %v4584_v39 = vcombine.high %v1678_v31, %v1686_v36 }
 0x6d5   : > { %5080 = vmatmul.mubr.bf16.vlgmr.msra.gmra.mrb[12].mxu0 %v1474_v41  ;;  %v4583_v41 = vcombine.low %v1678_v31, %v1686_v36 }
 0x6d6   : > { %2801 = vmatprep.mubr.bf16.mxu0 %v5397_v4  ;;  %2770 = vmatpush1.bf16.msra.mxu0 %v4521_v62  ;;  %v1727_v62 = vld [vmem:[%s5548_s29 + $0x388] sm:$0xff] }
 0x6d7   : > { %2771 = vmatprep.subr.bf16.mxu0 %v4538_v2  ;;  %2734 = vmatprep.subr.bf16.mxu1 %v4584_v39  ;;  %v4633_v1 = vcombine.low %v1727_v62, %v1735_v60  ;;  %v4634_v2 = vcombine.high %v1727_v62, %v1735_v60  ;;  %v1696_v60 = vld [vmem:[%s5548_s29 + $0x290] sm:$0xff] }
 0x6d8   : > { %2735 = vmatpush1.bf16.msra.mxu1 %v4583_v41  ;;  %v1656_v41 = vld [vmem:[%s5548_s29 + $0x150] sm:$0xff] }
 0x6da   : > { %2772 = vmatpush1.bf16.msra.mxu0 %v4537_v6  ;;  %v1624_v6 = vld [vmem:[%s5548_s29 + $0x50] sm:$0xff] }
 0x6db   : > { %2773 = vmatprep.subr.bf16.mxu0 %v4554_v23  ;;  %v4517_v23 = vld [vmem:[%s6170_s23] ss:$0 sm:$0xff] }
 0x6de   : > { %2774 = vmatpush1.bf16.msra.mxu0 %v4553_v22 }
 0x6df   : > { %2775 = vmatprep.subr.bf16.mxu0 %v4570_v30  ;;  %v1641_v30 = vld [vmem:[%s5548_s29 + $0xd8] sm:$0xff] }
 0x6e2   : > { %2776 = vmatpush1.bf16.msra.mxu0 %v4569_v29  ;;  %v1633_v29 = vld [vmem:[%s5548_s29 + $0x98] sm:$0xff] }
 0x7a8   : > { %v1563_v38 = vpop.f32.mrb[12].mxu0 }
 0x7a9   : > { %v1564_v34 = vadd.f32 %v4508_v42, %v1563_v38  ;;  %v5081_v43 = vpop.f32.mrb[13].mxu0  ;;  %v4586_v38 = vcombine.high %v1679_v37, %v1687_v40 }
 0x7aa   : > { %v1566_v57 = vpop.f32.mrb[14].mxu0  ;;  %v1702_v43 = vld [vmem:[%s5548_s29 + $0x2c0] sm:$0xff] }
 0x7ab   : > { %v1567_v44 = vadd.f32 %v4508_v42, %v1566_v57  ;;  %v5082_v45 = vpop.f32.mrb[15].mxu0  ;;  %v1570_v47 = vadd.f32 %v5355_v46, %v1564_v34  ;;  %v4585_v42 = vcombine.low %v1679_v37, %v1687_v40  ;;  %2777 = vmatprep.subr.bf16.mxu0 %v4586_v38  ;;  %v1694_v34 = vld [vmem:[%s5548_s29 + $0x280] sm:$0xff]  ;;  %v1695_v57 = vld [vmem:[%s5548_s29 + $0x288] sm:$0xff]  ;;  %v1648_v40 = vld [vmem:[%s5548_s29 + $0x110] sm:$0xff] }
 0x7ac   : > { %v1703_v45 = vld [vmem:[%s5548_s29 + $0x2c8] sm:$0xff]  ;;  %v4599_v46 = vcombine.low %v1694_v34, %v1702_v43  ;;  %v1657_v38 = vld [vmem:[%s5548_s29 + $0x158] sm:$0xff] }
 0x7ad   : > { %1572 = vadd.xlane.f32.xlu1 %v1570_v47  ;;  %v1571_v50 = vadd.f32 %v5356_v48, %v1567_v44  ;;  %2778 = vmatpush1.bf16.msra.mxu0 %v4585_v42  ;;  %v4600_v44 = vcombine.high %v1694_v34, %v1702_v43  ;;  %v4602_v48 = vcombine.high %v1695_v57, %v1703_v45  ;;  %v1649_v42 = vld [vmem:[%s5548_s29 + $0x118] sm:$0xff] }
 0x7ae   : > { %v4541_v43 = vcombine.low %v1633_v29, %v1641_v30 }
 0x7af   : > { %v1575_v51 = vsel %vm1574_vm8, %v1571_v50, 0.0  ;;  %2736 = vmatprep.subr.bf16.mxu1 %v4600_v44  ;;  %2779 = vmatprep.subr.bf16.mxu0 %v4602_v48  ;;  %v4558_v44 = vcombine.high %v1649_v42, %v1657_v38  ;;  %v1673_v48 = vld [vmem:[%s5548_s29 + $0x1d8] sm:$0xff] }
 0x7b0   : > { %1576 = vadd.xlane.f32.xlu0 %v1575_v51  ;;  %2737 = vmatpush1.bf16.msra.mxu1 %v4599_v46  ;;  %v1718_v51 = vld [vmem:[%s5548_s29 + $0x340] sm:$0xff]  ;;  %v1672_v46 = vld [vmem:[%s5548_s29 + $0x1d0] sm:$0xff] }
 0x83a   : > { %v1573_v7 = vpop.xlane.xlu1 %1572 }
 0x83b   : > { %v1579_v8 = vmul.f32 0.0078125, %v1573_v7  ;;  %v1617_v7 = vld [vmem:[%s5548_s29 + $0x18] sm:$0xff] }
 0x83d   : > { %v5746_v9 = vsub.f32 %v1570_v47, %v1579_v8  ;;  %v1577_v10 = vpop.xlane.xlu0 %1576  ;;  %v4601_v47 = vcombine.low %v1695_v57, %v1703_v45  ;;  %v4523_v8 = vcombine.low %v1616_v3, %v1624_v6  ;;  %v4556_v57 = vcombine.high %v1648_v40, %v1656_v41  ;;  %v1664_v45 = vld [vmem:[%s5548_s29 + $0x190] sm:$0xff] }
 0x83e   : > { %v1580_v11 = vmul.f32 0.0078125, %v1577_v10  ;;  %v4524_v10 = vcombine.high %v1616_v3, %v1624_v6  ;;  %v4572_v52 = vcombine.high %v1664_v45, %v1672_v46  ;;  %v4571_v59 = vcombine.low %v1664_v45, %v1672_v46  ;;  %v1650_v45 = vld [vmem:[%s5548_s29 + $0x120] sm:$0xff] }
 0x83f   : > { %v1583_v12 = vmul.f32 %v5746_v9, %v5746_v9  ;;  %2780 = vmatpush1.bf16.msra.mxu0 %v4601_v47  ;;  %v1665_v47 = vld [vmem:[%s5548_s29 + $0x198] sm:$0xff]  ;;  %v1658_v46 = vld [vmem:[%s5548_s29 + $0x160] sm:$0xff] }
 0x840   : > { %v5750_v13 = vsub.f32 %v1571_v50, %v1580_v11  ;;  %v1710_v50 = vld [vmem:[%s5548_s29 + $0x300] sm:$0xff]  ;;  %2781 = vmatprep.subr.bf16.mxu0 %v4618_v58  ;;  %v1625_v11 = vld [vmem:[%s5548_s29 + $0x58] sm:$0xff]  ;;  %v4573_v61 = vcombine.low %v1665_v47, %v1673_v48 }
 0x841   : > { %1585 = vadd.xlane.f32.xlu0 %v1583_v12  ;;  %v4616_v53 = vcombine.high %v1710_v50, %v1718_v51  ;;  %v4615_v55 = vcombine.low %v1710_v50, %v1718_v51  ;;  %v4525_v12 = vcombine.low %v1617_v7, %v1625_v11  ;;  %v4555_v50 = vcombine.low %v1648_v40, %v1656_v41  ;;  %v1689_v58 = vld [vmem:[%s5548_s29 + $0x258] sm:$0xff]  ;;  %v1634_v40 = vld [vmem:[%s5548_s29 + $0xa0] sm:$0xff] }
 0x842   : > { %v1584_v14 = vmul.f32 %v5750_v13, %v5750_v13  ;;  %v4557_v51 = vcombine.low %v1649_v42, %v1657_v38  ;;  %v1642_v41 = vld [vmem:[%s5548_s29 + $0xe0] sm:$0xff]  ;;  %v1635_v42 = vld [vmem:[%s5548_s29 + $0xa8] sm:$0xff] }
 0x843   : > { %2738 = vmatprep.subr.bf16.mxu1 %v4616_v53  ;;  %2782 = vmatpush1.bf16.msra.mxu0 %v4617_v56  ;;  %v4574_v53 = vcombine.high %v1665_v47, %v1673_v48  ;;  %v1681_v56 = vld [vmem:[%s5548_s29 + $0x218] sm:$0xff]  ;;  %v1643_v38 = vld [vmem:[%s5548_s29 + $0xe8] sm:$0xff] }
 0x844   : > { %v1587_v15 = vsel %vm1574_vm8, %v1584_v14, 0.0  ;;  %2739 = vmatpush1.bf16.msra.mxu1 %v4615_v55  ;;  %2783 = vmatprep.subr.bf16.mxu0 %v4634_v2  ;;  %v4526_v14 = vcombine.high %v1617_v7, %v1625_v11  ;;  %v1688_v55 = vld [vmem:[%s5548_s29 + $0x250] sm:$0xff]  ;;  %v1705_v2 = vld [vmem:[%s5548_s29 + $0x2d8] sm:$0xff]  ;;  %v4589_v6 = vcombine.low %v1681_v56, %v1689_v58  ;;  %v1651_v47 = vld [vmem:[%s5548_s29 + $0x128] sm:$0xff] }
 0x845   : > { %1588 = vadd.xlane.f32.xlu0 %v1587_v15  ;;  %2740 = vmatprep.subr.bf16.mxu1 %v4632_v63  ;;  %v4588_v62 = vcombine.high %v1680_v54, %v1688_v55  ;;  %v4590_v63 = vcombine.high %v1681_v56, %v1689_v58  ;;  %v4587_v3 = vcombine.low %v1680_v54, %v1688_v55  ;;  %v1720_v11 = vld [vmem:[%s5548_s29 + $0x350] sm:$0xff]  ;;  %v1659_v48 = vld [vmem:[%s5548_s29 + $0x168] sm:$0xff]  ;;  %v1666_v54 = vld [vmem:[%s5548_s29 + $0x1a0] sm:$0xff] }
 0x846   : > { %v1674_v55 = vld [vmem:[%s5548_s29 + $0x1e0] sm:$0xff]  ;;  %v1667_v56 = vld [vmem:[%s5548_s29 + $0x1a8] sm:$0xff] }
 0x847   : > { %2784 = vmatpush1.bf16.msra.mxu0 %v4633_v1  ;;  %v1697_v1 = vld [vmem:[%s5548_s29 + $0x298] sm:$0xff]  ;;  %v1675_v58 = vld [vmem:[%s5548_s29 + $0x1e8] sm:$0xff] }
 0x848   : > { %2741 = vmatpush1.bf16.msra.mxu1 %v4631_v0  ;;  %2855 = vmatprep.subr.bf16.mxu0 %v4526_v14  ;;  %v1704_v0 = vld [vmem:[%s5548_s29 + $0x2d0] sm:$0xff]  ;;  %v1721_v14 = vld [vmem:[%s5548_s29 + $0x358] sm:$0xff] }
 0x849   : > { %2812 = vmatprep.subr.bf16.mxu1 %v4524_v10  ;;  %v4604_v7 = vcombine.high %v1696_v60, %v1704_v0  ;;  %v1712_v10 = vld [vmem:[%s5548_s29 + $0x310] sm:$0xff] }
 0x8ce   : > { %v1586_v15 = vpop.xlane.xlu0 %1585 }
 0x8cf   : > { %v1590_v16 = vmul.f32 0.0078125, %v1586_v15  ;;  %v4603_v15 = vcombine.low %v1696_v60, %v1704_v0  ;;  %v1682_v60 = vld [vmem:[%s5548_s29 + $0x220] sm:$0xff] }
 0x8d0   : > { %v1690_v0 = vld [vmem:[%s5548_s29 + $0x260] sm:$0xff] }
 0x8d1   : > { %v1592_v17 = vadd.f32 1e-05, %v1590_v16  ;;  %v4605_v16 = vcombine.low %v1697_v1, %v1705_v2 }
 0x8d2   : > { %v1589_v18 = vpop.xlane.xlu0 %1588 }
 0x8d3   : > { %5347 = vrsqrt.f32 %v1592_v17  ;;  %v1591_v19 = vmul.f32 0.0078125, %v1589_v18  ;;  %v4620_v17 = vcombine.high %v1712_v10, %v1720_v11 }
 0x8d5   : > { %v1593_v20 = vadd.f32 1e-05, %v1591_v19  ;;  %v1728_v19 = vld [vmem:[%s5548_s29 + $0x390] sm:$0xff] }
 0x8d7   : > { %5349 = vrsqrt.f32 %v1593_v20  ;;  %v1736_v20 = vld [vmem:[%s5548_s29 + $0x3d0] sm:$0xff] }
 0x8dd   : > { %v5348_v21 = vpop.eup %5347 }
 0x8de   : > { %v1596_v22 = vmul.f32 %v5348_v21, %v5746_v9  ;;  %v1632_v9 = vld [vmem:[%s5548_s29 + $0x90] sm:$0xff]  ;;  %v1729_v21 = vld [vmem:[%s5548_s29 + $0x398] sm:$0xff] }
 0x8df   : > { %v4540_v39 = vcombine.high %v1632_v9, %v1640_v28  ;;  %v4539_v34 = vcombine.low %v1632_v9, %v1640_v28  ;;  %v1619_v9 = vld [vmem:[%s5548_s29 + $0x28] sm:$0xff] }
 0x8e0   : > { %v1604_v25 = vmul.f32 %v4517_v23, %v1596_v22  ;;  %v1737_v22 = vld [vmem:[%s5548_s29 + $0x3d8] sm:$0xff]  ;;  %v1627_v28 = vld [vmem:[%s5548_s29 + $0x68] sm:$0xff] }
 0x8e1   : > { %v5350_v24 = vpop.eup %5349 }
 0x8e2   : > { %v1597_v5 = vmul.f32 %v5350_v24, %v5750_v13  ;;  %v5799_v31 = vadd.f32 %v4518_v26, %v1604_v25  ;;  %v4542_v13 = vcombine.high %v1633_v29, %v1641_v30  ;;  %v4636_v25 = vcombine.high %v1728_v19, %v1736_v20 }
 0x8e3   : > { %v4635_v29 = vcombine.low %v1728_v19, %v1736_v20  ;;  %v4637_v30 = vcombine.low %v1729_v21, %v1737_v22  ;;  %v1714_v19 = vld [vmem:[%s5548_s29 + $0x320] sm:$0xff] }
 0x8e4   : > { %v1605_v27 = vmul.f32 %v4517_v23, %v1597_v5  ;;  %v4619_v23 = vcombine.low %v1712_v10, %v1720_v11  ;;  %v4638_v5 = vcombine.high %v1729_v21, %v1737_v22  ;;  %v1698_v10 = vld [vmem:[%s5548_s29 + $0x2a0] sm:$0xff]  ;;  %v1715_v21 = vld [vmem:[%s5548_s29 + $0x328] sm:$0xff] }
 0x8e5   : > { %v1706_v11 = vld [vmem:[%s5548_s29 + $0x2e0] sm:$0xff]  ;;  %v1723_v22 = vld [vmem:[%s5548_s29 + $0x368] sm:$0xff] }
 0x8e6   : > { %v5801_v36 = vadd.f32 %v4518_v26, %v1605_v27  ;;  %v1618_v26 = vld [vmem:[%s5548_s29 + $0x20] sm:$0xff] }
 0x8e7   : > { %v1626_v27 = vld [vmem:[%s5548_s29 + $0x60] sm:$0xff] }
 0x8e8   : > { %v5805_v37 = vpack.c.bf16 %v5801_v36, %v5799_v31  ;;  %v1722_v20 = vld [vmem:[%s5548_s29 + $0x360] sm:$0xff] }
 0x8ea   : > { %2759 = vmatmul.mubr.bf16.vlgmr.msra.gmra.mrb[28].mxu1 %v5805_v37  ;;  %2802 = vmatmul.mubr.bf16.vlgmr.msra.gmra.mrb[16].mxu0 %v5805_v37 }
 0x8eb   : > { %2813 = vmatpush1.bf16.msra.mxu1 %v4523_v8  ;;  %2856 = vmatpush1.bf16.msra.mxu0 %v4525_v12  ;;  %v4606_v8 = vcombine.high %v1697_v1, %v1705_v2  ;;  %v1713_v12 = vld [vmem:[%s5548_s29 + $0x318] sm:$0xff]  ;;  %v1683_v1 = vld [vmem:[%s5548_s29 + $0x228] sm:$0xff] }
 0x8ec   : > { %2814 = vmatprep.subr.bf16.mxu1 %v4540_v39  ;;  %2857 = vmatprep.subr.bf16.mxu0 %v4542_v13  ;;  %v4622_v18 = vcombine.high %v1713_v12, %v1721_v14  ;;  %v4621_v24 = vcombine.low %v1713_v12, %v1721_v14  ;;  %v4528_v39 = vcombine.high %v1618_v26, %v1626_v27  ;;  %v1691_v2 = vld [vmem:[%s5548_s29 + $0x268] sm:$0xff] }
 0x8ed   : > { %2844 = vmatprep.mubr.bf16.mxu1 %v5397_v4  ;;  %2887 = vmatprep.mubr.bf16.mxu0 %v5397_v4  ;;  %v4530_v13 = vcombine.high %v1619_v9, %v1627_v28  ;;  %v1699_v12 = vld [vmem:[%s5548_s29 + $0x2a8] sm:$0xff] }
 0x8ee   : > { %v1707_v14 = vld [vmem:[%s5548_s29 + $0x2e8] sm:$0xff] }
 0x8ef   : > { %2815 = vmatpush1.bf16.msra.mxu1 %v4539_v34  ;;  %2858 = vmatpush1.bf16.msra.mxu0 %v4541_v43  ;;  %v4527_v34 = vcombine.low %v1618_v26, %v1626_v27  ;;  %v4529_v43 = vcombine.low %v1619_v9, %v1627_v28  ;;  %v1730_v26 = vld [vmem:[%s5548_s29 + $0x3a0] sm:$0xff]  ;;  %v1731_v9 = vld [vmem:[%s5548_s29 + $0x3a8] sm:$0xff] }
 0x8f0   : > { %2816 = vmatprep.subr.bf16.mxu1 %v4556_v57  ;;  %2859 = vmatprep.subr.bf16.mxu0 %v4558_v44  ;;  %v4544_v57 = vcombine.high %v1634_v40, %v1642_v41  ;;  %v4546_v44 = vcombine.high %v1635_v42, %v1643_v38  ;;  %v1738_v27 = vld [vmem:[%s5548_s29 + $0x3e0] sm:$0xff]  ;;  %v1739_v28 = vld [vmem:[%s5548_s29 + $0x3e8] sm:$0xff] }
 0x8f3   : > { %2817 = vmatpush1.bf16.msra.mxu1 %v4555_v50  ;;  %2860 = vmatpush1.bf16.msra.mxu0 %v4557_v51  ;;  %v4543_v50 = vcombine.low %v1634_v40, %v1642_v41  ;;  %v4545_v51 = vcombine.low %v1635_v42, %v1643_v38  ;;  %v1620_v40 = vld [vmem:[%s5548_s29 + $0x30] sm:$0xff]  ;;  %v1621_v42 = vld [vmem:[%s5548_s29 + $0x38] sm:$0xff] }
 0x8f4   : > { %2818 = vmatprep.subr.bf16.mxu1 %v4572_v52  ;;  %2861 = vmatprep.subr.bf16.mxu0 %v4574_v53  ;;  %v4560_v52 = vcombine.high %v1650_v45, %v1658_v46  ;;  %v4562_v53 = vcombine.high %v1651_v47, %v1659_v48  ;;  %v1628_v41 = vld [vmem:[%s5548_s29 + $0x70] sm:$0xff]  ;;  %v1629_v38 = vld [vmem:[%s5548_s29 + $0x78] sm:$0xff] }
 0x8f7   : > { %2819 = vmatpush1.bf16.msra.mxu1 %v4571_v59  ;;  %2862 = vmatpush1.bf16.msra.mxu0 %v4573_v61  ;;  %v4559_v59 = vcombine.low %v1650_v45, %v1658_v46  ;;  %v4561_v61 = vcombine.low %v1651_v47, %v1659_v48  ;;  %v1636_v45 = vld [vmem:[%s5548_s29 + $0xb0] sm:$0xff]  ;;  %v1637_v47 = vld [vmem:[%s5548_s29 + $0xb8] sm:$0xff] }
 0x8f8   : > { %2820 = vmatprep.subr.bf16.mxu1 %v4588_v62  ;;  %2863 = vmatprep.subr.bf16.mxu0 %v4590_v63  ;;  %v4576_v62 = vcombine.high %v1666_v54, %v1674_v55  ;;  %v4578_v63 = vcombine.high %v1667_v56, %v1675_v58  ;;  %v1644_v46 = vld [vmem:[%s5548_s29 + $0xf0] sm:$0xff]  ;;  %v1645_v48 = vld [vmem:[%s5548_s29 + $0xf8] sm:$0xff] }
 0x8fb   : > { %2821 = vmatpush1.bf16.msra.mxu1 %v4587_v3  ;;  %2864 = vmatpush1.bf16.msra.mxu0 %v4589_v6  ;;  %v4575_v3 = vcombine.low %v1666_v54, %v1674_v55  ;;  %v4577_v6 = vcombine.low %v1667_v56, %v1675_v58  ;;  %v1652_v54 = vld [vmem:[%s5548_s29 + $0x130] sm:$0xff]  ;;  %v1653_v56 = vld [vmem:[%s5548_s29 + $0x138] sm:$0xff] }
 0x8fc   : > { %2822 = vmatprep.subr.bf16.mxu1 %v4604_v7  ;;  %2865 = vmatprep.subr.bf16.mxu0 %v4606_v8  ;;  %v4592_v7 = vcombine.high %v1682_v60, %v1690_v0  ;;  %v4594_v8 = vcombine.high %v1683_v1, %v1691_v2  ;;  %v1660_v55 = vld [vmem:[%s5548_s29 + $0x170] sm:$0xff]  ;;  %v1661_v58 = vld [vmem:[%s5548_s29 + $0x178] sm:$0xff] }
 0x8ff   : > { %2823 = vmatpush1.bf16.msra.mxu1 %v4603_v15  ;;  %2866 = vmatpush1.bf16.msra.mxu0 %v4605_v16  ;;  %v4591_v15 = vcombine.low %v1682_v60, %v1690_v0  ;;  %v4593_v16 = vcombine.low %v1683_v1, %v1691_v2  ;;  %v1668_v60 = vld [vmem:[%s5548_s29 + $0x1b0] sm:$0xff]  ;;  %v1669_v1 = vld [vmem:[%s5548_s29 + $0x1b8] sm:$0xff] }
 0x900   : > { %2824 = vmatprep.subr.bf16.mxu1 %v4620_v17  ;;  %2867 = vmatprep.subr.bf16.mxu0 %v4622_v18  ;;  %v4608_v17 = vcombine.high %v1698_v10, %v1706_v11  ;;  %v4610_v18 = vcombine.high %v1699_v12, %v1707_v14  ;;  %v1676_v0 = vld [vmem:[%s5548_s29 + $0x1f0] sm:$0xff]  ;;  %v1677_v2 = vld [vmem:[%s5548_s29 + $0x1f8] sm:$0xff] }
 0x903   : > { %2825 = vmatpush1.bf16.msra.mxu1 %v4619_v23  ;;  %2868 = vmatpush1.bf16.msra.mxu0 %v4621_v24  ;;  %v4607_v23 = vcombine.low %v1698_v10, %v1706_v11  ;;  %v4609_v24 = vcombine.low %v1699_v12, %v1707_v14  ;;  %v1684_v10 = vld [vmem:[%s5548_s29 + $0x230] sm:$0xff]  ;;  %v1685_v12 = vld [vmem:[%s5548_s29 + $0x238] sm:$0xff] }
 0x904   : > { %2826 = vmatprep.subr.bf16.mxu1 %v4636_v25  ;;  %2869 = vmatprep.subr.bf16.mxu0 %v4638_v5  ;;  %v4624_v25 = vcombine.high %v1714_v19, %v1722_v20  ;;  %v4626_v5 = vcombine.high %v1715_v21, %v1723_v22  ;;  %v1692_v11 = vld [vmem:[%s5548_s29 + $0x270] sm:$0xff]  ;;  %v1693_v14 = vld [vmem:[%s5548_s29 + $0x278] sm:$0xff] }
 0x907   : > { %2827 = vmatpush1.bf16.msra.mxu1 %v4635_v29  ;;  %2870 = vmatpush1.bf16.msra.mxu0 %v4637_v30  ;;  %v4623_v29 = vcombine.low %v1714_v19, %v1722_v20  ;;  %v4625_v30 = vcombine.low %v1715_v21, %v1723_v22  ;;  %v1708_v19 = vld [vmem:[%s5548_s29 + $0x2f0] sm:$0xff]  ;;  %v1701_v20 = vld [vmem:[%s5548_s29 + $0x2b8] sm:$0xff]  ;;  %v4595_v22 = vcombine.low %v1684_v10, %v1692_v11 }
 0x908   : > { %2898 = vmatprep.subr.bf16.mxu1 %v4528_v39  ;;  %2941 = vmatprep.subr.bf16.mxu0 %v4530_v13  ;;  %v4640_v39 = vcombine.high %v1730_v26, %v1738_v27  ;;  %v4642_v13 = vcombine.high %v1731_v9, %v1739_v28  ;;  %v1709_v21 = vld [vmem:[%s5548_s29 + $0x2f8] sm:$0xff] }
 0x90a   : > { %2845 = vmatmul.mubr.bf16.vlgmr.msra.gmra.mrb[32].mxu1 %v5805_v37  ;;  %2888 = vmatmul.mubr.bf16.vlgmr.msra.gmra.mrb[20].mxu0 %v5805_v37 }
 0x90b   : > { %2899 = vmatpush1.bf16.msra.mxu1 %v4527_v34  ;;  %2942 = vmatpush1.bf16.msra.mxu0 %v4529_v43  ;;  %v4639_v34 = vcombine.low %v1730_v26, %v1738_v27  ;;  %v4641_v43 = vcombine.low %v1731_v9, %v1739_v28  ;;  %v1724_v26 = vld [vmem:[%s5548_s29 + $0x370] sm:$0xff]  ;;  %v1717_v27 = vld [vmem:[%s5548_s29 + $0x338] sm:$0xff] }
 0x90c   : > { %2900 = vmatprep.subr.bf16.mxu1 %v4544_v57  ;;  %2943 = vmatprep.subr.bf16.mxu0 %v4546_v44  ;;  %v4532_v57 = vcombine.high %v1620_v40, %v1628_v41  ;;  %v4534_v44 = vcombine.high %v1621_v42, %v1629_v38  ;;  %v1725_v9 = vld [vmem:[%s5548_s29 + $0x378] sm:$0xff] }
 0x90d   : > { %2930 = vmatprep.mubr.bf16.mxu1 %v5397_v4  ;;  %2973 = vmatprep.mubr.bf16.mxu0 %v5397_v4 }
 0x90f   : > { %2901 = vmatpush1.bf16.msra.mxu1 %v4543_v50  ;;  %2944 = vmatpush1.bf16.msra.mxu0 %v4545_v51  ;;  %v4531_v50 = vcombine.low %v1620_v40, %v1628_v41  ;;  %v4533_v51 = vcombine.low %v1621_v42, %v1629_v38  ;;  %v1740_v40 = vld [vmem:[%s5548_s29 + $0x3f0] sm:$0xff]  ;;  %v1733_v41 = vld [vmem:[%s5548_s29 + $0x3b8] sm:$0xff] }
 0x910   : > { %2902 = vmatprep.subr.bf16.mxu1 %v4560_v52  ;;  %2945 = vmatprep.subr.bf16.mxu0 %v4562_v53  ;;  %v4548_v52 = vcombine.high %v1636_v45, %v1644_v46  ;;  %v4550_v53 = vcombine.high %v1637_v47, %v1645_v48  ;;  %v1741_v42 = vld [vmem:[%s5548_s29 + $0x3f8] sm:$0xff] }
 0x913   : > { %2903 = vmatpush1.bf16.msra.mxu1 %v4559_v59  ;;  %2946 = vmatpush1.bf16.msra.mxu0 %v4561_v61  ;;  %v4547_v59 = vcombine.low %v1636_v45, %v1644_v46  ;;  %v4549_v61 = vcombine.low %v1637_v47, %v1645_v48  ;;  %v4645_v45 = vcombine.low %v1733_v41, %v1741_v42  ;;  %v5187_v46 = vld [vmem:[%s5558_s12 + $0x40] sm:$0xff]  }
 0x914   : > { %2904 = vmatprep.subr.bf16.mxu1 %v4576_v62  ;;  %2947 = vmatprep.subr.bf16.mxu0 %v4578_v63  ;;  %v4564_v62 = vcombine.high %v1652_v54, %v1660_v55  ;;  %v4566_v63 = vcombine.high %v1653_v56, %v1661_v58  ;;  %v5188_v47 = vld [vmem:[%s5558_s12 + $0xc0] sm:$0xff]  }
 0x915   : > { %v5189_v48 = vld [vmem:[%s5558_s12] sm:$0xff]  }
 0x917   : > { %2905 = vmatpush1.bf16.msra.mxu1 %v4575_v3  ;;  %2948 = vmatpush1.bf16.msra.mxu0 %v4577_v6  ;;  %v4563_v3 = vcombine.low %v1652_v54, %v1660_v55  ;;  %v4565_v6 = vcombine.low %v1653_v56, %v1661_v58  ;;  %v5194_v54 = vld [vmem:[%s5558_s12 + $0x88] sm:$0xff]   ;;  %v5195_v55 = vld [vmem:[%s5558_s12 + $0x50] sm:$0xff]  }
 0x918   : > { %2906 = vmatprep.subr.bf16.mxu1 %v4592_v7  ;;  %2949 = vmatprep.subr.bf16.mxu0 %v4594_v8  ;;  %v4580_v7 = vcombine.high %v1668_v60, %v1676_v0  ;;  %v4582_v8 = vcombine.high %v1669_v1, %v1677_v2  ;;  %v5196_v56 = vld [vmem:[%s5558_s12 + $0xd0] sm:$0xff]  }
 0x919   : > { %v5197_v58 = vld [vmem:[%s5558_s12 + $0x10] sm:$0xff]  }
 0x91b   : > { %2907 = vmatpush1.bf16.msra.mxu1 %v4591_v15  ;;  %2950 = vmatpush1.bf16.msra.mxu0 %v4593_v16  ;;  %v4579_v15 = vcombine.low %v1668_v60, %v1676_v0  ;;  %v4596_v16 = vcombine.high %v1684_v10, %v1692_v11  ;;  %v5203_v60 = vld [vmem:[%s5558_s12 + $0x60] sm:$0xff]   ;;  %v5211_v10 = vld [vmem:[%s5558_s12 + $0x70] sm:$0xff]  }
 0x91c   : > { %2908 = vmatprep.subr.bf16.mxu1 %v4608_v17  ;;  %2951 = vmatprep.subr.bf16.mxu0 %v4610_v18  ;;  %v4598_v17 = vcombine.high %v1685_v12, %v1693_v14  ;;  %v1700_v18 = vld [vmem:[%s5548_s29 + $0x2b0] sm:$0xff]  ;;  %v5204_v0 = vld [vmem:[%s5558_s12 + $0xe0] sm:$0xff]  }
 0x91d   : > { %v4611_v28 = vcombine.low %v1700_v18, %v1708_v19  ;;  %v5212_v11 = vld [vmem:[%s5558_s12 + $0xf0] sm:$0xff]  }
 0x91f   : > { %2909 = vmatpush1.bf16.msra.mxu1 %v4607_v23  ;;  %2952 = vmatpush1.bf16.msra.mxu0 %v4609_v24  ;;  %v4597_v23 = vcombine.low %v1685_v12, %v1693_v14  ;;  %v4612_v24 = vcombine.high %v1700_v18, %v1708_v19  ;;  %v5213_v12 = vld [vmem:[%s5558_s12 + $0x30] sm:$0xff]   ;;  %v5219_v18 = vld [vmem:[%s5558_s12 + $0x140] sm:$0xff]  }
 0x920   : > { %2910 = vmatprep.subr.bf16.mxu1 %v4624_v25  ;;  %2953 = vmatprep.subr.bf16.mxu0 %v4626_v5  ;;  %v4614_v25 = vcombine.high %v1701_v20, %v1709_v21  ;;  %v1716_v5 = vld [vmem:[%s5548_s29 + $0x330] sm:$0xff]  ;;  %v5220_v19 = vld [vmem:[%s5558_s12 + $0x1c0] sm:$0xff]  }
 0x921   : > { %v4627_v38 = vcombine.low %v1716_v5, %v1724_v26  ;;  %v5214_v14 = vld [vmem:[%s5558_s12 + $0xb0] sm:$0xff]  }
 0x923   : > { %2911 = vmatpush1.bf16.msra.mxu1 %v4623_v29  ;;  %2954 = vmatpush1.bf16.msra.mxu0 %v4625_v30  ;;  %v4613_v29 = vcombine.low %v1701_v20, %v1709_v21  ;;  %v4628_v30 = vcombine.high %v1716_v5, %v1724_v26  ;;  %v5944_v20 = vld [vmem:[%s5553_s0] sm:$0xff]  ;;  %v2020_v21 = vsub.s32 3, %v5619_v32 }
 0x924   : > { %2912 = vmatprep.subr.bf16.mxu1 %v4640_v39  ;;  %2955 = vmatprep.subr.bf16.mxu0 %v4642_v13  ;;  %v4630_v39 = vcombine.high %v1717_v27, %v1725_v9  ;;  %v1732_v13 = vld [vmem:[%s5548_s29 + $0x3b0] sm:$0xff] }
 0x927   : > { %2913 = vmatpush1.bf16.msra.mxu1 %v4639_v34  ;;  %2956 = vmatpush1.bf16.msra.mxu0 %v4641_v43  ;;  %v4629_v34 = vcombine.low %v1717_v27, %v1725_v9  ;;  %v4644_v43 = vcombine.high %v1732_v13, %v1740_v40 }
 0x928   : > { %2984 = vmatprep.subr.bf16.mxu1 %v4532_v57  ;;  %3027 = vmatprep.subr.bf16.mxu0 %v4534_v44  ;;  %v4646_v57 = vcombine.high %v1733_v41, %v1741_v42  ;;  %v4643_v44 = vcombine.low %v1732_v13, %v1740_v40 }
 0x92a   : > { %2931 = vmatmul.mubr.bf16.vlgmr.msra.gmra.mrb[36].mxu1 %v5805_v37  ;;  %2974 = vmatmul.mubr.bf16.vlgmr.msra.gmra.mrb[24].mxu0 %v5805_v37 }
 0x92b   : > { %2985 = vmatpush1.bf16.msra.mxu1 %v4531_v50  ;;  %3028 = vmatpush1.bf16.msra.mxu0 %v4533_v51  ;;  %v5190_v50 = vld [vmem:[%s5558_s12 + $0x80] sm:$0xff]   ;;  %v5191_v51 = vld [vmem:[%s5558_s12 + $0x48] sm:$0xff]  }
 0x92c   : > { %2986 = vmatprep.subr.bf16.mxu1 %v4548_v52  ;;  %3029 = vmatprep.subr.bf16.mxu0 %v4550_v53  ;;  %v5192_v52 = vld [vmem:[%s5558_s12 + $0xc8] sm:$0xff]  }
 0x92d   : > { %3016 = vmatprep.mubr.bf16.mxu1 %v5397_v4  ;;  %3059 = vmatprep.mubr.bf16.mxu0 %v5397_v4  ;;  %v4581_v4 = vcombine.low %v1669_v1, %v1677_v2  ;;  %v5193_v53 = vld [vmem:[%s5558_s12 + $0x8] sm:$0xff]   ;;  %v5205_v1 = vld [vmem:[%s5558_s12 + $0x20] sm:$0xff]  }
 0x92e   : > { %v5206_v2 = vld [vmem:[%s5558_s12 + $0xa0] sm:$0xff]  }
 0x92f   : > { %2987 = vmatpush1.bf16.msra.mxu1 %v4547_v59  ;;  %3030 = vmatpush1.bf16.msra.mxu0 %v4549_v61  ;;  %v5198_v59 = vld [vmem:[%s5558_s12 + $0x90] sm:$0xff]   ;;  %v5200_v61 = vld [vmem:[%s5558_s12 + $0xd8] sm:$0xff]  }
 0x930   : > { %2988 = vmatprep.subr.bf16.mxu1 %v4564_v62  ;;  %3031 = vmatprep.subr.bf16.mxu0 %v4566_v63  ;;  %v5201_v62 = vld [vmem:[%s5558_s12 + $0x18] sm:$0xff]  }
 0x931   : > { %v5202_v63 = vld [vmem:[%s5558_s12 + $0x98] sm:$0xff]  }
 0x933   : > { %2989 = vmatpush1.bf16.msra.mxu1 %v4563_v3  ;;  %3032 = vmatpush1.bf16.msra.mxu0 %v4565_v6  ;;  %v5207_v3 = vld [vmem:[%s5558_s12 + $0x68] sm:$0xff]  }
 0x934   : > { %2990 = vmatprep.subr.bf16.mxu1 %v4580_v7  ;;  %3033 = vmatprep.subr.bf16.mxu0 %v4582_v8  ;;  %v5208_v6 = vld [vmem:[%s5558_s12 + $0xe8] sm:$0xff]  }
 0x935   : > { %v5209_v7 = vld [vmem:[%s5558_s12 + $0x28] sm:$0xff]  }
 0x936   : > { %v5210_v8 = vld [vmem:[%s5558_s12 + $0xa8] sm:$0xff]  }
 0x937   : > { %2991 = vmatpush1.bf16.msra.mxu1 %v4579_v15  ;;  %3034 = vmatpush1.bf16.msra.mxu0 %v4581_v4  ;;  %v5215_v15 = vld [vmem:[%s5558_s12 + $0x78] sm:$0xff]  }
 0x938   : > { %2992 = vmatprep.subr.bf16.mxu1 %v4596_v16  ;;  %3035 = vmatprep.subr.bf16.mxu0 %v4598_v17  ;;  %v5216_v4 = vld [vmem:[%s5558_s12 + $0xf8] sm:$0xff]  }
 0x939   : > { %v5217_v16 = vld [vmem:[%s5558_s12 + $0x38] sm:$0xff]  }
 0x93a   : > { %v5218_v17 = vld [vmem:[%s5558_s12 + $0xb8] sm:$0xff]  }
 0x93b   : > { %2993 = vmatpush1.bf16.msra.mxu1 %v4595_v22  ;;  %3036 = vmatpush1.bf16.msra.mxu0 %v4597_v23  ;;  %v2009_v22 = vrot.slane %v5944_v20, %v5622_v33  ;;  %v2017_v23 = vrot.slane %v5944_v20, %v5636_v49 }
 0x93c   : > { %2994 = vmatprep.subr.bf16.mxu1 %v4612_v24  ;;  %3037 = vmatprep.subr.bf16.mxu0 %v4614_v25  ;;  %v2013_v24 = vrot.slane %v5944_v20, %v5626_v35  ;;  %v2021_v25 = vrot.slane %v5944_v20, %v2020_v21 }
 0x93f   : > { %2995 = vmatpush1.bf16.msra.mxu1 %v4611_v28  ;;  %3038 = vmatpush1.bf16.msra.mxu0 %v4613_v29 }
 0x940   : > { %2996 = vmatprep.subr.bf16.mxu1 %v4628_v30  ;;  %3039 = vmatprep.subr.bf16.mxu0 %v4630_v39 }
 0x943   : > { %2997 = vmatpush1.bf16.msra.mxu1 %v4627_v38  ;;  %3040 = vmatpush1.bf16.msra.mxu0 %v4629_v34 }
 0x944   : > { %2998 = vmatprep.subr.bf16.mxu1 %v4644_v43  ;;  %3041 = vmatprep.subr.bf16.mxu0 %v4646_v57 }
 0x947   : > { %2999 = vmatpush1.bf16.msra.mxu1 %v4643_v44  ;;  %3042 = vmatpush1.bf16.msra.mxu0 %v4645_v45 }
 0x948   : > { %4819 = vmatprep.subr.bf16.mxu1 %v5187_v46  ;;  %4841 = vmatprep.subr.bf16.mxu0 %v5188_v47 }
 0x94a   : > { %3017 = vmatmul.mubr.bf16.vlgmr.msra.gmra.mrb[40].mxu1 %v5805_v37  ;;  %3060 = vmatmul.mubr.bf16.vlgmr.msra.gmra.mrb[28].mxu0 %v5805_v37  ;;  %v5199_v37 = vld [vmem:[%s5558_s12 + $0x58] sm:$0xff]  }
 0x94b   : > { %4820 = vmatpush3.bf16.msra.mxu1 %v5189_v48  ;;  %4842 = vmatpush3.bf16.msra.mxu0 %v5190_v50 }
 0x94c   : > { %4821 = vmatprep.subr.bf16.mxu1 %v5191_v51  ;;  %4843 = vmatprep.subr.bf16.mxu0 %v5192_v52 }
 0x94f   : > { %4822 = vmatpush3.bf16.msra.mxu1 %v5193_v53  ;;  %4844 = vmatpush3.bf16.msra.mxu0 %v5194_v54 }
 0x950   : > { %4823 = vmatprep.subr.bf16.mxu1 %v5195_v55  ;;  %4845 = vmatprep.subr.bf16.mxu0 %v5196_v56 }
 0x953   : > { %4824 = vmatpush3.bf16.msra.mxu1 %v5197_v58  ;;  %4846 = vmatpush3.bf16.msra.mxu0 %v5198_v59  ;;  %v5221_v58 = vld [vmem:[%s5558_s12 + $0x100] sm:$0xff]  }
 0x954   : > { %4825 = vmatprep.subr.bf16.mxu1 %v5199_v37  ;;  %4847 = vmatprep.subr.bf16.mxu0 %v5200_v61  ;;  %v5222_v59 = vld [vmem:[%s5558_s12 + $0x180] sm:$0xff]   ;;  %v5223_v37 = vld [vmem:[%s5558_s12 + $0x148] sm:$0xff]  }
 0x955   : > { %v5224_v61 = vld [vmem:[%s5558_s12 + $0x1c8] sm:$0xff]  }
 0x957   : > { %4826 = vmatpush3.bf16.msra.mxu1 %v5201_v62  ;;  %4848 = vmatpush3.bf16.msra.mxu0 %v5202_v63  ;;  %v5225_v62 = vld [vmem:[%s5558_s12 + $0x108] sm:$0xff]  }
 0x958   : > { %4827 = vmatprep.subr.bf16.mxu1 %v5203_v60  ;;  %4849 = vmatprep.subr.bf16.mxu0 %v5204_v0  ;;  %v5226_v63 = vld [vmem:[%s5558_s12 + $0x188] sm:$0xff]   ;;  %v5227_v60 = vld [vmem:[%s5558_s12 + $0x150] sm:$0xff]  }
 0x959   : > { %v5228_v0 = vld [vmem:[%s5558_s12 + $0x1d0] sm:$0xff]  }
 0x95b   : > { %4828 = vmatpush3.bf16.msra.mxu1 %v5205_v1  ;;  %4850 = vmatpush3.bf16.msra.mxu0 %v5206_v2  ;;  %v5229_v1 = vld [vmem:[%s5558_s12 + $0x110] sm:$0xff]  }
 0x95c   : > { %4829 = vmatprep.subr.bf16.mxu1 %v5207_v3  ;;  %4851 = vmatprep.subr.bf16.mxu0 %v5208_v6  ;;  %v5230_v2 = vld [vmem:[%s5558_s12 + $0x190] sm:$0xff]   ;;  %v5231_v3 = vld [vmem:[%s5558_s12 + $0x158] sm:$0xff]  }
 0x95d   : > { %v5232_v6 = vld [vmem:[%s5558_s12 + $0x1d8] sm:$0xff]  }
 0x95f   : > { %4830 = vmatpush3.bf16.msra.mxu1 %v5209_v7  ;;  %4852 = vmatpush3.bf16.msra.mxu0 %v5210_v8  ;;  %v5233_v7 = vld [vmem:[%s5558_s12 + $0x118] sm:$0xff]  }
 0x960   : > { %4831 = vmatprep.subr.bf16.mxu1 %v5211_v10  ;;  %4853 = vmatprep.subr.bf16.mxu0 %v5212_v11  ;;  %v5234_v8 = vld [vmem:[%s5558_s12 + $0x198] sm:$0xff]   ;;  %v5235_v10 = vld [vmem:[%s5558_s12 + $0x160] sm:$0xff]  }
 0x961   : > { %v5236_v11 = vld [vmem:[%s5558_s12 + $0x1e0] sm:$0xff]  }
 0x963   : > { %4832 = vmatpush3.bf16.msra.mxu1 %v5213_v12  ;;  %4854 = vmatpush3.bf16.msra.mxu0 %v5214_v14  ;;  %v5237_v12 = vld [vmem:[%s5558_s12 + $0x120] sm:$0xff]  }
 0x964   : > { %4833 = vmatprep.subr.bf16.mxu1 %v5215_v15  ;;  %4855 = vmatprep.subr.bf16.mxu0 %v5216_v4  ;;  %v5238_v14 = vld [vmem:[%s5558_s12 + $0x1a0] sm:$0xff]   ;;  %v5239_v15 = vld [vmem:[%s5558_s12 + $0x168] sm:$0xff]  }
 0x965   : > { %v5240_v4 = vld [vmem:[%s5558_s12 + $0x1e8] sm:$0xff]  }
 0x967   : > { %4834 = vmatpush3.bf16.msra.mxu1 %v5217_v16  ;;  %4856 = vmatpush3.bf16.msra.mxu0 %v5218_v17  ;;  %v2024_v16 = vsub.s32 4, %v5619_v32  ;;  %v2032_v17 = vsub.s32 6, %v5619_v32 }
 0x968   : > { %4863 = vmatprep.subr.bf16.mxu1 %v5219_v18  ;;  %4885 = vmatprep.subr.bf16.mxu0 %v5220_v19  ;;  %v2028_v18 = vsub.s32 5, %v5619_v32  ;;  %v2036_v19 = vsub.s32 7, %v5619_v32 }
 0x9bd   : > { %v2760_v5 = vpop.f32.mrb[28].mxu1  ;;  %v2803_v26 = vpop.f32.mrb[16].mxu0 }
 0x9be   : > { %v2761_v27 = vadd.f32 %v2760_v5, %v2009_v22  ;;  %v2804_v9 = vadd.f32 %v2803_v26, %v2017_v23  ;;  %v2762_v28 = vpop.f32.mrb[29].mxu1  ;;  %v2805_v29 = vpop.f32.mrb[17].mxu0  ;;  %v5243_v5 = vld [vmem:[%s5558_s12 + $0x170] sm:$0xff]  }
 0x9bf   : > { %v2763_v30 = vadd.f32 %v2762_v28, %v2013_v24  ;;  %v2806_v39 = vadd.f32 %v2805_v29, %v2021_v25  ;;  %v2764_v13 = vpop.f32.mrb[30].mxu1  ;;  %v2807_v40 = vpop.f32.mrb[18].mxu0  ;;  %v5244_v26 = vld [vmem:[%s5558_s12 + $0x1f0] sm:$0xff]  }
 0x9c0   : > { %v2765_v41 = vadd.f32 %v2764_v13, %v2009_v22  ;;  %v2808_v42 = vadd.f32 %v2807_v40, %v2017_v23  ;;  %v2766_v38 = vpop.f32.mrb[31].mxu1  ;;  %v2809_v34 = vpop.f32.mrb[19].mxu0  ;;  %v3070_v44 = vmax.f32 %v2761_v27, 0.0  ;;  %v3072_v45 = vmax.f32 %v2804_v9, 0.0  ;;  %v5241_v22 = vld [vmem:[%s5558_s12 + $0x128] sm:$0xff]  }
 0x9c1   : > { %v2767_v43 = vadd.f32 %v2766_v38, %v2013_v24  ;;  %v2810_v57 = vadd.f32 %v2809_v34, %v2021_v25  ;;  %v3071_v48 = vmax.f32 %v2763_v30, 0.0  ;;  %v3073_v50 = vmax.f32 %v2806_v39, 0.0  ;;  %v5242_v23 = vld [vmem:[%s5558_s12 + $0x1a8] sm:$0xff]   ;;  %v5245_v30 = vld [vmem:[%s5558_s12 + $0x130] sm:$0xff]   ;;  %v5247_v38 = vld [vmem:[%s5558_s12 + $0x178] sm:$0xff]  }
 0x9c2   : > { %v3086_v46 = vmax.f32 %v2765_v41, 0.0  ;;  %v3088_v47 = vmax.f32 %v2808_v42, 0.0  ;;  %v2025_v24 = vrot.slane %v5944_v20, %v2024_v16  ;;  %v2033_v25 = vrot.slane %v5944_v20, %v2032_v17  ;;  %v5246_v39 = vld [vmem:[%s5558_s12 + $0x1b0] sm:$0xff]   ;;  %v5248_v34 = vld [vmem:[%s5558_s12 + $0x1f8] sm:$0xff]  }
 0x9c3   : > { %v3087_v51 = vmax.f32 %v2767_v43, 0.0  ;;  %v3089_v52 = vmax.f32 %v2810_v57, 0.0  ;;  %v2029_v27 = vrot.slane %v5944_v20, %v2028_v18  ;;  %v2037_v9 = vrot.slane %v5944_v20, %v2036_v19 }
 0x9c4   : > { %v3102_v53 = vpack.c.bf16 %v3086_v46, %v3070_v44  ;;  %v3104_v54 = vpack.c.bf16 %v3088_v47, %v3072_v45 }
 0x9c5   : > { %v3103_v55 = vpack.c.bf16 %v3087_v51, %v3071_v48  ;;  %v3105_v56 = vpack.c.bf16 %v3089_v52, %v3073_v50  ;;  %v5249_v52 = vld [vmem:[%s5558_s12 + $0x138] sm:$0xff]  }
 0x9c7   : > { %3924 = vmatprep.mubr.bf16.mxu1 %v3103_v55  ;;  %3965 = vmatprep.mubr.bf16.mxu0 %v3105_v56 }
 0x9c8   : > { %3925 = vmatmul.mubr.bf16.vlgmr.msra.gmra.mrb[44].mxu1 %v3102_v53  ;;  %3966 = vmatmul.mubr.bf16.vlgmr.msra.gmra.mrb[32].mxu0 %v3104_v54  ;;  %v5250_v53 = vld [vmem:[%s5558_s12 + $0x1b8] sm:$0xff]  }
 0x9c9   : > { %4864 = vmatpush3.bf16.msra.mxu1 %v5221_v58  ;;  %4886 = vmatpush3.bf16.msra.mxu0 %v5222_v59  ;;  %v5251_v59 = vld [vmem:[%s5558_s12 + $0x240] sm:$0xff]  }
 0x9ca   : > { %4865 = vmatprep.subr.bf16.mxu1 %v5223_v37  ;;  %4887 = vmatprep.subr.bf16.mxu0 %v5224_v61  ;;  %v5252_v37 = vld [vmem:[%s5558_s12 + $0x2c0] sm:$0xff]  }
 0x9cd   : > { %4866 = vmatpush3.bf16.msra.mxu1 %v5225_v62  ;;  %4888 = vmatpush3.bf16.msra.mxu0 %v5226_v63 }
 0x9ce   : > { %4867 = vmatprep.subr.bf16.mxu1 %v5227_v60  ;;  %4889 = vmatprep.subr.bf16.mxu0 %v5228_v0 }
 0x9d1   : > { %4868 = vmatpush3.bf16.msra.mxu1 %v5229_v1  ;;  %4890 = vmatpush3.bf16.msra.mxu0 %v5230_v2 }
 0x9d2   : > { %4869 = vmatprep.subr.bf16.mxu1 %v5231_v3  ;;  %4891 = vmatprep.subr.bf16.mxu0 %v5232_v6  ;;  %v5253_v6 = vld [vmem:[%s5558_s12 + $0x200] sm:$0xff]  }
 0x9d5   : > { %4870 = vmatpush3.bf16.msra.mxu1 %v5233_v7  ;;  %4892 = vmatpush3.bf16.msra.mxu0 %v5234_v8  ;;  %v5254_v7 = vld [vmem:[%s5558_s12 + $0x280] sm:$0xff]   ;;  %v5255_v8 = vld [vmem:[%s5558_s12 + $0x248] sm:$0xff]  }
 0x9d6   : > { %4871 = vmatprep.subr.bf16.mxu1 %v5235_v10  ;;  %4893 = vmatprep.subr.bf16.mxu0 %v5236_v11  ;;  %v5256_v10 = vld [vmem:[%s5558_s12 + $0x2c8] sm:$0xff]  }
 0x9d7   : > { %v5257_v11 = vld [vmem:[%s5558_s12 + $0x208] sm:$0xff]  }
 0x9d9   : > { %4872 = vmatpush3.bf16.msra.mxu1 %v5237_v12  ;;  %4894 = vmatpush3.bf16.msra.mxu0 %v5238_v14  ;;  %v5258_v12 = vld [vmem:[%s5558_s12 + $0x288] sm:$0xff]   ;;  %v5259_v14 = vld [vmem:[%s5558_s12 + $0x250] sm:$0xff]  }
 0x9da   : > { %4873 = vmatprep.subr.bf16.mxu1 %v5239_v15  ;;  %4895 = vmatprep.subr.bf16.mxu0 %v5240_v4  ;;  %v5260_v15 = vld [vmem:[%s5558_s12 + $0x2d0] sm:$0xff]  }
 0x9db   : > { %v5261_v4 = vld [vmem:[%s5558_s12 + $0x210] sm:$0xff]  }
 0x9dd   : > { %v2846_v28 = vpop.f32.mrb[32].mxu1  ;;  %v2889_v29 = vpop.f32.mrb[20].mxu0  ;;  %4874 = vmatpush3.bf16.msra.mxu1 %v5241_v22  ;;  %4896 = vmatpush3.bf16.msra.mxu0 %v5242_v23  ;;  %v5262_v22 = vld [vmem:[%s5558_s12 + $0x290] sm:$0xff]   ;;  %v5263_v23 = vld [vmem:[%s5558_s12 + $0x258] sm:$0xff]  }
 0x9de   : > { %v2847_v13 = vadd.f32 %v2846_v28, %v2025_v24  ;;  %v2890_v40 = vadd.f32 %v2889_v29, %v2033_v25  ;;  %v2848_v41 = vpop.f32.mrb[33].mxu1  ;;  %v2891_v42 = vpop.f32.mrb[21].mxu0  ;;  %4875 = vmatprep.subr.bf16.mxu1 %v5243_v5  ;;  %4897 = vmatprep.subr.bf16.mxu0 %v5244_v26  ;;  %v5266_v5 = vld [vmem:[%s5558_s12 + $0x298] sm:$0xff]   ;;  %v5267_v26 = vld [vmem:[%s5558_s12 + $0x260] sm:$0xff]   ;;  %v5271_v29 = vld [vmem:[%s5558_s12 + $0x268] sm:$0xff]  }
 0x9df   : > { %v2849_v43 = vadd.f32 %v2848_v41, %v2029_v27  ;;  %v2892_v57 = vadd.f32 %v2891_v42, %v2037_v9  ;;  %v2850_v44 = vpop.f32.mrb[34].mxu1  ;;  %v2893_v20 = vpop.f32.mrb[22].mxu0  ;;  %v5270_v28 = vld [vmem:[%s5558_s12 + $0x2a0] sm:$0xff]  }
 0x9e0   : > { %v2851_v45 = vadd.f32 %v2850_v44, %v2025_v24  ;;  %v2894_v46 = vadd.f32 %v2893_v20, %v2033_v25  ;;  %v2852_v47 = vpop.f32.mrb[35].mxu1  ;;  %v2895_v48 = vpop.f32.mrb[23].mxu0  ;;  %v3074_v54 = vmax.f32 %v2847_v13, 0.0  ;;  %v3076_v55 = vmax.f32 %v2890_v40, 0.0  ;;  %v5264_v24 = vld [vmem:[%s5558_s12 + $0x2d8] sm:$0xff]   ;;  %v5273_v13 = vld [vmem:[%s5558_s12 + $0x228] sm:$0xff]  }
 0x9e1   : > { %v2853_v50 = vadd.f32 %v2852_v47, %v2029_v27  ;;  %v2896_v51 = vadd.f32 %v2895_v48, %v2037_v9  ;;  %4876 = vmatpush3.bf16.msra.mxu1 %v5245_v30  ;;  %4898 = vmatpush3.bf16.msra.mxu0 %v5246_v39  ;;  %v3075_v61 = vmax.f32 %v2849_v43, 0.0  ;;  %v3077_v62 = vmax.f32 %v2892_v57, 0.0  ;;  %v5265_v25 = vld [vmem:[%s5558_s12 + $0x218] sm:$0xff]   ;;  %v5268_v27 = vld [vmem:[%s5558_s12 + $0x2e0] sm:$0xff]   ;;  %v5272_v30 = vld [vmem:[%s5558_s12 + $0x2e8] sm:$0xff]  }
 0x9e2   : > { %v3090_v56 = vmax.f32 %v2851_v45, 0.0  ;;  %v3092_v58 = vmax.f32 %v2894_v46, 0.0  ;;  %4877 = vmatprep.subr.bf16.mxu1 %v5247_v38  ;;  %4899 = vmatprep.subr.bf16.mxu0 %v5248_v34  ;;  %v5269_v9 = vld [vmem:[%s5558_s12 + $0x220] sm:$0xff]   ;;  %v6025_v39 = vld [vmem:[%s5553_s0 + $0x8] sm:$0xff]  ;;  %v5275_v38 = vld [vmem:[%s5558_s12 + $0x270] sm:$0xff]  }
 0x9e3   : > { %v3091_v63 = vmax.f32 %v2853_v50, 0.0  ;;  %v3093_v60 = vmax.f32 %v2896_v51, 0.0  ;;  %v5274_v40 = vld [vmem:[%s5558_s12 + $0x2a8] sm:$0xff]   ;;  %v2041_v41 = vrot.slane %v6025_v39, %v5622_v33  ;;  %v2049_v42 = vrot.slane %v6025_v39, %v5636_v49  ;;  %v5276_v34 = vld [vmem:[%s5558_s12 + $0x2f0] sm:$0xff]   ;;  %v5279_v50 = vld [vmem:[%s5558_s12 + $0x278] sm:$0xff]  }
 0x9e4   : > { %v3106_v0 = vpack.c.bf16 %v3090_v56, %v3074_v54  ;;  %v3108_v1 = vpack.c.bf16 %v3092_v58, %v3076_v55  ;;  %v2045_v43 = vrot.slane %v6025_v39, %v5626_v35  ;;  %v2053_v57 = vrot.slane %v6025_v39, %v2020_v21  ;;  %v5277_v45 = vld [vmem:[%s5558_s12 + $0x230] sm:$0xff]   ;;  %v5280_v35 = vld [vmem:[%s5558_s12 + $0x2f8] sm:$0xff]  }
 0x9e5   : > { %v3107_v2 = vpack.c.bf16 %v3091_v63, %v3075_v61  ;;  %v3109_v3 = vpack.c.bf16 %v3093_v60, %v3077_v62  ;;  %4878 = vmatpush3.bf16.msra.mxu1 %v5249_v52  ;;  %4900 = vmatpush3.bf16.msra.mxu0 %v5250_v53  ;;  %v5278_v33 = vld [vmem:[%s5558_s12 + $0x2b0] sm:$0xff]   ;;  %v5281_v61 = vld [vmem:[%s5558_s12 + $0x238] sm:$0xff]  }
 0x9e6   : > { %4907 = vmatprep.subr.bf16.mxu1 %v5251_v59  ;;  %4929 = vmatprep.subr.bf16.mxu0 %v5252_v37  ;;  %v5282_v62 = vld [vmem:[%s5558_s12 + $0x2b8] sm:$0xff]  }
 0x9e7   : > { %4006 = vmatprep.mubr.bf16.mxu1 %v3107_v2  ;;  %4047 = vmatprep.mubr.bf16.mxu0 %v3109_v3  ;;  %v5283_v2 = vld [vmem:[%s5558_s12 + $0x340] sm:$0xff]  }
 0x9e8   : > { %4007 = vmatmul.mubr.bf16.vlgmr.msra.gmra.mrb[48].mxu1 %v3106_v0  ;;  %4048 = vmatmul.mubr.bf16.vlgmr.msra.gmra.mrb[36].mxu0 %v3108_v1  ;;  %v5284_v3 = vld [vmem:[%s5558_s12 + $0x3c0] sm:$0xff]  }
 0x9e9   : > { %4908 = vmatpush3.bf16.msra.mxu1 %v5253_v6  ;;  %4930 = vmatpush3.bf16.msra.mxu0 %v5254_v7 }
 0x9ea   : > { %4909 = vmatprep.subr.bf16.mxu1 %v5255_v8  ;;  %4931 = vmatprep.subr.bf16.mxu0 %v5256_v10 }
 0x9ed   : > { %4910 = vmatpush3.bf16.msra.mxu1 %v5257_v11  ;;  %4932 = vmatpush3.bf16.msra.mxu0 %v5258_v12 }
 0x9ee   : > { %4911 = vmatprep.subr.bf16.mxu1 %v5259_v14  ;;  %4933 = vmatprep.subr.bf16.mxu0 %v5260_v15 }
 0x9f1   : > { %4912 = vmatpush3.bf16.msra.mxu1 %v5261_v4  ;;  %4934 = vmatpush3.bf16.msra.mxu0 %v5262_v22  ;;  %v5285_v4 = vld [vmem:[%s5558_s12 + $0x300] sm:$0xff]  }
 0x9f2   : > { %4913 = vmatprep.subr.bf16.mxu1 %v5263_v23  ;;  %4935 = vmatprep.subr.bf16.mxu0 %v5264_v24  ;;  %v5286_v22 = vld [vmem:[%s5558_s12 + $0x380] sm:$0xff]   ;;  %v5287_v23 = vld [vmem:[%s5558_s12 + $0x348] sm:$0xff]  }
 0x9f3   : > { %v5288_v24 = vld [vmem:[%s5558_s12 + $0x3c8] sm:$0xff]  }
 0x9f5   : > { %4914 = vmatpush3.bf16.msra.mxu1 %v5265_v25  ;;  %4936 = vmatpush3.bf16.msra.mxu0 %v5266_v5  ;;  %v5289_v25 = vld [vmem:[%s5558_s12 + $0x308] sm:$0xff]  }
 0x9f6   : > { %4915 = vmatprep.subr.bf16.mxu1 %v5267_v26  ;;  %4937 = vmatprep.subr.bf16.mxu0 %v5268_v27  ;;  %v5290_v5 = vld [vmem:[%s5558_s12 + $0x388] sm:$0xff]   ;;  %v5291_v26 = vld [vmem:[%s5558_s12 + $0x350] sm:$0xff]  }
 0x9f7   : > { %v5292_v27 = vld [vmem:[%s5558_s12 + $0x3d0] sm:$0xff]  }
 0x9f9   : > { %4916 = vmatpush3.bf16.msra.mxu1 %v5269_v9  ;;  %4938 = vmatpush3.bf16.msra.mxu0 %v5270_v28  ;;  %v5293_v9 = vld [vmem:[%s5558_s12 + $0x310] sm:$0xff]  }
 0x9fa   : > { %4917 = vmatprep.subr.bf16.mxu1 %v5271_v29  ;;  %4939 = vmatprep.subr.bf16.mxu0 %v5272_v30  ;;  %v5294_v28 = vld [vmem:[%s5558_s12 + $0x390] sm:$0xff]   ;;  %v5295_v29 = vld [vmem:[%s5558_s12 + $0x358] sm:$0xff]  }
 0x9fb   : > { %v5296_v30 = vld [vmem:[%s5558_s12 + $0x3d8] sm:$0xff]  }
 0x9fd   : > { %v2932_v44 = vpop.f32.mrb[36].mxu1  ;;  %v2975_v20 = vpop.f32.mrb[24].mxu0  ;;  %4918 = vmatpush3.bf16.msra.mxu1 %v5273_v13  ;;  %4940 = vmatpush3.bf16.msra.mxu0 %v5274_v40  ;;  %v5297_v13 = vld [vmem:[%s5558_s12 + $0x318] sm:$0xff]  }
 0x9fe   : > { %v2933_v46 = vadd.f32 %v2932_v44, %v2041_v41  ;;  %v2976_v47 = vadd.f32 %v2975_v20, %v2049_v42  ;;  %v2934_v49 = vpop.f32.mrb[37].mxu1  ;;  %v2977_v48 = vpop.f32.mrb[25].mxu0  ;;  %4919 = vmatprep.subr.bf16.mxu1 %v5275_v38  ;;  %4941 = vmatprep.subr.bf16.mxu0 %v5276_v34  ;;  %v5298_v40 = vld [vmem:[%s5558_s12 + $0x398] sm:$0xff]   ;;  %v5301_v38 = vld [vmem:[%s5558_s12 + $0x320] sm:$0xff]   ;;  %v5305_v44 = vld [vmem:[%s5558_s12 + $0x328] sm:$0xff]  }
 0x9ff   : > { %v2935_v51 = vadd.f32 %v2934_v49, %v2045_v43  ;;  %v2978_v52 = vadd.f32 %v2977_v48, %v2053_v57  ;;  %v2936_v53 = vpop.f32.mrb[38].mxu1  ;;  %v2979_v21 = vpop.f32.mrb[26].mxu0  ;;  %v5302_v34 = vld [vmem:[%s5558_s12 + $0x3a0] sm:$0xff]   ;;  %v5306_v20 = vld [vmem:[%s5558_s12 + $0x3a8] sm:$0xff]   ;;  %v2061_v49 = vrot.slane %v6025_v39, %v2028_v18  ;;  %v2069_v48 = vrot.slane %v6025_v39, %v2036_v19  ;;  %v5312_v18 = vld [vmem:[%s5558_s12 + $0x3f8] sm:$0xff]  }
 0xa00   : > { %v2937_v54 = vadd.f32 %v2936_v53, %v2041_v41  ;;  %v2980_v55 = vadd.f32 %v2979_v21, %v2049_v42  ;;  %v2938_v56 = vpop.f32.mrb[39].mxu1  ;;  %v2981_v58 = vpop.f32.mrb[27].mxu0  ;;  %v3078_v63 = vmax.f32 %v2933_v46, 0.0  ;;  %v3080_v60 = vmax.f32 %v2976_v47, 0.0  ;;  %v5299_v41 = vld [vmem:[%s5558_s12 + $0x360] sm:$0xff]   ;;  %v5307_v46 = vld [vmem:[%s5558_s12 + $0x370] sm:$0xff]  }
 0xa01   : > { %v2939_v59 = vadd.f32 %v2938_v56, %v2045_v43  ;;  %v2982_v37 = vadd.f32 %v2981_v58, %v2053_v57  ;;  %4920 = vmatpush3.bf16.msra.mxu1 %v5277_v45  ;;  %4942 = vmatpush3.bf16.msra.mxu0 %v5278_v33  ;;  %v3079_v6 = vmax.f32 %v2935_v51, 0.0  ;;  %v3081_v7 = vmax.f32 %v2978_v52, 0.0  ;;  %v5300_v42 = vld [vmem:[%s5558_s12 + $0x3e0] sm:$0xff]   ;;  %v5303_v43 = vld [vmem:[%s5558_s12 + $0x368] sm:$0xff]   ;;  %v5308_v47 = vld [vmem:[%s5558_s12 + $0x3f0] sm:$0xff]  }
 0xa02   : > { %v3094_v0 = vmax.f32 %v2937_v54, 0.0  ;;  %v3096_v1 = vmax.f32 %v2980_v55, 0.0  ;;  %4921 = vmatprep.subr.bf16.mxu1 %v5279_v50  ;;  %4943 = vmatprep.subr.bf16.mxu0 %v5280_v35  ;;  %v5304_v57 = vld [vmem:[%s5558_s12 + $0x3e8] sm:$0xff]   ;;  %v2057_v45 = vrot.slane %v6025_v39, %v2024_v16  ;;  %v2065_v33 = vrot.slane %v6025_v39, %v2032_v17  ;;  %v5309_v16 = vld [vmem:[%s5558_s12 + $0x330] sm:$0xff]   ;;  %v5311_v54 = vld [vmem:[%s5558_s12 + $0x378] sm:$0xff]  }
 0xa03   : > { %v3095_v8 = vmax.f32 %v2939_v59, 0.0  ;;  %v3097_v10 = vmax.f32 %v2982_v37, 0.0  ;;  %v5310_v51 = vld [vmem:[%s5558_s12 + $0x3b0] sm:$0xff]  }
 0xa04   : > { %v3110_v11 = vpack.c.bf16 %v3094_v0, %v3078_v63  ;;  %v3112_v12 = vpack.c.bf16 %v3096_v1, %v3080_v60  ;;  %v5313_v63 = vld [vmem:[%s5558_s12 + $0x338] sm:$0xff]  }
 0xa05   : > { %v3111_v14 = vpack.c.bf16 %v3095_v8, %v3079_v6  ;;  %v3113_v15 = vpack.c.bf16 %v3097_v10, %v3081_v7  ;;  %4922 = vmatpush3.bf16.msra.mxu1 %v5281_v61  ;;  %4944 = vmatpush3.bf16.msra.mxu0 %v5282_v62  ;;  %v5314_v60 = vld [vmem:[%s5558_s12 + $0x3b8] sm:$0xff]  }
 0xa06   : > { %4951 = vmatprep.subr.bf16.mxu1 %v5283_v2  ;;  %4973 = vmatprep.subr.bf16.mxu0 %v5284_v3 }
 0xa07   : > { %4088 = vmatprep.mubr.bf16.mxu1 %v3111_v14  ;;  %4129 = vmatprep.mubr.bf16.mxu0 %v3113_v15 }
 0xa08   : > { %4089 = vmatmul.mubr.bf16.vlgmr.msra.gmra.mrb[52].mxu1 %v3110_v11  ;;  %4130 = vmatmul.mubr.bf16.vlgmr.msra.gmra.mrb[40].mxu0 %v3112_v12 }
 0xa09   : > { %4952 = vmatpush3.bf16.msra.mxu1 %v5285_v4  ;;  %4974 = vmatpush3.bf16.msra.mxu0 %v5286_v22 }
 0xa0a   : > { %4953 = vmatprep.subr.bf16.mxu1 %v5287_v23  ;;  %4975 = vmatprep.subr.bf16.mxu0 %v5288_v24  ;;  %v4647_v23 = vld [vmem:[%s639_s24] ss:$0 sm:$0xff] }
 0xa0d   : > { %4954 = vmatpush3.bf16.msra.mxu1 %v5289_v25  ;;  %4976 = vmatpush3.bf16.msra.mxu0 %v5290_v5 }
 0xa0e   : > { %4955 = vmatprep.subr.bf16.mxu1 %v5291_v26  ;;  %4977 = vmatprep.subr.bf16.mxu0 %v5292_v27 }
 0xa11   : > { %4956 = vmatpush3.bf16.msra.mxu1 %v5293_v9  ;;  %4978 = vmatpush3.bf16.msra.mxu0 %v5294_v28 }
 0xa12   : > { %4957 = vmatprep.subr.bf16.mxu1 %v5295_v29  ;;  %4979 = vmatprep.subr.bf16.mxu0 %v5296_v30 }
 0xa15   : > { %4958 = vmatpush3.bf16.msra.mxu1 %v5297_v13  ;;  %4980 = vmatpush3.bf16.msra.mxu0 %v5298_v40 }
 0xa16   : > { %4959 = vmatprep.subr.bf16.mxu1 %v5299_v41  ;;  %4981 = vmatprep.subr.bf16.mxu0 %v5300_v42 }
 0xa19   : > { %4960 = vmatpush3.bf16.msra.mxu1 %v5301_v38  ;;  %4982 = vmatpush3.bf16.msra.mxu0 %v5302_v34 }
 0xa1a   : > { %4961 = vmatprep.subr.bf16.mxu1 %v5303_v43  ;;  %4983 = vmatprep.subr.bf16.mxu0 %v5304_v57 }
 0xa1d   : > { %v3018_v50 = vpop.f32.mrb[40].mxu1  ;;  %v3061_v35 = vpop.f32.mrb[28].mxu0  ;;  %4962 = vmatpush3.bf16.msra.mxu1 %v5305_v44  ;;  %4984 = vmatpush3.bf16.msra.mxu0 %v5306_v20 }
 0xa1e   : > { %v3019_v52 = vadd.f32 %v3018_v50, %v2057_v45  ;;  %v3062_v17 = vadd.f32 %v3061_v35, %v2065_v33  ;;  %v3020_v53 = vpop.f32.mrb[41].mxu1  ;;  %v3063_v21 = vpop.f32.mrb[29].mxu0  ;;  %4963 = vmatprep.subr.bf16.mxu1 %v5307_v46  ;;  %4985 = vmatprep.subr.bf16.mxu0 %v5308_v47 }
 0xa1f   : > { %v3021_v55 = vadd.f32 %v3020_v53, %v2061_v49  ;;  %v3064_v32 = vadd.f32 %v3063_v21, %v2069_v48  ;;  %v3022_v56 = vpop.f32.mrb[42].mxu1  ;;  %v3065_v19 = vpop.f32.mrb[30].mxu0 }
 0xa20   : > { %v3023_v39 = vadd.f32 %v3022_v56, %v2057_v45  ;;  %v3066_v58 = vadd.f32 %v3065_v19, %v2065_v33  ;;  %v3024_v59 = vpop.f32.mrb[43].mxu1  ;;  %v3067_v37 = vpop.f32.mrb[31].mxu0  ;;  %v3082_v0 = vmax.f32 %v3019_v52, 0.0  ;;  %v3084_v1 = vmax.f32 %v3062_v17, 0.0 }
 0xa21   : > { %v3025_v61 = vadd.f32 %v3024_v59, %v2061_v49  ;;  %v3068_v62 = vadd.f32 %v3067_v37, %v2069_v48  ;;  %4964 = vmatpush3.bf16.msra.mxu1 %v5309_v16  ;;  %4986 = vmatpush3.bf16.msra.mxu0 %v5310_v51  ;;  %v3083_v6 = vmax.f32 %v3021_v55, 0.0  ;;  %v3085_v7 = vmax.f32 %v3064_v32, 0.0 }
 0xa22   : > { %v3098_v2 = vmax.f32 %v3023_v39, 0.0  ;;  %v3100_v3 = vmax.f32 %v3066_v58, 0.0  ;;  %4965 = vmatprep.subr.bf16.mxu1 %v5311_v54  ;;  %4987 = vmatprep.subr.bf16.mxu0 %v5312_v18 }
 0xa23   : > { %v3099_v8 = vmax.f32 %v3025_v61, 0.0  ;;  %v3101_v10 = vmax.f32 %v3068_v62, 0.0 }
 0xa24   : > { %v3114_v11 = vpack.c.bf16 %v3098_v2, %v3082_v0  ;;  %v3116_v12 = vpack.c.bf16 %v3100_v3, %v3084_v1 }
 0xa25   : > { %v3115_v14 = vpack.c.bf16 %v3099_v8, %v3083_v6  ;;  %v3117_v15 = vpack.c.bf16 %v3101_v10, %v3085_v7  ;;  %4966 = vmatpush3.bf16.msra.mxu1 %v5313_v63  ;;  %4988 = vmatpush3.bf16.msra.mxu0 %v5314_v60 }
 0xa27   : > { %4170 = vmatprep.mubr.bf16.mxu1 %v3115_v14  ;;  %4211 = vmatprep.mubr.bf16.mxu0 %v3117_v15 }
 0xa28   : > { %4171 = vmatmul.mubr.bf16.vlgmr.msra.gmra.mrb[56].mxu1 %v3114_v11  ;;  %4212 = vmatmul.mubr.bf16.vlgmr.msra.gmra.mrb[44].mxu0 %v3116_v12 }
 0xa9b   : > { %v4835_v4 = vpop.f32.mrb[44].mxu1  ;;  %v4857_v22 = vpop.f32.mrb[32].mxu0 }
 0xa9c   : > { %v4836_v24 = vpop.f32.mrb[45].mxu1  ;;  %v4858_v25 = vpop.f32.mrb[33].mxu0 }
 0xa9d   : > { %v4837_v5 = vadd.f32 %v4836_v24, %v4835_v4  ;;  %v4859_v26 = vadd.f32 %v4858_v25, %v4857_v22  ;;  %v4838_v27 = vpop.f32.mrb[46].mxu1  ;;  %v4860_v9 = vpop.f32.mrb[34].mxu0 }
 0xa9e   : > { %v4839_v28 = vpop.f32.mrb[47].mxu1  ;;  %v4861_v29 = vpop.f32.mrb[35].mxu0 }
 0xa9f   : > { %v3927_v30 = vadd.f32 %v4837_v5, %v4647_v23  ;;  %v4840_v13 = vadd.f32 %v4839_v28, %v4838_v27  ;;  %v4862_v40 = vadd.f32 %v4861_v29, %v4860_v9 }
 0xaa1   : > { %v3968_v41 = vadd.f32 %v4859_v26, %v3927_v30  ;;  %v3930_v42 = vadd.f32 %v4840_v13, %v4647_v23 }
 0xaa3   : > { %v3971_v38 = vadd.f32 %v4862_v40, %v3930_v42 }
 0xabb   : > { %v4879_v34 = vpop.f32.mrb[48].mxu1  ;;  %v4901_v43 = vpop.f32.mrb[36].mxu0 }
 0xabc   : > { %v4880_v57 = vpop.f32.mrb[49].mxu1  ;;  %v4902_v44 = vpop.f32.mrb[37].mxu0 }
 0xabd   : > { %v4881_v20 = vadd.f32 %v4880_v57, %v4879_v34  ;;  %v4903_v45 = vadd.f32 %v4902_v44, %v4901_v43  ;;  %v4882_v33 = vpop.f32.mrb[50].mxu1  ;;  %v4904_v46 = vpop.f32.mrb[38].mxu0  ;;  %v4776_v44 = vld [vmem:[%s642_s3] ss:$0 sm:$0xff] }
 0xabe   : > { %v4883_v47 = vpop.f32.mrb[51].mxu1  ;;  %v4905_v49 = vpop.f32.mrb[39].mxu0 }
 0xabf   : > { %v4009_v48 = vadd.f32 %v4881_v20, %v3968_v41  ;;  %v4884_v50 = vadd.f32 %v4883_v47, %v4882_v33  ;;  %v4906_v35 = vadd.f32 %v4905_v49, %v4904_v46 }
 0xac1   : > { %v4050_v16 = vadd.f32 %v4903_v45, %v4009_v48  ;;  %v4012_v51 = vadd.f32 %v4884_v50, %v3971_v38  ;;  %v4777_v45 = vld [vmem:[%s645_s6] ss:$0 sm:$0xff] }
 0xac3   : > { %v4053_v52 = vadd.f32 %v4906_v35, %v4012_v51 }
 0xadb   : > { %v4923_v17 = vpop.f32.mrb[52].mxu1  ;;  %v4945_v53 = vpop.f32.mrb[40].mxu0 }
 0xadc   : > { %v4924_v21 = vpop.f32.mrb[53].mxu1  ;;  %v4946_v54 = vpop.f32.mrb[41].mxu0 }
 0xadd   : > { %v4925_v18 = vadd.f32 %v4924_v21, %v4923_v17  ;;  %v4947_v55 = vadd.f32 %v4946_v54, %v4945_v53  ;;  %v4926_v32 = vpop.f32.mrb[54].mxu1  ;;  %v4948_v56 = vpop.f32.mrb[42].mxu0 }
 0xade   : > { %v4927_v19 = vpop.f32.mrb[55].mxu1  ;;  %v4949_v39 = vpop.f32.mrb[43].mxu0 }
 0xadf   : > { %v4091_v58 = vadd.f32 %v4925_v18, %v4050_v16  ;;  %v4928_v59 = vadd.f32 %v4927_v19, %v4926_v32  ;;  %v4950_v37 = vadd.f32 %v4949_v39, %v4948_v56 }
 0xae1   : > { %v4132_v61 = vadd.f32 %v4947_v55, %v4091_v58  ;;  %v4094_v62 = vadd.f32 %v4928_v59, %v4053_v52 }
 0xae3   : > { %v4135_v63 = vadd.f32 %v4950_v37, %v4094_v62 }
 0xafb   : > { %v4967_v60 = vpop.f32.mrb[56].mxu1  ;;  %v4989_v0 = vpop.f32.mrb[44].mxu0 }
 0xafc   : > { %v4968_v1 = vpop.f32.mrb[57].mxu1  ;;  %v4990_v2 = vpop.f32.mrb[45].mxu0 }
 0xafd   : > { %v4969_v3 = vadd.f32 %v4968_v1, %v4967_v60  ;;  %v4991_v6 = vadd.f32 %v4990_v2, %v4989_v0  ;;  %v4970_v7 = vpop.f32.mrb[58].mxu1  ;;  %v4992_v8 = vpop.f32.mrb[46].mxu0 }
 0xafe   : > { %v4971_v10 = vpop.f32.mrb[59].mxu1  ;;  %v4993_v11 = vpop.f32.mrb[47].mxu0 }
 0xaff   : > { %v4173_v12 = vadd.f32 %v4969_v3, %v4132_v61  ;;  %v4972_v14 = vadd.f32 %v4971_v10, %v4970_v7  ;;  %v4994_v15 = vadd.f32 %v4993_v11, %v4992_v8 }
 0xb01   : > { %v4214_v4 = vadd.f32 %v4991_v6, %v4173_v12  ;;  %v4176_v22 = vadd.f32 %v4972_v14, %v4135_v63 }
 0xb03   : > { %v4217_v23 = vadd.f32 %v4994_v15, %v4176_v22  ;;  %v4220_v24 = vadd.f32 %v4214_v4, %v5799_v31 }
 0xb05   : > { %4222 = vadd.xlane.f32.xlu1 %v4220_v24  ;;  %v4221_v25 = vadd.f32 %v4217_v23, %v5801_v36 }
 0xb07   : > { %v4224_v5 = vsel %vm1574_vm8, %v4221_v25, 0.0 }
 0xb08   : > { %4225 = vadd.xlane.f32.xlu0 %v4224_v5 }
 0xb92   : > { %v4223_v26 = vpop.xlane.xlu1 %4222 }
 0xb93   : > { %v4227_v27 = vmul.f32 0.0078125, %v4223_v26 }
 0xb95   : > { %v4229_v9 = vsub.f32 %v4220_v24, %v4227_v27  ;;  %v4226_v28 = vpop.xlane.xlu0 %4225 }
 0xb96   : > { %v4228_v29 = vmul.f32 0.0078125, %v4226_v28 }
 0xb97   : > { %v4231_v30 = vmul.f32 %v4229_v9, %v4229_v9 }
 0xb98   : > { %v4230_v13 = vsub.f32 %v4221_v25, %v4228_v29 }
 0xb99   : > { %4233 = vadd.xlane.f32.xlu0 %v4231_v30 }
 0xb9a   : > { %v4232_v40 = vmul.f32 %v4230_v13, %v4230_v13 }
 0xb9c   : > { %v4235_v41 = vsel %vm1574_vm8, %v4232_v40, 0.0 }
 0xb9d   : > { %4236 = vadd.xlane.f32.xlu1 %v4235_v41 }
 0xc26   : > { %v4234_v31 = vpop.xlane.xlu0 %4233 }
 0xc27   : > { %v4238_v42 = vmul.f32 0.0078125, %v4234_v31 }
 0xc29   : > { %v4240_v36 = vadd.f32 1e-05, %v4238_v42 }
 0xc2a   : > { %v4237_v38 = vpop.xlane.xlu1 %4236 }
 0xc2b   : > { %5351 = vrsqrt.f32 %v4240_v36  ;;  %v4239_v34 = vmul.f32 0.0078125, %v4237_v38 }
 0xc2d   : > { %v4241_v43 = vadd.f32 1e-05, %v4239_v34 }
 0xc2f   : > { %5353 = vrsqrt.f32 %v4241_v43 }
 0xc35   : > { %v5352_v57 = vpop.eup %5351 }
 0xc36   : > { %v4244_v20 = vmul.f32 %v5352_v57, %v4229_v9 }
 0xc38   : > { %v4252_v33 = vmul.f32 %v4776_v44, %v4244_v20 }
 0xc39   : > { %v5354_v46 = vpop.eup %5353 }
 0xc3a   : > { %v4260_v47 = vadd.f32 %v4777_v45, %v4252_v33  ;;  %v4245_v49 = vmul.f32 %v5354_v46, %v4230_v13 }
 0xc3c   : > { %4262 = vst [vmem:[#allocation2] sm:$0xff] %v4260_v47  ;;  %4264 = vst [vmem:[%s5575_s8] sm:$0xff] %v4260_v47  ;;  %v4253_v48 = vmul.f32 %v4776_v44, %v4245_v49 }
 0xc3e   : > { %v4261_v50 = vadd.f32 %v4777_v45, %v4253_v48 }
 0xc40   : > { %4263 = vst [vmem:[#allocation2 + $0x8] sm:$0x1] %v4261_v50  ;;  %4265 = vst [vmem:[%s5575_s8 + $0x8] sm:$0x1] %v4261_v50 }
 0xc41 PF: > { %s6174_s26 = sld [smem:[#allocation6_spill]]  ;;  %s6175_s25 = sld [smem:[#allocation4_spill]] }
 0xc42   : > { %s6177_s27 = sld [smem:[#allocation7_spill]]  ;;  %s6178_s28 = sld [smem:[#allocation8_spill]] }
 0xc47   : > { %s23_s29 = sadd.s32 1, %s6174_s26   ;;  %s6176_s26 = sld [smem:[#allocation5_spill]] }
 0xc48   : > { %p20_p8 = scmp.ge.s32.totalorder %s23_s29, 10  }
 0xc4a   :  { %22 = sbr.rel (!%p20_p8) target bundleno = 10 (0xa), region = 142 }

// kernel: _lambda_.6
= control target key start
LH: loop header
LB: loop body
LE: loop exit
PB: predicated region body
PF: predicated region fallthrough
CT: control target
= control target key end

     0   :  { %vm39_vm0 = vcmask 1041408   ;;  %s789_s0 = inlined_call_operand.vmem [shape: f32[2,128], index: 0, kind: input, shape index: {}]   ;;  %s790_s1 = inlined_call_operand.vmem [shape: f32[1,128], index: 1, kind: input, shape index: {}]   ;;  %s791_s2 = inlined_call_operand.vmem [shape: f32[1,128], index: 2, kind: input, shape index: {}]   ;;  %s792_s3 = inlined_call_operand.vmem [shape: bf16[128,128], index: 3, kind: input, shape index: {}]   ;;  %s793_s4 = inlined_call_operand.vmem [shape: f32[1,128], index: 4, kind: input, shape index: {}]   ;;  %s794_s5 = inlined_call_operand.vmem [shape: bf16[128,128], index: 5, kind: input, shape index: {}]   ;;  %s795_s6 = inlined_call_operand.vmem [shape: f32[1,128], index: 6, kind: input, shape index: {}]   ;;  %s796_s7 = inlined_call_operand.vmem [shape: bf16[128,128], index: 7, kind: input, shape index: {}]   ;;  %s797_s8 = inlined_call_operand.vmem [shape: f32[1,128], index: 8, kind: input, shape index: {}]   ;;  %s798_s9 = inlined_call_operand.hbm [shape: f32[2,128], index: 9, kind: output, shape index: {0}]   ;;  %s799_s10 = inlined_call_operand.vmem [shape: f32[2,128], index: 10, kind: output, shape index: {1}]  }
   0x1   :  { %v36_v0 = vld [vmem:[%s789_s0] sm:$0x3] }
   0x2   :  { %v40_v1 = vsel %vm39_vm0, %v36_v0, 0.0 }
   0x3   :  { %41 = vadd.xlane.f32.xlu0 %v40_v1 }
   0x4   :  { %16 = vsyncpa [#allocation3], 0  ;;  %v544_v2 = vld [vmem:[%s792_s3] sm:$0xff]   ;;  %v594_v3 = vmov 0.0   ;;  %v545_v4 = vld [vmem:[%s792_s3 + $0x8] sm:$0xff]   ;;  %vm595_vm1 = vmmov 0  }
   0x5   :  { %481 = vmatprep.subr.bf16.mxu0 %v594_v3  ;;  %501 = vmatprep.subr.bf16.mxu1 %v594_v3  ;;  %v546_v10 = vld [vmem:[%s792_s3 + $0x10] sm:$0xff]   ;;  %v547_v11 = vld [vmem:[%s792_s3 + $0x18] sm:$0xff]   ;;  %v548_v12 = vld [vmem:[%s792_s3 + $0x20] sm:$0xff]  }
   0x6   :  { %482 = vmatpush3.bf16.msra.mxu0 %v544_v2  ;;  %497 = vmatprep.mubr.msk.bf16.mxu0 %vm595_vm1, %v594_v3  ;;  %v549_v13 = vld [vmem:[%s792_s3 + $0x28] sm:$0xff]   ;;  %v550_v14 = vld [vmem:[%s792_s3 + $0x30] sm:$0xff]   ;;  %v551_v15 = vld [vmem:[%s792_s3 + $0x38] sm:$0xff]  }
   0x7   :  { %483 = vmatprep.subr.bf16.mxu0 %v594_v3  ;;  %517 = vmatprep.mubr.msk.bf16.mxu1 %vm595_vm1, %v594_v3  ;;  %v552_v16 = vld [vmem:[%s794_s5] sm:$0xff]   ;;  %v553_v17 = vld [vmem:[%s794_s5 + $0x8] sm:$0xff]   ;;  %v554_v18 = vld [vmem:[%s794_s5 + $0x10] sm:$0xff]  }
   0x8   :  { %502 = vmatpush3.bf16.msra.mxu1 %v552_v16  ;;  %v555_v19 = vld [vmem:[%s794_s5 + $0x18] sm:$0xff]   ;;  %v556_v20 = vld [vmem:[%s794_s5 + $0x20] sm:$0xff]   ;;  %v557_v21 = vld [vmem:[%s794_s5 + $0x28] sm:$0xff]  }
   0x9   :  { %503 = vmatprep.subr.bf16.mxu1 %v594_v3  ;;  %v425_v26 = vld [vmem:[%s790_s1] ss:$0 sm:$0xff]  ;;  %v558_v32 = vld [vmem:[%s794_s5 + $0x30] sm:$0xff]   ;;  %v559_v33 = vld [vmem:[%s794_s5 + $0x38] sm:$0xff]  }
   0xa   :  { %484 = vmatpush3.bf16.msra.mxu0 %v545_v4  ;;  %v426_v28 = vld [vmem:[%s791_s2] ss:$0 sm:$0xff]  ;;  %v561_v35 = vld [vmem:[%s796_s7 + $0x8] sm:$0xff]   ;;  %v562_v36 = vld [vmem:[%s796_s7 + $0x10] sm:$0xff]  }
   0xb   :  { %485 = vmatprep.subr.bf16.mxu0 %v594_v3  ;;  %v560_v34 = vld [vmem:[%s796_s7] sm:$0xff]   ;;  %v563_v37 = vld [vmem:[%s796_s7 + $0x18] sm:$0xff]   ;;  %v565_v39 = vld [vmem:[%s796_s7 + $0x28] sm:$0xff]  }
   0xc   :  { %504 = vmatpush3.bf16.msra.mxu1 %v553_v17  ;;  %v564_v38 = vld [vmem:[%s796_s7 + $0x20] sm:$0xff]   ;;  %v566_v40 = vld [vmem:[%s796_s7 + $0x30] sm:$0xff]   ;;  %v567_v49 = vld [vmem:[%s796_s7 + $0x38] sm:$0xff]  }
   0xd   :  { %505 = vmatprep.subr.bf16.mxu1 %v594_v3  ;;  %v427_v41 = vld [vmem:[%s793_s4] ss:$0 sm:$0xff]  ;;  %s596_s4 = smov [#allocation2]  }
   0xe   :  { %486 = vmatpush3.bf16.msra.mxu0 %v546_v10  ;;  %v436_v50 = vld [vmem:[%s795_s6] ss:$0 sm:$0xff]  ;;  %s413_s23 = sshll.u32 %s596_s4, 4  ;;  %s414_s23 = int_to_ptr.vmem [resolvable:$true] %s413_s23 }
   0xf   :  { %487 = vmatprep.subr.bf16.mxu0 %v594_v3  ;;  %s570_s24 = scalar_lea.vmem %s414_s23, 32  ;;  %p575_p1 = scmp.lt.s32.totalorder %s414_s23, %s414_s23 }
  0x10   :  { %506 = vmatpush3.bf16.msra.mxu1 %v554_v18  ;;  %p571_p0 = scmp.ne.s32.totalorder %s414_s23, %s570_s24  ;;  %p576_p2 = scmp.lt.s32.totalorder %s570_s24, %s570_s24 }
  0x11   :  { %507 = vmatprep.subr.bf16.mxu1 %v594_v3 }
  0x12   :  { %488 = vmatpush3.bf16.msra.mxu0 %v547_v11  ;;  %p577_p3 = por %p576_p2, %p575_p1 }
  0x13   :  { %489 = vmatprep.subr.bf16.mxu0 %v594_v3 }
  0x14   :  { %508 = vmatpush3.bf16.msra.mxu1 %v555_v19  ;;  %p578_p4 = pnand %p577_p3, %p571_p0 }
  0x15   :  { %509 = vmatprep.subr.bf16.mxu1 %v594_v3 }
  0x16   :  { %490 = vmatpush3.bf16.msra.mxu0 %v548_v12 }
  0x17   :  { %491 = vmatprep.subr.bf16.mxu0 %v594_v3 }
  0x18   :  { %510 = vmatpush3.bf16.msra.mxu1 %v556_v20 }
  0x19   :  { %511 = vmatprep.subr.bf16.mxu1 %v594_v3 }
  0x1a   :  { %492 = vmatpush3.bf16.msra.mxu0 %v549_v13 }
  0x1b   :  { %493 = vmatprep.subr.bf16.mxu0 %v594_v3 }
  0x1c   :  { %512 = vmatpush3.bf16.msra.mxu1 %v557_v21 }
  0x1d   :  { %513 = vmatprep.subr.bf16.mxu1 %v594_v3 }
  0x1e   :  { %494 = vmatpush3.bf16.msra.mxu0 %v550_v14 }
  0x1f   :  { %495 = vmatprep.subr.bf16.mxu0 %v594_v3 }
  0x20   :  { %514 = vmatpush3.bf16.msra.mxu1 %v558_v32 }
  0x21   :  { %515 = vmatprep.subr.bf16.mxu1 %v594_v3 }
  0x22   :  { %496 = vmatpush3.bf16.msra.mxu0 %v551_v15 }
  0x23   :  { %521 = vmatprep.subr.bf16.mxu0 %v594_v3 }
  0x24   :  { %516 = vmatpush3.bf16.msra.mxu1 %v559_v33 }
  0x90   :  { %v42_v5 = vpop.xlane.xlu0 %41 }
  0x91   :  { %v44_v6 = vmul.f32 0.0078125, %v42_v5 }
  0x93   :  { %v45_v7 = vsub.f32 %v36_v0, %v44_v6 }
  0x95   :  { %v46_v8 = vmul.f32 %v45_v7, %v45_v7 }
  0x97   :  { %v47_v9 = vsel %vm39_vm0, %v46_v8, 0.0 }
  0x98   :  { %48 = vadd.xlane.f32.xlu0 %v47_v9 }
 0x125   :  { %v49_v22 = vpop.xlane.xlu0 %48 }
 0x126   :  { %v50_v23 = vmul.f32 0.0078125, %v49_v22 }
 0x128   :  { %v51_v24 = vadd.f32 1e-05, %v50_v23 }
 0x12a   :  { %568 = vrsqrt.f32 %v51_v24 }
 0x134   :  { %v569_v25 = vpop.eup %568 }
 0x135   :  { %v53_v27 = vmul.f32 %v569_v25, %v45_v7 }
 0x137   :  { %v60_v29 = vmul.f32 %v425_v26, %v53_v27 }
 0x139   :  { %v67_v30 = vadd.f32 %v426_v28, %v60_v29 }
 0x13b   :  { %v68_v31 = vpack.c.bf16 %v67_v30, %v67_v30 }
 0x13d   :  { %498 = vmatmul.mubr.bf16.vlgmr.msra.gmra.mrb[0].mxu0 %v68_v31 }
 0x13e   :  { %537 = vmatprep.mubr.msk.bf16.mxu0 %vm595_vm1, %v594_v3  ;;  %522 = vmatpush3.bf16.msra.mxu0 %v560_v34 }
 0x13f   :  { %523 = vmatprep.subr.bf16.mxu0 %v594_v3 }
 0x142   :  { %524 = vmatpush3.bf16.msra.mxu0 %v561_v35 }
 0x143   :  { %525 = vmatprep.subr.bf16.mxu0 %v594_v3 }
 0x146   :  { %526 = vmatpush3.bf16.msra.mxu0 %v562_v36 }
 0x147   :  { %527 = vmatprep.subr.bf16.mxu0 %v594_v3 }
 0x14a   :  { %528 = vmatpush3.bf16.msra.mxu0 %v563_v37 }
 0x14b   :  { %529 = vmatprep.subr.bf16.mxu0 %v594_v3 }
 0x14e   :  { %530 = vmatpush3.bf16.msra.mxu0 %v564_v38 }
 0x14f   :  { %531 = vmatprep.subr.bf16.mxu0 %v594_v3 }
 0x152   :  { %532 = vmatpush3.bf16.msra.mxu0 %v565_v39 }
 0x153   :  { %533 = vmatprep.subr.bf16.mxu0 %v594_v3 }
 0x156   :  { %534 = vmatpush3.bf16.msra.mxu0 %v566_v40 }
 0x157   :  { %535 = vmatprep.subr.bf16.mxu0 %v594_v3 }
 0x15a   :  { %536 = vmatpush3.bf16.msra.mxu0 %v567_v49 }
 0x210   :  { %v174_v42 = vpop.f32.mrb[0].mxu0 }
 0x211   :  { %v175_v43 = vadd.f32 %v427_v41, %v174_v42  ;;  %v499_v44 = vpop.f32.mrb[1].mxu0 }
 0x212   :  { %v177_v45 = vpop.f32.mrb[2].mxu0 }
 0x213   :  { %v180_v46 = vmax.f32 %v175_v43, 0.0  ;;  %v500_v47 = vpop.f32.mrb[3].mxu0 }
 0x215   :  { %v181_v48 = vpack.c.bf16 %v180_v46, %v180_v46 }
 0x217   :  { %518 = vmatmul.mubr.bf16.vlgmr.msra.gmra.mrb[0].mxu1 %v181_v48 }
 0x2ea   :  { %v287_v51 = vpop.f32.mrb[0].mxu1 }
 0x2eb   :  { %v288_v52 = vadd.f32 %v436_v50, %v287_v51  ;;  %v519_v53 = vpop.f32.mrb[1].mxu1 }
 0x2ec   :  { %v290_v54 = vpop.f32.mrb[2].mxu1 }
 0x2ed   :  { %v294_v55 = vpack.c.bf16 %v288_v52, %v288_v52  ;;  %293 = vst [vmem:[#allocation2] sm:$0x3] %v288_v52  ;;  %v520_v56 = vpop.f32.mrb[3].mxu1 }
 0x2ef   :  { %538 = vmatmul.mubr.bf16.vlgmr.msra.gmra.mrb[4].mxu0 %v294_v55 }
 0x2f0   :  { %581 = shalt.err (!%p578_p4)
}
 0x2f1   :  { %s582_s25 = scalar_lea.hbm %s798_s9, 32 }
 0x2f2   :  { %p583_p5 = scmp.ne.s32.totalorder %s798_s9, %s582_s25  ;;  %p586_p6 = scmp.lt.u32.totalorder %s582_s25, %s798_s9 }
 0x2f4   :  { %p588_p7 = pnand %p586_p6, %p583_p5 }
 0x2f6   :  { %591 = shalt.err (!%p588_p7)
}
 0x2f7   :  { %416 = dma.vmem_to_hbm [thread:$0]  %s414_s23, 32, %s798_s9, [#allocation3]   ;;  %v445_v57 = vld [vmem:[%s797_s8] ss:$0 sm:$0xff] }
 0x3c2   :  { %v400_v58 = vpop.f32.mrb[4].mxu0 }
 0x3c3   :  { %v401_v59 = vadd.f32 %v445_v57, %v400_v58  ;;  %v539_v60 = vpop.f32.mrb[5].mxu0 }
 0x3c4   :  { %v403_v61 = vpop.f32.mrb[6].mxu0 }
 0x3c5   :  { %406 = vst [vmem:[%s799_s10] sm:$0x3] %v401_v59  ;;  %v540_v62 = vpop.f32.mrb[7].mxu0 }
 0x3c6   :  { %592 = dma.done.wait [#allocation3], 32  }
 0x3c7   :  { %593 = vsyncadd [#allocation3], 4294967264 }
 0x3c8   :  { %424 = vsyncpa [#allocation3], 1 }

// kernel: _lambda_.7
= control target key start
LH: loop header
LB: loop body
LE: loop exit
PB: predicated region body
PF: predicated region fallthrough
CT: control target
= control target key end

     0   :  { %s8194_s0 = inlined_call_operand.vmem [shape: f32[2,8,128], index: 0, kind: input, shape index: {}]   ;;  %s8195_s1 = inlined_call_operand.vmem [shape: f32[2,9,128], index: 1, kind: input, shape index: {}]   ;;  %s8196_s2 = inlined_call_operand.vmem [shape: bf16[4,128,384], index: 2, kind: input, shape index: {}]   ;;  %s8197_s3 = inlined_call_operand.vmem [shape: f32[4,1,384], index: 3, kind: input, shape index: {}]   ;;  %s8198_s4 = inlined_call_operand.vmem [shape: bf16[4,128,128], index: 4, kind: input, shape index: {}]   ;;  %s8199_s5 = inlined_call_operand.vmem [shape: f32[4,1,128], index: 5, kind: input, shape index: {}]   ;;  %s8200_s6 = inlined_call_operand.vmem [shape: f32[4,1,128], index: 6, kind: input, shape index: {}, may-alias: {6,14,20}]   ;;  %s8201_s7 = inlined_call_operand.vmem [shape: f32[4,1,128], index: 7, kind: input, shape index: {}, may-alias: {7,15,21}]   ;;  %s8202_s8 = inlined_call_operand.vmem [shape: bf16[4,128,128], index: 8, kind: input, shape index: {}]   ;;  %s8203_s9 = inlined_call_operand.vmem [shape: f32[4,1,128], index: 9, kind: input, shape index: {}]   ;;  %s8204_s10 = inlined_call_operand.vmem [shape: bf16[4,128,256], index: 10, kind: input, shape index: {}]   ;;  %s8205_s11 = inlined_call_operand.vmem [shape: f32[4,1,256], index: 11, kind: input, shape index: {}]   ;;  %s8206_s12 = inlined_call_operand.vmem [shape: bf16[4,128,128], index: 12, kind: input, shape index: {}]   ;;  %s8207_s13 = inlined_call_operand.vmem [shape: f32[4,1,128], index: 13, kind: input, shape index: {}]   ;;  %s8208_s14 = inlined_call_operand.vmem [shape: f32[4,1,128], index: 14, kind: input, shape index: {}, may-alias: {6,14,20}]   ;;  %s8209_s15 = inlined_call_operand.vmem [shape: f32[4,1,128], index: 15, kind: input, shape index: {}, may-alias: {7,15,21}]   ;;  %s8210_s16 = inlined_call_operand.vmem [shape: bf16[4,128,2048], index: 16, kind: input, shape index: {}]   ;;  %s8211_s17 = inlined_call_operand.vmem [shape: f32[4,1,2048], index: 17, kind: input, shape index: {}]   ;;  %s8212_s18 = inlined_call_operand.vmem [shape: bf16[4,2048,128], index: 18, kind: input, shape index: {}]   ;;  %s8213_s19 = inlined_call_operand.vmem [shape: f32[4,1,128], index: 19, kind: input, shape index: {}]   ;;  %s8214_s20 = inlined_call_operand.vmem [shape: f32[4,1,128], index: 20, kind: input, shape index: {}, may-alias: {6,14,20}]   ;;  %s8215_s21 = inlined_call_operand.vmem [shape: f32[4,1,128], index: 21, kind: input, shape index: {}, may-alias: {7,15,21}]   ;;  %s8216_s22 = inlined_call_operand.vmem [shape: bf16[128,128], index: 22, kind: input, shape index: {}]   ;;  %s8217_s23 = inlined_call_operand.vmem [shape: f32[1,128], index: 23, kind: input, shape index: {}]   ;;  %s8218_s24 = inlined_call_operand.hbm [shape: f32[2,8,128], index: 24, kind: output, shape index: {}]  }
   0x1   :  { %8238 = sst [smem:[#allocation23_spill]] %s8194_s0 }
   0x2   :  { %8239 = sst [smem:[#allocation24_spill]] %s8195_s1 }
   0x3   :  { %8240 = sst [smem:[#allocation25_spill]] %s8196_s2 }
   0x4   :  { %8241 = sst [smem:[#allocation26_spill]] %s8197_s3 }
   0x5   :  { %8242 = sst [smem:[#allocation27_spill]] %s8198_s4 }
   0x6   :  { %8243 = sst [smem:[#allocation28_spill]] %s8199_s5 }
   0x7   :  { %8244 = sst [smem:[#allocation29_spill]] %s8200_s6 }
   0x8   :  { %8245 = sst [smem:[#allocation30_spill]] %s8201_s7 }
   0x9   :  { %8246 = sst [smem:[#allocation31_spill]] %s8202_s8 }
   0xa   :  { %8247 = sst [smem:[#allocation32_spill]] %s8204_s10 }
   0xb   :  { %8248 = sst [smem:[#allocation33_spill]] %s8205_s11 }
   0xc   :  { %8249 = sst [smem:[#allocation34_spill]] %s8206_s12 }
   0xd   :  { %8250 = sst [smem:[#allocation35_spill]] %s8207_s13 }
   0xe   :  { %8251 = sst [smem:[#allocation36_spill]] %s8208_s14 }
   0xf   :  { %8252 = sst [smem:[#allocation37_spill]] %s8209_s15 }
  0x10   :  { %8253 = sst [smem:[#allocation38_spill]] %s8210_s16 }
  0x11   :  { %8254 = sst [smem:[#allocation39_spill]] %s8211_s17 }
  0x12   :  { %8255 = sst [smem:[#allocation40_spill]] %s8212_s18 }
  0x13   :  { %8256 = sst [smem:[#allocation41_spill]] %s8213_s19 }
  0x14   :  { %8257 = sst [smem:[#allocation42_spill]] %s8214_s20 }
  0x15   :  { %8258 = sst [smem:[#allocation43_spill]] %s8215_s21 }
  0x16   :  { %8259 = sst [smem:[#allocation44_spill]] %s8216_s22 }
  0x17   :  { %8260 = sst [smem:[#allocation45_spill]] %s8217_s23 }
  0x18   :  { %8261 = sst [smem:[#allocation46_spill]] %s8218_s24 }
  0x19   :  { %29 = vsyncpa [#allocation4], 0 }
  0x1a   :  { %31 = vsyncpa [#allocation4 + $0x1], 0  ;;  %s7254_s5 = smov 0   ;;  %s7256_s26 = smov 0  }
  0x1b   :  { %s7258_s27 = smov 0   ;;  %s7260_s28 = smov 0  }
  0x1c   :  { %s7262_s6 = smov 0   ;;  %s7264_s2 = smov 0  }
  0x1d   :  { %s7266_s29 = smov 0   ;;  %s7268_s0 = smov 0  }
  0x1e LB: > { %8262 = sst [smem:[#allocation6_spill]] %s7089_s5  ;;  %s5845_s7 = sadd.s32 4294967295, %s7117_s0   ;;  %s7117_s0 = sphi %s7268_s0, %s37_s0   ;;  %s7113_s29 = sphi %s7266_s29, %s8341_s29   ;;  %s7109_s2 = sphi %s7264_s2, %s8340_s2   ;;  %s7105_s6 = sphi %s7262_s6, %s8339_s6   ;;  %s7101_s28 = sphi %s7260_s28, %s8338_s28   ;;  %s7097_s27 = sphi %s7258_s27, %s8337_s27   ;;  %s7093_s26 = sphi %s7256_s26, %s8336_s26   ;;  %s7089_s5 = sphi %s7254_s5, %s8335_s5  }
  0x1f   : > { %8263 = sst [smem:[#allocation7_spill]] %s7093_s26  ;;  %s5846_s30 = sadd.s32 4294967294, %s7117_s0  }
  0x20   : > { %8264 = sst [smem:[#allocation8_spill]] %s7097_s27  ;;  %s46_s3 = sadd.s32 1, %s7109_s2 }
  0x21   : > { %8265 = sst [smem:[#allocation9_spill]] %s7101_s28  ;;  %p47_p0 = scmp.ge.s32.totalorder %s46_s3, 4 }
  0x22   : > { %8266 = sst [smem:[#allocation10_spill]] %s7105_s6  ;;  %s49_s25 = sadd.s32 1, %s7113_s29 }
  0x23   : > { %8267 = sst [smem:[#allocation11_spill]] %s7109_s2  ;;  %p680_p1 = scmp.ne.s32.totalorder %s7097_s27, %s7093_s26 }
  0x24   : > { %8268 = sst [smem:[#allocation12_spill]] %s7113_s29  ;;  %p681_p2 = scmp.eq.s32.totalorder %s5845_s7, 7 }
  0x25   : > { %8269 = sst [smem:[#allocation13_spill]] %s7117_s0  ;;  %s8343_s3 = smov (%p47_p0, %s46_s3), 0 }
  0x26   : > { %8270 = sst [smem:[#allocation14_spill]] %s8343_s3  ;;  %s8345_s25 = smov (!%p47_p0, %s49_s25), %s7113_s29 }
  0x27   : > { %p7303_p3 = por %p681_p2, %p680_p1  ;;  %p686_p4 = scmp.ne.s32.totalorder %s7093_s26, %s7089_s5 }
  0x28   : > { %p51_p5 = scmp.ge.s32.totalorder %s8345_s25, 2  ;;  %p687_p6 = scmp.eq.s32.totalorder %s5846_s30, 7 }
  0x29   : > { %s8271_s8 = scalar_select %p7303_p3, 1, 0 }
  0x2a   : > { %p5849_p7 = scmp.ge.s32.totalorder %s7117_s0, 1  ;;  %p863_p8 = scmp.lt.s32.totalorder %s7117_s0, 9 }
  0x2b   : > { %8272 = sst [smem:[#allocation15_spill]] %s8271_s8  ;;  %s8347_s25 = smov (%p51_p5, %s8345_s25), 0 }
  0x2c   : > { %8273 = sst [smem:[#allocation16_spill]] %s8347_s25  ;;  %p7313_p9 = por %p687_p6, %p686_p4 }
  0x2d   : > { %p864_p10 = pnand %p5849_p7, %p863_p8  ;;  %s667_s1 = ssub.s32 %s7113_s29, %s8347_s25 }
  0x2e   : > { %s8274_s4 = scalar_select %p7313_p9, 1, 0 }
  0x2f   : > { %s670_s7 = sadd.s32 1, %s7097_s27  ;;  %p668_p11 = scmp.eq.s32.totalorder %s667_s1, 0 }
  0x30   : > { %8275 = sst [smem:[#allocation17_spill]] %s8274_s4  ;;  %867 = sbr.rel (%p864_p10) target bundleno = 5560 (0x15b8), region = 116 }
  0x31   : > { %s7321_s3 = scalar_select %p668_p11, %s7097_s27, %s670_s7  }
  0x33   : > { %8276 = sst [smem:[#allocation18_spill]] %s7321_s3 }
  0x37   : > { %s8224_s30 = sand.u32 1, %s7093_s26   ;;  %p1010_p12 = scmp.lt.s32.totalorder %s7105_s6, 1 }
  0x38   : > { %s7327_s2 = sshll.u32 %s8224_s30, 3  ;;  %p1019_p13 = scmp.lt.s32.totalorder %s7101_s28, 3 }
  0x39   : > { %s1011_s4 = scalar_select %p1010_p12, %s7105_s6, 1 }
  0x3a   : > { %s7332_s5 = scalar_select %p1019_p13, %s7101_s28, 3 }
  0x3b   : > { %s5851_s1 = sshll.u32 %s1011_s4, 3  ;;  %s6230_s7 = sshll.u32 %s1011_s4, 4 }
  0x3c   : > { %s8277_s3 = sld [smem:[#allocation23_spill]]  ;;  %s8279_s24 = sld [smem:[#allocation24_spill]] }
  0x3d   : > { %s6686_s26 = smul.u32 192, %s7332_s5  ;;  %s6231_s6 = sshll.u32 %s7332_s5, 6 }
  0x3e   : > { %s6687_s23 = smul.u32 3, %s7332_s5  ;;  %s8281_s21 = sld [smem:[#allocation27_spill]] }
  0x3f   : > { %s8286_s20 = sld [smem:[#allocation26_spill]]  ;;  %s8290_s10 = sld [smem:[#allocation32_spill]] }
  0x40   : > { %s5861_s17 = sshll.u32 %s7332_s5, 1  ;;  %s8291_s11 = sld [smem:[#allocation33_spill]] }
  0x41   : > { %s8292_s12 = sld [smem:[#allocation34_spill]]  ;;  %s6235_s18 = sshll.u32 %s7332_s5, 10 }
  0x42   : > { %s7337_s30 = scalar_lea.vmem %s8277_s3, %s5851_s1  ;;  %s7342_s8 = scalar_lea.vmem %s8279_s24, %s6230_s7 }
  0x43   : > { %8278 = sst [smem:[#allocation19_spill]] %s7337_s30  ;;  %s8283_s3 = sld [smem:[#allocation25_spill]] }
  0x44   : > { %8280 = sst [smem:[#allocation20_spill]] %s7342_s8  ;;  %s7350_s4 = scalar_lea.vmem %s8281_s21, %s6231_s6 }
  0x45   : > { %8282 = sst [smem:[#allocation21_spill]] %s7350_s4  ;;  %s7364_s19 = scalar_lea.vmem %s8286_s20, %s6687_s23 }
  0x46   : > { %s6233_s23 = sshll.u32 %s7332_s5, 7  ;;  %s7393_s21 = scalar_lea.vmem %s8291_s11, %s5861_s17 }
  0x47   : > { %s7387_s22 = scalar_lea.vmem %s8290_s10, %s6233_s23  ;;  %s8296_s16 = sld [smem:[#allocation38_spill]] }
  0x48   : > { %s8297_s10 = sld [smem:[#allocation39_spill]]  ;;  %s8298_s20 = sld [smem:[#allocation40_spill]] }
  0x49   : > { %s7355_s1 = scalar_lea.vmem %s8283_s3, %s6686_s26  ;;  %s7398_s26 = scalar_lea.vmem %s8292_s12, %s6231_s6 }
  0x4a   : > { %8284 = sst [smem:[#allocation22_spill]] %s7355_s1  ;;  %s8299_s30 = sld [smem:[#allocation41_spill]] }
  0x4b   : > { %s8289_s1 = sld [smem:[#allocation31_spill]]  ;;  %s8300_s17 = sld [smem:[#allocation42_spill]] }
  0x4c   : > { %s8301_s14 = sld [smem:[#allocation43_spill]] }
  0x4d   : > { %s7416_s7 = scalar_lea.vmem %s8296_s16, %s6235_s18 }
  0x4e   : > { %s7427_s8 = scalar_lea.vmem %s8298_s20, %s6235_s18 }
  0x50   : > { %s1089_s4 = scalar_lea.vmem %s8299_s30, %s7332_s5 }
  0x51   : > { %s7377_s27 = scalar_lea.vmem %s8289_s1, %s6231_s6  ;;  %s5866_s6 = sshll.u32 %s7332_s5, 4 }
  0x52   : > { %s7422_s3 = scalar_lea.vmem %s8297_s10, %s5866_s6  ;;  %s1092_s28 = scalar_lea.vmem %s8300_s17, %s7332_s5 }
  0x53   : > { %s1095_s13 = scalar_lea.vmem %s8301_s14, %s7332_s5  ;;  %s1009_s1 = scalar_lea.vmem [#allocation3], %s7327_s2 }
  0x54   : > { %s8302_s10 = sld [smem:[#allocation9_spill]] }
  0x5a   : > { %p5869_p0 = scmp.ne.s32.totalorder %s8302_s10, 0 }
  0x5b   : > { %s8303_s6 = sld [smem:[#allocation19_spill]] (!%p5869_p0) }
  0x5c   : > { %1100 = sbr.rel (%p5869_p0) target bundleno = 99 (0x63), region = 120 }
  0x61   : > { %v1101_v0 = vld [vmem:[%s8303_s6] sm:$0xff] (!%p5869_p0) }
  0x62   : > { %1102 = vst [vmem:[#allocation2] sm:$0xff] (!%p5869_p0), %v1101_v0 }
  0x63 PF: > { %s8304_s0 = sld [smem:[#allocation22_spill]]  ;;  %v7119_v3 = vmov 0   ;;  %v7120_v4 = vmov 0.0   ;;  %vm7121_vm0 = vmmov 0   ;;  %v1160_v29 = vlaneseq  ;;  %v1138_v32 = vld [vmem:[%s7364_s19] sm:$0x7] }
  0x64   : > { %1335 = vmatprep.mubr.bf16.mxu0 %v7119_v3  ;;  %6490 = vmatprep.subr.bf16.mxu1 %v7120_v4  ;;  %vm1387_vm1 = vcmask 261120   ;;  %s7122_s11 = smov 96   ;;  %s7123_s12 = smov 64   ;;  %vm1450_vm2 = vcmask 1043456   ;;  %vm1434_vm3 = vcmask 64512   ;;  %vm1840_vm4 = vcmask 523264  }
  0x65   : > { %6506 = vmatprep.mubr.msk.bf16.mxu1 %vm7121_vm0, %v7120_v4  ;;  %v7485_v30 = vshrl.u32 %v1160_v29, 7  ;;  %s7124_s14 = smov 32   ;;  %s8305_s15 = sld [smem:[#allocation21_spill]]  ;;  %vm1842_vm5 = vcmask 785408   ;;  %vm2314_vm6 = vcmask 1044480   ;;  %vm2298_vm7 = vcmask 72704  }
  0x66   : > { %s8306_s23 = sld [smem:[#allocation28_spill]]  ;;  %s8308_s29 = sld [smem:[#allocation20_spill]] }
  0x67   : > { %v7488_v31 = vsub.s32 1, %v7485_v30  ;;  %v7492_v33 = vsub.s32 0, %v7485_v30  ;;  %v7507_v45 = vsub.s32 2, %v7485_v30  ;;  %s8309_s20 = sld [smem:[#allocation29_spill]]  ;;  %s8316_s19 = sld [smem:[#allocation36_spill]] }
  0x69   : > { %v6768_v1 = vld [vmem:[%s8304_s0 + $0x4] ss:$12 sps:$4 sm:$0xff]   ;;  %v6770_v2 = vld [vmem:[%s8304_s0] ss:$12 sps:$4 sm:$0xff]   ;;  %v6771_v5 = vld [vmem:[%s8304_s0 + $0x1c] ss:$12 sps:$4 sm:$0xff]   ;;  %v1167_v34 = vrot.slane %v1138_v32, %v7488_v31  ;;  %v1163_v35 = vrot.slane %v1138_v32, %v7492_v33  ;;  %v1171_v46 = vrot.slane %v1138_v32, %v7507_v45 }
  0x6a   : > { %1303 = vmatprep.subr.bf16.mxu0 %v6768_v1  ;;  %v6773_v6 = vld [vmem:[%s8304_s0 + $0x18] ss:$12 sps:$4 sm:$0xff]   ;;  %v6774_v7 = vld [vmem:[%s8304_s0 + $0x34] ss:$12 sps:$4 sm:$0xff]   ;;  %v6776_v8 = vld [vmem:[%s8304_s0 + $0x30] ss:$12 sps:$4 sm:$0xff]  }
  0x6b   : > { %1304 = vmatpush1.bf16.msra.mxu0 %v6770_v2  ;;  %v6777_v9 = vld [vmem:[%s8304_s0 + $0x4c] ss:$12 sps:$4 sm:$0xff]   ;;  %v6779_v10 = vld [vmem:[%s8304_s0 + $0x48] ss:$12 sps:$4 sm:$0xff]   ;;  %v6780_v12 = vld [vmem:[%s8304_s0 + $0x64] ss:$12 sps:$4 sm:$0xff]  }
  0x6c   : > { %1305 = vmatprep.subr.bf16.mxu0 %v6771_v5  ;;  %v6792_v11 = vld [vmem:[%s8304_s0 + $0x8] ss:$12 sps:$4 sm:$0xff]   ;;  %v6793_v13 = vld [vmem:[%s8304_s0 + $0x20] ss:$12 sps:$4 sm:$0xff]   ;;  %v6785_v16 = vld [vmem:[%s8304_s0 + $0x78] ss:$12 sps:$4 sm:$0xff]   ;;  %s8307_s18 = scalar_lea.vmem %s8306_s23, %s7332_s5 }
  0x6d   : > { %6491 = vmatpush3.bf16.msra.mxu1 %v6792_v11  ;;  %v6782_v14 = vld [vmem:[%s8304_s0 + $0x60] ss:$12 sps:$4 sm:$0xff]   ;;  %v6783_v15 = vld [vmem:[%s8304_s0 + $0x7c] ss:$12 sps:$4 sm:$0xff]   ;;  %v6794_v17 = vld [vmem:[%s8304_s0 + $0x38] ss:$12 sps:$4 sm:$0xff]   ;;  %s8310_s25 = scalar_lea.vmem %s8309_s20, %s7332_s5  ;;  %s8317_s23 = scalar_lea.vmem %s8316_s19, %s7332_s5 }
  0x6e   : > { %6492 = vmatprep.subr.bf16.mxu1 %v7120_v4  ;;  %v6786_v18 = vld [vmem:[%s8304_s0 + $0x94] ss:$12 sps:$4 sm:$0xff]   ;;  %v6795_v19 = vld [vmem:[%s8304_s0 + $0x50] ss:$12 sps:$4 sm:$0xff]   ;;  %v6789_v21 = vld [vmem:[%s8304_s0 + $0xac] ss:$12 sps:$4 sm:$0xff]  }
  0x6f   : > { %1306 = vmatpush1.bf16.msra.mxu0 %v6773_v6  ;;  %v6788_v20 = vld [vmem:[%s8304_s0 + $0x90] ss:$12 sps:$4 sm:$0xff]   ;;  %v6796_v22 = vld [vmem:[%s8304_s0 + $0x68] ss:$12 sps:$4 sm:$0xff]   ;;  %v1103_v24 = vld [vmem:[#allocation2] sm:$0xff] }
  0x70   : > { %1307 = vmatprep.subr.bf16.mxu0 %v6774_v7  ;;  %v6791_v23 = vld [vmem:[%s8304_s0 + $0xa8] ss:$12 sps:$4 sm:$0xff]   ;;  %v6797_v25 = vld [vmem:[%s8304_s0 + $0x80] ss:$12 sps:$4 sm:$0xff]   ;;  %v1158_v26 = vpack.c.bf16 %v1103_v24, %v1103_v24  ;;  %v6798_v27 = vld [vmem:[%s8304_s0 + $0x98] ss:$12 sps:$4 sm:$0xff]  }
  0x71   : > { %6493 = vmatpush3.bf16.msra.mxu1 %v6793_v13  ;;  %v6799_v28 = vld [vmem:[%s8304_s0 + $0xb0] ss:$12 sps:$4 sm:$0xff]   ;;  %s8313_s0 = scalar_lea.vmem %s8203_s9, %s7332_s5 }
  0x72   : > { %6494 = vmatprep.subr.bf16.mxu1 %v7120_v4 }
  0x73   : > { %1308 = vmatpush1.bf16.msra.mxu0 %v6776_v8 }
  0x74   : > { %1309 = vmatprep.subr.bf16.mxu0 %v6777_v9 }
  0x75   : > { %6495 = vmatpush3.bf16.msra.mxu1 %v6794_v17 }
  0x76   : > { %6496 = vmatprep.subr.bf16.mxu1 %v7120_v4 }
  0x77   : > { %1310 = vmatpush1.bf16.msra.mxu0 %v6779_v10 }
  0x78   : > { %1311 = vmatprep.subr.bf16.mxu0 %v6780_v12 }
  0x79   : > { %6497 = vmatpush3.bf16.msra.mxu1 %v6795_v19 }
  0x7a   : > { %6498 = vmatprep.subr.bf16.mxu1 %v7120_v4 }
  0x7b   : > { %1312 = vmatpush1.bf16.msra.mxu0 %v6782_v14 }
  0x7c   : > { %1313 = vmatprep.subr.bf16.mxu0 %v6783_v15 }
  0x7d   : > { %6499 = vmatpush3.bf16.msra.mxu1 %v6796_v22 }
  0x7e   : > { %6500 = vmatprep.subr.bf16.mxu1 %v7120_v4 }
  0x7f   : > { %1314 = vmatpush1.bf16.msra.mxu0 %v6785_v16 }
  0x80   : > { %1315 = vmatprep.subr.bf16.mxu0 %v6786_v18 }
  0x81   : > { %6501 = vmatpush3.bf16.msra.mxu1 %v6797_v25 }
  0x82   : > { %6502 = vmatprep.subr.bf16.mxu1 %v7120_v4 }
  0x83   : > { %1316 = vmatpush1.bf16.msra.mxu0 %v6788_v20 }
  0x84   : > { %1317 = vmatprep.subr.bf16.mxu0 %v6789_v21 }
  0x85   : > { %6503 = vmatpush3.bf16.msra.mxu1 %v6798_v27 }
  0x86   : > { %6504 = vmatprep.subr.bf16.mxu1 %v7120_v4 }
  0x87   : > { %1318 = vmatpush1.bf16.msra.mxu0 %v6791_v23 }
  0x88   : > { %6534 = vmatprep.subr.bf16.mxu0 %v7120_v4 }
  0x89   : > { %6505 = vmatpush3.bf16.msra.mxu1 %v6799_v28 }
  0x8a   : > { %1336 = vmatmul.mubr.bf16.vlgmr.msra.gmra.mrb[0].mxu0 %v1158_v26  ;;  %6510 = vmatprep.subr.bf16.mxu1 %v7120_v4 }
  0x8b   : > { %6536 = vmatprep.mubr.msk.bf16.mxu0 %vm7121_vm0, %v7120_v4 }
  0x8c   : > { %6507 = vmatmul.mubr.bf16.vlgmr.msra.gmra.mrb[0].mxu1 %v1158_v26 }
  0x8d   : > { %6512 = vmatprep.mubr.msk.bf16.mxu1 %vm7121_vm0, %v7120_v4 }
 0x15d   : > { %v1337_v36 = vpop.f32.mrb[0].mxu0 }
 0x15e   : > { %v1339_v37 = vpop.f32.mrb[1].mxu0  ;;  %v1338_v41 = vadd.f32 %v1337_v36, %v1163_v35 }
 0x15f   : > { %v1340_v38 = vadd.f32 %v1339_v37, %v1167_v34  ;;  %v1341_v39 = vpop.f32.mrb[2].mxu0  ;;  %v1378_v47 = vpop.f32.mrb[0].mxu1 }
 0x160   : > { %v1342_v40 = vpop.f32.mrb[3].mxu0  ;;  %v1384_v44 = vpack.c.bf16 %v1338_v41, %v1338_v41  ;;  %v1379_v48 = vadd.f32 %v1378_v47, %v1171_v46  ;;  %v6508_v49 = vpop.f32.mrb[1].mxu1 }
 0x161   : > { %v1385_v42 = vpack.c.bf16 %v1340_v38, %v1340_v38  ;;  %v1381_v50 = vpop.f32.mrb[2].mxu1 }
 0x162   : > { %v7510_v51 = vpack.c.bf16 %v1379_v48, %v1379_v48  ;;  %v6509_v52 = vpop.f32.mrb[3].mxu1 }
 0x163   : > { %1498 = vrot.lane.b32.xlu1 %v1385_v42, %s7122_s11  ;;  %v1392_v43 = vsel %vm1387_vm1, %v1385_v42, 0 }
 0x164   : > { %6511 = vmatpush3.bf16.xpose.msra.mxu1 %v1392_v43  ;;  %v1452_v53 = vsel %vm1450_vm2, %v7510_v51, 0 }
 0x165   : > { %6516 = vmatprep.subr.bf16.mxu1 %v7120_v4 }
 0x167   : > { %1495 = vrot.lane.b32.xlu1 %v1384_v44, %s7122_s11 }
 0x16b   : > { %1607 = vrot.lane.b32.xlu1 %v1384_v44, %s7123_s12  ;;  %6513 = vmatmul.mubr.msk.bf16.vlgmr.msra.gmra.mrb[4].mxu1 %vm1387_vm1, %v1384_v44 }
 0x16c   : > { %6518 = vmatprep.mubr.msk.bf16.mxu1 %vm7121_vm0, %v7120_v4  ;;  %6517 = vmatpush3.bf16.msra.mxu1 %v1452_v53 }
 0x16d   : > { %6522 = vmatprep.subr.bf16.mxu1 %v7120_v4 }
 0x16f   : > { %1719 = vrot.lane.b32.xlu1 %v1385_v42, %s7124_s14 }
 0x173   : > { %1717 = vrot.lane.b32.xlu1 %v1384_v44, %s7124_s14 }
 0x1d5   : > { %v1499_v0 = vpop.permute.xlu1 %1498 }
 0x1d6   : > { %v1504_v13 = vsel %vm1387_vm1, %v1499_v0, 0 }
 0x1d9   : > { %v1496_v1 = vpop.permute.xlu1 %1495 }
 0x1dd   : > { %v1608_v5 = vpop.permute.xlu1 %1607 }
 0x1e1   : > { %v1720_v8 = vpop.permute.xlu1 %1719 }
 0x1e2   : > { %v1725_v11 = vsel %vm1387_vm1, %v1720_v8, 0 }
 0x1e5   : > { %v1718_v14 = vpop.permute.xlu1 %1717 }
 0x23e   : > { %v1428_v54 = vpop.f32.mrb[4].mxu1 }
 0x23f   : > { %v6514_v55 = vpop.f32.mrb[5].mxu1  ;;  %v1435_v56 = vsel %vm1434_vm3, %v1428_v54, -inf }
 0x240   : > { %1436 = vmax.xlane.f32.xlu0 %v1435_v56  ;;  %v1431_v57 = vpop.f32.mrb[6].mxu1 }
 0x241   : > { %v6515_v58 = vpop.f32.mrb[7].mxu1 }
 0x2cd   : > { %v1437_v59 = vpop.xlane.xlu0 %1436 }
 0x2ce   : > { %v1438_v60 = vsub.f32 %v1428_v54, %v1437_v59 }
 0x2d0   : > { %v1439_v61 = vmul.f32 1.442695, %v1438_v60 }
 0x2d2   : > { %6976 = vpow2.f32 %v1439_v61 }
 0x2dc   : > { %v6977_v62 = vpop.eup %6976 }
 0x2dd   : > { %v1441_v63 = vsel %vm1434_vm3, %v6977_v62, 0.0 }
 0x2de   : > { %1442 = vadd.xlane.f32.xlu0 %v1441_v63 }
 0x2f4   : > { %1609 = vrot.lane.b32.xlu0 %v1385_v42, %s7123_s12 }
 0x36b   : > { %v1443_v2 = vpop.xlane.xlu0 %1442 }
 0x36c   : > { %6978 = vrcp.f32 %v1443_v2 }
 0x36f   : > { %v1610_v6 = vpop.permute.xlu0 %1609 }
 0x370   : > { %v1615_v7 = vsel %vm1387_vm1, %v1610_v6, 0 }
 0x371   : > { %6535 = vmatpush3.bf16.xpose.msra.mxu0 %v1615_v7 }
 0x372   : > { %6546 = vmatprep.subr.bf16.mxu0 %v7120_v4 }
 0x376   : > { %v6979_v9 = vpop.eup %6978 }
 0x377   : > { %v1445_v10 = vmul.f32 %v6979_v9, %v6977_v62  ;;  %v6800_v9 = vld [vmem:[%s8305_s15] sm:$0xff]  }
 0x378   : > { %6537 = vmatmul.mubr.msk.bf16.vlgmr.msra.gmra.mrb[4].mxu0 %vm1387_vm1, %v1608_v5 }
 0x379   : > { %6547 = vmatpush3.bf16.xpose.msra.mxu0 %v1725_v11  ;;  %v1446_v12 = vpack.c.bf16 %v1445_v10, %v1445_v10  ;;  %6548 = vmatprep.mubr.msk.bf16.mxu0 %vm7121_vm0, %v7120_v4  ;;  %v6801_v10 = vld [vmem:[%s8305_s15 + $0x8] sm:$0xff]   ;;  %v6802_v11 = vld [vmem:[%s8305_s15 + $0x10] sm:$0xff]  }
 0x37a   : > { %6558 = vmatprep.subr.bf16.mxu0 %v7120_v4 }
 0x37b   : > { %6519 = vmatmul.mubr.msk.bf16.vlgmr.msra.gmra.mrb[8].mxu1 %vm1434_vm3, %v1446_v12  ;;  %v6803_v12 = vld [vmem:[%s8305_s15 + $0x18] sm:$0xff]  }
 0x37c   : > { %6523 = vmatpush3.bf16.xpose.msra.mxu1 %v1504_v13  ;;  %6524 = vmatprep.mubr.msk.bf16.mxu1 %vm7121_vm0, %v7120_v4  ;;  %v6804_v13 = vld [vmem:[%s8305_s15 + $0x20] sm:$0xff]  }
 0x37d   : > { %6528 = vmatprep.subr.bf16.mxu1 %v7120_v4 }
 0x380   : > { %6549 = vmatmul.mubr.msk.bf16.vlgmr.msra.gmra.mrb[8].mxu0 %vm1387_vm1, %v1718_v14  ;;  %v6805_v14 = vld [vmem:[%s8305_s15 + $0x28] sm:$0xff]  }
 0x381   : > { %6574 = vmatprep.mubr.msk.bf16.mxu0 %vm7121_vm0, %v7120_v4  ;;  %6559 = vmatpush3.bf16.msra.mxu0 %v6800_v9  ;;  %v6833_v9 = vld [vmem:[%s7387_s22 + $0x70] ss:$8 sps:$4 sm:$0xff]  }
 0x382   : > { %6560 = vmatprep.subr.bf16.mxu0 %v7120_v4 }
 0x383   : > { %6525 = vmatmul.mubr.msk.bf16.vlgmr.msra.gmra.mrb[12].mxu1 %vm1387_vm1, %v1496_v1 }
 0x384   : > { %6530 = vmatprep.mubr.msk.bf16.mxu1 %vm7121_vm0, %v7120_v4 }
 0x385   : > { %6561 = vmatpush3.bf16.msra.mxu0 %v6801_v10  ;;  %v6836_v10 = vld [vmem:[%s7377_s27 + $0x20] sm:$0xff]  }
 0x386   : > { %6562 = vmatprep.subr.bf16.mxu0 %v7120_v4 }
 0x389   : > { %6563 = vmatpush3.bf16.msra.mxu0 %v6802_v11  ;;  %v1104_v11 = vld [vmem:[%s8308_s29] sm:$0xff] }
 0x38a   : > { %6564 = vmatprep.subr.bf16.mxu0 %v7120_v4 }
 0x38d   : > { %6565 = vmatpush3.bf16.msra.mxu0 %v6803_v12  ;;  %v1105_v12 = vld [vmem:[%s8308_s29 + $0x8] sm:$0x1] }
 0x38e   : > { %6566 = vmatprep.subr.bf16.mxu0 %v7120_v4 }
 0x391   : > { %6567 = vmatpush3.bf16.msra.mxu0 %v6804_v13  ;;  %v2114_v13 = vpack.c.bf16 %v1105_v12, %v1104_v11 }
 0x392   : > { %6568 = vmatprep.subr.bf16.mxu0 %v7120_v4 }
 0x395   : > { %6569 = vmatpush3.bf16.msra.mxu0 %v6805_v14  ;;  %v6837_v14 = vld [vmem:[%s7377_s27 + $0x28] sm:$0xff]  }
 0x396   : > { %6570 = vmatprep.subr.bf16.mxu0 %v7120_v4 }
 0x44b   : > { %v1651_v15 = vpop.f32.mrb[4].mxu0 }
 0x44c   : > { %v6538_v16 = vpop.f32.mrb[5].mxu0  ;;  %v1657_v17 = vsel %vm1434_vm3, %v1651_v15, -inf }
 0x44d   : > { %1658 = vmax.xlane.f32.xlu0 %v1657_v17  ;;  %v1654_v18 = vpop.f32.mrb[6].mxu0 }
 0x44e   : > { %v7537_v19 = vpop.f32.mrb[8].mxu1  ;;  %v6539_v20 = vpop.f32.mrb[7].mxu0 }
 0x44f   : > { %v6520_v21 = vpop.f32.mrb[9].mxu1 }
 0x450   : > { %v1491_v22 = vpop.f32.mrb[10].mxu1  ;;  %v6807_v21 = vld [vmem:[%s8305_s15 + $0x38] sm:$0xff]  }
 0x451   : > { %v6521_v23 = vpop.f32.mrb[11].mxu1 }
 0x453   : > { %v1761_v24 = vpop.f32.mrb[8].mxu0 }
 0x454   : > { %v6550_v25 = vpop.f32.mrb[9].mxu0  ;;  %v1767_v36 = vsel %vm1434_vm3, %v1761_v24, -inf }
 0x455   : > { %v1764_v26 = vpop.f32.mrb[10].mxu0 }
 0x456   : > { %v1540_v27 = vpop.f32.mrb[12].mxu1  ;;  %v6551_v28 = vpop.f32.mrb[11].mxu0 }
 0x457   : > { %v6526_v29 = vpop.f32.mrb[13].mxu1  ;;  %v1546_v32 = vsel %vm1434_vm3, %v1540_v27, -inf }
 0x458   : > { %1547 = vmax.xlane.f32.xlu1 %v1546_v32  ;;  %v1543_v34 = vpop.f32.mrb[14].mxu1 }
 0x459   : > { %v6527_v35 = vpop.f32.mrb[15].mxu1 }
 0x45c   : > { %1768 = vmax.xlane.f32.xlu1 %v1767_v36 }
 0x4da   : > { %v1659_v37 = vpop.xlane.xlu0 %1658 }
 0x4db   : > { %v1660_v38 = vsub.f32 %v1651_v15, %v1659_v37  ;;  %v6806_v15 = vld [vmem:[%s8305_s15 + $0x30] sm:$0xff]  }
 0x4dc   : > { %6571 = vmatpush3.bf16.msra.mxu0 %v6806_v15  ;;  %v6838_v15 = vld [vmem:[%s7377_s27 + $0x30] sm:$0xff]  }
 0x4dd   : > { %v1661_v39 = vmul.f32 1.442695, %v1660_v38  ;;  %6572 = vmatprep.subr.bf16.mxu0 %v7120_v4 }
 0x4df   : > { %6980 = vpow2.f32 %v1661_v39 }
 0x4e0   : > { %6573 = vmatpush3.bf16.msra.mxu0 %v6807_v21 }
 0x4e5   : > { %v1548_v40 = vpop.xlane.xlu1 %1547 }
 0x4e6   : > { %v1549_v41 = vsub.f32 %v1540_v27, %v1548_v40  ;;  %v5902_v40 = vld [vmem:[%s8307_s18] ss:$0 sm:$0xff] }
 0x4e8   : > { %v1550_v47 = vmul.f32 1.442695, %v1549_v41 }
 0x4e9   : > { %v6981_v42 = vpop.eup %6980  ;;  %v1769_v43 = vpop.xlane.xlu1 %1768 }
 0x4ea   : > { %v1770_v44 = vsub.f32 %v1761_v24, %v1769_v43  ;;  %v1663_v46 = vsel %vm1434_vm3, %v6981_v42, 0.0 }
 0x4eb   : > { %1664 = vadd.xlane.f32.xlu0 %v1663_v46  ;;  %v7014_v46 = vld [vmem:[#allocation2] sm:$0xff] }
 0x4ec   : > { %v1771_v48 = vmul.f32 1.442695, %v1770_v44 }
 0x4ee   : > { %6982 = vpow2.f32 %v1771_v48  ;;  %v6808_v48 = vld [vmem:[%s7387_s22] ss:$8 sps:$4 sm:$0xff]  }
 0x4ef   : > { %6984 = vpow2.f32 %v1550_v47 }
 0x4f8   : > { %v6983_v49 = vpop.eup %6982 }
 0x4f9   : > { %v1773_v50 = vsel %vm1434_vm3, %v6983_v49, 0.0  ;;  %v6985_v52 = vpop.eup %6984 }
 0x4fa   : > { %1774 = vadd.xlane.f32.xlu1 %v1773_v50  ;;  %v1552_v53 = vsel %vm1434_vm3, %v6985_v52, 0.0  ;;  %v6813_v50 = vld [vmem:[%s7387_s22 + $0x14] ss:$8 sps:$4 sm:$0xff]  }
 0x4fe   : > { %1553 = vadd.xlane.f32.xlu1 %v1552_v53  ;;  %v6811_v53 = vld [vmem:[%s7387_s22 + $0x10] ss:$8 sps:$4 sm:$0xff]  }
 0x501   : > { %1559 = vrot.lane.b32.xlu0 %v7510_v51, %s7122_s11 }
 0x50f   : > { %1669 = vrot.lane.b32.xlu1 %v7510_v51, %s7123_s12 }
 0x513   : > { %1779 = vrot.lane.b32.xlu1 %v7510_v51, %s7124_s14 }
 0x578   : > { %v1665_v54 = vpop.xlane.xlu0 %1664 }
 0x57c   : > { %v1560_v55 = vpop.permute.xlu0 %1559 }
 0x57d   : > { %v1565_v56 = vsel %vm1450_vm2, %v1560_v55, 0  ;;  %v6824_v55 = vld [vmem:[%s7377_s27 + $0x8] sm:$0xff]  }
 0x57e   : > { %6529 = vmatpush3.bf16.msra.mxu1 %v1565_v56  ;;  %v6814_v56 = vld [vmem:[%s7387_s22 + $0x20] ss:$8 sps:$4 sm:$0xff]  }
 0x57f   : > { %6540 = vmatprep.subr.bf16.mxu1 %v7120_v4 }
 0x587   : > { %v1775_v57 = vpop.xlane.xlu1 %1774 }
 0x58b   : > { %v1554_v58 = vpop.xlane.xlu1 %1553 }
 0x58c   : > { %6986 = vrcp.f32 %v1554_v58  ;;  %v6817_v58 = vld [vmem:[%s7387_s22 + $0x30] ss:$8 sps:$4 sm:$0xff]  }
 0x58d   : > { %6988 = vrcp.f32 %v1665_v54  ;;  %v6816_v54 = vld [vmem:[%s7387_s22 + $0x24] ss:$8 sps:$4 sm:$0xff]  }
 0x58e   : > { %6990 = vrcp.f32 %v1775_v57  ;;  %v6819_v57 = vld [vmem:[%s7387_s22 + $0x34] ss:$8 sps:$4 sm:$0xff]  }
 0x58f   : > { %v1670_v61 = vpop.permute.xlu1 %1669 }
 0x590   : > { %v1675_v0 = vsel %vm1450_vm2, %v1670_v61, 0  ;;  %v6827_v61 = vld [vmem:[%s7387_s22 + $0x54] ss:$8 sps:$4 sm:$0xff]  }
 0x593   : > { %v1780_v1 = vpop.permute.xlu1 %1779 }
 0x594   : > { %v1785_v6 = vsel %vm1450_vm2, %v1780_v1, 0 }
 0x596   : > { %v6987_v59 = vpop.eup %6986 }
 0x597   : > { %v1556_v60 = vmul.f32 %v6987_v59, %v6985_v52  ;;  %v6989_v63 = vpop.eup %6988  ;;  %v6820_v52 = vld [vmem:[%s7377_s27] sm:$0xff]  }
 0x598   : > { %v1667_v51 = vmul.f32 %v6989_v63, %v6981_v42  ;;  %v6991_v5 = vpop.eup %6990  ;;  %v6823_v59 = vld [vmem:[%s7387_s22 + $0x44] ss:$8 sps:$4 sm:$0xff]  }
 0x599   : > { %v1557_v62 = vpack.c.bf16 %v1556_v60, %v1556_v60  ;;  %v1777_v7 = vmul.f32 %v6991_v5, %v6983_v49  ;;  %v6810_v49 = vld [vmem:[%s7387_s22 + $0x4] ss:$8 sps:$4 sm:$0xff]   ;;  %v6821_v60 = vld [vmem:[%s7387_s22 + $0x40] ss:$8 sps:$4 sm:$0xff]  }
 0x59a   : > { %v1668_v2 = vpack.c.bf16 %v1667_v51, %v1667_v51  ;;  %2206 = vmatprep.subr.bf16.mxu0 %v6810_v49  ;;  %v6831_v5 = vld [vmem:[%s7387_s22 + $0x64] ss:$8 sps:$4 sm:$0xff]  }
 0x59b   : > { %6531 = vmatmul.mubr.msk.bf16.vlgmr.msra.gmra.mrb[16].mxu1 %vm1434_vm3, %v1557_v62  ;;  %v1778_v8 = vpack.c.bf16 %v1777_v7, %v1777_v7  ;;  %v6825_v62 = vld [vmem:[%s7387_s22 + $0x50] ss:$8 sps:$4 sm:$0xff]  }
 0x59c   : > { %6541 = vmatpush3.bf16.msra.mxu1 %v1675_v0  ;;  %6542 = vmatprep.mubr.msk.bf16.mxu1 %vm7121_vm0, %v7120_v4  ;;  %v6832_v7 = vld [vmem:[%s7377_s27 + $0x18] sm:$0xff]  }
 0x59d   : > { %6552 = vmatprep.subr.bf16.mxu1 %v7120_v4 }
 0x5a3   : > { %6543 = vmatmul.mubr.msk.bf16.vlgmr.msra.gmra.mrb[20].mxu1 %vm1434_vm3, %v1668_v2  ;;  %v6828_v2 = vld [vmem:[%s7377_s27 + $0x10] sm:$0xff]  }
 0x5a4   : > { %6553 = vmatpush3.bf16.msra.mxu1 %v1785_v6  ;;  %6554 = vmatprep.mubr.msk.bf16.mxu1 %vm7121_vm0, %v7120_v4  ;;  %v6829_v6 = vld [vmem:[%s7387_s22 + $0x60] ss:$8 sps:$4 sm:$0xff]  }
 0x5a5   : > { %6578 = vmatprep.subr.bf16.mxu1 %v7120_v4 }
 0x5ab   : > { %6555 = vmatmul.mubr.msk.bf16.vlgmr.msra.gmra.mrb[24].mxu1 %vm1434_vm3, %v1778_v8  ;;  %v6835_v8 = vld [vmem:[%s7387_s22 + $0x74] ss:$8 sps:$4 sm:$0xff]   ;;  %s8318_s22 = sld [smem:[#allocation37_spill]] }
 0x5ac   : > { %6594 = vmatprep.mubr.msk.bf16.mxu1 %vm7121_vm0, %v7120_v4  ;;  %6579 = vmatpush3.bf16.msra.mxu1 %v6820_v52 }
 0x5ad   : > { %6580 = vmatprep.subr.bf16.mxu1 %v7120_v4 }
 0x5b0   : > { %6581 = vmatpush3.bf16.msra.mxu1 %v6824_v55 }
 0x5b1   : > { %6582 = vmatprep.subr.bf16.mxu1 %v7120_v4  ;;  %s8319_s24 = scalar_lea.vmem %s8318_s22, %s7332_s5 }
 0x5b4   : > { %6583 = vmatpush3.bf16.msra.mxu1 %v6828_v2 }
 0x5b5   : > { %6584 = vmatprep.subr.bf16.mxu1 %v7120_v4 }
 0x5b8   : > { %6585 = vmatpush3.bf16.msra.mxu1 %v6832_v7 }
 0x5b9   : > { %6586 = vmatprep.subr.bf16.mxu1 %v7120_v4 }
 0x5bc   : > { %6587 = vmatpush3.bf16.msra.mxu1 %v6836_v10 }
 0x5bd   : > { %6588 = vmatprep.subr.bf16.mxu1 %v7120_v4 }
 0x5c0   : > { %6589 = vmatpush3.bf16.msra.mxu1 %v6837_v14 }
 0x5c1   : > { %6590 = vmatprep.subr.bf16.mxu1 %v7120_v4 }
 0x5c4   : > { %6591 = vmatpush3.bf16.msra.mxu1 %v6838_v15 }
 0x5c5   : > { %6592 = vmatprep.subr.bf16.mxu1 %v7120_v4 }
 0x66e   : > { %v1601_v16 = vpop.f32.mrb[16].mxu1 }
 0x66f   : > { %1828 = vrot.lane.b32.xlu0 %v1601_v16, %s7124_s14  ;;  %v6532_v17 = vpop.f32.mrb[17].mxu1  ;;  %v6839_v16 = vld [vmem:[%s7377_s27 + $0x38] sm:$0xff]   ;;  %s8311_s27 = sld [smem:[#allocation30_spill]] }
 0x670   : > { %v1604_v18 = vpop.f32.mrb[18].mxu1  ;;  %6593 = vmatpush3.bf16.msra.mxu1 %v6839_v16 }
 0x671   : > { %v6533_v20 = vpop.f32.mrb[19].mxu1  ;;  %6598 = vmatprep.subr.bf16.mxu1 %v7120_v4 }
 0x675   : > { %s8312_s10 = scalar_lea.vmem %s8311_s27, %s7332_s5 }
 0x676   : > { %v1711_v22 = vpop.f32.mrb[20].mxu1 }
 0x677   : > { %1832 = vrot.lane.b32.xlu1 %v1711_v22, %s7123_s12  ;;  %v6544_v23 = vpop.f32.mrb[21].mxu1  ;;  %v5911_v22 = vld [vmem:[%s8310_s25] ss:$0 sm:$0xff] }
 0x678   : > { %v1714_v24 = vpop.f32.mrb[22].mxu1 }
 0x679   : > { %v6545_v25 = vpop.f32.mrb[23].mxu1  ;;  %v5912_v24 = vld [vmem:[%s8312_s10] ss:$0 sm:$0xff]  ;;  %s8323_s10 = sld [smem:[#allocation9_spill]] }
 0x67e   : > { %v1821_v26 = vpop.f32.mrb[24].mxu1 }
 0x67f   : > { %1836 = vrot.lane.b32.xlu0 %v1821_v26, %s7122_s11  ;;  %v6556_v27 = vpop.f32.mrb[25].mxu1  ;;  %p6216_p1 = scmp.ne.s32.totalorder %s8323_s10, 3 }
 0x680   : > { %v1824_v28 = vpop.f32.mrb[26].mxu1  ;;  %vm7127_vm8 = vmmov (!%p6216_p1), 0  }
 0x681   : > { %v6557_v29 = vpop.f32.mrb[27].mxu1  ;;  %v1999_v28 = vld [vmem:[%s7393_s21] sm:$0x3] }
 0x682   : > { %v2119_v29 = vrot.slane %v1999_v28, %v7492_v33 }
 0x6e1   : > { %v1829_v32 = vpop.permute.xlu0 %1828 }
 0x6e2   : > { %v1839_v35 = vsel %vm1387_vm1, %v7537_v19, %v1829_v32  ;;  %v2123_v32 = vrot.slane %v1999_v28, %v7488_v31 }
 0x6e9   : > { %v1833_v34 = vpop.permute.xlu1 %1832 }
 0x6ea   : > { %v1841_v36 = vsel %vm1840_vm4, %v1839_v35, %v1833_v34 }
 0x6f1   : > { %v1837_v37 = vpop.permute.xlu0 %1836 }
 0x6f2   : > { %v1843_v38 = vsel %vm1842_vm5, %v1841_v36, %v1837_v37 }
 0x6f3   : > { %v1844_v39 = vpack.c.bf16 %v1843_v38, %v1843_v38 }
 0x6f5   : > { %6575 = vmatmul.mubr.bf16.vlgmr.msra.gmra.mrb[12].mxu0 %v1844_v39 }
 0x6f6   : > { %2238 = vmatprep.mubr.bf16.mxu0 %v7119_v3  ;;  %2207 = vmatpush1.bf16.msra.mxu0 %v6808_v48 }
 0x6f7   : > { %2208 = vmatprep.subr.bf16.mxu0 %v6813_v50 }
 0x6fa   : > { %2209 = vmatpush1.bf16.msra.mxu0 %v6811_v53 }
 0x6fb   : > { %2210 = vmatprep.subr.bf16.mxu0 %v6816_v54 }
 0x6fe   : > { %2211 = vmatpush1.bf16.msra.mxu0 %v6814_v56 }
 0x6ff   : > { %2212 = vmatprep.subr.bf16.mxu0 %v6819_v57 }
 0x702   : > { %2213 = vmatpush1.bf16.msra.mxu0 %v6817_v58 }
 0x703   : > { %2214 = vmatprep.subr.bf16.mxu0 %v6823_v59 }
 0x706   : > { %2215 = vmatpush1.bf16.msra.mxu0 %v6821_v60 }
 0x707   : > { %2216 = vmatprep.subr.bf16.mxu0 %v6827_v61 }
 0x70a   : > { %2217 = vmatpush1.bf16.msra.mxu0 %v6825_v62 }
 0x70b   : > { %2218 = vmatprep.subr.bf16.mxu0 %v6831_v5 }
 0x70e   : > { %2219 = vmatpush1.bf16.msra.mxu0 %v6829_v6 }
 0x70f   : > { %2220 = vmatprep.subr.bf16.mxu0 %v6835_v8 }
 0x712   : > { %2221 = vmatpush1.bf16.msra.mxu0 %v6833_v9 }
 0x713   : > { %6622 = vmatprep.subr.bf16.mxu0 %v7120_v4 }
 0x715   : > { %2239 = vmatmul.mubr.bf16.vlgmr.msra.gmra.mrb[16].mxu0 %v2114_v13 }
 0x716   : > { %6624 = vmatprep.mubr.msk.bf16.mxu0 %vm7121_vm0, %v7120_v4 }
 0x7c8   : > { %v1933_v19 = vpop.f32.mrb[12].mxu0 }
 0x7c9   : > { %v1934_v41 = vadd.f32 %v5902_v40, %v1933_v19  ;;  %v6576_v42 = vpop.f32.mrb[13].mxu0 }
 0x7ca   : > { %v1936_v43 = vpop.f32.mrb[14].mxu0 }
 0x7cb   : > { %v6577_v44 = vpop.f32.mrb[15].mxu0  ;;  %v1939_v47 = vadd.f32 %v7014_v46, %v1934_v41  ;;  %v7125_v46 = vmov 65535  }
 0x7cc   : > { %v5913_v44 = vld [vmem:[%s8313_s0] ss:$0 sm:$0xff]  ;;  %s8324_s0 = sld [smem:[#allocation44_spill]] (!%p6216_p1) }
 0x7cd   : > { %1940 = vadd.xlane.f32.xlu1 %v1939_v47 }
 0x7e8   : > { %v2240_v34 = vpop.f32.mrb[16].mxu0 }
 0x7e9   : > { %v2241_v35 = vadd.f32 %v2240_v34, %v2119_v29  ;;  %v2242_v36 = vpop.f32.mrb[17].mxu0 }
 0x7ea   : > { %v2243_v37 = vadd.f32 %v2242_v36, %v2123_v32  ;;  %v2244_v38 = vpop.f32.mrb[18].mxu0 }
 0x7eb   : > { %v2245_v39 = vadd.f32 %v2244_v38, %v2119_v29  ;;  %v2246_v40 = vpop.f32.mrb[19].mxu0 }
 0x7ec   : > { %v2247_v19 = vadd.f32 %v2246_v40, %v2123_v32 }
 0x7ed   : > { %v2250_v41 = vpack.c.bf16 %v2245_v39, %v2241_v35 }
 0x7ee   : > { %v7649_v42 = vpack.c.bf16 %v2247_v19, %v2243_v37 }
 0x7ef   : > { %v2256_v43 = vsel %vm1387_vm1, %v2250_v41, 0 }
 0x85a   : > { %v1941_v63 = vpop.xlane.xlu1 %1940 }
 0x85b   : > { %v1943_v0 = vmul.f32 0.0078125, %v1941_v63 }
 0x85d   : > { %v1944_v51 = vsub.f32 %v1939_v47, %v1943_v0  ;;  %v2315_v47 = vsel %vm1450_vm2, 4294967295, %v7125_v46 }
 0x85e   : > { %v7659_v52 = vsel %vm2314_vm6, %v2315_v47, 0 }
 0x85f   : > { %v1945_v1 = vmul.f32 %v1944_v51, %v1944_v51  ;;  %v2318_v56 = vand.u32 %v7659_v52, %v7649_v42 }
 0x861   : > { %1946 = vadd.xlane.f32.xlu0 %v1945_v1 }
 0x8ee   : > { %v1947_v17 = vpop.xlane.xlu0 %1946 }
 0x8ef   : > { %v1948_v18 = vmul.f32 0.0078125, %v1947_v17 }
 0x8f1   : > { %v1949_v20 = vadd.f32 1e-05, %v1948_v18 }
 0x8f3   : > { %6992 = vrsqrt.f32 %v1949_v20 }
 0x8fd   : > { %v6993_v21 = vpop.eup %6992 }
 0x8fe   : > { %v1951_v23 = vmul.f32 %v6993_v21, %v1944_v51 }
 0x900   : > { %v1958_v25 = vmul.f32 %v5911_v22, %v1951_v23 }
 0x902   : > { %v7640_v26 = vadd.f32 %v5912_v24, %v1958_v25 }
 0x904   : > { %v2019_v27 = vpack.c.bf16 %v7640_v26, %v7640_v26 }
 0x906   : > { %6595 = vmatmul.mubr.bf16.vlgmr.msra.gmra.mrb[28].mxu1 %v2019_v27 }
 0x907   : > { %6600 = vmatprep.mubr.msk.bf16.mxu1 %vm7121_vm0, %v7120_v4  ;;  %6599 = vmatpush3.bf16.xpose.msra.mxu1 %v2256_v43 }
 0x908   : > { %6604 = vmatprep.subr.bf16.mxu1 %v7120_v4 }
 0x9d9   : > { %v2108_v48 = vpop.f32.mrb[28].mxu1 }
 0x9da   : > { %v2109_v49 = vadd.f32 %v5913_v44, %v2108_v48  ;;  %v6596_v50 = vpop.f32.mrb[29].mxu1 }
 0x9db   : > { %v2111_v53 = vpop.f32.mrb[30].mxu1 }
 0x9dc   : > { %v2249_v54 = vpack.c.bf16 %v2109_v49, %v2109_v49  ;;  %v6597_v55 = vpop.f32.mrb[31].mxu1 }
 0x9de   : > { %6601 = vmatmul.mubr.msk.bf16.vlgmr.msra.gmra.mrb[32].mxu1 %vm1387_vm1, %v2249_v54 }
 0x9df   : > { %6605 = vmatpush3.bf16.msra.mxu1 %v2318_v56  ;;  %6606 = vmatprep.mubr.msk.bf16.mxu1 %vm7121_vm0, %v7120_v4 }
 0x9e0   : > { %6610 = vmatprep.subr.bf16.mxu1 %v7120_v4 }
 0xab1   : > { %v2292_v57 = vpop.f32.mrb[32].mxu1 }
 0xab2   : > { %v6602_v58 = vpop.f32.mrb[33].mxu1  ;;  %v2299_v59 = vsel %vm2298_vm7, %v2292_v57, -inf }
 0xab3   : > { %2300 = vmax.xlane.f32.xlu0 %v2299_v59  ;;  %v2295_v60 = vpop.f32.mrb[34].mxu1 }
 0xab4   : > { %v6603_v61 = vpop.f32.mrb[35].mxu1 }
 0xac9   : > { %2364 = vrot.lane.b32.xlu0 %v2250_v41, %s7122_s11 }
 0xacd   : > { %2473 = vrot.lane.b32.xlu0 %v2249_v54, %s7123_s12 }
 0xad1   : > { %2583 = vrot.lane.b32.xlu0 %v2249_v54, %s7124_s14 }
 0xb40   : > { %v2301_v62 = vpop.xlane.xlu0 %2300 }
 0xb41   : > { %v2302_v63 = vsub.f32 %v2292_v57, %v2301_v62 }
 0xb43   : > { %v2303_v0 = vmul.f32 1.442695, %v2302_v63 }
 0xb44   : > { %v2365_v8 = vpop.permute.xlu0 %2364 }
 0xb45   : > { %6994 = vpow2.f32 %v2303_v0  ;;  %v2370_v13 = vsel %vm1387_vm1, %v2365_v8, 0 }
 0xb48   : > { %v2474_v14 = vpop.permute.xlu0 %2473 }
 0xb4c   : > { %v2584_v16 = vpop.permute.xlu0 %2583 }
 0xb4f   : > { %v6995_v51 = vpop.eup %6994 }
 0xb50   : > { %v2305_v1 = vsel %vm2298_vm7, %v6995_v51, 0.0 }
 0xb51   : > { %2306 = vadd.xlane.f32.xlu1 %v2305_v1 }
 0xb62   : > { %2361 = vrot.lane.b32.xlu1 %v2249_v54, %s7122_s11 }
 0xb66   : > { %2475 = vrot.lane.b32.xlu1 %v2250_v41, %s7123_s12 }
 0xb6a   : > { %2585 = vrot.lane.b32.xlu1 %v2250_v41, %s7124_s14 }
 0xbde   : > { %v2307_v2 = vpop.xlane.xlu1 %2306 }
 0xbdf   : > { %6996 = vrcp.f32 %v2307_v2 }
 0xbe2   : > { %v2362_v5 = vpop.permute.xlu1 %2361 }
 0xbe6   : > { %v2476_v6 = vpop.permute.xlu1 %2475 }
 0xbe7   : > { %v2481_v7 = vsel %vm1387_vm1, %v2476_v6, 0 }
 0xbe8   : > { %6623 = vmatpush3.bf16.xpose.msra.mxu0 %v2481_v7 }
 0xbe9   : > { %v6997_v9 = vpop.eup %6996  ;;  %6634 = vmatprep.subr.bf16.mxu0 %v7120_v4 }
 0xbea   : > { %v2309_v10 = vmul.f32 %v6997_v9, %v6995_v51  ;;  %v2586_v11 = vpop.permute.xlu1 %2585 }
 0xbeb   : > { %v2591_v15 = vsel %vm1387_vm1, %v2586_v11, 0 }
 0xbec   : > { %v2310_v12 = vpack.c.bf16 %v2309_v10, %v2309_v10 }
 0xbee   : > { %6607 = vmatmul.mubr.msk.bf16.vlgmr.msra.gmra.mrb[36].mxu1 %vm2298_vm7, %v2310_v12 }
 0xbef   : > { %6611 = vmatpush3.bf16.xpose.msra.mxu1 %v2370_v13  ;;  %6625 = vmatmul.mubr.msk.bf16.vlgmr.msra.gmra.mrb[20].mxu0 %vm1387_vm1, %v2474_v14  ;;  %v6840_v13 = vld [vmem:[%s7398_s26] sm:$0xff]   ;;  %v6841_v14 = vld [vmem:[%s7398_s26 + $0x8] sm:$0xff]  }
 0xbf0   : > { %6635 = vmatpush3.bf16.xpose.msra.mxu0 %v2591_v15  ;;  %6612 = vmatprep.mubr.msk.bf16.mxu1 %vm7121_vm0, %v7120_v4  ;;  %v6843_v15 = vld [vmem:[%s7398_s26 + $0x18] sm:$0xff]  }
 0xbf1   : > { %6636 = vmatprep.mubr.msk.bf16.mxu0 %vm7121_vm0, %v7120_v4  ;;  %6616 = vmatprep.subr.bf16.mxu1 %v7120_v4 }
 0xbf2   : > { %6646 = vmatprep.subr.bf16.mxu0 %v7120_v4 }
 0xbf6   : > { %6613 = vmatmul.mubr.msk.bf16.vlgmr.msra.gmra.mrb[40].mxu1 %vm1387_vm1, %v2362_v5 }
 0xbf7   : > { %6637 = vmatmul.mubr.msk.bf16.vlgmr.msra.gmra.mrb[24].mxu0 %vm1387_vm1, %v2584_v16  ;;  %6618 = vmatprep.mubr.msk.bf16.mxu1 %vm7121_vm0, %v7120_v4  ;;  %v6844_v16 = vld [vmem:[%s7398_s26 + $0x20] sm:$0xff]  }
 0xbf8   : > { %6662 = vmatprep.mubr.msk.bf16.mxu0 %vm7121_vm0, %v7120_v4  ;;  %6647 = vmatpush3.bf16.msra.mxu0 %v6840_v13 }
 0xbf9   : > { %6648 = vmatprep.subr.bf16.mxu0 %v7120_v4 }
 0xbfc   : > { %6649 = vmatpush3.bf16.msra.mxu0 %v6841_v14 }
 0xbfd   : > { %6650 = vmatprep.subr.bf16.mxu0 %v7120_v4 }
 0xcc1   : > { %v7693_v17 = vpop.f32.mrb[36].mxu1 }
 0xcc2   : > { %v6608_v18 = vpop.f32.mrb[37].mxu1  ;;  %v2517_v20 = vpop.f32.mrb[20].mxu0 }
 0xcc3   : > { %v2357_v21 = vpop.f32.mrb[38].mxu1  ;;  %v6626_v22 = vpop.f32.mrb[21].mxu0  ;;  %v2523_v23 = vsel %vm2298_vm7, %v2517_v20, -inf  ;;  %v6845_v18 = vld [vmem:[%s7398_s26 + $0x28] sm:$0xff]  }
 0xcc4   : > { %2524 = vmax.xlane.f32.xlu0 %v2523_v23  ;;  %v6609_v24 = vpop.f32.mrb[39].mxu1  ;;  %v2520_v25 = vpop.f32.mrb[22].mxu0 }
 0xcc5   : > { %v6627_v27 = vpop.f32.mrb[23].mxu0  ;;  %v6847_v25 = vld [vmem:[%s7398_s26 + $0x38] sm:$0xff]  }
 0xcc9   : > { %v2406_v28 = vpop.f32.mrb[40].mxu1 }
 0xcca   : > { %v6614_v29 = vpop.f32.mrb[41].mxu1  ;;  %v2627_v32 = vpop.f32.mrb[24].mxu0  ;;  %v2412_v34 = vsel %vm2298_vm7, %v2406_v28, -inf }
 0xccb   : > { %v6638_v35 = vpop.f32.mrb[25].mxu0  ;;  %2413 = vmax.xlane.f32.xlu1 %v2412_v34  ;;  %v2409_v36 = vpop.f32.mrb[42].mxu1  ;;  %v2633_v37 = vsel %vm2298_vm7, %v2627_v32, -inf }
 0xccc   : > { %2634 = vmax.xlane.f32.xlu0 %v2633_v37  ;;  %v6615_v38 = vpop.f32.mrb[43].mxu1  ;;  %v2630_v39 = vpop.f32.mrb[26].mxu0 }
 0xccd   : > { %v6639_v40 = vpop.f32.mrb[27].mxu0 }
 0xd51   : > { %v2525_v19 = vpop.xlane.xlu0 %2524 }
 0xd52   : > { %v2526_v41 = vsub.f32 %v2517_v20, %v2525_v19  ;;  %v6846_v20 = vld [vmem:[%s7398_s26 + $0x30] sm:$0xff]  }
 0xd54   : > { %v2527_v43 = vmul.f32 1.442695, %v2526_v41 }
 0xd56   : > { %6998 = vpow2.f32 %v2527_v43 }
 0xd58   : > { %v2414_v44 = vpop.xlane.xlu1 %2413 }
 0xd59   : > { %v2415_v46 = vsub.f32 %v2406_v28, %v2414_v44  ;;  %v2635_v47 = vpop.xlane.xlu0 %2634 }
 0xd5a   : > { %v2636_v48 = vsub.f32 %v2627_v32, %v2635_v47 }
 0xd5b   : > { %v2416_v49 = vmul.f32 1.442695, %v2415_v46 }
 0xd5c   : > { %v2637_v50 = vmul.f32 1.442695, %v2636_v48 }
 0xd5e   : > { %7000 = vpow2.f32 %v2637_v50 }
 0xd5f   : > { %7002 = vpow2.f32 %v2416_v49 }
 0xd60   : > { %v6999_v53 = vpop.eup %6998 }
 0xd61   : > { %v2529_v54 = vsel %vm2298_vm7, %v6999_v53, 0.0 }
 0xd62   : > { %2530 = vadd.xlane.f32.xlu0 %v2529_v54  ;;  %v2837_v54 = vld [vmem:[%s7416_s7 + $0x40] sm:$0xff] }
 0xd68   : > { %v7001_v55 = vpop.eup %7000 }
 0xd69   : > { %v2639_v56 = vsel %vm2298_vm7, %v7001_v55, 0.0  ;;  %v7003_v57 = vpop.eup %7002 }
 0xd6a   : > { %2640 = vadd.xlane.f32.xlu1 %v2639_v56  ;;  %v2418_v58 = vsel %vm2298_vm7, %v7003_v57, 0.0 }
 0xd6e   : > { %2419 = vadd.xlane.f32.xlu1 %v2418_v58  ;;  %v2838_v58 = vld [vmem:[%s7416_s7 + $0x48] sm:$0xff] }
 0xd78   : > { %2425 = vrot.lane.b32.xlu0 %v7649_v42, %s7122_s11 }
 0xd7f   : > { %2535 = vrot.lane.b32.xlu1 %v7649_v42, %s7123_s12 }
 0xd83   : > { %2645 = vrot.lane.b32.xlu1 %v7649_v42, %s7124_s14 }
 0xdef   : > { %v2531_v59 = vpop.xlane.xlu0 %2530 }
 0xdf3   : > { %v2426_v60 = vpop.permute.xlu0 %2425 }
 0xdf4   : > { %v2431_v61 = vand.u32 %v2426_v60, %v7659_v52  ;;  %v2853_v60 = vld [vmem:[%s7416_s7 + $0xc0] sm:$0xff] }
 0xdf6   : > { %6617 = vmatpush3.bf16.msra.mxu1 %v2431_v61 }
 0xdf7   : > { %v2641_v62 = vpop.xlane.xlu1 %2640  ;;  %6628 = vmatprep.subr.bf16.mxu1 %v7120_v4 }
 0xdfb   : > { %v2420_v63 = vpop.xlane.xlu1 %2419 }
 0xdfc   : > { %7004 = vrcp.f32 %v2420_v63 }
 0xdfd   : > { %7006 = vrcp.f32 %v2531_v59  ;;  %v2845_v59 = vld [vmem:[%s7416_s7 + $0x80] sm:$0xff] }
 0xdfe   : > { %7008 = vrcp.f32 %v2641_v62  ;;  %v5974_v63 = vcombine.high %v2845_v59, %v2853_v60 }
 0xdff   : > { %v2536_v1 = vpop.permute.xlu1 %2535 }
 0xe00   : > { %v2541_v6 = vand.u32 %v2536_v1, %v7659_v52  ;;  %v2861_v1 = vld [vmem:[%s7416_s7 + $0x100] sm:$0xff] }
 0xe03   : > { %v2646_v7 = vpop.permute.xlu1 %2645 }
 0xe04   : > { %v2651_v10 = vand.u32 %v2646_v7, %v7659_v52  ;;  %v6842_v52 = vld [vmem:[%s7398_s26 + $0x10] sm:$0xff]  }
 0xe05   : > { %6651 = vmatpush3.bf16.msra.mxu0 %v6842_v52 }
 0xe06   : > { %v7005_v0 = vpop.eup %7004  ;;  %6652 = vmatprep.subr.bf16.mxu0 %v7120_v4 }
 0xe07   : > { %v2422_v51 = vmul.f32 %v7005_v0, %v7003_v57  ;;  %v7007_v5 = vpop.eup %7006  ;;  %v2846_v0 = vld [vmem:[%s7416_s7 + $0x88] sm:$0xff] }
 0xe08   : > { %v2533_v42 = vmul.f32 %v7007_v5, %v6999_v53  ;;  %v7009_v9 = vpop.eup %7008  ;;  %v2829_v53 = vld [vmem:[%s7416_s7] sm:$0xff]  ;;  %v2862_v5 = vld [vmem:[%s7416_s7 + $0x108] sm:$0xff] }
 0xe09   : > { %v2423_v2 = vpack.c.bf16 %v2422_v51, %v2422_v51  ;;  %v2643_v11 = vmul.f32 %v7009_v9, %v7001_v55  ;;  %6653 = vmatpush3.bf16.msra.mxu0 %v6843_v15  ;;  %v2830_v55 = vld [vmem:[%s7416_s7 + $0x8] sm:$0xff]  ;;  %v5957_v56 = vcombine.low %v2829_v53, %v2837_v54  ;;  %v5958_v57 = vcombine.high %v2829_v53, %v2837_v54  ;;  %v2877_v15 = vld [vmem:[%s7416_s7 + $0x180] sm:$0xff] }
 0xe0a   : > { %v2534_v8 = vpack.c.bf16 %v2533_v42, %v2533_v42  ;;  %6654 = vmatprep.subr.bf16.mxu0 %v7120_v4  ;;  %v5959_v61 = vcombine.low %v2830_v55, %v2838_v58  ;;  %v5960_v62 = vcombine.high %v2830_v55, %v2838_v58  ;;  %v2854_v51 = vld [vmem:[%s7416_s7 + $0xc8] sm:$0xff]  ;;  %v5973_v42 = vcombine.low %v2845_v59, %v2853_v60  ;;  %v2941_v54 = vld [vmem:[%s7416_s7 + $0x380] sm:$0xff] }
 0xe0b   : > { %6619 = vmatmul.mubr.msk.bf16.vlgmr.msra.gmra.mrb[44].mxu1 %vm2298_vm7, %v2423_v2  ;;  %v2644_v12 = vpack.c.bf16 %v2643_v11, %v2643_v11  ;;  %v2869_v2 = vld [vmem:[%s7416_s7 + $0x140] sm:$0xff]  ;;  %v5975_v7 = vcombine.low %v2846_v0, %v2854_v51  ;;  %v2950_v58 = vld [vmem:[%s7416_s7 + $0x3c8] sm:$0xff] }
 0xe0c   : > { %6629 = vmatpush3.bf16.msra.mxu1 %v2541_v6  ;;  %6630 = vmatprep.mubr.msk.bf16.mxu1 %vm7121_vm0, %v7120_v4  ;;  %v2870_v6 = vld [vmem:[%s7416_s7 + $0x148] sm:$0xff]  ;;  %v2949_v55 = vld [vmem:[%s7416_s7 + $0x3c0] sm:$0xff] }
 0xe0d   : > { %6640 = vmatprep.subr.bf16.mxu1 %v7120_v4  ;;  %6655 = vmatpush3.bf16.msra.mxu0 %v6844_v16  ;;  %v5992_v9 = vcombine.high %v2862_v5, %v2870_v6  ;;  %v5991_v11 = vcombine.low %v2862_v5, %v2870_v6  ;;  %v2885_v16 = vld [vmem:[%s7416_s7 + $0x1c0] sm:$0xff]  ;;  %v6069_v59 = vcombine.low %v2941_v54, %v2949_v55 }
 0xe0e   : > { %6656 = vmatprep.subr.bf16.mxu0 %v7120_v4 }
 0xe11   : > { %6657 = vmatpush3.bf16.msra.mxu0 %v6845_v18  ;;  %v2878_v18 = vld [vmem:[%s7416_s7 + $0x188] sm:$0xff] }
 0xe12   : > { %6658 = vmatprep.subr.bf16.mxu0 %v7120_v4 }
 0xe13   : > { %6631 = vmatmul.mubr.msk.bf16.vlgmr.msra.gmra.mrb[48].mxu1 %vm2298_vm7, %v2534_v8  ;;  %v5990_v8 = vcombine.high %v2861_v1, %v2869_v2 }
 0xe14   : > { %6641 = vmatpush3.bf16.msra.mxu1 %v2651_v10  ;;  %6642 = vmatprep.mubr.msk.bf16.mxu1 %vm7121_vm0, %v7120_v4  ;;  %v5989_v10 = vcombine.low %v2861_v1, %v2869_v2 }
 0xe15   : > { %6659 = vmatpush3.bf16.msra.mxu0 %v6846_v20  ;;  %3941 = vmatprep.subr.bf16.mxu1 %v5958_v57  ;;  %v6006_v20 = vcombine.high %v2877_v15, %v2885_v16  ;;  %v6070_v57 = vcombine.high %v2941_v54, %v2949_v55  ;;  %v2920_v54 = vld [vmem:[%s7416_s7 + $0x2d8] sm:$0xff] }
 0xe16   : > { %6660 = vmatprep.subr.bf16.mxu0 %v7120_v4 }
 0xe19   : > { %6661 = vmatpush3.bf16.msra.mxu0 %v6847_v25  ;;  %v2893_v25 = vld [vmem:[%s7416_s7 + $0x200] sm:$0xff] }
 0xe1a   : > { %3982 = vmatprep.subr.bf16.mxu0 %v5960_v62  ;;  %v2831_v62 = vld [vmem:[%s7416_s7 + $0x10] sm:$0xff] }
 0xe1b   : > { %6643 = vmatmul.mubr.msk.bf16.vlgmr.msra.gmra.mrb[52].mxu1 %vm2298_vm7, %v2644_v12 }
 0xe1c   : > { %3973 = vmatprep.mubr.bf16.mxu1 %v7119_v3  ;;  %3942 = vmatpush1.bf16.msra.mxu1 %v5957_v56  ;;  %v2942_v56 = vld [vmem:[%s7416_s7 + $0x388] sm:$0xff] }
 0xe1d   : > { %3943 = vmatprep.subr.bf16.mxu1 %v5974_v63  ;;  %v6071_v60 = vcombine.low %v2942_v56, %v2950_v58  ;;  %v2839_v63 = vld [vmem:[%s7416_s7 + $0x50] sm:$0xff] }
 0xe1e   : > { %v5962_v1 = vcombine.high %v2831_v62, %v2839_v63 }
 0xe20   : > { %3944 = vmatpush1.bf16.msra.mxu1 %v5973_v42 }
 0xe21   : > { %3945 = vmatprep.subr.bf16.mxu1 %v5990_v8 }
 0xe24   : > { %3946 = vmatpush1.bf16.msra.mxu1 %v5989_v10 }
 0xe25   : > { %3947 = vmatprep.subr.bf16.mxu1 %v6006_v20 }
 0xede   : > { %v2467_v21 = vpop.f32.mrb[44].mxu1 }
 0xedf   : > { %2694 = vrot.lane.b32.xlu0 %v2467_v21, %s7124_s14  ;;  %v6620_v22 = vpop.f32.mrb[45].mxu1  ;;  %v2886_v21 = vld [vmem:[%s7416_s7 + $0x1c8] sm:$0xff] }
 0xee0   : > { %v2470_v23 = vpop.f32.mrb[46].mxu1  ;;  %v6005_v22 = vcombine.low %v2877_v15, %v2885_v16  ;;  %v2848_v15 = vld [vmem:[%s7416_s7 + $0x98] sm:$0xff] }
 0xee1   : > { %v6621_v24 = vpop.f32.mrb[47].mxu1  ;;  %v6007_v23 = vcombine.low %v2878_v18, %v2886_v21  ;;  %v2856_v16 = vld [vmem:[%s7416_s7 + $0xd8] sm:$0xff] }
 0xee2   : > { %v6008_v24 = vcombine.high %v2878_v18, %v2886_v21  ;;  %3948 = vmatpush1.bf16.msra.mxu1 %v6005_v22  ;;  %v5980_v22 = vcombine.high %v2848_v15, %v2856_v16 }
 0xee6   : > { %v2577_v27 = vpop.f32.mrb[48].mxu1 }
 0xee7   : > { %2698 = vrot.lane.b32.xlu1 %v2577_v27, %s7123_s12  ;;  %v6632_v28 = vpop.f32.mrb[49].mxu1  ;;  %s8314_s12 = sld [smem:[#allocation35_spill]]  ;;  %v2901_v27 = vld [vmem:[%s7416_s7 + $0x240] sm:$0xff] }
 0xee8   : > { %v2580_v29 = vpop.f32.mrb[50].mxu1  ;;  %v2894_v28 = vld [vmem:[%s7416_s7 + $0x208] sm:$0xff] }
 0xee9   : > { %v6633_v32 = vpop.f32.mrb[51].mxu1  ;;  %v6022_v29 = vcombine.high %v2893_v25, %v2901_v27 }
 0xeea   : > { %v2902_v32 = vld [vmem:[%s7416_s7 + $0x248] sm:$0xff] }
 0xeeb   : > { %3949 = vmatprep.subr.bf16.mxu1 %v6022_v29 }
 0xeed   : > { %s8315_s14 = scalar_lea.vmem %s8314_s12, %s7332_s5 }
 0xeee   : > { %v2687_v34 = vpop.f32.mrb[52].mxu1  ;;  %v5946_v44 = vld [vmem:[%s8315_s14] ss:$0 sm:$0xff] }
 0xeef   : > { %2702 = vrot.lane.b32.xlu0 %v2687_v34, %s7122_s11  ;;  %v6644_v35 = vpop.f32.mrb[53].mxu1  ;;  %v6021_v34 = vcombine.low %v2893_v25, %v2901_v27  ;;  %v2872_v25 = vld [vmem:[%s7416_s7 + $0x158] sm:$0xff]  ;;  %s8325_s11 = smov (!%p6216_p1), %s8324_s0 }
 0xef0   : > { %v2690_v36 = vpop.f32.mrb[54].mxu1  ;;  %v6023_v35 = vcombine.low %v2894_v28, %v2902_v32 }
 0xef1   : > { %v6645_v37 = vpop.f32.mrb[55].mxu1  ;;  %v6024_v36 = vcombine.high %v2894_v28, %v2902_v32  ;;  %3950 = vmatpush1.bf16.msra.mxu1 %v6021_v34  ;;  %v5979_v28 = vcombine.low %v2848_v15, %v2856_v16  ;;  %v2879_v34 = vld [vmem:[%s7416_s7 + $0x190] sm:$0xff] }
 0xef2   : > { %v2909_v37 = vld [vmem:[%s7416_s7 + $0x280] sm:$0xff] }
 0xf51   : > { %v2695_v38 = vpop.permute.xlu0 %2694 }
 0xf52   : > { %v2705_v4 = vsel %vm1387_vm1, %v7693_v17, %v2695_v38  ;;  %v2917_v38 = vld [vmem:[%s7416_s7 + $0x2c0] sm:$0xff] }
 0xf59   : > { %v2699_v39 = vpop.permute.xlu1 %2698 }
 0xf5a   : > { %v2706_v40 = vsel %vm1840_vm4, %v2705_v4, %v2699_v39  ;;  %v2910_v39 = vld [vmem:[%s7416_s7 + $0x288] sm:$0xff]  ;;  %v6038_v4 = vcombine.high %v2909_v37, %v2917_v38 }
 0xf5c   : > { %3951 = vmatprep.subr.bf16.mxu1 %v6038_v4 }
 0xf61   : > { %v2703_v19 = vpop.permute.xlu0 %2702 }
 0xf62   : > { %v2707_v41 = vsel %vm1842_vm5, %v2706_v40, %v2703_v19  ;;  %v2918_v40 = vld [vmem:[%s7416_s7 + $0x2c8] sm:$0xff]  ;;  %v6037_v19 = vcombine.low %v2909_v37, %v2917_v38  ;;  %v2888_v37 = vld [vmem:[%s7416_s7 + $0x1d8] sm:$0xff] }
 0xf63   : > { %v2708_v43 = vpack.c.bf16 %v2707_v41, %v2707_v41  ;;  %v6039_v41 = vcombine.low %v2910_v39, %v2918_v40 }
 0xf64   : > { %3952 = vmatpush1.bf16.msra.mxu1 %v6037_v19  ;;  %v2895_v19 = vld [vmem:[%s7416_s7 + $0x210] sm:$0xff] }
 0xf65   : > { %6663 = vmatmul.mubr.bf16.vlgmr.msra.gmra.mrb[28].mxu0 %v2708_v43  ;;  %v6040_v43 = vcombine.high %v2910_v39, %v2918_v40 }
 0xf66   : > { %4014 = vmatprep.mubr.bf16.mxu0 %v7119_v3  ;;  %3983 = vmatpush1.bf16.msra.mxu0 %v5959_v61  ;;  %v6072_v61 = vcombine.high %v2942_v56, %v2950_v58 }
0x1038   : > { %v2797_v17 = vpop.f32.mrb[28].mxu0 }
0x1039   : > { %v2798_v46 = vadd.f32 %v5946_v44, %v2797_v17  ;;  %v6664_v47 = vpop.f32.mrb[29].mxu0  ;;  %v2925_v44 = vld [vmem:[%s7416_s7 + $0x300] sm:$0xff] }
0x103a   : > { %v2800_v48 = vpop.f32.mrb[30].mxu0  ;;  %v2933_v17 = vld [vmem:[%s7416_s7 + $0x340] sm:$0xff] }
0x103b   : > { %v6665_v49 = vpop.f32.mrb[31].mxu0  ;;  %v2803_v50 = vadd.f32 %v2798_v46, %v7640_v26  ;;  %v5976_v26 = vcombine.high %v2846_v0, %v2854_v51  ;;  %v2926_v46 = vld [vmem:[%s7416_s7 + $0x308] sm:$0xff]  ;;  %v6054_v47 = vcombine.high %v2925_v44, %v2933_v17  ;;  %v2832_v0 = vld [vmem:[%s7416_s7 + $0x18] sm:$0xff]  ;;  %v5961_v51 = vcombine.low %v2831_v62, %v2839_v63 }
0x103c   : > { %v2934_v48 = vld [vmem:[%s7416_s7 + $0x348] sm:$0xff]  ;;  %v6053_v49 = vcombine.low %v2925_v44, %v2933_v17  ;;  %v2904_v44 = vld [vmem:[%s7416_s7 + $0x258] sm:$0xff] }
0x103d   : > { %2804 = vadd.xlane.f32.xlu1 %v2803_v50  ;;  %3984 = vmatprep.subr.bf16.mxu0 %v5976_v26  ;;  %v6056_v53 = vcombine.high %v2926_v46, %v2934_v48  ;;  %v2840_v26 = vld [vmem:[%s7416_s7 + $0x58] sm:$0xff] }
0x103e   : > { %3985 = vmatpush1.bf16.msra.mxu0 %v5975_v7  ;;  %3953 = vmatprep.subr.bf16.mxu1 %v6054_v47  ;;  %v5963_v2 = vcombine.low %v2832_v0, %v2840_v26  ;;  %v5964_v5 = vcombine.high %v2832_v0, %v2840_v26  ;;  %v2936_v62 = vld [vmem:[%s7416_s7 + $0x358] sm:$0xff]  ;;  %v2943_v26 = vld [vmem:[%s7416_s7 + $0x390] sm:$0xff] }
0x103f   : > { %3986 = vmatprep.subr.bf16.mxu0 %v5992_v9  ;;  %3954 = vmatpush1.bf16.msra.mxu1 %v6053_v49  ;;  %v5955_v9 = vld [vmem:[%s8317_s23] ss:$0 sm:$0xff]  ;;  %v2911_v49 = vld [vmem:[%s7416_s7 + $0x290] sm:$0xff] }
0x1040   : > { %3955 = vmatprep.subr.bf16.mxu1 %v6070_v57 }
0x1042   : > { %3987 = vmatpush1.bf16.msra.mxu0 %v5991_v11  ;;  %v5956_v11 = vld [vmem:[%s8319_s24] ss:$0 sm:$0xff] }
0x1043   : > { %3988 = vmatprep.subr.bf16.mxu0 %v6008_v24  ;;  %3956 = vmatpush1.bf16.msra.mxu1 %v6069_v59  ;;  %v2864_v24 = vld [vmem:[%s7416_s7 + $0x118] sm:$0xff]  ;;  %v2927_v59 = vld [vmem:[%s7416_s7 + $0x310] sm:$0xff] }
0x1044   : > { %4023 = vmatprep.subr.bf16.mxu1 %v5962_v1  ;;  %v5996_v32 = vcombine.high %v2864_v24, %v2872_v25  ;;  %v5995_v39 = vcombine.low %v2864_v24, %v2872_v25  ;;  %v2858_v24 = vld [vmem:[%s7416_s7 + $0xe8] sm:$0xff] }
0x1046   : > { %3989 = vmatpush1.bf16.msra.mxu0 %v6007_v23  ;;  %v2871_v23 = vld [vmem:[%s7416_s7 + $0x150] sm:$0xff] }
0x1047   : > { %3990 = vmatprep.subr.bf16.mxu0 %v6024_v36  ;;  %v2880_v36 = vld [vmem:[%s7416_s7 + $0x198] sm:$0xff] }
0x1048   : > { %v6012_v40 = vcombine.high %v2880_v36, %v2888_v37 }
0x104a   : > { %3991 = vmatpush1.bf16.msra.mxu0 %v6023_v35  ;;  %v2887_v35 = vld [vmem:[%s7416_s7 + $0x1d0] sm:$0xff] }
0x104b   : > { %3992 = vmatprep.subr.bf16.mxu0 %v6040_v43  ;;  %v6010_v4 = vcombine.high %v2879_v34, %v2887_v35  ;;  %v2896_v43 = vld [vmem:[%s7416_s7 + $0x218] sm:$0xff]  ;;  %v6009_v17 = vcombine.low %v2879_v34, %v2887_v35  ;;  %v2873_v34 = vld [vmem:[%s7416_s7 + $0x160] sm:$0xff]  ;;  %v2866_v35 = vld [vmem:[%s7416_s7 + $0x128] sm:$0xff] }
0x104c   : > { %v6027_v56 = vcombine.low %v2896_v43, %v2904_v44 }
0x104e   : > { %3993 = vmatpush1.bf16.msra.mxu0 %v6039_v41  ;;  %v2903_v41 = vld [vmem:[%s7416_s7 + $0x250] sm:$0xff] }
0x104f   : > { %3994 = vmatprep.subr.bf16.mxu0 %v6056_v53  ;;  %v6026_v47 = vcombine.high %v2895_v19, %v2903_v41  ;;  %v2912_v53 = vld [vmem:[%s7416_s7 + $0x298] sm:$0xff]  ;;  %v6025_v55 = vcombine.low %v2895_v19, %v2903_v41  ;;  %v2889_v19 = vld [vmem:[%s7416_s7 + $0x1e0] sm:$0xff]  ;;  %v2882_v41 = vld [vmem:[%s7416_s7 + $0x1a8] sm:$0xff] }
0x1050   : > { %v6044_v58 = vcombine.high %v2912_v53, %v2920_v54  ;;  %v6043_v0 = vcombine.low %v2912_v53, %v2920_v54  ;;  %v2906_v53 = vld [vmem:[%s7416_s7 + $0x268] sm:$0xff] }
0x10ca   : > { %v2805_v12 = vpop.xlane.xlu1 %2804 }
0x10cb   : > { %v2806_v13 = vmul.f32 0.0078125, %v2805_v12 }
0x10cd   : > { %v7761_v14 = vsub.f32 %v2803_v50, %v2806_v13  ;;  %v6055_v50 = vcombine.low %v2926_v46, %v2934_v48  ;;  %v2847_v13 = vld [vmem:[%s7416_s7 + $0x90] sm:$0xff]  ;;  %v6011_v46 = vcombine.low %v2880_v36, %v2888_v37  ;;  %v6028_v48 = vcombine.high %v2896_v43, %v2904_v44  ;;  %v2874_v36 = vld [vmem:[%s7416_s7 + $0x168] sm:$0xff] }
0x10ce   : > { %v2890_v43 = vld [vmem:[%s7416_s7 + $0x1e8] sm:$0xff] }
0x10cf   : > { %v2808_v52 = vmul.f32 %v7761_v14, %v7761_v14  ;;  %3995 = vmatpush1.bf16.msra.mxu0 %v6055_v50  ;;  %v2919_v50 = vld [vmem:[%s7416_s7 + $0x2d0] sm:$0xff] }
0x10d0   : > { %3996 = vmatprep.subr.bf16.mxu0 %v6072_v61  ;;  %v6042_v57 = vcombine.high %v2911_v49, %v2919_v50  ;;  %v2928_v61 = vld [vmem:[%s7416_s7 + $0x318] sm:$0xff]  ;;  %v6041_v63 = vcombine.low %v2911_v49, %v2919_v50  ;;  %v2905_v49 = vld [vmem:[%s7416_s7 + $0x260] sm:$0xff]  ;;  %v2898_v50 = vld [vmem:[%s7416_s7 + $0x228] sm:$0xff] }
0x10d1   : > { %2809 = vadd.xlane.f32.xlu0 %v2808_v52  ;;  %v2855_v52 = vld [vmem:[%s7416_s7 + $0xd0] sm:$0xff]  ;;  %v6060_v1 = vcombine.high %v2928_v61, %v2936_v62 }
0x10d2   : > { %v5978_v21 = vcombine.high %v2847_v13, %v2855_v52  ;;  %v5977_v27 = vcombine.low %v2847_v13, %v2855_v52  ;;  %v2842_v13 = vld [vmem:[%s7416_s7 + $0x68] sm:$0xff] }
0x10d3   : > { %3997 = vmatpush1.bf16.msra.mxu0 %v6071_v60  ;;  %v2935_v60 = vld [vmem:[%s7416_s7 + $0x350] sm:$0xff] }
0x10d4   : > { %4064 = vmatprep.subr.bf16.mxu0 %v5964_v5  ;;  %v2944_v5 = vld [vmem:[%s7416_s7 + $0x398] sm:$0xff] }
0x115e   : > { %v2810_v6 = vpop.xlane.xlu0 %2809 }
0x115f   : > { %v2811_v42 = vmul.f32 0.0078125, %v2810_v6  ;;  %v2952_v6 = vld [vmem:[%s7416_s7 + $0x3d8] sm:$0xff] }
0x1160   : > { %v6075_v15 = vcombine.low %v2944_v5, %v2952_v6 }
0x1161   : > { %v2812_v7 = vadd.f32 1e-05, %v2811_v42  ;;  %v6057_v42 = vcombine.low %v2927_v59, %v2935_v60 }
0x1163   : > { %7010 = vrsqrt.f32 %v2812_v7  ;;  %v6059_v7 = vcombine.low %v2928_v61, %v2936_v62  ;;  %v2922_v61 = vld [vmem:[%s7416_s7 + $0x2e8] sm:$0xff] }
0x116d   : > { %v7011_v8 = vpop.eup %7010 }
0x116e   : > { %v2814_v10 = vmul.f32 %v7011_v8, %v7761_v14  ;;  %v2863_v14 = vld [vmem:[%s7416_s7 + $0x110] sm:$0xff] }
0x116f   : > { %v5994_v29 = vcombine.high %v2863_v14, %v2871_v23  ;;  %v5993_v38 = vcombine.low %v2863_v14, %v2871_v23  ;;  %v2857_v14 = vld [vmem:[%s7416_s7 + $0xe0] sm:$0xff]  ;;  %v2850_v23 = vld [vmem:[%s7416_s7 + $0xa8] sm:$0xff] }
0x1170   : > { %v2821_v12 = vmul.f32 %v5955_v9, %v2814_v10  ;;  %v6076_v9 = vcombine.high %v2944_v5, %v2952_v6  ;;  %v2833_v10 = vld [vmem:[%s7416_s7 + $0x20] sm:$0xff]  ;;  %v2938_v5 = vld [vmem:[%s7416_s7 + $0x368] sm:$0xff] }
0x1172   : > { %v7804_v18 = vadd.f32 %v5956_v11, %v2821_v12  ;;  %v2841_v11 = vld [vmem:[%s7416_s7 + $0x60] sm:$0xff]  ;;  %v2834_v12 = vld [vmem:[%s7416_s7 + $0x28] sm:$0xff] }
0x1173   : > { %v5966_v16 = vcombine.high %v2833_v10, %v2841_v11  ;;  %v5965_v25 = vcombine.low %v2833_v10, %v2841_v11  ;;  %v2953_v10 = vld [vmem:[%s7416_s7 + $0x3e0] sm:$0xff]  ;;  %v2946_v11 = vld [vmem:[%s7416_s7 + $0x3a8] sm:$0xff] }
0x1174   : > { %v7808_v20 = vpack.c.bf16 %v7804_v18, %v7804_v18 }
0x1176   : > { %3974 = vmatmul.mubr.bf16.vlgmr.msra.gmra.mrb[56].mxu1 %v7808_v20  ;;  %4015 = vmatmul.mubr.bf16.vlgmr.msra.gmra.mrb[32].mxu0 %v7808_v20 }
0x1177   : > { %4024 = vmatpush1.bf16.msra.mxu1 %v5961_v51  ;;  %4065 = vmatpush1.bf16.msra.mxu0 %v5963_v2  ;;  %v6058_v51 = vcombine.high %v2927_v59, %v2935_v60  ;;  %v2951_v2 = vld [vmem:[%s7416_s7 + $0x3d0] sm:$0xff]  ;;  %v2921_v59 = vld [vmem:[%s7416_s7 + $0x2e0] sm:$0xff]  ;;  %v2914_v60 = vld [vmem:[%s7416_s7 + $0x2a8] sm:$0xff] }
0x1178   : > { %4025 = vmatprep.subr.bf16.mxu1 %v5978_v21  ;;  %4066 = vmatprep.subr.bf16.mxu0 %v5980_v22  ;;  %v6074_v8 = vcombine.high %v2943_v26, %v2951_v2  ;;  %v6073_v52 = vcombine.low %v2943_v26, %v2951_v2  ;;  %v5968_v21 = vcombine.high %v2834_v12, %v2842_v13  ;;  %v2849_v22 = vld [vmem:[%s7416_s7 + $0xa0] sm:$0xff]  ;;  %v2930_v2 = vld [vmem:[%s7416_s7 + $0x328] sm:$0xff] }
0x1179   : > { %4055 = vmatprep.mubr.bf16.mxu1 %v7119_v3  ;;  %4096 = vmatprep.mubr.bf16.mxu0 %v7119_v3  ;;  %v5981_v37 = vcombine.low %v2849_v22, %v2857_v14  ;;  %v2937_v26 = vld [vmem:[%s7416_s7 + $0x360] sm:$0xff] }
0x117b   : > { %4026 = vmatpush1.bf16.msra.mxu1 %v5977_v27  ;;  %4067 = vmatpush1.bf16.msra.mxu0 %v5979_v28  ;;  %v5967_v27 = vcombine.low %v2834_v12, %v2842_v13  ;;  %v5982_v28 = vcombine.high %v2849_v22, %v2857_v14  ;;  %v2954_v12 = vld [vmem:[%s7416_s7 + $0x3e8] sm:$0xff]  ;;  %v2843_v22 = vld [vmem:[%s7416_s7 + $0x70] sm:$0xff]  ;;  %v2836_v14 = vld [vmem:[%s7416_s7 + $0x38] sm:$0xff] }
0x117c   : > { %4027 = vmatprep.subr.bf16.mxu1 %v5994_v29  ;;  %4068 = vmatprep.subr.bf16.mxu0 %v5996_v32  ;;  %v5984_v29 = vcombine.high %v2850_v23, %v2858_v24  ;;  %v2865_v32 = vld [vmem:[%s7416_s7 + $0x120] sm:$0xff] }
0x117d   : > { %v5997_v44 = vcombine.low %v2865_v32, %v2873_v34 }
0x117f   : > { %4028 = vmatpush1.bf16.msra.mxu1 %v5993_v38  ;;  %4069 = vmatpush1.bf16.msra.mxu0 %v5995_v39  ;;  %v5983_v38 = vcombine.low %v2850_v23, %v2858_v24  ;;  %v5998_v39 = vcombine.high %v2865_v32, %v2873_v34  ;;  %v2844_v23 = vld [vmem:[%s7416_s7 + $0x78] sm:$0xff]  ;;  %v2859_v32 = vld [vmem:[%s7416_s7 + $0xf0] sm:$0xff] }
0x1180   : > { %4029 = vmatprep.subr.bf16.mxu1 %v6010_v4  ;;  %4070 = vmatprep.subr.bf16.mxu0 %v6012_v40  ;;  %v6000_v4 = vcombine.high %v2866_v35, %v2874_v36  ;;  %v2881_v40 = vld [vmem:[%s7416_s7 + $0x1a0] sm:$0xff]  ;;  %v2852_v34 = vld [vmem:[%s7416_s7 + $0xb8] sm:$0xff] }
0x1181   : > { %v6013_v54 = vcombine.low %v2881_v40, %v2889_v19 }
0x1183   : > { %4030 = vmatpush1.bf16.msra.mxu1 %v6009_v17  ;;  %4071 = vmatpush1.bf16.msra.mxu0 %v6011_v46  ;;  %v5999_v17 = vcombine.low %v2866_v35, %v2874_v36  ;;  %v6014_v46 = vcombine.high %v2881_v40, %v2889_v19  ;;  %v2860_v35 = vld [vmem:[%s7416_s7 + $0xf8] sm:$0xff]  ;;  %v2875_v40 = vld [vmem:[%s7416_s7 + $0x170] sm:$0xff] }
0x1184   : > { %4031 = vmatprep.subr.bf16.mxu1 %v6026_v47  ;;  %4072 = vmatprep.subr.bf16.mxu0 %v6028_v48  ;;  %v6016_v47 = vcombine.high %v2882_v41, %v2890_v43  ;;  %v2897_v48 = vld [vmem:[%s7416_s7 + $0x220] sm:$0xff]  ;;  %v2868_v19 = vld [vmem:[%s7416_s7 + $0x138] sm:$0xff] }
0x1185   : > { %v6029_v62 = vcombine.low %v2897_v48, %v2905_v49 }
0x1187   : > { %4032 = vmatpush1.bf16.msra.mxu1 %v6025_v55  ;;  %4073 = vmatpush1.bf16.msra.mxu0 %v6027_v56  ;;  %v6015_v55 = vcombine.low %v2882_v41, %v2890_v43  ;;  %v6030_v56 = vcombine.high %v2897_v48, %v2905_v49  ;;  %v2876_v41 = vld [vmem:[%s7416_s7 + $0x178] sm:$0xff]  ;;  %v2891_v48 = vld [vmem:[%s7416_s7 + $0x1f0] sm:$0xff] }
0x1188   : > { %4033 = vmatprep.subr.bf16.mxu1 %v6042_v57  ;;  %4074 = vmatprep.subr.bf16.mxu0 %v6044_v58  ;;  %v6032_v57 = vcombine.high %v2898_v50, %v2906_v53  ;;  %v2913_v58 = vld [vmem:[%s7416_s7 + $0x2a0] sm:$0xff]  ;;  %v2884_v49 = vld [vmem:[%s7416_s7 + $0x1b8] sm:$0xff] }
0x1189   : > { %v6045_v6 = vcombine.low %v2913_v58, %v2921_v59 }
0x118b   : > { %4034 = vmatpush1.bf16.msra.mxu1 %v6041_v63  ;;  %4075 = vmatpush1.bf16.msra.mxu0 %v6043_v0  ;;  %v6031_v63 = vcombine.low %v2898_v50, %v2906_v53  ;;  %v6046_v0 = vcombine.high %v2913_v58, %v2921_v59  ;;  %v2892_v50 = vld [vmem:[%s7416_s7 + $0x1f8] sm:$0xff]  ;;  %v2907_v58 = vld [vmem:[%s7416_s7 + $0x270] sm:$0xff] }
0x118c   : > { %4035 = vmatprep.subr.bf16.mxu1 %v6058_v51  ;;  %4076 = vmatprep.subr.bf16.mxu0 %v6060_v1  ;;  %v6048_v51 = vcombine.high %v2914_v60, %v2922_v61  ;;  %v2929_v1 = vld [vmem:[%s7416_s7 + $0x320] sm:$0xff]  ;;  %v2900_v59 = vld [vmem:[%s7416_s7 + $0x238] sm:$0xff] }
0x118d   : > { %v6061_v13 = vcombine.low %v2929_v1, %v2937_v26 }
0x118f   : > { %4036 = vmatpush1.bf16.msra.mxu1 %v6057_v42  ;;  %4077 = vmatpush1.bf16.msra.mxu0 %v6059_v7  ;;  %v6047_v42 = vcombine.low %v2914_v60, %v2922_v61  ;;  %v6062_v7 = vcombine.high %v2929_v1, %v2937_v26  ;;  %v2908_v60 = vld [vmem:[%s7416_s7 + $0x278] sm:$0xff] }
0x1190   : > { %4037 = vmatprep.subr.bf16.mxu1 %v6074_v8  ;;  %4078 = vmatprep.subr.bf16.mxu0 %v6076_v9  ;;  %v6064_v8 = vcombine.high %v2930_v2, %v2938_v5  ;;  %v2945_v9 = vld [vmem:[%s7416_s7 + $0x3a0] sm:$0xff]  ;;  %v2916_v1 = vld [vmem:[%s7416_s7 + $0x2b8] sm:$0xff] }
0x1191   : > { %v6077_v24 = vcombine.low %v2945_v9, %v2953_v10  ;;  %v2924_v26 = vld [vmem:[%s7416_s7 + $0x2f8] sm:$0xff] }
0x1193   : > { %4038 = vmatpush1.bf16.msra.mxu1 %v6073_v52  ;;  %4079 = vmatpush1.bf16.msra.mxu0 %v6075_v15  ;;  %v6063_v52 = vcombine.low %v2930_v2, %v2938_v5  ;;  %v6078_v15 = vcombine.high %v2945_v9, %v2953_v10  ;;  %v6035_v5 = vcombine.low %v2900_v59, %v2908_v60  ;;  %v2932_v9 = vld [vmem:[%s7416_s7 + $0x338] sm:$0xff] }
0x1194   : > { %4105 = vmatprep.subr.bf16.mxu1 %v5966_v16  ;;  %4146 = vmatprep.subr.bf16.mxu0 %v5968_v21  ;;  %v6080_v16 = vcombine.high %v2946_v11, %v2954_v12  ;;  %v2835_v21 = vld [vmem:[%s7416_s7 + $0x30] sm:$0xff]  ;;  %v2940_v10 = vld [vmem:[%s7416_s7 + $0x378] sm:$0xff] }
0x1195   : > { %v5969_v36 = vcombine.low %v2835_v21, %v2843_v22 }
0x1196   : > { %4056 = vmatmul.mubr.bf16.vlgmr.msra.gmra.mrb[60].mxu1 %v7808_v20  ;;  %4097 = vmatmul.mubr.bf16.vlgmr.msra.gmra.mrb[36].mxu0 %v7808_v20 }
0x1197   : > { %4106 = vmatpush1.bf16.msra.mxu1 %v5965_v25  ;;  %4147 = vmatpush1.bf16.msra.mxu0 %v5967_v27  ;;  %v6079_v25 = vcombine.low %v2946_v11, %v2954_v12  ;;  %v5970_v27 = vcombine.high %v2835_v21, %v2843_v22  ;;  %v6051_v12 = vcombine.low %v2916_v1, %v2924_v26  ;;  %v2948_v21 = vld [vmem:[%s7416_s7 + $0x3b8] sm:$0xff] }
0x1198   : > { %4107 = vmatprep.subr.bf16.mxu1 %v5982_v28  ;;  %4148 = vmatprep.subr.bf16.mxu0 %v5984_v29  ;;  %v5972_v28 = vcombine.high %v2836_v14, %v2844_v23  ;;  %v2851_v29 = vld [vmem:[%s7416_s7 + $0xb0] sm:$0xff]  ;;  %v2956_v22 = vld [vmem:[%s7416_s7 + $0x3f8] sm:$0xff] }
0x1199   : > { %4137 = vmatprep.mubr.bf16.mxu1 %v7119_v3  ;;  %4178 = vmatprep.mubr.bf16.mxu0 %v7119_v3  ;;  %v5985_v43 = vcombine.low %v2851_v29, %v2859_v32 }
0x119b   : > { %4108 = vmatpush1.bf16.msra.mxu1 %v5981_v37  ;;  %4149 = vmatpush1.bf16.msra.mxu0 %v5983_v38  ;;  %v5971_v37 = vcombine.low %v2836_v14, %v2844_v23  ;;  %v5986_v38 = vcombine.high %v2851_v29, %v2859_v32  ;;  %v6067_v23 = vcombine.low %v2932_v9, %v2940_v10  ;;  %v6848_v29 = vld [vmem:[%s7427_s8 + $0x40] sm:$0xff]  }
0x119c   : > { %4109 = vmatprep.subr.bf16.mxu1 %v5998_v39  ;;  %4150 = vmatprep.subr.bf16.mxu0 %v6000_v4  ;;  %v5988_v39 = vcombine.high %v2852_v34, %v2860_v35  ;;  %v2867_v4 = vld [vmem:[%s7416_s7 + $0x130] sm:$0xff]  ;;  %v6849_v32 = vld [vmem:[%s7427_s8 + $0xc0] sm:$0xff]  }
0x119d   : > { %v6001_v53 = vcombine.low %v2867_v4, %v2875_v40 }
0x119f   : > { %4110 = vmatpush1.bf16.msra.mxu1 %v5997_v44  ;;  %4151 = vmatpush1.bf16.msra.mxu0 %v5999_v17  ;;  %v5987_v44 = vcombine.low %v2852_v34, %v2860_v35  ;;  %v6002_v17 = vcombine.high %v2867_v4, %v2875_v40  ;;  %v6850_v34 = vld [vmem:[%s7427_s8] sm:$0xff]   ;;  %v6856_v4 = vld [vmem:[%s7427_s8 + $0x50] sm:$0xff]  }
0x11a0   : > { %4111 = vmatprep.subr.bf16.mxu1 %v6014_v46  ;;  %4152 = vmatprep.subr.bf16.mxu0 %v6016_v47  ;;  %v6004_v46 = vcombine.high %v2868_v19, %v2876_v41  ;;  %v2883_v47 = vld [vmem:[%s7416_s7 + $0x1b0] sm:$0xff]  ;;  %v6851_v35 = vld [vmem:[%s7427_s8 + $0x80] sm:$0xff]  }
0x11a1   : > { %v6017_v61 = vcombine.low %v2883_v47, %v2891_v48  ;;  %v6857_v40 = vld [vmem:[%s7427_s8 + $0xd0] sm:$0xff]  }
0x11a3   : > { %4112 = vmatpush1.bf16.msra.mxu1 %v6013_v54  ;;  %4153 = vmatpush1.bf16.msra.mxu0 %v6015_v55  ;;  %v6003_v54 = vcombine.low %v2868_v19, %v2876_v41  ;;  %v6018_v55 = vcombine.high %v2883_v47, %v2891_v48  ;;  %v6858_v19 = vld [vmem:[%s7427_s8 + $0x10] sm:$0xff]   ;;  %v6865_v47 = vld [vmem:[%s7427_s8 + $0xe0] sm:$0xff]  }
0x11a4   : > { %4113 = vmatprep.subr.bf16.mxu1 %v6030_v56  ;;  %4154 = vmatprep.subr.bf16.mxu0 %v6032_v57  ;;  %v6020_v56 = vcombine.high %v2884_v49, %v2892_v50  ;;  %v2899_v57 = vld [vmem:[%s7416_s7 + $0x230] sm:$0xff]  ;;  %v6866_v48 = vld [vmem:[%s7427_s8 + $0x20] sm:$0xff]  }
0x11a5   : > { %v6033_v2 = vcombine.low %v2899_v57, %v2907_v58  ;;  %v6859_v41 = vld [vmem:[%s7427_s8 + $0x90] sm:$0xff]  }
0x11a7   : > { %4114 = vmatpush1.bf16.msra.mxu1 %v6029_v62  ;;  %4155 = vmatpush1.bf16.msra.mxu0 %v6031_v63  ;;  %v6034_v62 = vcombine.high %v2899_v57, %v2907_v58  ;;  %v6036_v63 = vcombine.high %v2900_v59, %v2908_v60  ;;  %v6873_v57 = vld [vmem:[%s7427_s8 + $0xf0] sm:$0xff]   ;;  %v6876_v60 = vld [vmem:[%s7427_s8 + $0x78] sm:$0xff]  }
0x11a8   : > { %4115 = vmatprep.subr.bf16.mxu1 %v6046_v0  ;;  %4156 = vmatprep.subr.bf16.mxu0 %v6048_v51  ;;  %v2915_v0 = vld [vmem:[%s7416_s7 + $0x2b0] sm:$0xff] }
0x11a9   : > { %v2923_v51 = vld [vmem:[%s7416_s7 + $0x2f0] sm:$0xff] }
0x11aa   : > { %v6049_v11 = vcombine.low %v2915_v0, %v2923_v51  ;;  %v6874_v58 = vld [vmem:[%s7427_s8 + $0x30] sm:$0xff]  }
0x11ab   : > { %4116 = vmatpush1.bf16.msra.mxu1 %v6045_v6  ;;  %4157 = vmatpush1.bf16.msra.mxu0 %v6047_v42  ;;  %v6050_v6 = vcombine.high %v2915_v0, %v2923_v51  ;;  %v6052_v42 = vcombine.high %v2916_v1, %v2924_v26  ;;  %v6875_v59 = vld [vmem:[%s7427_s8 + $0xb0] sm:$0xff]   ;;  %v6881_v0 = vld [vmem:[%s7427_s8 + $0x1c0] sm:$0xff]   ;;  %v3235_v1 = vsub.s32 3, %v7485_v30 }
0x11ac   : > { %4117 = vmatprep.subr.bf16.mxu1 %v6062_v7  ;;  %4158 = vmatprep.subr.bf16.mxu0 %v6064_v8  ;;  %v2931_v7 = vld [vmem:[%s7416_s7 + $0x330] sm:$0xff]  ;;  %v7947_v51 = vld [vmem:[%s7422_s3] sm:$0xff] }
0x11ad   : > { %v2939_v8 = vld [vmem:[%s7416_s7 + $0x370] sm:$0xff]  ;;  %v3224_v26 = vrot.slane %v7947_v51, %v7492_v33 }
0x11ae   : > { %v6065_v14 = vcombine.low %v2931_v7, %v2939_v8 }
0x11af   : > { %4118 = vmatpush1.bf16.msra.mxu1 %v6061_v13  ;;  %4159 = vmatpush1.bf16.msra.mxu0 %v6063_v52  ;;  %v6066_v13 = vcombine.high %v2931_v7, %v2939_v8  ;;  %v6068_v52 = vcombine.high %v2932_v9, %v2940_v10 }
0x11b0   : > { %4119 = vmatprep.subr.bf16.mxu1 %v6078_v15  ;;  %4160 = vmatprep.subr.bf16.mxu0 %v6080_v16  ;;  %v2947_v15 = vld [vmem:[%s7416_s7 + $0x3b0] sm:$0xff] }
0x11b1   : > { %v2955_v16 = vld [vmem:[%s7416_s7 + $0x3f0] sm:$0xff] }
0x11b3   : > { %4120 = vmatpush1.bf16.msra.mxu1 %v6077_v24  ;;  %4161 = vmatpush1.bf16.msra.mxu0 %v6079_v25  ;;  %v6082_v24 = vcombine.high %v2947_v15, %v2955_v16  ;;  %v6084_v25 = vcombine.high %v2948_v21, %v2956_v22 }
0x11b4   : > { %4187 = vmatprep.subr.bf16.mxu1 %v5970_v27  ;;  %4228 = vmatprep.subr.bf16.mxu0 %v5972_v28  ;;  %v6081_v27 = vcombine.low %v2947_v15, %v2955_v16  ;;  %v6083_v28 = vcombine.low %v2948_v21, %v2956_v22 }
0x11b6   : > { %4138 = vmatmul.mubr.bf16.vlgmr.msra.gmra.mrb[64].mxu1 %v7808_v20  ;;  %4179 = vmatmul.mubr.bf16.vlgmr.msra.gmra.mrb[40].mxu0 %v7808_v20 }
0x11b7   : > { %4188 = vmatpush1.bf16.msra.mxu1 %v5969_v36  ;;  %4229 = vmatpush1.bf16.msra.mxu0 %v5971_v37  ;;  %v6852_v36 = vld [vmem:[%s7427_s8 + $0x48] sm:$0xff]  }
0x11b8   : > { %4189 = vmatprep.subr.bf16.mxu1 %v5986_v38  ;;  %4230 = vmatprep.subr.bf16.mxu0 %v5988_v39  ;;  %v6853_v37 = vld [vmem:[%s7427_s8 + $0xc8] sm:$0xff]  }
0x11b9   : > { %4219 = vmatprep.mubr.bf16.mxu1 %v7119_v3  ;;  %4260 = vmatprep.mubr.bf16.mxu0 %v7119_v3  ;;  %v6019_v3 = vcombine.low %v2884_v49, %v2892_v50  ;;  %v6854_v38 = vld [vmem:[%s7427_s8 + $0x8] sm:$0xff]   ;;  %v6867_v49 = vld [vmem:[%s7427_s8 + $0xa0] sm:$0xff]  }
0x11ba   : > { %v6855_v39 = vld [vmem:[%s7427_s8 + $0x88] sm:$0xff]  }
0x11bb   : > { %4190 = vmatpush1.bf16.msra.mxu1 %v5985_v43  ;;  %4231 = vmatpush1.bf16.msra.mxu0 %v5987_v44  ;;  %v6861_v43 = vld [vmem:[%s7427_s8 + $0xd8] sm:$0xff]   ;;  %v6868_v50 = vld [vmem:[%s7427_s8 + $0x68] sm:$0xff]  }
0x11bc   : > { %4191 = vmatprep.subr.bf16.mxu1 %v6002_v17  ;;  %4232 = vmatprep.subr.bf16.mxu0 %v6004_v46  ;;  %v6862_v44 = vld [vmem:[%s7427_s8 + $0x18] sm:$0xff]   ;;  %v6864_v46 = vld [vmem:[%s7427_s8 + $0x60] sm:$0xff]  }
0x11bd   : > { %v6863_v17 = vld [vmem:[%s7427_s8 + $0x98] sm:$0xff]  }
0x11bf   : > { %4192 = vmatpush1.bf16.msra.mxu1 %v6001_v53  ;;  %4233 = vmatpush1.bf16.msra.mxu0 %v6003_v54  ;;  %v6869_v53 = vld [vmem:[%s7427_s8 + $0xe8] sm:$0xff]  }
0x11c0   : > { %4193 = vmatprep.subr.bf16.mxu1 %v6018_v55  ;;  %4234 = vmatprep.subr.bf16.mxu0 %v6020_v56  ;;  %v6870_v54 = vld [vmem:[%s7427_s8 + $0x28] sm:$0xff]   ;;  %v6872_v56 = vld [vmem:[%s7427_s8 + $0x70] sm:$0xff]  }
0x11c1   : > { %v6871_v55 = vld [vmem:[%s7427_s8 + $0xa8] sm:$0xff]  }
0x11c3   : > { %4194 = vmatpush1.bf16.msra.mxu1 %v6017_v61  ;;  %4235 = vmatpush1.bf16.msra.mxu0 %v6019_v3  ;;  %v6877_v61 = vld [vmem:[%s7427_s8 + $0xf8] sm:$0xff]  }
0x11c4   : > { %4195 = vmatprep.subr.bf16.mxu1 %v6034_v62  ;;  %4236 = vmatprep.subr.bf16.mxu0 %v6036_v63  ;;  %v6878_v3 = vld [vmem:[%s7427_s8 + $0x38] sm:$0xff]   ;;  %v6880_v63 = vld [vmem:[%s7427_s8 + $0x140] sm:$0xff]  }
0x11c5   : > { %v6879_v62 = vld [vmem:[%s7427_s8 + $0xb8] sm:$0xff]  }
0x11c7   : > { %4196 = vmatpush1.bf16.msra.mxu1 %v6033_v2  ;;  %4237 = vmatpush1.bf16.msra.mxu0 %v6035_v5  ;;  %v3232_v2 = vrot.slane %v7947_v51, %v7507_v45  ;;  %v3228_v5 = vrot.slane %v7947_v51, %v7488_v31 }
0x11c8   : > { %4197 = vmatprep.subr.bf16.mxu1 %v6050_v6  ;;  %4238 = vmatprep.subr.bf16.mxu0 %v6052_v42  ;;  %v3236_v6 = vrot.slane %v7947_v51, %v3235_v1 }
0x11cb   : > { %4198 = vmatpush1.bf16.msra.mxu1 %v6049_v11  ;;  %4239 = vmatpush1.bf16.msra.mxu0 %v6051_v12 }
0x11cc   : > { %4199 = vmatprep.subr.bf16.mxu1 %v6066_v13  ;;  %4240 = vmatprep.subr.bf16.mxu0 %v6068_v52 }
0x11cf   : > { %4200 = vmatpush1.bf16.msra.mxu1 %v6065_v14  ;;  %4241 = vmatpush1.bf16.msra.mxu0 %v6067_v23 }
0x11d0   : > { %4201 = vmatprep.subr.bf16.mxu1 %v6082_v24  ;;  %4242 = vmatprep.subr.bf16.mxu0 %v6084_v25 }
0x11d3   : > { %4202 = vmatpush1.bf16.msra.mxu1 %v6081_v27  ;;  %4243 = vmatpush1.bf16.msra.mxu0 %v6083_v28  ;;  %v6882_v28 = vld [vmem:[%s7427_s8 + $0x100] sm:$0xff]  }
0x11d4   : > { %6305 = vmatprep.subr.bf16.mxu1 %v6848_v29  ;;  %6327 = vmatprep.subr.bf16.mxu0 %v6849_v32  ;;  %v6883_v29 = vld [vmem:[%s7427_s8 + $0x180] sm:$0xff]  }
0x11d6   : > { %4220 = vmatmul.mubr.bf16.vlgmr.msra.gmra.mrb[68].mxu1 %v7808_v20  ;;  %4261 = vmatmul.mubr.bf16.vlgmr.msra.gmra.mrb[44].mxu0 %v7808_v20  ;;  %v6860_v20 = vld [vmem:[%s7427_s8 + $0x58] sm:$0xff]  }
0x11d7   : > { %6306 = vmatpush3.bf16.msra.mxu1 %v6850_v34  ;;  %6328 = vmatpush3.bf16.msra.mxu0 %v6851_v35  ;;  %v6884_v35 = vld [vmem:[%s7427_s8 + $0x148] sm:$0xff]  }
0x11d8   : > { %6307 = vmatprep.subr.bf16.mxu1 %v6852_v36  ;;  %6329 = vmatprep.subr.bf16.mxu0 %v6853_v37  ;;  %v6885_v36 = vld [vmem:[%s7427_s8 + $0x1c8] sm:$0xff]  }
0x11d9   : > { %v6886_v37 = vld [vmem:[%s7427_s8 + $0x108] sm:$0xff]  }
0x11db   : > { %6308 = vmatpush3.bf16.msra.mxu1 %v6854_v38  ;;  %6330 = vmatpush3.bf16.msra.mxu0 %v6855_v39  ;;  %v6887_v38 = vld [vmem:[%s7427_s8 + $0x188] sm:$0xff]   ;;  %v6888_v39 = vld [vmem:[%s7427_s8 + $0x150] sm:$0xff]  }
0x11dc   : > { %6309 = vmatprep.subr.bf16.mxu1 %v6856_v4  ;;  %6331 = vmatprep.subr.bf16.mxu0 %v6857_v40  ;;  %v6889_v4 = vld [vmem:[%s7427_s8 + $0x1d0] sm:$0xff]  }
0x11dd   : > { %v6890_v40 = vld [vmem:[%s7427_s8 + $0x110] sm:$0xff]  }
0x11df   : > { %6310 = vmatpush3.bf16.msra.mxu1 %v6858_v19  ;;  %6332 = vmatpush3.bf16.msra.mxu0 %v6859_v41  ;;  %v6891_v19 = vld [vmem:[%s7427_s8 + $0x190] sm:$0xff]   ;;  %v6892_v41 = vld [vmem:[%s7427_s8 + $0x158] sm:$0xff]  }
0x11e0   : > { %6311 = vmatprep.subr.bf16.mxu1 %v6860_v20  ;;  %6333 = vmatprep.subr.bf16.mxu0 %v6861_v43  ;;  %v6893_v20 = vld [vmem:[%s7427_s8 + $0x1d8] sm:$0xff]  }
0x11e1   : > { %v6894_v43 = vld [vmem:[%s7427_s8 + $0x118] sm:$0xff]  }
0x11e3   : > { %6312 = vmatpush3.bf16.msra.mxu1 %v6862_v44  ;;  %6334 = vmatpush3.bf16.msra.mxu0 %v6863_v17  ;;  %v6895_v44 = vld [vmem:[%s7427_s8 + $0x198] sm:$0xff]   ;;  %v6896_v17 = vld [vmem:[%s7427_s8 + $0x160] sm:$0xff]  }
0x11e4   : > { %6313 = vmatprep.subr.bf16.mxu1 %v6864_v46  ;;  %6335 = vmatprep.subr.bf16.mxu0 %v6865_v47  ;;  %v6897_v46 = vld [vmem:[%s7427_s8 + $0x1e0] sm:$0xff]  }
0x11e5   : > { %v6898_v47 = vld [vmem:[%s7427_s8 + $0x120] sm:$0xff]  }
0x11e7   : > { %6314 = vmatpush3.bf16.msra.mxu1 %v6866_v48  ;;  %6336 = vmatpush3.bf16.msra.mxu0 %v6867_v49  ;;  %v6899_v48 = vld [vmem:[%s7427_s8 + $0x1a0] sm:$0xff]   ;;  %v6900_v49 = vld [vmem:[%s7427_s8 + $0x168] sm:$0xff]  }
0x11e8   : > { %6315 = vmatprep.subr.bf16.mxu1 %v6868_v50  ;;  %6337 = vmatprep.subr.bf16.mxu0 %v6869_v53  ;;  %v6901_v50 = vld [vmem:[%s7427_s8 + $0x1e8] sm:$0xff]   ;;  %v3239_v53 = vsub.s32 4, %v7485_v30 }
0x11eb   : > { %6316 = vmatpush3.bf16.msra.mxu1 %v6870_v54  ;;  %6338 = vmatpush3.bf16.msra.mxu0 %v6871_v55  ;;  %v3247_v54 = vsub.s32 6, %v7485_v30  ;;  %v6902_v55 = vld [vmem:[%s7427_s8 + $0x128] sm:$0xff]  }
0x11ec   : > { %6317 = vmatprep.subr.bf16.mxu1 %v6872_v56  ;;  %6339 = vmatprep.subr.bf16.mxu0 %v6873_v57  ;;  %v6903_v56 = vld [vmem:[%s7427_s8 + $0x1a8] sm:$0xff]   ;;  %v3243_v57 = vsub.s32 5, %v7485_v30 }
0x11ef   : > { %6318 = vmatpush3.bf16.msra.mxu1 %v6874_v58  ;;  %6340 = vmatpush3.bf16.msra.mxu0 %v6875_v59  ;;  %v3251_v58 = vsub.s32 7, %v7485_v30  ;;  %v6904_v59 = vld [vmem:[%s7427_s8 + $0x170] sm:$0xff]  }
0x11f0   : > { %6319 = vmatprep.subr.bf16.mxu1 %v6876_v60  ;;  %6341 = vmatprep.subr.bf16.mxu0 %v6877_v61  ;;  %v6905_v60 = vld [vmem:[%s7427_s8 + $0x1f0] sm:$0xff]   ;;  %v3240_v61 = vrot.slane %v7947_v51, %v3239_v53 }
0x11f3   : > { %6320 = vmatpush3.bf16.msra.mxu1 %v6878_v3  ;;  %6342 = vmatpush3.bf16.msra.mxu0 %v6879_v62  ;;  %v3248_v3 = vrot.slane %v7947_v51, %v3247_v54  ;;  %v3244_v62 = vrot.slane %v7947_v51, %v3243_v57 }
0x11f4   : > { %6349 = vmatprep.subr.bf16.mxu1 %v6880_v63  ;;  %6371 = vmatprep.subr.bf16.mxu0 %v6881_v0  ;;  %v3252_v63 = vrot.slane %v7947_v51, %v3251_v58  ;;  %v6906_v0 = vld [vmem:[%s7427_s8 + $0x130] sm:$0xff]  }
0x1249   : > { %v3975_v42 = vpop.f32.mrb[56].mxu1  ;;  %v4016_v7 = vpop.f32.mrb[32].mxu0 }
0x124a   : > { %v3976_v8 = vadd.f32 %v3975_v42, %v3224_v26  ;;  %v4017_v9 = vadd.f32 %v4016_v7, %v3232_v2  ;;  %v3977_v10 = vpop.f32.mrb[57].mxu1  ;;  %v4018_v11 = vpop.f32.mrb[33].mxu0  ;;  %v6907_v26 = vld [vmem:[%s7427_s8 + $0x1b0] sm:$0xff]   ;;  %v6908_v2 = vld [vmem:[%s7427_s8 + $0x178] sm:$0xff]  }
0x124b   : > { %v3978_v12 = vadd.f32 %v3977_v10, %v3228_v5  ;;  %v4019_v13 = vadd.f32 %v4018_v11, %v3236_v6  ;;  %v3979_v52 = vpop.f32.mrb[58].mxu1  ;;  %v4020_v15 = vpop.f32.mrb[34].mxu0  ;;  %v6909_v5 = vld [vmem:[%s7427_s8 + $0x1f8] sm:$0xff]  }
0x124c   : > { %v4269_v16 = vmax.f32 %v3976_v8, 0.0  ;;  %v4271_v21 = vmax.f32 %v4017_v9, 0.0  ;;  %v3980_v22 = vpop.f32.mrb[59].mxu1  ;;  %v4021_v14 = vpop.f32.mrb[35].mxu0  ;;  %v6910_v52 = vld [vmem:[%s7427_s8 + $0x138] sm:$0xff]  }
0x124d   : > { %v4270_v23 = vmax.f32 %v3978_v12, 0.0  ;;  %v4272_v24 = vmax.f32 %v4019_v13, 0.0  ;;  %v6911_v15 = vld [vmem:[%s7427_s8 + $0x1b8] sm:$0xff]  }
0x124e   : > { %v4285_v32 = vpack.c.bf16 %v4269_v16, %v4269_v16  ;;  %v4287_v34 = vpack.c.bf16 %v4271_v21, %v4271_v21 }
0x124f   : > { %v4286_v25 = vpack.c.bf16 %v4270_v23, %v4270_v23  ;;  %v4288_v27 = vpack.c.bf16 %v4272_v24, %v4272_v24  ;;  %v6912_v23 = vld [vmem:[%s7427_s8 + $0x240] sm:$0xff]  }
0x1250   : > { %v6913_v24 = vld [vmem:[%s7427_s8 + $0x2c0] sm:$0xff]  }
0x1251   : > { %5107 = vmatprep.mubr.bf16.mxu1 %v4286_v25  ;;  %5147 = vmatprep.mubr.bf16.mxu0 %v4288_v27 }
0x1252   : > { %5108 = vmatmul.mubr.bf16.vlgmr.msra.gmra.mrb[72].mxu1 %v4285_v32  ;;  %5148 = vmatmul.mubr.bf16.vlgmr.msra.gmra.mrb[48].mxu0 %v4287_v34  ;;  %v6914_v32 = vld [vmem:[%s7427_s8 + $0x200] sm:$0xff]  }
0x1253   : > { %6350 = vmatpush3.bf16.msra.mxu1 %v6882_v28  ;;  %6372 = vmatpush3.bf16.msra.mxu0 %v6883_v29  ;;  %v6915_v34 = vld [vmem:[%s7427_s8 + $0x280] sm:$0xff]  }
0x1254   : > { %6351 = vmatprep.subr.bf16.mxu1 %v6884_v35  ;;  %6373 = vmatprep.subr.bf16.mxu0 %v6885_v36 }
0x1257   : > { %6352 = vmatpush3.bf16.msra.mxu1 %v6886_v37  ;;  %6374 = vmatpush3.bf16.msra.mxu0 %v6887_v38  ;;  %v6916_v37 = vld [vmem:[%s7427_s8 + $0x248] sm:$0xff]  }
0x1258   : > { %6353 = vmatprep.subr.bf16.mxu1 %v6888_v39  ;;  %6375 = vmatprep.subr.bf16.mxu0 %v6889_v4  ;;  %v6917_v38 = vld [vmem:[%s7427_s8 + $0x2c8] sm:$0xff]  }
0x1259   : > { %v6918_v39 = vld [vmem:[%s7427_s8 + $0x208] sm:$0xff]  }
0x125a   : > { %v6919_v4 = vld [vmem:[%s7427_s8 + $0x288] sm:$0xff]  }
0x125b   : > { %6354 = vmatpush3.bf16.msra.mxu1 %v6890_v40  ;;  %6376 = vmatpush3.bf16.msra.mxu0 %v6891_v19  ;;  %v6920_v40 = vld [vmem:[%s7427_s8 + $0x250] sm:$0xff]  }
0x125c   : > { %6355 = vmatprep.subr.bf16.mxu1 %v6892_v41  ;;  %6377 = vmatprep.subr.bf16.mxu0 %v6893_v20  ;;  %v6921_v19 = vld [vmem:[%s7427_s8 + $0x2d0] sm:$0xff]  }
0x125d   : > { %v6922_v41 = vld [vmem:[%s7427_s8 + $0x210] sm:$0xff]  }
0x125e   : > { %v6923_v20 = vld [vmem:[%s7427_s8 + $0x290] sm:$0xff]  }
0x125f   : > { %6356 = vmatpush3.bf16.msra.mxu1 %v6894_v43  ;;  %6378 = vmatpush3.bf16.msra.mxu0 %v6895_v44  ;;  %v6924_v43 = vld [vmem:[%s7427_s8 + $0x258] sm:$0xff]  }
0x1260   : > { %6357 = vmatprep.subr.bf16.mxu1 %v6896_v17  ;;  %6379 = vmatprep.subr.bf16.mxu0 %v6897_v46  ;;  %v6925_v44 = vld [vmem:[%s7427_s8 + $0x2d8] sm:$0xff]  }
0x1261   : > { %v6926_v17 = vld [vmem:[%s7427_s8 + $0x218] sm:$0xff]  }
0x1262   : > { %v6927_v46 = vld [vmem:[%s7427_s8 + $0x298] sm:$0xff]  }
0x1263   : > { %6358 = vmatpush3.bf16.msra.mxu1 %v6898_v47  ;;  %6380 = vmatpush3.bf16.msra.mxu0 %v6899_v48  ;;  %v6928_v47 = vld [vmem:[%s7427_s8 + $0x260] sm:$0xff]  }
0x1264   : > { %6359 = vmatprep.subr.bf16.mxu1 %v6900_v49  ;;  %6381 = vmatprep.subr.bf16.mxu0 %v6901_v50  ;;  %v6929_v48 = vld [vmem:[%s7427_s8 + $0x2e0] sm:$0xff]  }
0x1265   : > { %v6930_v49 = vld [vmem:[%s7427_s8 + $0x220] sm:$0xff]  }
0x1266   : > { %v6931_v50 = vld [vmem:[%s7427_s8 + $0x2a0] sm:$0xff]  }
0x1267   : > { %6360 = vmatpush3.bf16.msra.mxu1 %v6902_v55  ;;  %6382 = vmatpush3.bf16.msra.mxu0 %v6903_v56  ;;  %v6932_v55 = vld [vmem:[%s7427_s8 + $0x268] sm:$0xff]  }
0x1268   : > { %6361 = vmatprep.subr.bf16.mxu1 %v6904_v59  ;;  %6383 = vmatprep.subr.bf16.mxu0 %v6905_v60  ;;  %v6933_v56 = vld [vmem:[%s7427_s8 + $0x2e8] sm:$0xff]  }
0x1269   : > { %v4057_v6 = vpop.f32.mrb[60].mxu1  ;;  %v4098_v42 = vpop.f32.mrb[36].mxu0  ;;  %v6934_v59 = vld [vmem:[%s7427_s8 + $0x228] sm:$0xff]  }
0x126a   : > { %v4058_v7 = vadd.f32 %v4057_v6, %v3240_v61  ;;  %v4099_v8 = vadd.f32 %v4098_v42, %v3248_v3  ;;  %v4059_v9 = vpop.f32.mrb[61].mxu1  ;;  %v4100_v10 = vpop.f32.mrb[37].mxu0  ;;  %v6935_v60 = vld [vmem:[%s7427_s8 + $0x2a8] sm:$0xff]   ;;  %v6936_v3 = vld [vmem:[%s7427_s8 + $0x270] sm:$0xff]   ;;  %v6940_v42 = vld [vmem:[%s7427_s8 + $0x278] sm:$0xff]  }
0x126b   : > { %v4060_v11 = vadd.f32 %v4059_v9, %v3244_v62  ;;  %v4101_v12 = vadd.f32 %v4100_v10, %v3252_v63  ;;  %v4061_v13 = vpop.f32.mrb[62].mxu1  ;;  %v4102_v51 = vpop.f32.mrb[38].mxu0  ;;  %6362 = vmatpush3.bf16.msra.mxu1 %v6906_v0  ;;  %6384 = vmatpush3.bf16.msra.mxu0 %v6907_v26  ;;  %v8030_v61 = vld [vmem:[%s7422_s3 + $0x8] sm:$0xff]  ;;  %v6937_v62 = vld [vmem:[%s7427_s8 + $0x2f0] sm:$0xff]  }
0x126c   : > { %v4273_v16 = vmax.f32 %v4058_v7, 0.0  ;;  %v4275_v21 = vmax.f32 %v4099_v8, 0.0  ;;  %v4062_v22 = vpop.f32.mrb[63].mxu1  ;;  %v4103_v14 = vpop.f32.mrb[39].mxu0  ;;  %6363 = vmatprep.subr.bf16.mxu1 %v6908_v2  ;;  %6385 = vmatprep.subr.bf16.mxu0 %v6909_v5  ;;  %v3256_v63 = vrot.slane %v8030_v61, %v7492_v33  ;;  %v3264_v0 = vrot.slane %v8030_v61, %v7507_v45  ;;  %v6938_v5 = vld [vmem:[%s7427_s8 + $0x230] sm:$0xff]   ;;  %v6941_v33 = vld [vmem:[%s7427_s8 + $0x2f8] sm:$0xff]  }
0x126d   : > { %v4274_v25 = vmax.f32 %v4060_v11, 0.0  ;;  %v4276_v27 = vmax.f32 %v4101_v12, 0.0  ;;  %v3260_v26 = vrot.slane %v8030_v61, %v7488_v31  ;;  %v3268_v2 = vrot.slane %v8030_v61, %v3235_v1  ;;  %v6939_v6 = vld [vmem:[%s7427_s8 + $0x2b0] sm:$0xff]   ;;  %v6942_v51 = vld [vmem:[%s7427_s8 + $0x238] sm:$0xff]   ;;  %v6944_v14 = vld [vmem:[%s7427_s8 + $0x340] sm:$0xff]  }
0x126e   : > { %v4289_v35 = vpack.c.bf16 %v4273_v16, %v4273_v16  ;;  %v4291_v36 = vpack.c.bf16 %v4275_v21, %v4275_v21 }
0x126f   : > { %v4290_v28 = vpack.c.bf16 %v4274_v25, %v4274_v25  ;;  %v4292_v29 = vpack.c.bf16 %v4276_v27, %v4276_v27  ;;  %6364 = vmatpush3.bf16.msra.mxu1 %v6910_v52  ;;  %6386 = vmatpush3.bf16.msra.mxu0 %v6911_v15  ;;  %v6943_v52 = vld [vmem:[%s7427_s8 + $0x2b8] sm:$0xff]  }
0x1270   : > { %6393 = vmatprep.subr.bf16.mxu1 %v6912_v23  ;;  %6415 = vmatprep.subr.bf16.mxu0 %v6913_v24  ;;  %v6945_v23 = vld [vmem:[%s7427_s8 + $0x3c0] sm:$0xff]  }
0x1271   : > { %5187 = vmatprep.mubr.bf16.mxu1 %v4290_v28  ;;  %5227 = vmatprep.mubr.bf16.mxu0 %v4292_v29  ;;  %v6946_v29 = vld [vmem:[%s7427_s8 + $0x300] sm:$0xff]  }
0x1272   : > { %5188 = vmatmul.mubr.bf16.vlgmr.msra.gmra.mrb[76].mxu1 %v4289_v35  ;;  %5228 = vmatmul.mubr.bf16.vlgmr.msra.gmra.mrb[52].mxu0 %v4291_v36  ;;  %v6948_v36 = vld [vmem:[%s7427_s8 + $0x348] sm:$0xff]  }
0x1273   : > { %6394 = vmatpush3.bf16.msra.mxu1 %v6914_v32  ;;  %6416 = vmatpush3.bf16.msra.mxu0 %v6915_v34  ;;  %v6947_v32 = vld [vmem:[%s7427_s8 + $0x380] sm:$0xff]  }
0x1274   : > { %6395 = vmatprep.subr.bf16.mxu1 %v6916_v37  ;;  %6417 = vmatprep.subr.bf16.mxu0 %v6917_v38  ;;  %v6949_v37 = vld [vmem:[%s7427_s8 + $0x3c8] sm:$0xff]  }
0x1275   : > { %v6950_v38 = vld [vmem:[%s7427_s8 + $0x308] sm:$0xff]  }
0x1277   : > { %6396 = vmatpush3.bf16.msra.mxu1 %v6918_v39  ;;  %6418 = vmatpush3.bf16.msra.mxu0 %v6919_v4  ;;  %v6951_v39 = vld [vmem:[%s7427_s8 + $0x388] sm:$0xff]   ;;  %v6952_v4 = vld [vmem:[%s7427_s8 + $0x350] sm:$0xff]  }
0x1278   : > { %6397 = vmatprep.subr.bf16.mxu1 %v6920_v40  ;;  %6419 = vmatprep.subr.bf16.mxu0 %v6921_v19  ;;  %v6953_v40 = vld [vmem:[%s7427_s8 + $0x3d0] sm:$0xff]  }
0x1279   : > { %v6954_v19 = vld [vmem:[%s7427_s8 + $0x310] sm:$0xff]  }
0x127b   : > { %6398 = vmatpush3.bf16.msra.mxu1 %v6922_v41  ;;  %6420 = vmatpush3.bf16.msra.mxu0 %v6923_v20  ;;  %v6955_v41 = vld [vmem:[%s7427_s8 + $0x390] sm:$0xff]   ;;  %v6956_v20 = vld [vmem:[%s7427_s8 + $0x358] sm:$0xff]  }
0x127c   : > { %6399 = vmatprep.subr.bf16.mxu1 %v6924_v43  ;;  %6421 = vmatprep.subr.bf16.mxu0 %v6925_v44  ;;  %v6957_v43 = vld [vmem:[%s7427_s8 + $0x3d8] sm:$0xff]  }
0x127d   : > { %v6958_v44 = vld [vmem:[%s7427_s8 + $0x318] sm:$0xff]  }
0x127f   : > { %6400 = vmatpush3.bf16.msra.mxu1 %v6926_v17  ;;  %6422 = vmatpush3.bf16.msra.mxu0 %v6927_v46  ;;  %v6959_v17 = vld [vmem:[%s7427_s8 + $0x398] sm:$0xff]   ;;  %v6960_v46 = vld [vmem:[%s7427_s8 + $0x360] sm:$0xff]  }
0x1280   : > { %6401 = vmatprep.subr.bf16.mxu1 %v6928_v47  ;;  %6423 = vmatprep.subr.bf16.mxu0 %v6929_v48  ;;  %v6961_v47 = vld [vmem:[%s7427_s8 + $0x3e0] sm:$0xff]  }
0x1281   : > { %v6962_v48 = vld [vmem:[%s7427_s8 + $0x320] sm:$0xff]  }
0x1283   : > { %6402 = vmatpush3.bf16.msra.mxu1 %v6930_v49  ;;  %6424 = vmatpush3.bf16.msra.mxu0 %v6931_v50  ;;  %v6963_v49 = vld [vmem:[%s7427_s8 + $0x3a0] sm:$0xff]   ;;  %v6964_v50 = vld [vmem:[%s7427_s8 + $0x368] sm:$0xff]  }
0x1284   : > { %6403 = vmatprep.subr.bf16.mxu1 %v6932_v55  ;;  %6425 = vmatprep.subr.bf16.mxu0 %v6933_v56  ;;  %v6965_v55 = vld [vmem:[%s7427_s8 + $0x3e8] sm:$0xff]  }
0x1285   : > { %v6966_v56 = vld [vmem:[%s7427_s8 + $0x328] sm:$0xff]  }
0x1287   : > { %6404 = vmatpush3.bf16.msra.mxu1 %v6934_v59  ;;  %6426 = vmatpush3.bf16.msra.mxu0 %v6935_v60  ;;  %v6967_v59 = vld [vmem:[%s7427_s8 + $0x3a8] sm:$0xff]   ;;  %v6968_v60 = vld [vmem:[%s7427_s8 + $0x370] sm:$0xff]  }
0x1288   : > { %6405 = vmatprep.subr.bf16.mxu1 %v6936_v3  ;;  %6427 = vmatprep.subr.bf16.mxu0 %v6937_v62  ;;  %v6969_v3 = vld [vmem:[%s7427_s8 + $0x3f0] sm:$0xff]   ;;  %v3272_v62 = vrot.slane %v8030_v61, %v3239_v53  ;;  %v6972_v53 = vld [vmem:[%s7427_s8 + $0x378] sm:$0xff]  }
0x1289   : > { %v4139_v7 = vpop.f32.mrb[64].mxu1  ;;  %v4180_v8 = vpop.f32.mrb[40].mxu0 }
0x128a   : > { %v4140_v45 = vadd.f32 %v4139_v7, %v3256_v63  ;;  %v4181_v9 = vadd.f32 %v4180_v8, %v3264_v0  ;;  %v4141_v10 = vpop.f32.mrb[65].mxu1  ;;  %v4182_v11 = vpop.f32.mrb[41].mxu0  ;;  %v3280_v63 = vrot.slane %v8030_v61, %v3247_v54  ;;  %v3276_v0 = vrot.slane %v8030_v61, %v3243_v57 }
0x128b   : > { %v4142_v31 = vadd.f32 %v4141_v10, %v3260_v26  ;;  %v4183_v12 = vadd.f32 %v4182_v11, %v3268_v2  ;;  %v4143_v13 = vpop.f32.mrb[66].mxu1  ;;  %v4184_v1 = vpop.f32.mrb[42].mxu0  ;;  %6406 = vmatpush3.bf16.msra.mxu1 %v6938_v5  ;;  %6428 = vmatpush3.bf16.msra.mxu0 %v6939_v6  ;;  %v3284_v26 = vrot.slane %v8030_v61, %v3251_v58  ;;  %v6970_v2 = vld [vmem:[%s7427_s8 + $0x330] sm:$0xff]   ;;  %v6973_v6 = vld [vmem:[%s7427_s8 + $0x3f8] sm:$0xff]  }
0x128c   : > { %v4277_v15 = vmax.f32 %v4140_v45, 0.0  ;;  %v4279_v16 = vmax.f32 %v4181_v9, 0.0  ;;  %v4144_v21 = vpop.f32.mrb[67].mxu1  ;;  %v4185_v22 = vpop.f32.mrb[43].mxu0  ;;  %6407 = vmatprep.subr.bf16.mxu1 %v6940_v42  ;;  %6429 = vmatprep.subr.bf16.mxu0 %v6941_v33  ;;  %v6971_v5 = vld [vmem:[%s7427_s8 + $0x3b0] sm:$0xff]   ;;  %v6974_v58 = vld [vmem:[%s7427_s8 + $0x338] sm:$0xff]  }
0x128d   : > { %v4278_v24 = vmax.f32 %v4142_v31, 0.0  ;;  %v4280_v25 = vmax.f32 %v4183_v12, 0.0  ;;  %v6975_v61 = vld [vmem:[%s7427_s8 + $0x3b8] sm:$0xff]   ;;  %s8326_s8 = sld [smem:[#allocation45_spill]] (!%p6216_p1) }
0x128e   : > { %v4293_v34 = vpack.c.bf16 %v4277_v15, %v4277_v15  ;;  %v4295_v35 = vpack.c.bf16 %v4279_v16, %v4279_v16 }
0x128f   : > { %v4294_v27 = vpack.c.bf16 %v4278_v24, %v4278_v24  ;;  %v4296_v28 = vpack.c.bf16 %v4280_v25, %v4280_v25  ;;  %6408 = vmatpush3.bf16.msra.mxu1 %v6942_v51  ;;  %6430 = vmatpush3.bf16.msra.mxu0 %v6943_v52 }
0x1290   : > { %6437 = vmatprep.subr.bf16.mxu1 %v6944_v14  ;;  %6459 = vmatprep.subr.bf16.mxu0 %v6945_v23  ;;  %v6085_v23 = vld [vmem:[%s1089_s4] ss:$0 sm:$0xff] }
0x1291   : > { %5267 = vmatprep.mubr.bf16.mxu1 %v4294_v27  ;;  %5307 = vmatprep.mubr.bf16.mxu0 %v4296_v28 }
0x1292   : > { %5268 = vmatmul.mubr.bf16.vlgmr.msra.gmra.mrb[80].mxu1 %v4293_v34  ;;  %5308 = vmatmul.mubr.bf16.vlgmr.msra.gmra.mrb[56].mxu0 %v4295_v35 }
0x1293   : > { %6438 = vmatpush3.bf16.msra.mxu1 %v6946_v29  ;;  %6460 = vmatpush3.bf16.msra.mxu0 %v6947_v32 }
0x1294   : > { %6439 = vmatprep.subr.bf16.mxu1 %v6948_v36  ;;  %6461 = vmatprep.subr.bf16.mxu0 %v6949_v37 }
0x1297   : > { %6440 = vmatpush3.bf16.msra.mxu1 %v6950_v38  ;;  %6462 = vmatpush3.bf16.msra.mxu0 %v6951_v39 }
0x1298   : > { %6441 = vmatprep.subr.bf16.mxu1 %v6952_v4  ;;  %6463 = vmatprep.subr.bf16.mxu0 %v6953_v40 }
0x129b   : > { %6442 = vmatpush3.bf16.msra.mxu1 %v6954_v19  ;;  %6464 = vmatpush3.bf16.msra.mxu0 %v6955_v41 }
0x129c   : > { %6443 = vmatprep.subr.bf16.mxu1 %v6956_v20  ;;  %6465 = vmatprep.subr.bf16.mxu0 %v6957_v43 }
0x129f   : > { %6444 = vmatpush3.bf16.msra.mxu1 %v6958_v44  ;;  %6466 = vmatpush3.bf16.msra.mxu0 %v6959_v17 }
0x12a0   : > { %6445 = vmatprep.subr.bf16.mxu1 %v6960_v46  ;;  %6467 = vmatprep.subr.bf16.mxu0 %v6961_v47 }
0x12a3   : > { %6446 = vmatpush3.bf16.msra.mxu1 %v6962_v48  ;;  %6468 = vmatpush3.bf16.msra.mxu0 %v6963_v49 }
0x12a4   : > { %6447 = vmatprep.subr.bf16.mxu1 %v6964_v50  ;;  %6469 = vmatprep.subr.bf16.mxu0 %v6965_v55 }
0x12a7   : > { %6448 = vmatpush3.bf16.msra.mxu1 %v6966_v56  ;;  %6470 = vmatpush3.bf16.msra.mxu0 %v6967_v59 }
0x12a8   : > { %6449 = vmatprep.subr.bf16.mxu1 %v6968_v60  ;;  %6471 = vmatprep.subr.bf16.mxu0 %v6969_v3 }
0x12a9   : > { %v4221_v42 = vpop.f32.mrb[68].mxu1  ;;  %v4262_v54 = vpop.f32.mrb[44].mxu0 }
0x12aa   : > { %v4222_v33 = vadd.f32 %v4221_v42, %v3272_v62  ;;  %v4263_v7 = vadd.f32 %v4262_v54, %v3280_v63  ;;  %v4223_v8 = vpop.f32.mrb[69].mxu1  ;;  %v4264_v45 = vpop.f32.mrb[45].mxu0 }
0x12ab   : > { %v4224_v9 = vadd.f32 %v4223_v8, %v3276_v0  ;;  %v4265_v57 = vadd.f32 %v4264_v45, %v3284_v26  ;;  %v4225_v10 = vpop.f32.mrb[70].mxu1  ;;  %v4266_v30 = vpop.f32.mrb[46].mxu0  ;;  %6450 = vmatpush3.bf16.msra.mxu1 %v6970_v2  ;;  %6472 = vmatpush3.bf16.msra.mxu0 %v6971_v5 }
0x12ac   : > { %v4281_v11 = vmax.f32 %v4222_v33, 0.0  ;;  %v4283_v31 = vmax.f32 %v4263_v7, 0.0  ;;  %v4226_v12 = vpop.f32.mrb[71].mxu1  ;;  %v4267_v13 = vpop.f32.mrb[47].mxu0  ;;  %6451 = vmatprep.subr.bf16.mxu1 %v6972_v53  ;;  %6473 = vmatprep.subr.bf16.mxu0 %v6973_v6 }
0x12ad   : > { %v4282_v1 = vmax.f32 %v4224_v9, 0.0  ;;  %v4284_v51 = vmax.f32 %v4265_v57, 0.0 }
0x12ae   : > { %v4297_v16 = vpack.c.bf16 %v4281_v11, %v4281_v11  ;;  %v4299_v21 = vpack.c.bf16 %v4283_v31, %v4283_v31 }
0x12af   : > { %v4298_v52 = vpack.c.bf16 %v4282_v1, %v4282_v1  ;;  %v4300_v15 = vpack.c.bf16 %v4284_v51, %v4284_v51  ;;  %6452 = vmatpush3.bf16.msra.mxu1 %v6974_v58  ;;  %6474 = vmatpush3.bf16.msra.mxu0 %v6975_v61  ;;  %v6214_v51 = vld [vmem:[%s1092_s28] ss:$0 sm:$0xff] }
0x12b1   : > { %5347 = vmatprep.mubr.bf16.mxu1 %v4298_v52  ;;  %5387 = vmatprep.mubr.bf16.mxu0 %v4300_v15 }
0x12b2   : > { %5348 = vmatmul.mubr.bf16.vlgmr.msra.gmra.mrb[84].mxu1 %v4297_v16  ;;  %5388 = vmatmul.mubr.bf16.vlgmr.msra.gmra.mrb[60].mxu0 %v4299_v21  ;;  %v7015_v21 = vld [vmem:[%s8324_s0] sm:$0xff] (!%p6216_p1)  }
0x1325   : > { %v6321_v22 = vpop.f32.mrb[72].mxu1  ;;  %v6343_v14 = vpop.f32.mrb[48].mxu0 }
0x1326   : > { %v6322_v24 = vpop.f32.mrb[73].mxu1  ;;  %v6344_v25 = vpop.f32.mrb[49].mxu0 }
0x1327   : > { %v6323_v27 = vadd.f32 %v6322_v24, %v6321_v22  ;;  %v6345_v28 = vadd.f32 %v6344_v25, %v6343_v14  ;;  %v6324_v29 = vpop.f32.mrb[74].mxu1  ;;  %v6346_v32 = vpop.f32.mrb[50].mxu0  ;;  %v7126_v22 = vmov (!%p6216_p1), 0.0   ;;  %v7016_v14 = vld [vmem:[%s8325_s11 + $0x8] sm:$0xff] (!%p6216_p1)   ;;  %v7018_v24 = vld [vmem:[%s8325_s11 + $0x18] sm:$0xff] (!%p6216_p1)   ;;  %v7019_v25 = vld [vmem:[%s8325_s11 + $0x20] sm:$0xff] (!%p6216_p1)  }
0x1328   : > { %v6325_v34 = vpop.f32.mrb[75].mxu1  ;;  %v6347_v35 = vpop.f32.mrb[51].mxu0  ;;  %6666 = vmatprep.subr.bf16.mxu0 (!%p6216_p1), %v7126_v22  ;;  %6682 = vmatprep.mubr.msk.bf16.mxu0 (!%p6216_p1), %vm7127_vm8, %v7126_v22  ;;  %v7022_v29 = vld [vmem:[%s8325_s11 + $0x38] sm:$0xff] (!%p6216_p1)  }
0x1329   : > { %v5110_v36 = vadd.f32 %v6323_v27, %v6085_v23  ;;  %6667 = vmatpush3.bf16.msra.mxu0 (!%p6216_p1), %v7015_v21  ;;  %v7017_v23 = vld [vmem:[%s8325_s11 + $0x10] sm:$0xff] (!%p6216_p1)   ;;  %v7020_v27 = vld [vmem:[%s8325_s11 + $0x28] sm:$0xff] (!%p6216_p1)   ;;  %v6217_v34 = vld [vmem:[%s8326_s8] ss:$0 sm:$0xff] (!%p6216_p1) }
0x132a   : > { %6668 = vmatprep.subr.bf16.mxu0 (!%p6216_p1), %v7126_v22 }
0x132b   : > { %v5150_v37 = vadd.f32 %v6345_v28, %v5110_v36  ;;  %v7021_v28 = vld [vmem:[%s8325_s11 + $0x30] sm:$0xff] (!%p6216_p1)  }
0x132d   : > { %6669 = vmatpush3.bf16.msra.mxu0 (!%p6216_p1), %v7016_v14 }
0x132e   : > { %6670 = vmatprep.subr.bf16.mxu0 (!%p6216_p1), %v7126_v22 }
0x1331   : > { %6671 = vmatpush3.bf16.msra.mxu0 (!%p6216_p1), %v7017_v23 }
0x1332   : > { %6672 = vmatprep.subr.bf16.mxu0 (!%p6216_p1), %v7126_v22 }
0x1335   : > { %6673 = vmatpush3.bf16.msra.mxu0 (!%p6216_p1), %v7018_v24 }
0x1336   : > { %6674 = vmatprep.subr.bf16.mxu0 (!%p6216_p1), %v7126_v22 }
0x1339   : > { %6675 = vmatpush3.bf16.msra.mxu0 (!%p6216_p1), %v7019_v25 }
0x133a   : > { %6676 = vmatprep.subr.bf16.mxu0 (!%p6216_p1), %v7126_v22 }
0x133d   : > { %6677 = vmatpush3.bf16.msra.mxu0 (!%p6216_p1), %v7020_v27 }
0x133e   : > { %6678 = vmatprep.subr.bf16.mxu0 (!%p6216_p1), %v7126_v22 }
0x1341   : > { %6679 = vmatpush3.bf16.msra.mxu0 (!%p6216_p1), %v7021_v28 }
0x1342   : > { %6680 = vmatprep.subr.bf16.mxu0 (!%p6216_p1), %v7126_v22 }
0x1345   : > { %v6365_v38 = vpop.f32.mrb[76].mxu1  ;;  %v6387_v39 = vpop.f32.mrb[52].mxu0  ;;  %6681 = vmatpush3.bf16.msra.mxu0 (!%p6216_p1), %v7022_v29 }
0x1346   : > { %v6366_v4 = vpop.f32.mrb[77].mxu1  ;;  %v6388_v40 = vpop.f32.mrb[53].mxu0 }
0x1347   : > { %v6367_v19 = vadd.f32 %v6366_v4, %v6365_v38  ;;  %v6389_v41 = vadd.f32 %v6388_v40, %v6387_v39  ;;  %v6368_v20 = vpop.f32.mrb[78].mxu1  ;;  %v6390_v43 = vpop.f32.mrb[54].mxu0 }
0x1348   : > { %v6369_v44 = vpop.f32.mrb[79].mxu1  ;;  %v6391_v17 = vpop.f32.mrb[55].mxu0 }
0x1349   : > { %v5190_v46 = vadd.f32 %v6367_v19, %v5150_v37 }
0x134b   : > { %v5230_v47 = vadd.f32 %v6389_v41, %v5190_v46 }
0x1365   : > { %v6409_v48 = vpop.f32.mrb[80].mxu1  ;;  %v6431_v49 = vpop.f32.mrb[56].mxu0 }
0x1366   : > { %v6410_v50 = vpop.f32.mrb[81].mxu1  ;;  %v6432_v55 = vpop.f32.mrb[57].mxu0 }
0x1367   : > { %v6411_v56 = vadd.f32 %v6410_v50, %v6409_v48  ;;  %v6433_v59 = vadd.f32 %v6432_v55, %v6431_v49  ;;  %v6412_v60 = vpop.f32.mrb[82].mxu1  ;;  %v6434_v3 = vpop.f32.mrb[58].mxu0 }
0x1368   : > { %v6413_v62 = vpop.f32.mrb[83].mxu1  ;;  %v6435_v63 = vpop.f32.mrb[59].mxu0 }
0x1369   : > { %v5270_v0 = vadd.f32 %v6411_v56, %v5230_v47 }
0x136b   : > { %v5310_v26 = vadd.f32 %v6433_v59, %v5270_v0 }
0x1385   : > { %v6453_v2 = vpop.f32.mrb[84].mxu1  ;;  %v6475_v5 = vpop.f32.mrb[60].mxu0 }
0x1386   : > { %v6454_v53 = vpop.f32.mrb[85].mxu1  ;;  %v6476_v6 = vpop.f32.mrb[61].mxu0 }
0x1387   : > { %v6455_v42 = vadd.f32 %v6454_v53, %v6453_v2  ;;  %v6477_v54 = vadd.f32 %v6476_v6, %v6475_v5  ;;  %v6456_v33 = vpop.f32.mrb[86].mxu1  ;;  %v6478_v7 = vpop.f32.mrb[62].mxu0 }
0x1388   : > { %v6457_v8 = vpop.f32.mrb[87].mxu1  ;;  %v6479_v45 = vpop.f32.mrb[63].mxu0 }
0x1389   : > { %v5350_v9 = vadd.f32 %v6455_v42, %v5310_v26 }
0x138b   : > { %v5390_v57 = vadd.f32 %v6477_v54, %v5350_v9 }
0x138d   : > { %v5395_v10 = vadd.f32 %v5390_v57, %v7804_v18  ;;  %v6215_v18 = vld [vmem:[%s1095_s13] ss:$0 sm:$0xff] }
0x138f   : > { %5396 = vadd.xlane.f32.xlu0 %v5395_v10 }
0x141c   : > { %v5397_v30 = vpop.xlane.xlu0 %5396 }
0x141d   : > { %v5398_v58 = vmul.f32 0.0078125, %v5397_v30 }
0x141f   : > { %v5399_v61 = vsub.f32 %v5395_v10, %v5398_v58 }
0x1421   : > { %v5400_v11 = vmul.f32 %v5399_v61, %v5399_v61 }
0x1423   : > { %5401 = vadd.xlane.f32.xlu1 %v5400_v11 }
0x14b0   : > { %v5402_v31 = vpop.xlane.xlu1 %5401 }
0x14b1   : > { %v5403_v12 = vmul.f32 0.0078125, %v5402_v31 }
0x14b3   : > { %v5404_v13 = vadd.f32 1e-05, %v5403_v12 }
0x14b5   : > { %7012 = vrsqrt.f32 %v5404_v13 }
0x14bf   : > { %v7013_v1 = vpop.eup %7012 }
0x14c0   : > { %v5406_v52 = vmul.f32 %v7013_v1, %v5399_v61  ;;  %5425 = sbr.rel (%p6216_p1) target bundleno = 5535 (0x159f), region = 124 }
0x14c2   : > { %v5413_v15 = vmul.f32 %v6214_v51, %v5406_v52 }
0x14c4   : > { %v5420_v16 = vadd.f32 %v6215_v18, %v5413_v15 }
0x14c6   : > { %5421 = vst [vmem:[#allocation2] sm:$0xff] %v5420_v16  ;;  %v5426_v32 = vpack.c.bf16 (!%p6216_p1), %v5420_v16, %v5420_v16 }
0x14c8   : > { %6683 = vmatmul.mubr.bf16.vlgmr.msra.gmra.mrb[0].mxu0 %v5426_v32 }
0x159b   : > { %v5532_v35 = vpop.f32.mrb[0].mxu0 }
0x159c   : > { %v5533_v36 = vadd.f32 %v6217_v34, %v5532_v35  ;;  %v6684_v37 = vpop.f32.mrb[1].mxu0 }
0x159d   : > { %v5535_v38 = vpop.f32.mrb[2].mxu0 }
0x159e   : > { %5538 = vst [vmem:[%s1009_s1] sm:$0xff] %v5533_v36  ;;  %v6685_v39 = vpop.f32.mrb[3].mxu0 }
0x159f PF: > { %s8327_s4 = sld [smem:[#allocation10_spill]]  ;;  %s8328_s20 = sld [smem:[#allocation7_spill]] }
0x15a0   : > { %s8330_s10 = sld [smem:[#allocation46_spill]]  ;;  %s5553_s6 = sshll.u32 %s1009_s1, 4  ;;  %s5554_s6 = int_to_ptr.vmem [resolvable:$true] %s5553_s6 }
0x15a1   : > { %s7023_s26 = scalar_lea.vmem %s5554_s6, 128  ;;  %s7128_s13 = smov [#allocation3]  }
0x15a2   : > { %p7024_p2 = scmp.ne.s32.totalorder %s5554_s6, %s7023_s26  ;;  %s7027_s5 = sshll.u32 %s7128_s13, 4  ;;  %s7028_s5 = int_to_ptr.vmem [resolvable:$false] %s7027_s5 }
0x15a3   : > { %s7029_s12 = scalar_lea.vmem %s7028_s5, 256  ;;  %p7030_p6 = scmp.lt.s32.totalorder %s5554_s6, %s7028_s5 }
0x15a4   : > { %p7025_p4 = pnand %p7024_p2, %p7303_p3  ;;  %p7031_p7 = scmp.lt.s32.totalorder %s7029_s12, %s7023_s26 }
0x15a5   : > { %s6227_s30 = sshll.u32 %s8327_s4, 7  ;;  %s8331_s0 = sand.u32 1, %s8328_s20  }
0x15a6   : > { %s8143_s21 = scalar_lea.hbm %s8330_s10, %s6227_s30  ;;  %s5540_s28 = scalar_lea.sflag [#allocation4], %s8331_s0 }
0x15a7   : > { %p7026_p5 = pneg %p7025_p4  ;;  %p7032_p8 = por %p7031_p7, %p7030_p6 }
0x15a9   : > { %p7033_p10 = pnand %p7032_p8, %p7026_p5 }
0x15ab   : > { %7036 = shalt.err (!%p7033_p10)
}
0x15ac   : > { %s7037_s2 = scalar_lea.hbm %s8143_s21, 128  ;;  %s7041_s15 = scalar_lea.hbm %s8330_s10, 256 }
0x15ad   : > { %p7038_p11 = scmp.ne.s32.totalorder %s8143_s21, %s7037_s2  ;;  %p7042_p0 = scmp.lt.u32.totalorder %s8143_s21, %s8330_s10 }
0x15ae   : > { %p7043_p1 = scmp.lt.u32.totalorder %s7041_s15, %s7037_s2  ;;  %p7045_p4 = scmp.lt.u32.totalorder %s7037_s2, %s8143_s21 }
0x15af   : > { %p7039_p12 = pnand %p7038_p11, %p7303_p3 }
0x15b0   : > { %p7044_p2 = por %p7043_p1, %p7042_p0 }
0x15b1   : > { %p7040_p13 = pneg %p7039_p12 }
0x15b2   : > { %p7046_p5 = por %p7045_p4, %p7044_p2 }
0x15b4   : > { %p7047_p6 = pnand %p7046_p5, %p7040_p13 }
0x15b6   : > { %7050 = shalt.err (!%p7047_p6)
}
0x15b7   : > { %6688 = dma.vmem_to_hbm [thread:$0]  (%p7303_p3), %s5554_s6, 128, %s8143_s21, %s5540_s28  }
0x15b8 PF: > { %s8332_s23 = sld [smem:[#allocation13_spill]]  ;;  %s8333_s18 = sld [smem:[#allocation6_spill]] }
0x15be   : > { %p6694_p7 = scmp.ge.s32.totalorder %s8332_s23, 2  ;;  %s5565_s22 = sand.u32 1, %s8333_s18  }
0x15bf   : > { %s5566_s24 = scalar_lea.sflag [#allocation4], %s5565_s22 }
0x15c0   : > { %p6691_p8 = pnand %p6694_p7, %p7313_p9 }
0x15c2   : > { %7084 = dma.done.wait (!%p6691_p8), %s5566_s24, 128  }
0x15c3   : > { %7086 = vsyncadd (!%p6691_p8), %s5566_s24, 4294967168  ;;  %s37_s0 = sadd.s32 1, %s8332_s23   ;;  %s8335_s5 = sld [smem:[#allocation7_spill]] }
0x15c4   : > { %p34_p10 = scmp.ge.s32.totalorder %s37_s0, 10   ;;  %s8336_s26 = sld [smem:[#allocation8_spill]] }
0x15c5   : > { %s8337_s27 = sld [smem:[#allocation18_spill]]  ;;  %s8338_s28 = sld [smem:[#allocation11_spill]] }
0x15c6   : > { %s8339_s6 = sld [smem:[#allocation12_spill]]  ;;  %s8340_s2 = sld [smem:[#allocation14_spill]] }
0x15c7   : > { %s8341_s29 = sld [smem:[#allocation16_spill]]  ;;  %36 = sbr.rel (!%p34_p10) target bundleno = 30 (0x1e), region = 222 }
0x15ce   :  { %5571 = vsyncpa [#allocation4], 1 }
0x15cf   :  { %5573 = vsyncpa [#allocation4 + $0x1], 1 }

</bundles_post_ra>
